<compile_context>
chip_gen: v6e
topology: v6e:2x2x1
jax: 0.10.0
libtpu: 0.0.40
codegen_flags: <defaults>
</compile_context>

<pallas_src>
import functools

import jax
import jax.numpy as jnp
from jax import lax
from jax.experimental import pallas as pl
from jax.experimental.pallas import tpu as pltpu


# ----------------------------------------------------------------------------
# Layout helpers (cheap plain-JAX glue, ~1x the activation size)
# ----------------------------------------------------------------------------
def _phase_split(x_nhwc):
    """(N,H,W,C) -> flattened phase-split zero-padded tensor (N, A*B+1, 4C) bf16.

    ps[n, a*B+b, (pi*2+pj)*C + c] = pad1(x)[n, 2a+pi, 2b+pj, c]
    One extra zero row keeps all four shifted windows of the conv kernel in
    bounds.  A 4x4/stride-2/pad-1 conv then becomes four contiguous
    shifted-window matmuls against (4C, Cout) weight groups.
    """
    n, h, w, c = x_nhwc.shape
    assert h % 2 == 0 and w % 2 == 0
    a, b = (h + 2) // 2, (w + 2) // 2
    xp = jnp.pad(x_nhwc, ((0, 0), (1, 1), (1, 1), (0, 0)))
    ps = (xp.reshape(n, a, 2, b, 2, c)
            .transpose(0, 1, 3, 2, 4, 5)
            .reshape(n, a * b, 4 * c))
    ps = jnp.pad(ps, ((0, 0), (0, 1), (0, 0)))
    return ps.astype(jnp.bfloat16), a, b


def _prep_weight_groups(w_hwio):
    """(4,4,Cin,Cout) HWIO -> (4, 4Cin, Cout) bf16 matching the phase layout.

    group g = ui*2+uj (window shift), K index = (pi*2+pj)*Cin + c with
    tap (ti, tj) = (2ui+pi, 2uj+pj).
    """
    cin, cout = w_hwio.shape[2], w_hwio.shape[3]
    wg = (w_hwio.reshape(2, 2, 2, 2, cin, cout)
                .transpose(0, 2, 1, 3, 4, 5)
                .reshape(4, 4 * cin, cout))
    return wg.astype(jnp.bfloat16)


def _unflatten_valid(y, n, ho, b_cols, c):
    """(N, Ho*B, C) kernel output -> (N, Ho, Wo, C) dropping the garbage col."""
    return y.reshape(n, ho, b_cols, c)[:, :, :b_cols - 1, :]


# ----------------------------------------------------------------------------
# Pallas kernels
# ----------------------------------------------------------------------------
def _conv_accumulate(x_ref, w_ref, b_cols, m_rows):
    # Four shifted contiguous windows of the flat phase tensor, one MXU dot
    # each, accumulated in f32 registers (whole K reduction inside one step).
    offs = (0, 1, b_cols, b_cols + 1)
    acc = jnp.dot(x_ref[0, 0:m_rows, :], w_ref[0],
                  preferred_element_type=jnp.float32)
    for g in range(1, 4):
        o = offs[g]
        acc = acc + jnp.dot(x_ref[0, o:o + m_rows, :], w_ref[g],
                            preferred_element_type=jnp.float32)
    return acc


def _conv4x4s2_leaky_kernel(x_ref, w_ref, o_ref, *, b_cols, m_rows):
    """conv 4x4 / stride 2 / pad 1 + LeakyReLU(0.2); bf16 out."""
    acc = _conv_accumulate(x_ref, w_ref, b_cols, m_rows)
    y = jnp.maximum(acc, 0.2 * acc)
    o_ref[0, :, :] = y.astype(o_ref.dtype)


def _conv4x4s2_stats_kernel(x_ref, w_ref, mask_ref, o_ref, s_ref, *,
                            b_cols, m_rows):
    """conv 4x4 / stride 2 / pad 1, pre-BN bf16 out + fused f32 channel stats.

    mask zeroes the (garbage) extra output column so the batch statistics are
    exact when divided by the true N*Ho*Wo count outside the kernel.
    """
    acc = _conv_accumulate(x_ref, w_ref, b_cols, m_rows)
    o_ref[0, :, :] = acc.astype(o_ref.dtype)
    av = acc * mask_ref[...]
    s_ref[0, 0:1, :] = jnp.sum(av, axis=0, keepdims=True)
    s_ref[0, 1:2, :] = jnp.sum(av * acc, axis=0, keepdims=True)


def _dot_sigmoid_kernel(x_ref, w_ref, o_ref):
    """conv5 (4x4 valid, Cout=1) as a VPU multiply + lane reduce + sigmoid."""
    x = x_ref[...].astype(jnp.float32)
    w = w_ref[...].astype(jnp.float32)
    y = jnp.sum(x * w, axis=-1, keepdims=True)
    e = jnp.exp(-jnp.abs(y))
    s = 1.0 / (1.0 + e)
    o_ref[...] = jnp.where(y >= 0.0, s, 1.0 - s)


# ----------------------------------------------------------------------------
# pallas_call wrappers
# ----------------------------------------------------------------------------
def conv4x4_s2(ps, wg, *, b_cols, ho, with_stats):
    """Run the fused conv kernel over a batch grid.

    ps: (N, A*B+1, 4Cin) bf16 phase tensor, wg: (4, 4Cin, Cout) bf16.
    Returns (N, Ho*B, Cout) bf16 [and (N, 2, Cout) f32 stats if with_stats].
    """
    n, l, kg = ps.shape
    cout = wg.shape[2]
    m = ho * b_cols
    wo = b_cols - 1
    assert l == (ho + 1) * b_cols + 1

    cost = pl.CostEstimate(
        flops=2 * n * ho * wo * (4 * kg) * cout,
        transcendentals=0,
        bytes_accessed=(ps.size + wg.size + n * m * cout) * 2)

    in_specs = [pl.BlockSpec((1, l, kg), lambda i: (i, 0, 0)),
                pl.BlockSpec((4, kg, cout), lambda i: (0, 0, 0))]
    args = [ps, wg]

    if with_stats:
        mask = (jnp.arange(m, dtype=jnp.int32) % b_cols < wo)
        mask = mask.astype(jnp.float32).reshape(m, 1)
        in_specs.append(pl.BlockSpec((m, 1), lambda i: (0, 0)))
        args.append(mask)
        kernel = functools.partial(_conv4x4s2_stats_kernel,
                                   b_cols=b_cols, m_rows=m)
        out_shape = (jax.ShapeDtypeStruct((n, m, cout), jnp.bfloat16),
                     jax.ShapeDtypeStruct((n, 2, cout), jnp.float32))
        out_specs = (pl.BlockSpec((1, m, cout), lambda i: (i, 0, 0)),
                     pl.BlockSpec((1, 2, cout), lambda i: (i, 0, 0)))
    else:
        kernel = functools.partial(_conv4x4s2_leaky_kernel,
                                   b_cols=b_cols, m_rows=m)
        out_shape = jax.ShapeDtypeStruct((n, m, cout), jnp.bfloat16)
        out_specs = pl.BlockSpec((1, m, cout), lambda i: (i, 0, 0))

    return pl.pallas_call(
        kernel,
        out_shape=out_shape,
        grid_spec=pltpu.PrefetchScalarGridSpec(
            num_scalar_prefetch=0,
            grid=(n,),
            in_specs=in_specs,
            out_specs=out_specs),
        compiler_params=pltpu.CompilerParams(
            dimension_semantics=("parallel",)),
        cost_estimate=cost,
    )(*args)


def dot_sigmoid(x, w):
    """x: (N, K) bf16, w: (1, K) bf16 -> sigmoid(x @ w.T) as (N, 1) f32."""
    n, k = x.shape
    return pl.pallas_call(
        _dot_sigmoid_kernel,
        out_shape=jax.ShapeDtypeStruct((n, 1), jnp.float32),
        grid_spec=pltpu.PrefetchScalarGridSpec(
            num_scalar_prefetch=0,
            grid=(1,),
            in_specs=[pl.BlockSpec((n, k), lambda i: (0, 0)),
                      pl.BlockSpec((1, k), lambda i: (0, 0))],
            out_specs=pl.BlockSpec((n, 1), lambda i: (0, 0))),
        compiler_params=pltpu.CompilerParams(
            dimension_semantics=("arbitrary",)),
        cost_estimate=pl.CostEstimate(flops=2 * n * k, transcendentals=n,
                                      bytes_accessed=(n * k + k) * 2 + n * 4),
    )(x, w)


# ----------------------------------------------------------------------------
# BatchNorm (training-mode batch stats) from the fused kernel statistics
# ----------------------------------------------------------------------------
def _bn_scale_shift(stats, gamma, beta, count, eps=1e-5):
    tot = jnp.sum(stats.astype(jnp.float32), axis=0)          # (2, C)
    mean = tot[0] / count
    var = jnp.maximum(tot[1] / count - mean * mean, 0.0)
    inv = lax.rsqrt(var + eps)
    scale = gamma.reshape(-1).astype(jnp.float32) * inv
    shift = beta.reshape(-1).astype(jnp.float32) - mean * scale
    return scale, shift


# ----------------------------------------------------------------------------
# Forward pass (mirrors CNN.forward)
# ----------------------------------------------------------------------------
def cnn_forward(x_nchw, p):
    n = x_nchw.shape[0]
    x = jnp.transpose(x_nchw, (0, 2, 3, 1)).astype(jnp.float32)      # NHWC

    # conv1 + LeakyReLU (no BN) ------------------------------------------------
    ps, a1, b1 = _phase_split(x)
    ho1, c1 = a1 - 1, p["w1"].shape[3]
    y1 = conv4x4_s2(ps, _prep_weight_groups(p["w1"]),
                    b_cols=b1, ho=ho1, with_stats=False)
    act = _unflatten_valid(y1, n, ho1, b1, c1)                        # bf16

    # conv{2,3,4} + BN + LeakyReLU --------------------------------------------
    # TODO(synk): the BN-affine + pad + phase-split glue is a single fused
    # plain-JAX pass per layer over the (small) activation; it could be folded
    # into the consumer kernel with per-channel neutral-value padding.
    def conv_bn_block(act, w, gamma, beta):
        ps, a, b = _phase_split(act)
        ho, cout = a - 1, w.shape[3]
        y, stats = conv4x4_s2(ps, _prep_weight_groups(w),
                              b_cols=b, ho=ho, with_stats=True)
        scale, shift = _bn_scale_shift(stats, gamma, beta, n * ho * (b - 1))
        z = _unflatten_valid(y, n, ho, b, cout).astype(jnp.float32)
        z = z * scale + shift
        return jnp.maximum(z, 0.2 * z)                                # f32

    act = conv_bn_block(act, p["w2"], p["g2"], p["b2"])
    act = conv_bn_block(act, p["w3"], p["g3"], p["b3"])
    act = conv_bn_block(act, p["w4"], p["g4"], p["b4"])               # (N,4,4,8ndf)

    # conv5 (4x4 valid, Cout=1) + sigmoid --------------------------------------
    x5 = act.reshape(n, -1).astype(jnp.bfloat16)                      # (N, 16*8ndf)
    w5 = p["w5"].reshape(1, -1).astype(jnp.bfloat16)                  # (1, 16*8ndf)
    out = dot_sigmoid(x5, w5)                                         # (N, 1) f32
    return out.reshape(n, 1, 1, 1)


# ----------------------------------------------------------------------------
# Parameters (deterministic synthetic init, DCGAN-style N(0, 0.02))
# ----------------------------------------------------------------------------
def init_params(key, nc, ndf):
    ks = jax.random.split(key, 11)

    def conv_w(k, cin, cout):
        return (0.02 * jax.random.normal(k, (4, 4, cin, cout))).astype(jnp.float32)

    return {
        "w1": conv_w(ks[0], nc, ndf),
        "w2": conv_w(ks[1], ndf, ndf * 2),
        "w3": conv_w(ks[2], ndf * 2, ndf * 4),
        "w4": conv_w(ks[3], ndf * 4, ndf * 8),
        "w5": conv_w(ks[4], ndf * 8, 1),
        "g2": 1.0 + 0.1 * jax.random.normal(ks[5], (ndf * 2,), jnp.float32),
        "b2": 0.1 * jax.random.normal(ks[6], (ndf * 2,), jnp.float32),
        "g3": 1.0 + 0.1 * jax.random.normal(ks[7], (ndf * 4,), jnp.float32),
        "b3": 0.1 * jax.random.normal(ks[8], (ndf * 4,), jnp.float32),
        "g4": 1.0 + 0.1 * jax.random.normal(ks[9], (ndf * 8,), jnp.float32),
        "b4": 0.1 * jax.random.normal(ks[10], (ndf * 8,), jnp.float32),
    }


# ----------------------------------------------------------------------------
# Pure-JAX reference with the same mixed-precision policy
# (bf16 conv inputs, f32 accumulation / batch stats, bf16 activation storage)
# ----------------------------------------------------------------------------
def cnn_forward_ref(x_nchw, p):
    bf = jnp.bfloat16

    def conv(x, w, s, pad):
        return lax.conv_general_dilated(
            x.astype(bf), w.astype(bf), (s, s), [(pad, pad), (pad, pad)],
            dimension_numbers=("NHWC", "HWIO", "NHWC"),
            preferred_element_type=jnp.float32)

    def leaky(v):
        return jnp.maximum(v, 0.2 * v)

    def bn(y, g, b):
        mean = jnp.mean(y, axis=(0, 1, 2))
        var = jnp.maximum(jnp.mean(y * y, axis=(0, 1, 2)) - mean * mean, 0.0)
        inv = lax.rsqrt(var + 1e-5)
        scale = g.reshape(-1) * inv
        shift = b.reshape(-1) - mean * scale
        yq = y.astype(bf).astype(jnp.float32)      # kernel stores pre-BN as bf16
        return yq * scale + shift

    x = jnp.transpose(x_nchw, (0, 2, 3, 1)).astype(jnp.float32)
    x = leaky(conv(x, p["w1"], 2, 1))
    x = leaky(bn(conv(x, p["w2"], 2, 1), p["g2"], p["b2"]))
    x = leaky(bn(conv(x, p["w3"], 2, 1), p["g3"], p["b3"]))
    x = leaky(bn(conv(x, p["w4"], 2, 1), p["g4"], p["b4"]))
    x = jax.nn.sigmoid(conv(x, p["w5"], 1, 0))
    return jnp.transpose(x, (0, 3, 1, 2))


# ----------------------------------------------------------------------------
if __name__ == "__main__":
    # DCGAN discriminator needs 64x64 input to reach 1x1 at conv5.
    N, NC, NDF, S = 2, 3, 8, 64

    key = jax.random.PRNGKey(0)
    kx, kp = jax.random.split(key)
    x = jax.random.normal(kx, (N, NC, S, S), jnp.float32)
    params = init_params(kp, NC, NDF)

    out = jax.block_until_ready(jax.jit(cnn_forward)(x, params))

    assert out.shape == (N, 1, 1, 1), out.shape
    assert bool(jnp.all(jnp.isfinite(out)))

    ref = cnn_forward_ref(x, params)
    err = float(jnp.max(jnp.abs(out - ref)))
    assert err < 5e-3, f"mismatch vs JAX reference: {err}"

    print("KERNEL_OK")
</pallas_src>

<mosaic_0001>
module attributes {stable_mosaic.version = 11 : i64} {
  func.func @_conv4x4s2_leaky_kernel(%arg0: i32, %arg1: memref<1x1090x12xbf16, #tpu.memory_space<vmem>>, %arg2: memref<4x12x8xbf16, #tpu.memory_space<vmem>>, %arg3: memref<1x1056x8xbf16, #tpu.memory_space<vmem>>) attributes {dimension_semantics = [#tpu.dimension_semantics<parallel>], iteration_bounds = array<i64: 2>, scalar_prefetch = 0 : i64, scratch_operands = 0 : i64, tpu.core_type = #tpu.core_type<tc>, window_params = [{transform_indices = @transform_0, window_bounds = array<i64: 1, 1090, 12>}, {pipeline_mode = #tpu.pipeline_mode<synchronous>, transform_indices = @transform_1, window_bounds = array<i64: 4, 12, 8>}, {transform_indices = @transform_2, window_bounds = array<i64: 1, 1056, 8>}]} {
    %c0 = arith.constant 0 : index
    %c0_0 = arith.constant 0 : index
    %c0_1 = arith.constant 0 : index
    %0 = vector.load %arg1[%c0, %c0_0, %c0_1] : memref<1x1090x12xbf16, #tpu.memory_space<vmem>>, vector<1x1056x12xbf16>
    %1 = vector.shape_cast %0 : vector<1x1056x12xbf16> to vector<1056x12xbf16>
    %c0_2 = arith.constant 0 : index
    %c0_3 = arith.constant 0 : index
    %c0_4 = arith.constant 0 : index
    %2 = vector.load %arg2[%c0_2, %c0_3, %c0_4] : memref<4x12x8xbf16, #tpu.memory_space<vmem>>, vector<1x12x8xbf16>
    %3 = vector.shape_cast %2 : vector<1x12x8xbf16> to vector<12x8xbf16>
    %cst = arith.constant dense<0.000000e+00> : vector<1056x8xf32>
    %4 = tpu.matmul %1, %3, %cst {dimension_numbers = #tpu.dot_dimension_numbers<[1], [0], [0], [1], [0, 0, 1, 1], [], []>} : vector<1056x12xbf16>, vector<12x8xbf16>, vector<1056x8xf32> -> vector<1056x8xf32>
    %c0_5 = arith.constant 0 : index
    %c1 = arith.constant 1 : index
    %c0_6 = arith.constant 0 : index
    %5 = vector.load %arg1[%c0_5, %c1, %c0_6] : memref<1x1090x12xbf16, #tpu.memory_space<vmem>>, vector<1x1056x12xbf16>
    %6 = vector.shape_cast %5 : vector<1x1056x12xbf16> to vector<1056x12xbf16>
    %c1_7 = arith.constant 1 : index
    %c0_8 = arith.constant 0 : index
    %c0_9 = arith.constant 0 : index
    %7 = vector.load %arg2[%c1_7, %c0_8, %c0_9] : memref<4x12x8xbf16, #tpu.memory_space<vmem>>, vector<1x12x8xbf16>
    %8 = vector.shape_cast %7 : vector<1x12x8xbf16> to vector<12x8xbf16>
    %cst_10 = arith.constant dense<0.000000e+00> : vector<1056x8xf32>
    %9 = tpu.matmul %6, %8, %cst_10 {dimension_numbers = #tpu.dot_dimension_numbers<[1], [0], [0], [1], [0, 0, 1, 1], [], []>} : vector<1056x12xbf16>, vector<12x8xbf16>, vector<1056x8xf32> -> vector<1056x8xf32>
    %10 = arith.addf %4, %9 : vector<1056x8xf32>
    %c0_11 = arith.constant 0 : index
    %c33 = arith.constant 33 : index
    %c0_12 = arith.constant 0 : index
    %11 = vector.load %arg1[%c0_11, %c33, %c0_12] : memref<1x1090x12xbf16, #tpu.memory_space<vmem>>, vector<1x1056x12xbf16>
    %12 = vector.shape_cast %11 : vector<1x1056x12xbf16> to vector<1056x12xbf16>
    %c2 = arith.constant 2 : index
    %c0_13 = arith.constant 0 : index
    %c0_14 = arith.constant 0 : index
    %13 = vector.load %arg2[%c2, %c0_13, %c0_14] : memref<4x12x8xbf16, #tpu.memory_space<vmem>>, vector<1x12x8xbf16>
    %14 = vector.shape_cast %13 : vector<1x12x8xbf16> to vector<12x8xbf16>
    %cst_15 = arith.constant dense<0.000000e+00> : vector<1056x8xf32>
    %15 = tpu.matmul %12, %14, %cst_15 {dimension_numbers = #tpu.dot_dimension_numbers<[1], [0], [0], [1], [0, 0, 1, 1], [], []>} : vector<1056x12xbf16>, vector<12x8xbf16>, vector<1056x8xf32> -> vector<1056x8xf32>
    %16 = arith.addf %10, %15 : vector<1056x8xf32>
    %c0_16 = arith.constant 0 : index
    %c34 = arith.constant 34 : index
    %c0_17 = arith.constant 0 : index
    %17 = vector.load %arg1[%c0_16, %c34, %c0_17] : memref<1x1090x12xbf16, #tpu.memory_space<vmem>>, vector<1x1056x12xbf16>
    %18 = vector.shape_cast %17 : vector<1x1056x12xbf16> to vector<1056x12xbf16>
    %c3 = arith.constant 3 : index
    %c0_18 = arith.constant 0 : index
    %c0_19 = arith.constant 0 : index
    %19 = vector.load %arg2[%c3, %c0_18, %c0_19] : memref<4x12x8xbf16, #tpu.memory_space<vmem>>, vector<1x12x8xbf16>
    %20 = vector.shape_cast %19 : vector<1x12x8xbf16> to vector<12x8xbf16>
    %cst_20 = arith.constant dense<0.000000e+00> : vector<1056x8xf32>
    %21 = tpu.matmul %18, %20, %cst_20 {dimension_numbers = #tpu.dot_dimension_numbers<[1], [0], [0], [1], [0, 0, 1, 1], [], []>} : vector<1056x12xbf16>, vector<12x8xbf16>, vector<1056x8xf32> -> vector<1056x8xf32>
    %22 = arith.addf %16, %21 : vector<1056x8xf32>
    %cst_21 = arith.constant 2.000000e-01 : f32
    %23 = vector.broadcast %cst_21 : f32 to vector<1056x8xf32>
    %24 = arith.mulf %23, %22 : vector<1056x8xf32>
    %25 = arith.maximumf %22, %24 : vector<1056x8xf32>
    %26 = arith.truncf %25 : vector<1056x8xf32> to vector<1056x8xbf16>
    %c0_22 = arith.constant 0 : index
    %c0_23 = arith.constant 0 : index
    %c0_24 = arith.constant 0 : index
    %27 = vector.load %arg3[%c0_22, %c0_23, %c0_24] : memref<1x1056x8xbf16, #tpu.memory_space<vmem>>, vector<1x1056x8xbf16>
    %28 = vector.shape_cast %27 : vector<1x1056x8xbf16> to vector<1056x8xbf16>
    %29 = vector.shape_cast %26 : vector<1056x8xbf16> to vector<1x1056x8xbf16>
    tpu.vector_store %arg3[%c0_22, %c0_23, %c0_24], %29 {strides = array<i32>} : memref<1x1056x8xbf16, #tpu.memory_space<vmem>>, vector<1x1056x8xbf16>,
    return
  }
  func.func @transform_0(%arg0: i32) -> (i32, i32, i32) {
    %c0_i32 = arith.constant 0 : i32
    %c0_i32_0 = arith.constant 0 : i32
    %c0_i32_1 = arith.constant 0 : i32
    return %arg0, %c0_i32, %c0_i32_0 : i32, i32, i32
  }
  func.func @transform_1(%arg0: i32) -> (i32, i32, i32) {
    %c0_i32 = arith.constant 0 : i32
    %c0_i32_0 = arith.constant 0 : i32
    %c0_i32_1 = arith.constant 0 : i32
    %c0_i32_2 = arith.constant 0 : i32
    return %c0_i32, %c0_i32_0, %c0_i32_1 : i32, i32, i32
  }
  func.func @transform_2(%arg0: i32) -> (i32, i32, i32) {
    %c0_i32 = arith.constant 0 : i32
    %c0_i32_0 = arith.constant 0 : i32
    %c0_i32_1 = arith.constant 0 : i32
    return %arg0, %c0_i32, %c0_i32_0 : i32, i32, i32
  }
}

module attributes {stable_mosaic.version = 11 : i64} {
  func.func @_conv4x4s2_stats_kernel(%arg0: i32, %arg1: memref<1x290x32xbf16, #tpu.memory_space<vmem>>, %arg2: memref<4x32x16xbf16, #tpu.memory_space<vmem>>, %arg3: memref<272x1xf32, #tpu.memory_space<vmem>>, %arg4: memref<1x272x16xbf16, #tpu.memory_space<vmem>>, %arg5: memref<1x2x16xf32, #tpu.memory_space<vmem>>) attributes {dimension_semantics = [#tpu.dimension_semantics<parallel>], iteration_bounds = array<i64: 2>, scalar_prefetch = 0 : i64, scratch_operands = 0 : i64, tpu.core_type = #tpu.core_type<tc>, window_params = [{transform_indices = @transform_0, window_bounds = array<i64: 1, 290, 32>}, {pipeline_mode = #tpu.pipeline_mode<synchronous>, transform_indices = @transform_1, window_bounds = array<i64: 4, 32, 16>}, {pipeline_mode = #tpu.pipeline_mode<synchronous>, transform_indices = @transform_2, window_bounds = array<i64: 272, 1>}, {transform_indices = @transform_3, window_bounds = array<i64: 1, 272, 16>}, {transform_indices = @transform_4, window_bounds = array<i64: 1, 2, 16>}]} {
    %c0 = arith.constant 0 : index
    %c0_0 = arith.constant 0 : index
    %c0_1 = arith.constant 0 : index
    %0 = vector.load %arg1[%c0, %c0_0, %c0_1] : memref<1x290x32xbf16, #tpu.memory_space<vmem>>, vector<1x272x32xbf16>
    %1 = vector.shape_cast %0 : vector<1x272x32xbf16> to vector<272x32xbf16>
    %c0_2 = arith.constant 0 : index
    %c0_3 = arith.constant 0 : index
    %c0_4 = arith.constant 0 : index
    %2 = vector.load %arg2[%c0_2, %c0_3, %c0_4] : memref<4x32x16xbf16, #tpu.memory_space<vmem>>, vector<1x32x16xbf16>
    %3 = vector.shape_cast %2 : vector<1x32x16xbf16> to vector<32x16xbf16>
    %cst = arith.constant dense<0.000000e+00> : vector<272x16xf32>
    %4 = tpu.matmul %1, %3, %cst {dimension_numbers = #tpu.dot_dimension_numbers<[1], [0], [0], [1], [0, 0, 1, 1], [], []>} : vector<272x32xbf16>, vector<32x16xbf16>, vector<272x16xf32> -> vector<272x16xf32>
    %c0_5 = arith.constant 0 : index
    %c1 = arith.constant 1 : index
    %c0_6 = arith.constant 0 : index
    %5 = vector.load %arg1[%c0_5, %c1, %c0_6] : memref<1x290x32xbf16, #tpu.memory_space<vmem>>, vector<1x272x32xbf16>
    %6 = vector.shape_cast %5 : vector<1x272x32xbf16> to vector<272x32xbf16>
    %c1_7 = arith.constant 1 : index
    %c0_8 = arith.constant 0 : index
    %c0_9 = arith.constant 0 : index
    %7 = vector.load %arg2[%c1_7, %c0_8, %c0_9] : memref<4x32x16xbf16, #tpu.memory_space<vmem>>, vector<1x32x16xbf16>
    %8 = vector.shape_cast %7 : vector<1x32x16xbf16> to vector<32x16xbf16>
    %cst_10 = arith.constant dense<0.000000e+00> : vector<272x16xf32>
    %9 = tpu.matmul %6, %8, %cst_10 {dimension_numbers = #tpu.dot_dimension_numbers<[1], [0], [0], [1], [0, 0, 1, 1], [], []>} : vector<272x32xbf16>, vector<32x16xbf16>, vector<272x16xf32> -> vector<272x16xf32>
    %10 = arith.addf %4, %9 : vector<272x16xf32>
    %c0_11 = arith.constant 0 : index
    %c17 = arith.constant 17 : index
    %c0_12 = arith.constant 0 : index
    %11 = vector.load %arg1[%c0_11, %c17, %c0_12] : memref<1x290x32xbf16, #tpu.memory_space<vmem>>, vector<1x272x32xbf16>
    %12 = vector.shape_cast %11 : vector<1x272x32xbf16> to vector<272x32xbf16>
    %c2 = arith.constant 2 : index
    %c0_13 = arith.constant 0 : index
    %c0_14 = arith.constant 0 : index
    %13 = vector.load %arg2[%c2, %c0_13, %c0_14] : memref<4x32x16xbf16, #tpu.memory_space<vmem>>, vector<1x32x16xbf16>
    %14 = vector.shape_cast %13 : vector<1x32x16xbf16> to vector<32x16xbf16>
    %cst_15 = arith.constant dense<0.000000e+00> : vector<272x16xf32>
    %15 = tpu.matmul %12, %14, %cst_15 {dimension_numbers = #tpu.dot_dimension_numbers<[1], [0], [0], [1], [0, 0, 1, 1], [], []>} : vector<272x32xbf16>, vector<32x16xbf16>, vector<272x16xf32> -> vector<272x16xf32>
    %16 = arith.addf %10, %15 : vector<272x16xf32>
    %c0_16 = arith.constant 0 : index
    %c18 = arith.constant 18 : index
    %c0_17 = arith.constant 0 : index
    %17 = vector.load %arg1[%c0_16, %c18, %c0_17] : memref<1x290x32xbf16, #tpu.memory_space<vmem>>, vector<1x272x32xbf16>
    %18 = vector.shape_cast %17 : vector<1x272x32xbf16> to vector<272x32xbf16>
    %c3 = arith.constant 3 : index
    %c0_18 = arith.constant 0 : index
    %c0_19 = arith.constant 0 : index
    %19 = vector.load %arg2[%c3, %c0_18, %c0_19] : memref<4x32x16xbf16, #tpu.memory_space<vmem>>, vector<1x32x16xbf16>
    %20 = vector.shape_cast %19 : vector<1x32x16xbf16> to vector<32x16xbf16>
    %cst_20 = arith.constant dense<0.000000e+00> : vector<272x16xf32>
    %21 = tpu.matmul %18, %20, %cst_20 {dimension_numbers = #tpu.dot_dimension_numbers<[1], [0], [0], [1], [0, 0, 1, 1], [], []>} : vector<272x32xbf16>, vector<32x16xbf16>, vector<272x16xf32> -> vector<272x16xf32>
    %22 = arith.addf %16, %21 : vector<272x16xf32>
    %23 = arith.truncf %22 : vector<272x16xf32> to vector<272x16xbf16>
    %c0_21 = arith.constant 0 : index
    %c0_22 = arith.constant 0 : index
    %c0_23 = arith.constant 0 : index
    %24 = vector.load %arg4[%c0_21, %c0_22, %c0_23] : memref<1x272x16xbf16, #tpu.memory_space<vmem>>, vector<1x272x16xbf16>
    %25 = vector.shape_cast %24 : vector<1x272x16xbf16> to vector<272x16xbf16>
    %26 = vector.shape_cast %23 : vector<272x16xbf16> to vector<1x272x16xbf16>
    tpu.vector_store %arg4[%c0_21, %c0_22, %c0_23], %26 {strides = array<i32>} : memref<1x272x16xbf16, #tpu.memory_space<vmem>>, vector<1x272x16xbf16>,
    %c0_24 = arith.constant 0 : index
    %c0_25 = arith.constant 0 : index
    %27 = vector.load %arg3[%c0_24, %c0_25] : memref<272x1xf32, #tpu.memory_space<vmem>>, vector<272x1xf32>
    %28 = vector.broadcast %27 : vector<272x1xf32> to vector<272x16xf32>
    %29 = arith.mulf %22, %28 : vector<272x16xf32>
    %cst_26 = arith.constant dense<0.000000e+00> : vector<16xf32>
    %30 = vector.multi_reduction <add>, %29, %cst_26 [0] : vector<272x16xf32> to vector<16xf32>
    %31 = vector.shape_cast %30 : vector<16xf32> to vector<1x16xf32>
    %c0_27 = arith.constant 0 : index
    %c0_28 = arith.constant 0 : index
    %c0_29 = arith.constant 0 : index
    %32 = vector.load %arg5[%c0_27, %c0_28, %c0_29] : memref<1x2x16xf32, #tpu.memory_space<vmem>>, vector<1x1x16xf32>
    %33 = vector.shape_cast %32 : vector<1x1x16xf32> to vector<1x16xf32>
    %34 = vector.shape_cast %31 : vector<1x16xf32> to vector<1x1x16xf32>
    tpu.vector_store %arg5[%c0_27, %c0_28, %c0_29], %34 {strides = array<i32>} : memref<1x2x16xf32, #tpu.memory_space<vmem>>, vector<1x1x16xf32>,
    %35 = arith.mulf %29, %22 : vector<272x16xf32>
    %cst_30 = arith.constant dense<0.000000e+00> : vector<16xf32>
    %36 = vector.multi_reduction <add>, %35, %cst_30 [0] : vector<272x16xf32> to vector<16xf32>
    %37 = vector.shape_cast %36 : vector<16xf32> to vector<1x16xf32>
    %c0_31 = arith.constant 0 : index
    %c1_32 = arith.constant 1 : index
    %c0_33 = arith.constant 0 : index
    %38 = vector.load %arg5[%c0_31, %c1_32, %c0_33] : memref<1x2x16xf32, #tpu.memory_space<vmem>>, vector<1x1x16xf32>
    %39 = vector.shape_cast %38 : vector<1x1x16xf32> to vector<1x16xf32>
    %40 = vector.shape_cast %37 : vector<1x16xf32> to vector<1x1x16xf32>
    tpu.vector_store %arg5[%c0_31, %c1_32, %c0_33], %40 {strides = array<i32>} : memref<1x2x16xf32, #tpu.memory_space<vmem>>, vector<1x1x16xf32>,
    return
  }
  func.func @transform_0(%arg0: i32) -> (i32, i32, i32) {
    %c0_i32 = arith.constant 0 : i32
    %c0_i32_0 = arith.constant 0 : i32
    %c0_i32_1 = arith.constant 0 : i32
    return %arg0, %c0_i32, %c0_i32_0 : i32, i32, i32
  }
  func.func @transform_1(%arg0: i32) -> (i32, i32, i32) {
    %c0_i32 = arith.constant 0 : i32
    %c0_i32_0 = arith.constant 0 : i32
    %c0_i32_1 = arith.constant 0 : i32
    %c0_i32_2 = arith.constant 0 : i32
    return %c0_i32, %c0_i32_0, %c0_i32_1 : i32, i32, i32
  }
  func.func @transform_2(%arg0: i32) -> (i32, i32) {
    %c0_i32 = arith.constant 0 : i32
    %c0_i32_0 = arith.constant 0 : i32
    %c0_i32_1 = arith.constant 0 : i32
    return %c0_i32, %c0_i32_0 : i32, i32
  }
  func.func @transform_3(%arg0: i32) -> (i32, i32, i32) {
    %c0_i32 = arith.constant 0 : i32
    %c0_i32_0 = arith.constant 0 : i32
    %c0_i32_1 = arith.constant 0 : i32
    return %arg0, %c0_i32, %c0_i32_0 : i32, i32, i32
  }
  func.func @transform_4(%arg0: i32) -> (i32, i32, i32) {
    %c0_i32 = arith.constant 0 : i32
    %c0_i32_0 = arith.constant 0 : i32
    %c0_i32_1 = arith.constant 0 : i32
    return %arg0, %c0_i32, %c0_i32_0 : i32, i32, i32
  }
}

module attributes {stable_mosaic.version = 11 : i64} {
  func.func @_conv4x4s2_stats_kernel(%arg0: i32, %arg1: memref<1x82x64xbf16, #tpu.memory_space<vmem>>, %arg2: memref<4x64x32xbf16, #tpu.memory_space<vmem>>, %arg3: memref<72x1xf32, #tpu.memory_space<vmem>>, %arg4: memref<1x72x32xbf16, #tpu.memory_space<vmem>>, %arg5: memref<1x2x32xf32, #tpu.memory_space<vmem>>) attributes {dimension_semantics = [#tpu.dimension_semantics<parallel>], iteration_bounds = array<i64: 2>, scalar_prefetch = 0 : i64, scratch_operands = 0 : i64, tpu.core_type = #tpu.core_type<tc>, window_params = [{transform_indices = @transform_0, window_bounds = array<i64: 1, 82, 64>}, {pipeline_mode = #tpu.pipeline_mode<synchronous>, transform_indices = @transform_1, window_bounds = array<i64: 4, 64, 32>}, {pipeline_mode = #tpu.pipeline_mode<synchronous>, transform_indices = @transform_2, window_bounds = array<i64: 72, 1>}, {transform_indices = @transform_3, window_bounds = array<i64: 1, 72, 32>}, {transform_indices = @transform_4, window_bounds = array<i64: 1, 2, 32>}]} {
    %c0 = arith.constant 0 : index
    %c0_0 = arith.constant 0 : index
    %c0_1 = arith.constant 0 : index
    %0 = vector.load %arg1[%c0, %c0_0, %c0_1] : memref<1x82x64xbf16, #tpu.memory_space<vmem>>, vector<1x72x64xbf16>
    %1 = vector.shape_cast %0 : vector<1x72x64xbf16> to vector<72x64xbf16>
    %c0_2 = arith.constant 0 : index
    %c0_3 = arith.constant 0 : index
    %c0_4 = arith.constant 0 : index
    %2 = vector.load %arg2[%c0_2, %c0_3, %c0_4] : memref<4x64x32xbf16, #tpu.memory_space<vmem>>, vector<1x64x32xbf16>
    %3 = vector.shape_cast %2 : vector<1x64x32xbf16> to vector<64x32xbf16>
    %cst = arith.constant dense<0.000000e+00> : vector<72x32xf32>
    %4 = tpu.matmul %1, %3, %cst {dimension_numbers = #tpu.dot_dimension_numbers<[1], [0], [0], [1], [0, 0, 1, 1], [], []>} : vector<72x64xbf16>, vector<64x32xbf16>, vector<72x32xf32> -> vector<72x32xf32>
    %c0_5 = arith.constant 0 : index
    %c1 = arith.constant 1 : index
    %c0_6 = arith.constant 0 : index
    %5 = vector.load %arg1[%c0_5, %c1, %c0_6] : memref<1x82x64xbf16, #tpu.memory_space<vmem>>, vector<1x72x64xbf16>
    %6 = vector.shape_cast %5 : vector<1x72x64xbf16> to vector<72x64xbf16>
    %c1_7 = arith.constant 1 : index
    %c0_8 = arith.constant 0 : index
    %c0_9 = arith.constant 0 : index
    %7 = vector.load %arg2[%c1_7, %c0_8, %c0_9] : memref<4x64x32xbf16, #tpu.memory_space<vmem>>, vector<1x64x32xbf16>
    %8 = vector.shape_cast %7 : vector<1x64x32xbf16> to vector<64x32xbf16>
    %cst_10 = arith.constant dense<0.000000e+00> : vector<72x32xf32>
    %9 = tpu.matmul %6, %8, %cst_10 {dimension_numbers = #tpu.dot_dimension_numbers<[1], [0], [0], [1], [0, 0, 1, 1], [], []>} : vector<72x64xbf16>, vector<64x32xbf16>, vector<72x32xf32> -> vector<72x32xf32>
    %10 = arith.addf %4, %9 : vector<72x32xf32>
    %c0_11 = arith.constant 0 : index
    %c9 = arith.constant 9 : index
    %c0_12 = arith.constant 0 : index
    %11 = vector.load %arg1[%c0_11, %c9, %c0_12] : memref<1x82x64xbf16, #tpu.memory_space<vmem>>, vector<1x72x64xbf16>
    %12 = vector.shape_cast %11 : vector<1x72x64xbf16> to vector<72x64xbf16>
    %c2 = arith.constant 2 : index
    %c0_13 = arith.constant 0 : index
    %c0_14 = arith.constant 0 : index
    %13 = vector.load %arg2[%c2, %c0_13, %c0_14] : memref<4x64x32xbf16, #tpu.memory_space<vmem>>, vector<1x64x32xbf16>
    %14 = vector.shape_cast %13 : vector<1x64x32xbf16> to vector<64x32xbf16>
    %cst_15 = arith.constant dense<0.000000e+00> : vector<72x32xf32>
    %15 = tpu.matmul %12, %14, %cst_15 {dimension_numbers = #tpu.dot_dimension_numbers<[1], [0], [0], [1], [0, 0, 1, 1], [], []>} : vector<72x64xbf16>, vector<64x32xbf16>, vector<72x32xf32> -> vector<72x32xf32>
    %16 = arith.addf %10, %15 : vector<72x32xf32>
    %c0_16 = arith.constant 0 : index
    %c10 = arith.constant 10 : index
    %c0_17 = arith.constant 0 : index
    %17 = vector.load %arg1[%c0_16, %c10, %c0_17] : memref<1x82x64xbf16, #tpu.memory_space<vmem>>, vector<1x72x64xbf16>
    %18 = vector.shape_cast %17 : vector<1x72x64xbf16> to vector<72x64xbf16>
    %c3 = arith.constant 3 : index
    %c0_18 = arith.constant 0 : index
    %c0_19 = arith.constant 0 : index
    %19 = vector.load %arg2[%c3, %c0_18, %c0_19] : memref<4x64x32xbf16, #tpu.memory_space<vmem>>, vector<1x64x32xbf16>
    %20 = vector.shape_cast %19 : vector<1x64x32xbf16> to vector<64x32xbf16>
    %cst_20 = arith.constant dense<0.000000e+00> : vector<72x32xf32>
    %21 = tpu.matmul %18, %20, %cst_20 {dimension_numbers = #tpu.dot_dimension_numbers<[1], [0], [0], [1], [0, 0, 1, 1], [], []>} : vector<72x64xbf16>, vector<64x32xbf16>, vector<72x32xf32> -> vector<72x32xf32>
    %22 = arith.addf %16, %21 : vector<72x32xf32>
    %23 = arith.truncf %22 : vector<72x32xf32> to vector<72x32xbf16>
    %c0_21 = arith.constant 0 : index
    %c0_22 = arith.constant 0 : index
    %c0_23 = arith.constant 0 : index
    %24 = vector.load %arg4[%c0_21, %c0_22, %c0_23] : memref<1x72x32xbf16, #tpu.memory_space<vmem>>, vector<1x72x32xbf16>
    %25 = vector.shape_cast %24 : vector<1x72x32xbf16> to vector<72x32xbf16>
    %26 = vector.shape_cast %23 : vector<72x32xbf16> to vector<1x72x32xbf16>
    tpu.vector_store %arg4[%c0_21, %c0_22, %c0_23], %26 {strides = array<i32>} : memref<1x72x32xbf16, #tpu.memory_space<vmem>>, vector<1x72x32xbf16>,
    %c0_24 = arith.constant 0 : index
    %c0_25 = arith.constant 0 : index
    %27 = vector.load %arg3[%c0_24, %c0_25] : memref<72x1xf32, #tpu.memory_space<vmem>>, vector<72x1xf32>
    %28 = vector.broadcast %27 : vector<72x1xf32> to vector<72x32xf32>
    %29 = arith.mulf %22, %28 : vector<72x32xf32>
    %cst_26 = arith.constant dense<0.000000e+00> : vector<32xf32>
    %30 = vector.multi_reduction <add>, %29, %cst_26 [0] : vector<72x32xf32> to vector<32xf32>
    %31 = vector.shape_cast %30 : vector<32xf32> to vector<1x32xf32>
    %c0_27 = arith.constant 0 : index
    %c0_28 = arith.constant 0 : index
    %c0_29 = arith.constant 0 : index
    %32 = vector.load %arg5[%c0_27, %c0_28, %c0_29] : memref<1x2x32xf32, #tpu.memory_space<vmem>>, vector<1x1x32xf32>
    %33 = vector.shape_cast %32 : vector<1x1x32xf32> to vector<1x32xf32>
    %34 = vector.shape_cast %31 : vector<1x32xf32> to vector<1x1x32xf32>
    tpu.vector_store %arg5[%c0_27, %c0_28, %c0_29], %34 {strides = array<i32>} : memref<1x2x32xf32, #tpu.memory_space<vmem>>, vector<1x1x32xf32>,
    %35 = arith.mulf %29, %22 : vector<72x32xf32>
    %cst_30 = arith.constant dense<0.000000e+00> : vector<32xf32>
    %36 = vector.multi_reduction <add>, %35, %cst_30 [0] : vector<72x32xf32> to vector<32xf32>
    %37 = vector.shape_cast %36 : vector<32xf32> to vector<1x32xf32>
    %c0_31 = arith.constant 0 : index
    %c1_32 = arith.constant 1 : index
    %c0_33 = arith.constant 0 : index
    %38 = vector.load %arg5[%c0_31, %c1_32, %c0_33] : memref<1x2x32xf32, #tpu.memory_space<vmem>>, vector<1x1x32xf32>
    %39 = vector.shape_cast %38 : vector<1x1x32xf32> to vector<1x32xf32>
    %40 = vector.shape_cast %37 : vector<1x32xf32> to vector<1x1x32xf32>
    tpu.vector_store %arg5[%c0_31, %c1_32, %c0_33], %40 {strides = array<i32>} : memref<1x2x32xf32, #tpu.memory_space<vmem>>, vector<1x1x32xf32>,
    return
  }
  func.func @transform_0(%arg0: i32) -> (i32, i32, i32) {
    %c0_i32 = arith.constant 0 : i32
    %c0_i32_0 = arith.constant 0 : i32
    %c0_i32_1 = arith.constant 0 : i32
    return %arg0, %c0_i32, %c0_i32_0 : i32, i32, i32
  }
  func.func @transform_1(%arg0: i32) -> (i32, i32, i32) {
    %c0_i32 = arith.constant 0 : i32
    %c0_i32_0 = arith.constant 0 : i32
    %c0_i32_1 = arith.constant 0 : i32
    %c0_i32_2 = arith.constant 0 : i32
    return %c0_i32, %c0_i32_0, %c0_i32_1 : i32, i32, i32
  }
  func.func @transform_2(%arg0: i32) -> (i32, i32) {
    %c0_i32 = arith.constant 0 : i32
    %c0_i32_0 = arith.constant 0 : i32
    %c0_i32_1 = arith.constant 0 : i32
    return %c0_i32, %c0_i32_0 : i32, i32
  }
  func.func @transform_3(%arg0: i32) -> (i32, i32, i32) {
    %c0_i32 = arith.constant 0 : i32
    %c0_i32_0 = arith.constant 0 : i32
    %c0_i32_1 = arith.constant 0 : i32
    return %arg0, %c0_i32, %c0_i32_0 : i32, i32, i32
  }
  func.func @transform_4(%arg0: i32) -> (i32, i32, i32) {
    %c0_i32 = arith.constant 0 : i32
    %c0_i32_0 = arith.constant 0 : i32
    %c0_i32_1 = arith.constant 0 : i32
    return %arg0, %c0_i32, %c0_i32_0 : i32, i32, i32
  }
}

module attributes {stable_mosaic.version = 11 : i64} {
  func.func @_conv4x4s2_stats_kernel(%arg0: i32, %arg1: memref<1x26x128xbf16, #tpu.memory_space<vmem>>, %arg2: memref<4x128x64xbf16, #tpu.memory_space<vmem>>, %arg3: memref<20x1xf32, #tpu.memory_space<vmem>>, %arg4: memref<1x20x64xbf16, #tpu.memory_space<vmem>>, %arg5: memref<1x2x64xf32, #tpu.memory_space<vmem>>) attributes {dimension_semantics = [#tpu.dimension_semantics<parallel>], iteration_bounds = array<i64: 2>, scalar_prefetch = 0 : i64, scratch_operands = 0 : i64, tpu.core_type = #tpu.core_type<tc>, window_params = [{transform_indices = @transform_0, window_bounds = array<i64: 1, 26, 128>}, {pipeline_mode = #tpu.pipeline_mode<synchronous>, transform_indices = @transform_1, window_bounds = array<i64: 4, 128, 64>}, {pipeline_mode = #tpu.pipeline_mode<synchronous>, transform_indices = @transform_2, window_bounds = array<i64: 20, 1>}, {transform_indices = @transform_3, window_bounds = array<i64: 1, 20, 64>}, {transform_indices = @transform_4, window_bounds = array<i64: 1, 2, 64>}]} {
    %c0 = arith.constant 0 : index
    %c0_0 = arith.constant 0 : index
    %c0_1 = arith.constant 0 : index
    %0 = vector.load %arg1[%c0, %c0_0, %c0_1] : memref<1x26x128xbf16, #tpu.memory_space<vmem>>, vector<1x20x128xbf16>
    %1 = vector.shape_cast %0 : vector<1x20x128xbf16> to vector<20x128xbf16>
    %c0_2 = arith.constant 0 : index
    %c0_3 = arith.constant 0 : index
    %c0_4 = arith.constant 0 : index
    %2 = vector.load %arg2[%c0_2, %c0_3, %c0_4] : memref<4x128x64xbf16, #tpu.memory_space<vmem>>, vector<1x128x64xbf16>
    %3 = vector.shape_cast %2 : vector<1x128x64xbf16> to vector<128x64xbf16>
    %cst = arith.constant dense<0.000000e+00> : vector<20x64xf32>
    %4 = tpu.matmul %1, %3, %cst {dimension_numbers = #tpu.dot_dimension_numbers<[1], [0], [0], [1], [0, 0, 1, 1], [], []>} : vector<20x128xbf16>, vector<128x64xbf16>, vector<20x64xf32> -> vector<20x64xf32>
    %c0_5 = arith.constant 0 : index
    %c1 = arith.constant 1 : index
    %c0_6 = arith.constant 0 : index
    %5 = vector.load %arg1[%c0_5, %c1, %c0_6] : memref<1x26x128xbf16, #tpu.memory_space<vmem>>, vector<1x20x128xbf16>
    %6 = vector.shape_cast %5 : vector<1x20x128xbf16> to vector<20x128xbf16>
    %c1_7 = arith.constant 1 : index
    %c0_8 = arith.constant 0 : index
    %c0_9 = arith.constant 0 : index
    %7 = vector.load %arg2[%c1_7, %c0_8, %c0_9] : memref<4x128x64xbf16, #tpu.memory_space<vmem>>, vector<1x128x64xbf16>
    %8 = vector.shape_cast %7 : vector<1x128x64xbf16> to vector<128x64xbf16>
    %cst_10 = arith.constant dense<0.000000e+00> : vector<20x64xf32>
    %9 = tpu.matmul %6, %8, %cst_10 {dimension_numbers = #tpu.dot_dimension_numbers<[1], [0], [0], [1], [0, 0, 1, 1], [], []>} : vector<20x128xbf16>, vector<128x64xbf16>, vector<20x64xf32> -> vector<20x64xf32>
    %10 = arith.addf %4, %9 : vector<20x64xf32>
    %c0_11 = arith.constant 0 : index
    %c5 = arith.constant 5 : index
    %c0_12 = arith.constant 0 : index
    %11 = vector.load %arg1[%c0_11, %c5, %c0_12] : memref<1x26x128xbf16, #tpu.memory_space<vmem>>, vector<1x20x128xbf16>
    %12 = vector.shape_cast %11 : vector<1x20x128xbf16> to vector<20x128xbf16>
    %c2 = arith.constant 2 : index
    %c0_13 = arith.constant 0 : index
    %c0_14 = arith.constant 0 : index
    %13 = vector.load %arg2[%c2, %c0_13, %c0_14] : memref<4x128x64xbf16, #tpu.memory_space<vmem>>, vector<1x128x64xbf16>
    %14 = vector.shape_cast %13 : vector<1x128x64xbf16> to vector<128x64xbf16>
    %cst_15 = arith.constant dense<0.000000e+00> : vector<20x64xf32>
    %15 = tpu.matmul %12, %14, %cst_15 {dimension_numbers = #tpu.dot_dimension_numbers<[1], [0], [0], [1], [0, 0, 1, 1], [], []>} : vector<20x128xbf16>, vector<128x64xbf16>, vector<20x64xf32> -> vector<20x64xf32>
    %16 = arith.addf %10, %15 : vector<20x64xf32>
    %c0_16 = arith.constant 0 : index
    %c6 = arith.constant 6 : index
    %c0_17 = arith.constant 0 : index
    %17 = vector.load %arg1[%c0_16, %c6, %c0_17] : memref<1x26x128xbf16, #tpu.memory_space<vmem>>, vector<1x20x128xbf16>
    %18 = vector.shape_cast %17 : vector<1x20x128xbf16> to vector<20x128xbf16>
    %c3 = arith.constant 3 : index
    %c0_18 = arith.constant 0 : index
    %c0_19 = arith.constant 0 : index
    %19 = vector.load %arg2[%c3, %c0_18, %c0_19] : memref<4x128x64xbf16, #tpu.memory_space<vmem>>, vector<1x128x64xbf16>
    %20 = vector.shape_cast %19 : vector<1x128x64xbf16> to vector<128x64xbf16>
    %cst_20 = arith.constant dense<0.000000e+00> : vector<20x64xf32>
    %21 = tpu.matmul %18, %20, %cst_20 {dimension_numbers = #tpu.dot_dimension_numbers<[1], [0], [0], [1], [0, 0, 1, 1], [], []>} : vector<20x128xbf16>, vector<128x64xbf16>, vector<20x64xf32> -> vector<20x64xf32>
    %22 = arith.addf %16, %21 : vector<20x64xf32>
    %23 = arith.truncf %22 : vector<20x64xf32> to vector<20x64xbf16>
    %c0_21 = arith.constant 0 : index
    %c0_22 = arith.constant 0 : index
    %c0_23 = arith.constant 0 : index
    %24 = vector.load %arg4[%c0_21, %c0_22, %c0_23] : memref<1x20x64xbf16, #tpu.memory_space<vmem>>, vector<1x20x64xbf16>
    %25 = vector.shape_cast %24 : vector<1x20x64xbf16> to vector<20x64xbf16>
    %26 = vector.shape_cast %23 : vector<20x64xbf16> to vector<1x20x64xbf16>
    tpu.vector_store %arg4[%c0_21, %c0_22, %c0_23], %26 {strides = array<i32>} : memref<1x20x64xbf16, #tpu.memory_space<vmem>>, vector<1x20x64xbf16>,
    %c0_24 = arith.constant 0 : index
    %c0_25 = arith.constant 0 : index
    %27 = vector.load %arg3[%c0_24, %c0_25] : memref<20x1xf32, #tpu.memory_space<vmem>>, vector<20x1xf32>
    %28 = vector.broadcast %27 : vector<20x1xf32> to vector<20x64xf32>
    %29 = arith.mulf %22, %28 : vector<20x64xf32>
    %cst_26 = arith.constant dense<0.000000e+00> : vector<64xf32>
    %30 = vector.multi_reduction <add>, %29, %cst_26 [0] : vector<20x64xf32> to vector<64xf32>
    %31 = vector.shape_cast %30 : vector<64xf32> to vector<1x64xf32>
    %c0_27 = arith.constant 0 : index
    %c0_28 = arith.constant 0 : index
    %c0_29 = arith.constant 0 : index
    %32 = vector.load %arg5[%c0_27, %c0_28, %c0_29] : memref<1x2x64xf32, #tpu.memory_space<vmem>>, vector<1x1x64xf32>
    %33 = vector.shape_cast %32 : vector<1x1x64xf32> to vector<1x64xf32>
    %34 = vector.shape_cast %31 : vector<1x64xf32> to vector<1x1x64xf32>
    tpu.vector_store %arg5[%c0_27, %c0_28, %c0_29], %34 {strides = array<i32>} : memref<1x2x64xf32, #tpu.memory_space<vmem>>, vector<1x1x64xf32>,
    %35 = arith.mulf %29, %22 : vector<20x64xf32>
    %cst_30 = arith.constant dense<0.000000e+00> : vector<64xf32>
    %36 = vector.multi_reduction <add>, %35, %cst_30 [0] : vector<20x64xf32> to vector<64xf32>
    %37 = vector.shape_cast %36 : vector<64xf32> to vector<1x64xf32>
    %c0_31 = arith.constant 0 : index
    %c1_32 = arith.constant 1 : index
    %c0_33 = arith.constant 0 : index
    %38 = vector.load %arg5[%c0_31, %c1_32, %c0_33] : memref<1x2x64xf32, #tpu.memory_space<vmem>>, vector<1x1x64xf32>
    %39 = vector.shape_cast %38 : vector<1x1x64xf32> to vector<1x64xf32>
    %40 = vector.shape_cast %37 : vector<1x64xf32> to vector<1x1x64xf32>
    tpu.vector_store %arg5[%c0_31, %c1_32, %c0_33], %40 {strides = array<i32>} : memref<1x2x64xf32, #tpu.memory_space<vmem>>, vector<1x1x64xf32>,
    return
  }
  func.func @transform_0(%arg0: i32) -> (i32, i32, i32) {
    %c0_i32 = arith.constant 0 : i32
    %c0_i32_0 = arith.constant 0 : i32
    %c0_i32_1 = arith.constant 0 : i32
    return %arg0, %c0_i32, %c0_i32_0 : i32, i32, i32
  }
  func.func @transform_1(%arg0: i32) -> (i32, i32, i32) {
    %c0_i32 = arith.constant 0 : i32
    %c0_i32_0 = arith.constant 0 : i32
    %c0_i32_1 = arith.constant 0 : i32
    %c0_i32_2 = arith.constant 0 : i32
    return %c0_i32, %c0_i32_0, %c0_i32_1 : i32, i32, i32
  }
  func.func @transform_2(%arg0: i32) -> (i32, i32) {
    %c0_i32 = arith.constant 0 : i32
    %c0_i32_0 = arith.constant 0 : i32
    %c0_i32_1 = arith.constant 0 : i32
    return %c0_i32, %c0_i32_0 : i32, i32
  }
  func.func @transform_3(%arg0: i32) -> (i32, i32, i32) {
    %c0_i32 = arith.constant 0 : i32
    %c0_i32_0 = arith.constant 0 : i32
    %c0_i32_1 = arith.constant 0 : i32
    return %arg0, %c0_i32, %c0_i32_0 : i32, i32, i32
  }
  func.func @transform_4(%arg0: i32) -> (i32, i32, i32) {
    %c0_i32 = arith.constant 0 : i32
    %c0_i32_0 = arith.constant 0 : i32
    %c0_i32_1 = arith.constant 0 : i32
    return %arg0, %c0_i32, %c0_i32_0 : i32, i32, i32
  }
}

module attributes {stable_mosaic.version = 11 : i64} {
  func.func @_dot_sigmoid_kernel(%arg0: i32, %arg1: memref<2x1024xbf16, #tpu.memory_space<vmem>>, %arg2: memref<1x1024xbf16, #tpu.memory_space<vmem>>, %arg3: memref<2x1xf32, #tpu.memory_space<vmem>>) attributes {dimension_semantics = [#tpu.dimension_semantics<arbitrary>], iteration_bounds = array<i64: 1>, scalar_prefetch = 0 : i64, scratch_operands = 0 : i64, tpu.core_type = #tpu.core_type<tc>, window_params = [{pipeline_mode = #tpu.pipeline_mode<synchronous>, transform_indices = @transform_0, window_bounds = array<i64: 2, 1024>}, {pipeline_mode = #tpu.pipeline_mode<synchronous>, transform_indices = @transform_1, window_bounds = array<i64: 1, 1024>}, {pipeline_mode = #tpu.pipeline_mode<synchronous>, transform_indices = @transform_2, window_bounds = array<i64: 2, 1>}]} {
    %c0 = arith.constant 0 : index
    %c0_0 = arith.constant 0 : index
    %0 = vector.load %arg1[%c0, %c0_0] : memref<2x1024xbf16, #tpu.memory_space<vmem>>, vector<2x1024xbf16>
    %1 = arith.extf %0 : vector<2x1024xbf16> to vector<2x1024xf32>
    %c0_1 = arith.constant 0 : index
    %c0_2 = arith.constant 0 : index
    %2 = vector.load %arg2[%c0_1, %c0_2] : memref<1x1024xbf16, #tpu.memory_space<vmem>>, vector<1x1024xbf16>
    %3 = arith.extf %2 : vector<1x1024xbf16> to vector<1x1024xf32>
    %4 = vector.broadcast %3 : vector<1x1024xf32> to vector<2x1024xf32>
    %5 = arith.mulf %1, %4 : vector<2x1024xf32>
    %cst = arith.constant dense<0.000000e+00> : vector<2xf32>
    %6 = vector.multi_reduction <add>, %5, %cst [1] : vector<2x1024xf32> to vector<2xf32>
    %7 = vector.shape_cast %6 : vector<2xf32> to vector<2x1xf32>
    %8 = math.absf %7 : vector<2x1xf32>
    %cst_3 = arith.constant 0.000000e+00 : f32
    %9 = vector.broadcast %cst_3 : f32 to vector<2x1xf32>
    %10 = arith.subf %9, %8 : vector<2x1xf32>
    %11 = math.exp %10 : vector<2x1xf32>
    %cst_4 = arith.constant 1.000000e+00 : f32
    %12 = vector.broadcast %cst_4 : f32 to vector<2x1xf32>
    %13 = arith.addf %12, %11 : vector<2x1xf32>
    %cst_5 = arith.constant 1.000000e+00 : f32
    %14 = vector.broadcast %cst_5 : f32 to vector<2x1xf32>
    %15 = arith.divf %14, %13 : vector<2x1xf32>
    %cst_6 = arith.constant 0.000000e+00 : f32
    %16 = vector.broadcast %cst_6 : f32 to vector<2x1xf32>
    %17 = arith.cmpf oge, %7, %16 : vector<2x1xf32>
    %cst_7 = arith.constant 1.000000e+00 : f32
    %18 = vector.broadcast %cst_7 : f32 to vector<2x1xf32>
    %19 = arith.subf %18, %15 : vector<2x1xf32>
    %20 = arith.select %17, %15, %19 : vector<2x1xi1>, vector<2x1xf32>
    %c0_8 = arith.constant 0 : index
    %c0_9 = arith.constant 0 : index
    %21 = vector.load %arg3[%c0_8, %c0_9] : memref<2x1xf32, #tpu.memory_space<vmem>>, vector<2x1xf32>
    tpu.vector_store %arg3[%c0_8, %c0_9], %20 {strides = array<i32>} : memref<2x1xf32, #tpu.memory_space<vmem>>, vector<2x1xf32>,
    return
  }
  func.func @transform_0(%arg0: i32) -> (i32, i32) {
    %c0_i32 = arith.constant 0 : i32
    %c0_i32_0 = arith.constant 0 : i32
    %c0_i32_1 = arith.constant 0 : i32
    return %c0_i32, %c0_i32_0 : i32, i32
  }
  func.func @transform_1(%arg0: i32) -> (i32, i32) {
    %c0_i32 = arith.constant 0 : i32
    %c0_i32_0 = arith.constant 0 : i32
    %c0_i32_1 = arith.constant 0 : i32
    return %c0_i32, %c0_i32_0 : i32, i32
  }
  func.func @transform_2(%arg0: i32) -> (i32, i32) {
    %c0_i32 = arith.constant 0 : i32
    %c0_i32_0 = arith.constant 0 : i32
    %c0_i32_1 = arith.constant 0 : i32
    return %c0_i32, %c0_i32_0 : i32, i32
  }
}

</mosaic_0001>

<bundles_post_ra>
// kernel: cnn_forward.5
= control target key start
LH: loop header
LB: loop body
LE: loop exit
PB: predicated region body
PF: predicated region fallthrough
CT: control target
= control target key end

     0   :  { %s8201_s9 = smov 0   ;;  %s9719_s0 = inlined_call_operand.vmem [shape: bf16[2,1090,12], index: 0, kind: input, shape index: {}]   ;;  %s9720_s1 = inlined_call_operand.vmem [shape: bf16[4,12,8], index: 1, kind: input, shape index: {}]   ;;  %s9721_s2 = inlined_call_operand.vmem [shape: bf16[2,1056,8], index: 2, kind: output, shape index: {}]  }
   0x1 LB: > { %s6539_s10 = sadd.s32 4294967295, %s8184_s9   ;;  %p6543_p0 = scmp.ge.s32.totalorder %s8184_s9, 1  ;;  %s8184_s9 = sphi %s8201_s9, %s12_s9  }
   0x2   : > { %p112_p1 = scmp.lt.s32.totalorder %s8184_s9, 3 }
   0x4   : > { %p113_p2 = pnand %p6543_p0, %p112_p1 }
   0x6   : > { %116 = sbr.rel (%p113_p2) target bundleno = 756 (0x2f4), region = 28 }
   0xb   : > { %vm1353_vm0 = vcmask 1045504   ;;  %p134_p3 = scmp.lt.s32.totalorder %s6539_s10, 1  ;;  %v8039_v0 = vld [vmem:[%s9720_s1] sm:$0x3f]   ;;  %v8040_v1 = vld [vmem:[%s9720_s1 + $0x8] sm:$0x3f]  }
   0xc   : > { %8026 = vmatprep.subr.msk.bf16.mxu1 %vm1353_vm0, %v8039_v0  ;;  %v2056_v2 = vsel %vm1353_vm0, %v8039_v0, 0  ;;  %8025 = vmatprep.subr.msk.bf16.mxu0 %vm1353_vm0, %v8040_v1  ;;  %v1355_v3 = vsel %vm1353_vm0, %v8040_v1, 0  ;;  %v8043_v4 = vld [vmem:[%s9720_s1 + $0x10] sm:$0x3f]   ;;  %v8045_v5 = vld [vmem:[%s9720_s1 + $0x18] sm:$0x3f]  }
   0xd   : > { %s9925_s10 = smov (!%p134_p3, %s6539_s10), 1  ;;  %7624 = vmatpush3.bf16.msra.mxu1 %v2056_v2  ;;  %7490 = vmatpush3.bf16.msra.mxu0 %v1355_v3  ;;  %vm1154_vm1 = vcmask 97280   ;;  %vm616_vm2 = vsmask.f32 7424  ;;  %v4864_v8 = vsel %vm1353_vm0, %v8045_v5, 0  ;;  %v3824_v29 = vsel %vm1353_vm0, %v8043_v4, 0 }
   0xe   : > { %s8029_s15 = smul.u32 548, %s9925_s10  ;;  %8027 = vmatprep.subr.msk.bf16.mxu0 %vm1353_vm0, %v8043_v4  ;;  %8028 = vmatprep.subr.msk.bf16.mxu1 %vm1353_vm0, %v8045_v5  ;;  %vm4526_vm3 = vcmask 1046528   ;;  %vm6351_vm4 = vcmask 60416  }
   0xf   : > { %s8030_s23 = smul.u32 528, %s9925_s10 }
  0x10   : > { %s8231_s22 = scalar_lea.vmem %s9719_s0, %s8029_s15 }
  0x11   : > { %v8041_v6 = vld [vmem:[%s8231_s22] sm:$0xff]   ;;  %v8042_v7 = vld [vmem:[%s8231_s22 + $0x8] sm:$0xff]   ;;  %v8044_v13 = vld [vmem:[%s8231_s22 + $0x10] sm:$0xff]   ;;  %s9201_s26 = scalar_lea.vmem %s9721_s2, %s8030_s23 }
  0x12   : > { %7625 = vmatprep.mubr.msk.bf16.mxu1 %vm1154_vm1, %v8041_v6  ;;  %v618_v9 = vshrl.u32 %v8041_v6, 16  ;;  %v620_v10 = vshll.u32 %v8041_v6, 16  ;;  %v625_v11 = vshll.u32 %v8042_v7, 16  ;;  %v629_v12 = vshrl.u32 %v8042_v7, 16  ;;  %v8046_v14 = vld [vmem:[%s8231_s22 + $0x18] sm:$0xff]   ;;  %v8047_v16 = vld [vmem:[%s8231_s22 + $0x20] sm:$0xff]  }
  0x13   : > { %7626 = vmatmul.mubr.msk.bf16.vlgmr.msra.gmra.mxu1 %vm1154_vm1, %v8042_v7  ;;  %v633_v18 = vshll.u32 %v8044_v13, 16  ;;  %v637_v19 = vshrl.u32 %v8044_v13, 16  ;;  %v641_v20 = vshll.u32 %v8046_v14, 16  ;;  %v649_v22 = vshll.u32 %v8047_v16, 16  ;;  %v8048_v27 = vld [vmem:[%s8231_s22 + $0x28] sm:$0xff]   ;;  %v8049_v35 = vld [vmem:[%s8231_s22 + $0x30] sm:$0xff]  }
  0x14   : > { %v622_v15 = vrot.slane %v620_v10, 1  ;;  %7892 = vmatpush3.bf16.msra.mxu1 %v4864_v8  ;;  %v627_v17 = vrot.slane %v625_v11, 1  ;;  %7629 = vmatprep.mubr.msk.bf16.mxu1 %vm1154_vm1, %v8044_v13  ;;  %v645_v26 = vshrl.u32 %v8046_v14, 16  ;;  %v653_v30 = vshrl.u32 %v8047_v16, 16  ;;  %v8050_v40 = vld [vmem:[%s8231_s22 + $0x38] sm:$0xff]   ;;  %v8051_v48 = vld [vmem:[%s8231_s22 + $0x40] sm:$0xff]  }
  0x15   : > { %v635_v24 = vrot.slane %v633_v18, 1  ;;  %v643_v25 = vrot.slane %v641_v20, 1  ;;  %v657_v33 = vshll.u32 %v8048_v27, 16  ;;  %v651_v34 = vrot.slane %v649_v22, 1  ;;  %v8052_v52 = vld [vmem:[%s8231_s22 + $0x48] sm:$0xff]   ;;  %v8053_v60 = vld [vmem:[%s8231_s22 + $0x50] sm:$0xff]  }
  0x16   : > { %v623_v21 = vor.u32 %v622_v15, %v618_v9  ;;  %v631_v23 = vor.u32 %v629_v12, %v627_v17  ;;  %v665_v41 = vshll.u32 %v8049_v35, 16  ;;  %v661_v43 = vshrl.u32 %v8048_v27, 16  ;;  %v8054_v0 = vld [vmem:[%s8231_s22 + $0x58] sm:$0xff]   ;;  %v8055_v8 = vld [vmem:[%s8231_s22 + $0x60] sm:$0xff]   ;;  %v8056_v12 = vld [vmem:[%s8231_s22 + $0x68] sm:$0xff]  }
  0x17   : > { %v639_v32 = vor.u32 %v637_v19, %v635_v24  ;;  %v647_v37 = vor.u32 %v645_v26, %v643_v25  ;;  %v655_v38 = vor.u32 %v653_v30, %v651_v34  ;;  %v659_v39 = vrot.slane %v657_v33, 1  ;;  %v8057_v20 = vld [vmem:[%s8231_s22 + $0x70] sm:$0xff]  }
  0x18   : > { %v628_v28 = vsel %vm616_vm2, %v623_v21, %v627_v17  ;;  %v636_v31 = vsel %vm616_vm2, %v631_v23, %v635_v24  ;;  %v669_v45 = vshrl.u32 %v8049_v35, 16  ;;  %v673_v46 = vshll.u32 %v8050_v40, 16  ;;  %v8058_v24 = vld [vmem:[%s8231_s22 + $0x78] sm:$0xff]  }
  0x19   : > { %7491 = vmatprep.mubr.msk.bf16.mxu0 %vm1154_vm1, %v628_v28  ;;  %v644_v36 = vsel %vm616_vm2, %v639_v32, %v643_v25  ;;  %v652_v42 = vsel %vm616_vm2, %v647_v37, %v651_v34  ;;  %v660_v44 = vsel %vm616_vm2, %v655_v38, %v659_v39  ;;  %v667_v47 = vrot.slane %v665_v41, 1  ;;  %v8059_v32 = vld [vmem:[%s8231_s22 + $0x80] sm:$0xff]  }
  0x1a   : > { %7492 = vmatmul.mubr.msk.bf16.vlgmr.msra.gmra.mxu0 %vm1154_vm1, %v636_v31  ;;  %v663_v49 = vor.u32 %v661_v43, %v659_v39  ;;  %v675_v51 = vrot.slane %v673_v46, 1  ;;  %v681_v53 = vshll.u32 %v8051_v48, 16  ;;  %v677_v55 = vshrl.u32 %v8050_v40, 16 }
  0x1b   : > { %7758 = vmatpush3.bf16.msra.mxu0 %v3824_v29  ;;  %7630 = vmatmul.mubr.msk.bf16.gmra.mxu1 %vm1154_vm1, %v8046_v14  ;;  %v671_v50 = vor.u32 %v669_v45, %v667_v47  ;;  %v685_v57 = vshrl.u32 %v8051_v48, 16  ;;  %v689_v58 = vshll.u32 %v8052_v52, 16  ;;  %v697_v1 = vshll.u32 %v8053_v60, 16 }
  0x1c   : > { %7495 = vmatprep.mubr.msk.bf16.mxu0 %vm1154_vm1, %v644_v36  ;;  %7633 = vmatprep.mubr.msk.bf16.mxu1 %vm1154_vm1, %v8047_v16  ;;  %v668_v54 = vsel %vm616_vm2, %v663_v49, %v667_v47  ;;  %v683_v59 = vrot.slane %v681_v53, 1  ;;  %v679_v61 = vor.u32 %v677_v55, %v675_v51  ;;  %v693_v3 = vshrl.u32 %v8052_v52, 16  ;;  %v8060_v36 = vld [vmem:[%s8231_s22 + $0x88] sm:$0xff]   ;;  %v8063_v55 = vld [vmem:[%s8231_s22 + $0xa0] sm:$0xff]  }
  0x1d   : > { %v676_v56 = vsel %vm616_vm2, %v671_v50, %v675_v51  ;;  %v691_v63 = vrot.slane %v689_v58, 1  ;;  %v701_v5 = vshrl.u32 %v8053_v60, 16  ;;  %v705_v6 = vshll.u32 %v8054_v0, 16  ;;  %v8064_v58 = vld [vmem:[%s8231_s22 + $0xa8] sm:$0xff]  }
  0x1e   : > { %v687_v62 = vor.u32 %v685_v57, %v683_v59  ;;  %v684_v2 = vsel %vm616_vm2, %v679_v61, %v683_v59  ;;  %v699_v7 = vrot.slane %v697_v1, 1  ;;  %v713_v13 = vshll.u32 %v8055_v8, 16 }
  0x1f   : > { %v695_v9 = vor.u32 %v693_v3, %v691_v63  ;;  %v707_v11 = vrot.slane %v705_v6, 1  ;;  %v709_v15 = vshrl.u32 %v8054_v0, 16  ;;  %v717_v17 = vshrl.u32 %v8055_v8, 16  ;;  %v8066_v6 = vld [vmem:[%s8231_s22 + $0xb8] sm:$0xff]  }
  0x20   : > { %v692_v4 = vsel %vm616_vm2, %v687_v62, %v691_v63  ;;  %v703_v10 = vor.u32 %v701_v5, %v699_v7  ;;  %v721_v18 = vshll.u32 %v8056_v12, 16  ;;  %v715_v19 = vrot.slane %v713_v13, 1 }
  0x21   : > { %v700_v14 = vsel %vm616_vm2, %v695_v9, %v699_v7  ;;  %v711_v21 = vor.u32 %v709_v15, %v707_v11  ;;  %v729_v25 = vshll.u32 %v8057_v20, 16  ;;  %v733_v29 = vshrl.u32 %v8057_v20, 16 }
  0x22   : > { %7496 = vmatmul.mubr.msk.bf16.gmra.mxu0 %vm1154_vm1, %v652_v42  ;;  %v708_v16 = vsel %vm616_vm2, %v703_v10, %v707_v11  ;;  %v719_v22 = vor.u32 %v717_v17, %v715_v19  ;;  %v723_v23 = vrot.slane %v721_v18, 1  ;;  %v737_v30 = vshll.u32 %v8058_v24, 16  ;;  %v8068_v18 = vld [vmem:[%s8231_s22 + $0xc8] sm:$0xff]  }
  0x23   : > { %7634 = vmatmul.mubr.msk.bf16.gmra.mxu1 %vm1154_vm1, %v8048_v27  ;;  %7499 = vmatprep.mubr.msk.bf16.mxu0 %vm1154_vm1, %v660_v44  ;;  %v716_v26 = vsel %vm616_vm2, %v711_v21, %v715_v19  ;;  %v725_v27 = vshrl.u32 %v8056_v12, 16  ;;  %v731_v31 = vrot.slane %v729_v25, 1  ;;  %v745_v37 = vshll.u32 %v8059_v32, 16  ;;  %v8061_v44 = vld [vmem:[%s8231_s22 + $0x90] sm:$0xff]  }
  0x24   : > { %7637 = vmatprep.mubr.msk.bf16.mxu1 %vm1154_vm1, %v8049_v35  ;;  %v724_v28 = vsel %vm616_vm2, %v719_v22, %v723_v23  ;;  %v739_v35 = vrot.slane %v737_v30, 1  ;;  %v741_v39 = vshrl.u32 %v8058_v24, 16  ;;  %v749_v41 = vshrl.u32 %v8059_v32, 16  ;;  %v8070_v30 = vld [vmem:[%s8231_s22 + $0xd8] sm:$0xff]  }
  0x25   : > { %v727_v33 = vor.u32 %v725_v27, %v723_v23  ;;  %v735_v34 = vor.u32 %v733_v29, %v731_v31  ;;  %v753_v42 = vshll.u32 %v8060_v36, 16  ;;  %v747_v43 = vrot.slane %v745_v37, 1 }
  0x26   : > { %v743_v45 = vor.u32 %v741_v39, %v739_v35  ;;  %v761_v49 = vshll.u32 %v8061_v44, 16  ;;  %v757_v51 = vshrl.u32 %v8060_v36, 16  ;;  %v765_v53 = vshrl.u32 %v8061_v44, 16 }
  0x27   : > { %v732_v38 = vsel %vm616_vm2, %v727_v33, %v731_v31  ;;  %v751_v46 = vor.u32 %v749_v41, %v747_v43  ;;  %v755_v47 = vrot.slane %v753_v42, 1  ;;  %v777_v62 = vshll.u32 %v8063_v55, 16  ;;  %v8072_v42 = vld [vmem:[%s8231_s22 + $0xe8] sm:$0xff]  }
  0x28   : > { %v748_v50 = vsel %vm616_vm2, %v743_v45, %v747_v43  ;;  %v785_v1 = vshll.u32 %v8064_v58, 16  ;;  %v789_v9 = vshrl.u32 %v8064_v58, 16  ;;  %v801_v13 = vshll.u32 %v8066_v6, 16 }
  0x29   : > { %v759_v57 = vor.u32 %v757_v51, %v755_v47  ;;  %v779_v3 = vrot.slane %v777_v62, 1  ;;  %v805_v21 = vshrl.u32 %v8066_v6, 16  ;;  %v817_v25 = vshll.u32 %v8068_v18, 16 }
  0x2a   : > { %7500 = vmatmul.mubr.msk.bf16.gmra.mxu0 %vm1154_vm1, %v668_v54  ;;  %v821_v33 = vshrl.u32 %v8068_v18, 16  ;;  %v833_v37 = vshll.u32 %v8070_v30, 16  ;;  %v837_v45 = vshrl.u32 %v8070_v30, 16 }
  0x2b   : > { %7638 = vmatmul.mubr.msk.bf16.gmra.mxu1 %vm1154_vm1, %v8050_v40  ;;  %7503 = vmatprep.mubr.msk.bf16.mxu0 %vm1154_vm1, %v676_v56  ;;  %v740_v40 = vsel %vm616_vm2, %v735_v34, %v739_v35  ;;  %v763_v56 = vrot.slane %v761_v49, 1  ;;  %v849_v49 = vshll.u32 %v8072_v42, 16 }
  0x2c   : > { %7641 = vmatprep.mubr.msk.bf16.mxu1 %vm1154_vm1, %v8051_v48  ;;  %v8062_v48 = vld [vmem:[%s8231_s22 + $0x98] sm:$0xff]  }
  0x2d   : > { %v769_v54 = vshll.u32 %v8062_v48, 16  ;;  %v767_v59 = vor.u32 %v765_v53, %v763_v56  ;;  %v773_v61 = vshrl.u32 %v8062_v48, 16  ;;  %v764_v63 = vsel %vm616_vm2, %v759_v57, %v763_v56 }
  0x2e   : > { %v851_v56 = vrot.slane %v849_v49, 1  ;;  %v853_v57 = vshrl.u32 %v8072_v42, 16 }
  0x32   : > { %7504 = vmatmul.mubr.msk.bf16.gmra.mxu0 %vm1154_vm1, %v684_v2 }
  0x33   : > { %7642 = vmatmul.mubr.msk.bf16.gmra.mxu1 %vm1154_vm1, %v8052_v52  ;;  %7507 = vmatprep.mubr.msk.bf16.mxu0 %vm1154_vm1, %v692_v4  ;;  %v756_v52 = vsel %vm616_vm2, %v751_v46, %v755_v47  ;;  %v8065_v4 = vld [vmem:[%s8231_s22 + $0xb0] sm:$0xff]  }
  0x34   : > { %7645 = vmatprep.mubr.msk.bf16.mxu1 %vm1154_vm1, %v8053_v60  ;;  %v771_v60 = vrot.slane %v769_v54, 1  ;;  %v793_v10 = vshll.u32 %v8065_v4, 16  ;;  %v8074_v54 = vld [vmem:[%s8231_s22 + $0xf8] sm:$0xff]  }
  0x36   : > { %v772_v2 = vsel %vm616_vm2, %v767_v59, %v771_v60  ;;  %v775_v5 = vor.u32 %v773_v61, %v771_v60  ;;  %v795_v15 = vrot.slane %v793_v10, 1  ;;  %v865_v61 = vshll.u32 %v8074_v54, 16 }
  0x38   : > { %v780_v11 = vsel %vm616_vm2, %v775_v5, %v779_v3  ;;  %v869_v5 = vshrl.u32 %v8074_v54, 16 }
  0x3a   : > { %7508 = vmatmul.mubr.msk.bf16.gmra.mxu0 %vm1154_vm1, %v700_v14 }
  0x3b   : > { %7646 = vmatmul.mubr.msk.bf16.gmra.mxu1 %vm1154_vm1, %v8054_v0  ;;  %7511 = vmatprep.mubr.msk.bf16.mxu0 %vm1154_vm1, %v708_v16  ;;  %v781_v0 = vshrl.u32 %v8063_v55, 16  ;;  %v8067_v16 = vld [vmem:[%s8231_s22 + $0xc0] sm:$0xff]  }
  0x3c   : > { %7649 = vmatprep.mubr.msk.bf16.mxu1 %vm1154_vm1, %v8055_v8  ;;  %v787_v8 = vrot.slane %v785_v1, 1  ;;  %v809_v22 = vshll.u32 %v8067_v16, 16  ;;  %v855_v1 = vor.u32 %v853_v57, %v851_v56 }
  0x3d   : > { %v783_v7 = vor.u32 %v781_v0, %v779_v3  ;;  %v8075_v0 = vld [vmem:[%s8231_s22 + $0x100] sm:$0xff]  }
  0x3e   : > { %v791_v17 = vor.u32 %v789_v9, %v787_v8  ;;  %v811_v27 = vrot.slane %v809_v22, 1 }
  0x3f   : > { %v788_v14 = vsel %vm616_vm2, %v783_v7, %v787_v8  ;;  %v877_v8 = vshrl.u32 %v8075_v0, 16 }
  0x40   : > { %v796_v23 = vsel %vm616_vm2, %v791_v17, %v795_v15 }
  0x42   : > { %7512 = vmatmul.mubr.msk.bf16.gmra.mxu0 %vm1154_vm1, %v716_v26 }
  0x43   : > { %7650 = vmatmul.mubr.msk.bf16.gmra.mxu1 %vm1154_vm1, %v8056_v12  ;;  %7515 = vmatprep.mubr.msk.bf16.mxu0 %vm1154_vm1, %v724_v28  ;;  %v797_v12 = vshrl.u32 %v8065_v4, 16  ;;  %v8069_v28 = vld [vmem:[%s8231_s22 + $0xd0] sm:$0xff]  }
  0x44   : > { %7653 = vmatprep.mubr.msk.bf16.mxu1 %vm1154_vm1, %v8057_v20  ;;  %v803_v20 = vrot.slane %v801_v13, 1  ;;  %v825_v34 = vshll.u32 %v8069_v28, 16 }
  0x45   : > { %v799_v19 = vor.u32 %v797_v12, %v795_v15  ;;  %v8077_v12 = vld [vmem:[%s8231_s22 + $0x110] sm:$0xff]  }
  0x46   : > { %v807_v29 = vor.u32 %v805_v21, %v803_v20  ;;  %v827_v39 = vrot.slane %v825_v34, 1 }
  0x47   : > { %v804_v26 = vsel %vm616_vm2, %v799_v19, %v803_v20  ;;  %v893_v20 = vshrl.u32 %v8077_v12, 16 }
  0x48   : > { %v812_v35 = vsel %vm616_vm2, %v807_v29, %v811_v27 }
  0x4a   : > { %7516 = vmatmul.mubr.msk.bf16.gmra.mxu0 %vm1154_vm1, %v732_v38 }
  0x4b   : > { %7654 = vmatmul.mubr.msk.bf16.gmra.mxu1 %vm1154_vm1, %v8058_v24  ;;  %7519 = vmatprep.mubr.msk.bf16.mxu0 %vm1154_vm1, %v740_v40  ;;  %v813_v24 = vshrl.u32 %v8067_v16, 16  ;;  %v8071_v40 = vld [vmem:[%s8231_s22 + $0xe0] sm:$0xff]  }
  0x4c   : > { %7657 = vmatprep.mubr.msk.bf16.mxu1 %vm1154_vm1, %v8059_v32  ;;  %v819_v32 = vrot.slane %v817_v25, 1  ;;  %v841_v46 = vshll.u32 %v8071_v40, 16 }
  0x4d   : > { %v815_v31 = vor.u32 %v813_v24, %v811_v27  ;;  %v8079_v24 = vld [vmem:[%s8231_s22 + $0x120] sm:$0xff]  }
  0x4e   : > { %v823_v41 = vor.u32 %v821_v33, %v819_v32  ;;  %v843_v51 = vrot.slane %v841_v46, 1  ;;  %v905_v29 = vshll.u32 %v8079_v24, 16  ;;  %v909_v33 = vshrl.u32 %v8079_v24, 16 }
  0x4f   : > { %v820_v38 = vsel %vm616_vm2, %v815_v31, %v819_v32 }
  0x50   : > { %v828_v47 = vsel %vm616_vm2, %v823_v41, %v827_v39 }
  0x52   : > { %7520 = vmatmul.mubr.msk.bf16.gmra.mxu0 %vm1154_vm1, %v748_v50 }
  0x53   : > { %7658 = vmatmul.mubr.msk.bf16.gmra.mxu1 %vm1154_vm1, %v8060_v36  ;;  %7523 = vmatprep.mubr.msk.bf16.mxu0 %vm1154_vm1, %v756_v52  ;;  %v829_v36 = vshrl.u32 %v8069_v28, 16  ;;  %v8073_v52 = vld [vmem:[%s8231_s22 + $0xf0] sm:$0xff]  }
  0x54   : > { %7661 = vmatprep.mubr.msk.bf16.mxu1 %vm1154_vm1, %v8061_v44  ;;  %v835_v44 = vrot.slane %v833_v37, 1  ;;  %v861_v60 = vshrl.u32 %v8073_v52, 16 }
  0x55   : > { %v831_v43 = vor.u32 %v829_v36, %v827_v39  ;;  %v8081_v36 = vld [vmem:[%s8231_s22 + $0x130] sm:$0xff]  }
  0x56   : > { %v839_v53 = vor.u32 %v837_v45, %v835_v44  ;;  %v921_v41 = vshll.u32 %v8081_v36, 16  ;;  %v925_v45 = vshrl.u32 %v8081_v36, 16 }
  0x57   : > { %v836_v50 = vsel %vm616_vm2, %v831_v43, %v835_v44 }
  0x58   : > { %v844_v59 = vsel %vm616_vm2, %v839_v53, %v843_v51 }
  0x5a   : > { %7524 = vmatmul.mubr.msk.bf16.gmra.mxu0 %vm1154_vm1, %v764_v63 }
  0x5b   : > { %7662 = vmatmul.mubr.msk.bf16.gmra.mxu1 %vm1154_vm1, %v8062_v48  ;;  %7527 = vmatprep.mubr.msk.bf16.mxu0 %vm1154_vm1, %v772_v2  ;;  %v845_v48 = vshrl.u32 %v8071_v40, 16  ;;  %v8076_v2 = vld [vmem:[%s8231_s22 + $0x108] sm:$0xff]  }
  0x5c   : > { %7665 = vmatprep.mubr.msk.bf16.mxu1 %vm1154_vm1, %v8063_v55  ;;  %v881_v9 = vshll.u32 %v8076_v2, 16  ;;  %v885_v17 = vshrl.u32 %v8076_v2, 16 }
  0x5d   : > { %v847_v55 = vor.u32 %v845_v48, %v843_v51  ;;  %v8083_v48 = vld [vmem:[%s8231_s22 + $0x140] sm:$0xff]  }
  0x5e   : > { %v937_v53 = vshll.u32 %v8083_v48, 16  ;;  %v941_v57 = vshrl.u32 %v8083_v48, 16 }
  0x5f   : > { %v852_v62 = vsel %vm616_vm2, %v847_v55, %v851_v56 }
  0x62   : > { %7528 = vmatmul.mubr.msk.bf16.gmra.mxu0 %vm1154_vm1, %v780_v11 }
  0x63   : > { %7666 = vmatmul.mubr.msk.bf16.gmra.mxu1 %vm1154_vm1, %v8064_v58  ;;  %7531 = vmatprep.mubr.msk.bf16.mxu0 %vm1154_vm1, %v788_v14  ;;  %v857_v58 = vshll.u32 %v8073_v52, 16  ;;  %v8078_v14 = vld [vmem:[%s8231_s22 + $0x118] sm:$0xff]  }
  0x64   : > { %7669 = vmatprep.mubr.msk.bf16.mxu1 %vm1154_vm1, %v8065_v4  ;;  %v867_v4 = vrot.slane %v865_v61, 1  ;;  %v897_v21 = vshll.u32 %v8078_v14, 16  ;;  %v901_v31 = vshrl.u32 %v8078_v14, 16 }
  0x65   : > { %v859_v63 = vrot.slane %v857_v58, 1 }
  0x66   : > { %v871_v13 = vor.u32 %v869_v5, %v867_v4  ;;  %v899_v27 = vrot.slane %v897_v21, 1 }
  0x67   : > { %v863_v3 = vor.u32 %v861_v60, %v859_v63  ;;  %v860_v7 = vsel %vm616_vm2, %v855_v1, %v859_v63  ;;  %v8085_v60 = vld [vmem:[%s8231_s22 + $0x150] sm:$0xff]  }
  0x68   : > { %v903_v37 = vor.u32 %v901_v31, %v899_v27  ;;  %v953_v1 = vshll.u32 %v8085_v60, 16  ;;  %v957_v5 = vshrl.u32 %v8085_v60, 16 }
  0x69   : > { %v868_v10 = vsel %vm616_vm2, %v863_v3, %v867_v4 }
  0x6a   : > { %7532 = vmatmul.mubr.msk.bf16.gmra.mxu0 %vm1154_vm1, %v796_v23 }
  0x6b   : > { %7670 = vmatmul.mubr.msk.bf16.gmra.mxu1 %vm1154_vm1, %v8066_v6  ;;  %7535 = vmatprep.mubr.msk.bf16.mxu0 %vm1154_vm1, %v804_v26  ;;  %v873_v6 = vshll.u32 %v8075_v0, 16 }
  0x6c   : > { %7673 = vmatprep.mubr.msk.bf16.mxu1 %vm1154_vm1, %v8067_v16  ;;  %v883_v16 = vrot.slane %v881_v9, 1 }
  0x6d   : > { %v875_v11 = vrot.slane %v873_v6, 1 }
  0x6e   : > { %v887_v25 = vor.u32 %v885_v17, %v883_v16 }
  0x6f   : > { %v879_v15 = vor.u32 %v877_v8, %v875_v11  ;;  %v876_v19 = vsel %vm616_vm2, %v871_v13, %v875_v11  ;;  %v8087_v8 = vld [vmem:[%s8231_s22 + $0x160] sm:$0xff]  }
  0x70   : > { %v969_v13 = vshll.u32 %v8087_v8, 16  ;;  %v973_v17 = vshrl.u32 %v8087_v8, 16 }
  0x71   : > { %v884_v22 = vsel %vm616_vm2, %v879_v15, %v883_v16 }
  0x72   : > { %7536 = vmatmul.mubr.msk.bf16.gmra.mxu0 %vm1154_vm1, %v812_v35  ;;  %v907_v35 = vrot.slane %v905_v29, 1 }
  0x73   : > { %7674 = vmatmul.mubr.msk.bf16.gmra.mxu1 %vm1154_vm1, %v8068_v18  ;;  %7539 = vmatprep.mubr.msk.bf16.mxu0 %vm1154_vm1, %v820_v38  ;;  %v889_v18 = vshll.u32 %v8077_v12, 16 }
  0x74   : > { %7677 = vmatprep.mubr.msk.bf16.mxu1 %vm1154_vm1, %v8069_v28  ;;  %v8080_v28 = vld [vmem:[%s8231_s22 + $0x128] sm:$0xff]   ;;  %v911_v38 = vor.u32 %v909_v33, %v907_v35 }
  0x75   : > { %v891_v23 = vrot.slane %v889_v18, 1  ;;  %v913_v34 = vshll.u32 %v8080_v28, 16  ;;  %v917_v43 = vshrl.u32 %v8080_v28, 16 }
  0x77   : > { %v895_v26 = vor.u32 %v893_v20, %v891_v23  ;;  %v915_v39 = vrot.slane %v913_v34, 1  ;;  %v8089_v20 = vld [vmem:[%s8231_s22 + $0x170] sm:$0xff]  }
  0x78   : > { %v989_v29 = vshrl.u32 %v8089_v20, 16 }
  0x79   : > { %v900_v32 = vsel %vm616_vm2, %v895_v26, %v899_v27  ;;  %v916_v44 = vsel %vm616_vm2, %v911_v38, %v915_v39  ;;  %v919_v49 = vor.u32 %v917_v43, %v915_v39 }
  0x7a   : > { %7540 = vmatmul.mubr.msk.bf16.gmra.mxu0 %vm1154_vm1, %v828_v47  ;;  %v923_v47 = vrot.slane %v921_v41, 1 }
  0x7b   : > { %7678 = vmatmul.mubr.msk.bf16.gmra.mxu1 %vm1154_vm1, %v8070_v30  ;;  %7543 = vmatprep.mubr.msk.bf16.mxu0 %vm1154_vm1, %v836_v50  ;;  %v892_v30 = vsel %vm616_vm2, %v887_v25, %v891_v23  ;;  %v985_v25 = vshll.u32 %v8089_v20, 16 }
  0x7c   : > { %7681 = vmatprep.mubr.msk.bf16.mxu1 %vm1154_vm1, %v8071_v40  ;;  %v8082_v40 = vld [vmem:[%s8231_s22 + $0x138] sm:$0xff]   ;;  %v927_v50 = vor.u32 %v925_v45, %v923_v47 }
  0x7d   : > { %v929_v46 = vshll.u32 %v8082_v40, 16  ;;  %v933_v55 = vshrl.u32 %v8082_v40, 16  ;;  %v987_v31 = vrot.slane %v985_v25, 1 }
  0x7f   : > { %v931_v51 = vrot.slane %v929_v46, 1  ;;  %v991_v34 = vor.u32 %v989_v29, %v987_v31 }
  0x81   : > { %v932_v56 = vsel %vm616_vm2, %v927_v50, %v931_v51  ;;  %v935_v61 = vor.u32 %v933_v55, %v931_v51 }
  0x82   : > { %7544 = vmatmul.mubr.msk.bf16.gmra.mxu0 %vm1154_vm1, %v844_v59  ;;  %v939_v59 = vrot.slane %v937_v53, 1 }
  0x83   : > { %7682 = vmatmul.mubr.msk.bf16.gmra.mxu1 %vm1154_vm1, %v8072_v42  ;;  %7547 = vmatprep.mubr.msk.bf16.mxu0 %vm1154_vm1, %v852_v62  ;;  %v908_v42 = vsel %vm616_vm2, %v903_v37, %v907_v35 }
  0x84   : > { %7685 = vmatprep.mubr.msk.bf16.mxu1 %vm1154_vm1, %v8073_v52  ;;  %v8084_v52 = vld [vmem:[%s8231_s22 + $0x148] sm:$0xff]   ;;  %v943_v62 = vor.u32 %v941_v57, %v939_v59 }
  0x85   : > { %v945_v58 = vshll.u32 %v8084_v52, 16  ;;  %v949_v3 = vshrl.u32 %v8084_v52, 16 }
  0x87   : > { %v947_v63 = vrot.slane %v945_v58, 1 }
  0x89   : > { %v948_v4 = vsel %vm616_vm2, %v943_v62, %v947_v63  ;;  %v951_v9 = vor.u32 %v949_v3, %v947_v63 }
  0x8a   : > { %7548 = vmatmul.mubr.msk.bf16.gmra.mxu0 %vm1154_vm1, %v860_v7  ;;  %v955_v7 = vrot.slane %v953_v1, 1 }
  0x8b   : > { %7686 = vmatmul.mubr.msk.bf16.gmra.mxu1 %vm1154_vm1, %v8074_v54  ;;  %7551 = vmatprep.mubr.msk.bf16.mxu0 %vm1154_vm1, %v868_v10  ;;  %v924_v54 = vsel %vm616_vm2, %v919_v49, %v923_v47 }
  0x8c   : > { %7689 = vmatprep.mubr.msk.bf16.mxu1 %vm1154_vm1, %v8075_v0  ;;  %v8086_v0 = vld [vmem:[%s8231_s22 + $0x158] sm:$0xff]   ;;  %v959_v10 = vor.u32 %v957_v5, %v955_v7 }
  0x8d   : > { %v961_v6 = vshll.u32 %v8086_v0, 16  ;;  %v965_v15 = vshrl.u32 %v8086_v0, 16 }
  0x8f   : > { %v963_v11 = vrot.slane %v961_v6, 1 }
  0x91   : > { %v964_v16 = vsel %vm616_vm2, %v959_v10, %v963_v11  ;;  %v967_v21 = vor.u32 %v965_v15, %v963_v11 }
  0x92   : > { %7552 = vmatmul.mubr.msk.bf16.gmra.mxu0 %vm1154_vm1, %v876_v19  ;;  %v971_v19 = vrot.slane %v969_v13, 1 }
  0x93   : > { %7690 = vmatmul.mubr.msk.bf16.gmra.mxu1 %vm1154_vm1, %v8076_v2  ;;  %7555 = vmatprep.mubr.msk.bf16.mxu0 %vm1154_vm1, %v884_v22  ;;  %v940_v2 = vsel %vm616_vm2, %v935_v61, %v939_v59  ;;  %v8096_v61 = vld [vmem:[%s8231_s22 + $0x1a8] sm:$0xff]  }
  0x94   : > { %7693 = vmatprep.mubr.msk.bf16.mxu1 %vm1154_vm1, %v8077_v12  ;;  %v8088_v12 = vld [vmem:[%s8231_s22 + $0x168] sm:$0xff]   ;;  %v975_v22 = vor.u32 %v973_v17, %v971_v19  ;;  %v972_v26 = vsel %vm616_vm2, %v967_v21, %v971_v19  ;;  %v1041_v5 = vshll.u32 %v8096_v61, 16 }
  0x95   : > { %v977_v18 = vshll.u32 %v8088_v12, 16  ;;  %v981_v27 = vshrl.u32 %v8088_v12, 16 }
  0x96   : > { %v1043_v15 = vrot.slane %v1041_v5, 1 }
  0x97   : > { %v979_v23 = vrot.slane %v977_v18, 1 }
  0x99   : > { %v983_v33 = vor.u32 %v981_v27, %v979_v23 }
  0x9a   : > { %7556 = vmatmul.mubr.msk.bf16.gmra.mxu0 %vm1154_vm1, %v892_v30 }
  0x9b   : > { %7694 = vmatmul.mubr.msk.bf16.gmra.mxu1 %vm1154_vm1, %v8078_v14  ;;  %7559 = vmatprep.mubr.msk.bf16.mxu0 %vm1154_vm1, %v900_v32  ;;  %v956_v14 = vsel %vm616_vm2, %v951_v9, %v955_v7  ;;  %v8091_v32 = vld [vmem:[%s8231_s22 + $0x180] sm:$0xff]   ;;  %v988_v38 = vsel %vm616_vm2, %v983_v33, %v987_v31  ;;  %v8097_v9 = vld [vmem:[%s8231_s22 + $0x1b0] sm:$0xff]  }
  0x9c   : > { %7697 = vmatprep.mubr.msk.bf16.mxu1 %vm1154_vm1, %v8079_v24  ;;  %v8090_v24 = vld [vmem:[%s8231_s22 + $0x178] sm:$0xff]   ;;  %v1001_v37 = vshll.u32 %v8091_v32, 16  ;;  %v1005_v41 = vshrl.u32 %v8091_v32, 16  ;;  %v1053_v27 = vshrl.u32 %v8097_v9, 16  ;;  %v8099_v33 = vld [vmem:[%s8231_s22 + $0x1c0] sm:$0xff]  }
  0x9d   : > { %v993_v30 = vshll.u32 %v8090_v24, 16  ;;  %v997_v39 = vshrl.u32 %v8090_v24, 16 }
  0x9e   : > { %v1003_v43 = vrot.slane %v1001_v37, 1 }
  0x9f   : > { %v995_v35 = vrot.slane %v993_v30, 1 }
  0xa0   : > { %v1007_v46 = vor.u32 %v1005_v41, %v1003_v43 }
  0xa1   : > { %v999_v45 = vor.u32 %v997_v39, %v995_v35 }
  0xa2   : > { %7560 = vmatmul.mubr.msk.bf16.gmra.mxu0 %vm1154_vm1, %v908_v42 }
  0xa3   : > { %7698 = vmatmul.mubr.msk.bf16.gmra.mxu1 %vm1154_vm1, %v8080_v28  ;;  %7563 = vmatprep.mubr.msk.bf16.mxu0 %vm1154_vm1, %v916_v44  ;;  %v980_v28 = vsel %vm616_vm2, %v975_v22, %v979_v23  ;;  %v8093_v44 = vld [vmem:[%s8231_s22 + $0x190] sm:$0xff]   ;;  %v1004_v50 = vsel %vm616_vm2, %v999_v45, %v1003_v43 }
  0xa4   : > { %7701 = vmatprep.mubr.msk.bf16.mxu1 %vm1154_vm1, %v8081_v36  ;;  %v8092_v36 = vld [vmem:[%s8231_s22 + $0x188] sm:$0xff]   ;;  %v1017_v49 = vshll.u32 %v8093_v44, 16  ;;  %v1021_v53 = vshrl.u32 %v8093_v44, 16 }
  0xa5   : > { %v1009_v42 = vshll.u32 %v8092_v36, 16  ;;  %v1013_v51 = vshrl.u32 %v8092_v36, 16 }
  0xa6   : > { %v1019_v55 = vrot.slane %v1017_v49, 1 }
  0xa7   : > { %v1011_v47 = vrot.slane %v1009_v42, 1 }
  0xa8   : > { %v1023_v59 = vor.u32 %v1021_v53, %v1019_v55 }
  0xa9   : > { %v1015_v58 = vor.u32 %v1013_v51, %v1011_v47  ;;  %v1069_v51 = vshrl.u32 %v8099_v33, 16 }
  0xaa   : > { %7564 = vmatmul.mubr.msk.bf16.gmra.mxu0 %vm1154_vm1, %v924_v54 }
  0xab   : > { %7702 = vmatmul.mubr.msk.bf16.gmra.mxu1 %vm1154_vm1, %v8082_v40  ;;  %7567 = vmatprep.mubr.msk.bf16.mxu0 %vm1154_vm1, %v932_v56  ;;  %v996_v40 = vsel %vm616_vm2, %v991_v34, %v995_v35  ;;  %v8095_v56 = vld [vmem:[%s8231_s22 + $0x1a0] sm:$0xff]  }
  0xac   : > { %7705 = vmatprep.mubr.msk.bf16.mxu1 %vm1154_vm1, %v8083_v48  ;;  %v8094_v48 = vld [vmem:[%s8231_s22 + $0x198] sm:$0xff]   ;;  %v1033_v63 = vshll.u32 %v8095_v56, 16 }
  0xad   : > { %v1025_v54 = vshll.u32 %v8094_v48, 16 }
  0xb2   : > { %7568 = vmatmul.mubr.msk.bf16.gmra.mxu0 %vm1154_vm1, %v940_v2  ;;  %v1029_v2 = vshrl.u32 %v8094_v48, 16 }
  0xb3   : > { %7706 = vmatmul.mubr.msk.bf16.gmra.mxu1 %vm1154_vm1, %v8084_v52  ;;  %7571 = vmatprep.mubr.msk.bf16.mxu0 %vm1154_vm1, %v948_v4  ;;  %v1012_v52 = vsel %vm616_vm2, %v1007_v46, %v1011_v47  ;;  %v1037_v4 = vshrl.u32 %v8095_v56, 16 }
  0xb4   : > { %7709 = vmatprep.mubr.msk.bf16.mxu1 %vm1154_vm1, %v8085_v60  ;;  %v1027_v60 = vrot.slane %v1025_v54, 1 }
  0xb6   : > { %v1028_v3 = vsel %vm616_vm2, %v1023_v59, %v1027_v60 }
  0xba   : > { %7572 = vmatmul.mubr.msk.bf16.gmra.mxu0 %vm1154_vm1, %v956_v14 }
  0xbb   : > { %7710 = vmatmul.mubr.msk.bf16.gmra.mxu1 %vm1154_vm1, %v8086_v0  ;;  %7575 = vmatprep.mubr.msk.bf16.mxu0 %vm1154_vm1, %v964_v16  ;;  %v1020_v0 = vsel %vm616_vm2, %v1015_v58, %v1019_v55  ;;  %v8098_v16 = vld [vmem:[%s8231_s22 + $0x1b8] sm:$0xff]  }
  0xbc   : > { %7713 = vmatprep.mubr.msk.bf16.mxu1 %vm1154_vm1, %v8087_v8  ;;  %v1035_v8 = vrot.slane %v1033_v63, 1 }
  0xbe   : > { %v1039_v14 = vor.u32 %v1037_v4, %v1035_v8 }
  0xc2   : > { %7576 = vmatmul.mubr.msk.bf16.gmra.mxu0 %vm1154_vm1, %v972_v26  ;;  %v1044_v26 = vsel %vm616_vm2, %v1039_v14, %v1043_v15 }
  0xc3   : > { %7714 = vmatmul.mubr.msk.bf16.gmra.mxu1 %vm1154_vm1, %v8088_v12  ;;  %7579 = vmatprep.mubr.msk.bf16.mxu0 %vm1154_vm1, %v980_v28  ;;  %v1031_v12 = vor.u32 %v1029_v2, %v1027_v60  ;;  %v1057_v28 = vshll.u32 %v8098_v16, 16 }
  0xc4   : > { %7717 = vmatprep.mubr.msk.bf16.mxu1 %vm1154_vm1, %v8089_v20  ;;  %v1049_v20 = vshll.u32 %v8097_v9, 16 }
  0xc5   : > { %v1036_v22 = vsel %vm616_vm2, %v1031_v12, %v1035_v8  ;;  %v1059_v39 = vrot.slane %v1057_v28, 1 }
  0xca   : > { %7580 = vmatmul.mubr.msk.bf16.gmra.mxu0 %vm1154_vm1, %v988_v38 }
  0xcb   : > { %7718 = vmatmul.mubr.msk.bf16.gmra.mxu1 %vm1154_vm1, %v8090_v24  ;;  %7583 = vmatprep.mubr.msk.bf16.mxu0 %vm1154_vm1, %v996_v40  ;;  %v1045_v24 = vshrl.u32 %v8096_v61, 16  ;;  %v8100_v40 = vld [vmem:[%s8231_s22 + $0x1c8] sm:$0xff]  }
  0xcc   : > { %7721 = vmatprep.mubr.msk.bf16.mxu1 %vm1154_vm1, %v8091_v32  ;;  %v1051_v32 = vrot.slane %v1049_v20, 1  ;;  %v1077_v8 = vshrl.u32 %v8100_v40, 16 }
  0xce   : > { %v1055_v38 = vor.u32 %v1053_v27, %v1051_v32  ;;  %v8104_v27 = vld [vmem:[%s8231_s22 + $0x1e8] sm:$0xff]  }
  0xd2   : > { %7584 = vmatmul.mubr.msk.bf16.gmra.mxu0 %vm1154_vm1, %v1004_v50  ;;  %v1060_v50 = vsel %vm616_vm2, %v1055_v38, %v1059_v39 }
  0xd3   : > { %v7627_v57 = vpop.f32.mrf.mxu1  ;;  %7722 = vmatmul.mubr.msk.bf16.gmra.mxu1 %vm1154_vm1, %v8092_v36  ;;  %7587 = vmatprep.mubr.msk.bf16.mxu0 %vm1154_vm1, %v1012_v52  ;;  %v1047_v36 = vor.u32 %v1045_v24, %v1043_v15  ;;  %v1073_v52 = vshll.u32 %v8100_v40, 16 }
  0xd4   : > { %7725 = vmatprep.mubr.msk.bf16.mxu1 %vm1154_vm1, %v8093_v44  ;;  %v1065_v44 = vshll.u32 %v8099_v33, 16 }
  0xd5   : > { %v2092_v62 = vpop.f32.mrf.mxu1  ;;  %v1052_v46 = vsel %vm616_vm2, %v1047_v36, %v1051_v32  ;;  %v1075_v63 = vrot.slane %v1073_v52, 1 }
  0xd7   : > { %v7628_v1 = vpop.f32.mrf.mxu1 }
  0xd9   : > { %v2095_v6 = vpop.f32.mrf.mxu1 }
  0xda   : > { %v7493_v7 = vpop.f32.mrf.mxu0  ;;  %7588 = vmatmul.mubr.msk.bf16.gmra.mxu0 %vm1154_vm1, %v1020_v0  ;;  %v8102_v0 = vld [vmem:[%s8231_s22 + $0x1d8] sm:$0xff]  }
  0xdb   : > { %v8444_v10 = vadd.f32 %v7627_v57, %v7493_v7  ;;  %v7631_v11 = vpop.f32.mrf.mxu1  ;;  %7726 = vmatmul.mubr.msk.bf16.gmra.mxu1 %vm1154_vm1, %v8094_v48  ;;  %7591 = vmatprep.mubr.msk.bf16.mxu0 %vm1154_vm1, %v1028_v3  ;;  %v1061_v48 = vshrl.u32 %v8098_v16, 16  ;;  %v8101_v57 = vld [vmem:[%s8231_s22 + $0x1d0] sm:$0xff]  }
  0xdc   : > { %v1391_v13 = vpop.f32.mrf.mxu0  ;;  %7729 = vmatprep.mubr.msk.bf16.mxu1 %vm1154_vm1, %v8095_v56  ;;  %v1067_v56 = vrot.slane %v1065_v44, 1  ;;  %v1081_v4 = vshll.u32 %v8101_v57, 16  ;;  %v1085_v12 = vshrl.u32 %v8101_v57, 16 }
  0xdd   : > { %v8450_v17 = vadd.f32 %v2092_v62, %v1391_v13  ;;  %v2108_v18 = vpop.f32.mrf.mxu1  ;;  %v1063_v60 = vor.u32 %v1061_v48, %v1059_v39  ;;  %v1089_v13 = vshll.u32 %v8102_v0, 16  ;;  %v8105_v48 = vld [vmem:[%s8231_s22 + $0x1f0] sm:$0xff]  }
  0xde   : > { %v7494_v19 = vpop.f32.mrf.mxu0  ;;  %v1071_v62 = vor.u32 %v1069_v51, %v1067_v56 }
  0xdf   : > { %v8452_v21 = vadd.f32 %v7628_v1, %v7494_v19  ;;  %v7632_v23 = vpop.f32.mrf.mxu1  ;;  %v8103_v19 = vld [vmem:[%s8231_s22 + $0x1e0] sm:$0xff]  }
  0xe0   : > { %v1394_v25 = vpop.f32.mrf.mxu0  ;;  %v1097_v32 = vshll.u32 %v8103_v19, 16 }
  0xe1   : > { %v8456_v29 = vadd.f32 %v2095_v6, %v1394_v25  ;;  %v2111_v30 = vpop.f32.mrf.mxu1  ;;  %v1068_v6 = vsel %vm616_vm2, %v1063_v60, %v1067_v56  ;;  %v8106_v56 = vld [vmem:[%s8231_s22 + $0x1f8] sm:$0xff]  }
  0xe2   : > { %v7497_v31 = vpop.f32.mrf.mxu0  ;;  %7592 = vmatmul.mubr.msk.bf16.gmra.mxu0 %vm1154_vm1, %v1036_v22 }
  0xe3   : > { %v8460_v34 = vadd.f32 %v7631_v11, %v7497_v31  ;;  %v7635_v35 = vpop.f32.mrf.mxu1  ;;  %7730 = vmatmul.mubr.msk.bf16.gmra.mxu1 %vm1154_vm1, %v8096_v61  ;;  %7595 = vmatprep.mubr.msk.bf16.mxu0 %vm1154_vm1, %v1044_v26  ;;  %v1076_v11 = vsel %vm616_vm2, %v1071_v62, %v1075_v63  ;;  %v1091_v26 = vrot.slane %v1089_v13, 1  ;;  %v8107_v13 = vld [vmem:[%s8231_s22 + $0x200] sm:$0xff]  }
  0xe4   : > { %v1407_v37 = vpop.f32.mrf.mxu0  ;;  %7733 = vmatprep.mubr.msk.bf16.mxu1 %vm1154_vm1, %v8097_v9 }
  0xe5   : > { %v8466_v41 = vadd.f32 %v2108_v18, %v1407_v37  ;;  %v2124_v42 = vpop.f32.mrf.mxu1  ;;  %v1083_v18 = vrot.slane %v1081_v4, 1  ;;  %v1093_v37 = vshrl.u32 %v8102_v0, 16 }
  0xe6   : > { %v7498_v43 = vpop.f32.mrf.mxu0 }
  0xe7   : > { %v8468_v45 = vadd.f32 %v7632_v23, %v7498_v43  ;;  %v7636_v47 = vpop.f32.mrf.mxu1  ;;  %v1079_v23 = vor.u32 %v1077_v8, %v1075_v63  ;;  %v1087_v25 = vor.u32 %v1085_v12, %v1083_v18  ;;  %v1095_v51 = vor.u32 %v1093_v37, %v1091_v26 }
  0xe8   : > { %v1410_v49 = vpop.f32.mrf.mxu0 }
  0xe9   : > { %v8472_v53 = vadd.f32 %v2111_v30, %v1410_v49  ;;  %v2127_v54 = vpop.f32.mrf.mxu1  ;;  %v1092_v39 = vsel %vm616_vm2, %v1087_v25, %v1091_v26 }
  0xea   : > { %v7501_v55 = vpop.f32.mrf.mxu0  ;;  %7596 = vmatmul.mubr.msk.bf16.gmra.mxu0 %vm1154_vm1, %v1052_v46 }
  0xeb   : > { %v8476_v58 = vadd.f32 %v7635_v35, %v7501_v55  ;;  %v7639_v59 = vpop.f32.mrf.mxu1  ;;  %7734 = vmatmul.mubr.msk.bf16.gmra.mxu1 %vm1154_vm1, %v8098_v16  ;;  %7599 = vmatprep.mubr.msk.bf16.mxu0 %vm1154_vm1, %v1060_v50  ;;  %v1084_v35 = vsel %vm616_vm2, %v1079_v23, %v1083_v18 }
  0xec   : > { %v1423_v61 = vpop.f32.mrf.mxu0  ;;  %7737 = vmatprep.mubr.msk.bf16.mxu1 %vm1154_vm1, %v8099_v33 }
  0xed   : > { %v8482_v1 = vadd.f32 %v2124_v42, %v1423_v61  ;;  %v2140_v2 = vpop.f32.mrf.mxu1  ;;  %v1105_v42 = vshll.u32 %v8104_v27, 16  ;;  %v1113_v61 = vshll.u32 %v8105_v48, 16 }
  0xee   : > { %v7502_v3 = vpop.f32.mrf.mxu0 }
  0xef   : > { %v8484_v5 = vadd.f32 %v7636_v47, %v7502_v3  ;;  %v7640_v7 = vpop.f32.mrf.mxu1  ;;  %v1099_v47 = vrot.slane %v1097_v32, 1  ;;  %v1107_v55 = vrot.slane %v1105_v42, 1  ;;  %v1115_v12 = vrot.slane %v1113_v61, 1 }
  0xf0   : > { %v1426_v9 = vpop.f32.mrf.mxu0 }
  0xf1   : > { %v8488_v14 = vadd.f32 %v2127_v54, %v1426_v9  ;;  %v2143_v15 = vpop.f32.mrf.mxu1  ;;  %v1100_v63 = vsel %vm616_vm2, %v1095_v51, %v1099_v47  ;;  %v8542_v51 = vld [vmem:[%s8231_s22 + $0x18] sm:$0xff]  }
  0xf2   : > { %v7505_v16 = vpop.f32.mrf.mxu0  ;;  %7600 = vmatmul.mubr.msk.bf16.gmra.mxu0 %vm1154_vm1, %v1068_v6  ;;  %v1117_v6 = vshrl.u32 %v8105_v48, 16 }
  0xf3   : > { %v8492_v20 = vadd.f32 %v7639_v59, %v7505_v16  ;;  %v7643_v22 = vpop.f32.mrf.mxu1  ;;  %7738 = vmatmul.mubr.msk.bf16.gmra.mxu1 %vm1154_vm1, %v8100_v40  ;;  %7603 = vmatprep.mubr.msk.bf16.mxu0 %vm1154_vm1, %v1076_v11  ;;  %v1101_v40 = vshrl.u32 %v8103_v19, 16 }
  0xf4   : > { %v1439_v24 = vpop.f32.mrf.mxu0  ;;  %7741 = vmatprep.mubr.msk.bf16.mxu1 %vm1154_vm1, %v8101_v57 }
  0xf5   : > { %v8498_v28 = vadd.f32 %v2140_v2, %v1439_v24  ;;  %v2156_v30 = vpop.f32.mrf.mxu1  ;;  %v1103_v54 = vor.u32 %v1101_v40, %v1099_v47  ;;  %v1109_v2 = vshrl.u32 %v8104_v27, 16  ;;  %v8108_v24 = vld [vmem:[%s8231_s22 + $0x208] sm:$0xff]  }
  0xf6   : > { %v7506_v31 = vpop.f32.mrf.mxu0 }
  0xf7   : > { %v8500_v33 = vadd.f32 %v7640_v7, %v7506_v31  ;;  %v7644_v36 = vpop.f32.mrf.mxu1  ;;  %v1108_v4 = vsel %vm616_vm2, %v1103_v54, %v1107_v55  ;;  %v1121_v7 = vshll.u32 %v8106_v56, 16  ;;  %v1111_v18 = vor.u32 %v1109_v2, %v1107_v55  ;;  %v2620_v31 = vld [vmem:[%s8231_s22 + $0x14] sm:$0xf] }
  0xf8   : > { %v1442_v38 = vpop.f32.mrf.mxu0 }
  0xf9   : > { %v8504_v43 = vadd.f32 %v2143_v15, %v1442_v38  ;;  %v2159_v44 = vpop.f32.mrf.mxu1  ;;  %v1123_v23 = vrot.slane %v1121_v7, 1 }
  0xfa   : > { %v7509_v46 = vpop.f32.mrf.mxu0  ;;  %7604 = vmatmul.mubr.msk.bf16.gmra.mxu0 %vm1154_vm1, %v1084_v35  ;;  %v1129_v35 = vshll.u32 %v8107_v13, 16 }
  0xfb   : > { %v8508_v49 = vadd.f32 %v7643_v22, %v7509_v46  ;;  %v7647_v50 = vpop.f32.mrf.mxu1  ;;  %7742 = vmatmul.mubr.msk.bf16.gmra.mxu1 %vm1154_vm1, %v8102_v0  ;;  %7607 = vmatprep.mubr.msk.bf16.mxu0 %vm1154_vm1, %v1092_v39  ;;  %v1119_v22 = vor.u32 %v1117_v6, %v1115_v12  ;;  %v1125_v39 = vshrl.u32 %v8106_v56, 16  ;;  %v1137_v46 = vshll.u32 %v8108_v24, 16 }
  0xfc   : > { %v1455_v52 = vpop.f32.mrf.mxu0  ;;  %7745 = vmatprep.mubr.msk.bf16.mxu1 %vm1154_vm1, %v8103_v19  ;;  %v1131_v55 = vrot.slane %v1129_v35, 1 }
  0xfd   : > { %v8514_v57 = vadd.f32 %v2156_v30, %v1455_v52  ;;  %v2172_v59 = vpop.f32.mrf.mxu1  ;;  %v2619_v30 = vld [vmem:[%s8231_s22 + $0x10] sm:$0xf]  ;;  %v1124_v42 = vsel %vm616_vm2, %v1119_v22, %v1123_v23  ;;  %v1127_v61 = vor.u32 %v1125_v39, %v1123_v23 }
  0xfe   : > { %v7510_v60 = vpop.f32.mrf.mxu0  ;;  %v6751_v47 = vcombine.low %v2619_v30, %v2620_v31  ;;  %v8113_v30 = vld [vmem:[%s8231_s22 + $0x20] sm:$0xff]  }
  0xff   : > { %v8516_v62 = vadd.f32 %v7644_v36, %v7510_v60  ;;  %v7648_v0 = vpop.f32.mrf.mxu1  ;;  %v4519_v36 = vld [vmem:[%s8231_s22 + $0x10] sm:$0xe] }
 0x100   : > { %v1458_v3 = vpop.f32.mrf.mxu0  ;;  %v6887_v52 = vcombine.low %v4519_v36, %v2620_v31 }
 0x101   : > { %v8520_v8 = vadd.f32 %v2159_v44, %v1458_v3  ;;  %v2175_v9 = vpop.f32.mrf.mxu1  ;;  %v1133_v44 = vshrl.u32 %v8107_v13, 16  ;;  %v1139_v3 = vrot.slane %v1137_v46, 1 }
 0x102   : > { %v7513_v11 = vpop.f32.mrf.mxu0  ;;  %7608 = vmatmul.mubr.msk.bf16.gmra.mxu0 %vm1154_vm1, %v1100_v63  ;;  %v8109_v63 = vld [vmem:[%s8231_s22 + $0x210] ss:$0 sps:$4 sm:$0x11]  }
 0x103   : > { %v8524_v15 = vadd.f32 %v7647_v50, %v7513_v11  ;;  %v7651_v16 = vpop.f32.mrf.mxu1  ;;  %7746 = vmatmul.mubr.msk.bf16.gmra.mxu1 %vm1154_vm1, %v8104_v27  ;;  %7611 = vmatprep.mubr.msk.bf16.mxu0 %vm1154_vm1, %v1108_v4  ;;  %v1116_v27 = vsel %vm616_vm2, %v1111_v18, %v1115_v12  ;;  %v1135_v2 = vor.u32 %v1133_v44, %v1131_v55  ;;  %v3091_v4 = vshll.u32 %v6751_v47, 16 }
 0x104   : > { %v1471_v19 = vpop.f32.mrf.mxu0  ;;  %7749 = vmatprep.mubr.msk.bf16.mxu1 %vm1154_vm1, %v8105_v48  ;;  %v4528_v11 = vrot.slane %v8542_v51, 1 }
 0x105   : > { %v8530_v25 = vadd.f32 %v2172_v59, %v1471_v19  ;;  %v2188_v26 = vpop.f32.mrf.mxu1  ;;  %v1141_v19 = vshrl.u32 %v8108_v24, 16  ;;  %v1140_v23 = vsel %vm616_vm2, %v1135_v2, %v1139_v3  ;;  %v3093_v31 = vrot.slane %v3091_v4, 1 }
 0x106   : > { %v7514_v32 = vpop.f32.mrf.mxu0  ;;  %v3100_v4 = vshrl.u32 %v8542_v51, 16 }
 0x107   : > { %v8535_v37 = vadd.f32 %v7648_v0, %v7514_v32  ;;  %v7652_v38 = vpop.f32.mrf.mxu1  ;;  %v3096_v32 = vshll.u32 %v8542_v51, 16  ;;  %v1143_v44 = vor.u32 %v1141_v19, %v1139_v3  ;;  %v3108_v19 = vshrl.u32 %v8113_v30, 16 }
 0x108   : > { %v1474_v40 = vpop.f32.mrf.mxu0 }
 0x109   : > { %v8539_v48 = vadd.f32 %v2175_v9, %v1474_v40  ;;  %v2191_v50 = vpop.f32.mrf.mxu1  ;;  %v4527_v9 = vrot.slane %v6887_v52, 1 }
 0x10a   : > { %v7517_v54 = vpop.f32.mrf.mxu0  ;;  %7612 = vmatmul.mubr.msk.bf16.gmra.mxu0 %vm1154_vm1, %v1116_v27 }
 0x10b   : > { %v8545_v59 = vadd.f32 %v7651_v16, %v7517_v54  ;;  %v7655_v60 = vpop.f32.mrf.mxu1  ;;  %7750 = vmatmul.mubr.msk.bf16.gmra.mxu1 %vm1154_vm1, %v8106_v56  ;;  %7615 = vmatprep.mubr.msk.bf16.mxu0 %vm1154_vm1, %v1124_v42  ;;  %v1132_v16 = vsel %vm616_vm2, %v1127_v61, %v1131_v55  ;;  %v4529_v27 = vsel %vm4526_vm3, %v4527_v9, %v4528_v11  ;;  %v3098_v54 = vrot.slane %v3096_v32, 1 }
 0x10c   : > { %v1487_v0 = vpop.f32.mrf.mxu0  ;;  %7753 = vmatprep.mubr.msk.bf16.mxu1 %vm1154_vm1, %v8107_v13  ;;  %v1145_v13 = vshll.u32 %v8109_v63, 16 }
 0x10d   : > { %v8551_v6 = vadd.f32 %v2188_v26, %v1487_v0  ;;  %v2204_v7 = vpop.f32.mrf.mxu1  ;;  %v3089_v26 = vshrl.u32 %v6751_v47, 16  ;;  %v3104_v0 = vshll.u32 %v8113_v30, 16 }
 0x10e   : > { %v7518_v12 = vpop.f32.mrf.mxu0  ;;  %v1147_v46 = vrot.slane %v1145_v13, 1 }
 0x10f   : > { %v8554_v56 = vadd.f32 %v7652_v38, %v7518_v12  ;;  %v7656_v18 = vpop.f32.mrf.mxu1  ;;  %v8564_v38 = vld [vmem:[%s8231_s22 + $0x28] sm:$0xff]   ;;  %v3094_v52 = vor.u32 %v3093_v31, %v3089_v26  ;;  %v8587_v26 = vld [vmem:[%s8231_s22 + $0x38] sm:$0xff]   ;;  %v3106_v51 = vrot.slane %v3104_v0, 1 }
 0x110   : > { %v1490_v22 = vpop.f32.mrf.mxu0  ;;  %v1148_v2 = vsel %vm616_vm2, %v1143_v44, %v1147_v46  ;;  %v3112_v13 = vshll.u32 %v8564_v38, 16 }
 0x111   : > { %v8560_v35 = vadd.f32 %v2191_v50, %v1490_v22  ;;  %v2207_v36 = vpop.f32.mrf.mxu1  ;;  %v4530_v50 = vrot.slane %v8113_v30, 1 }
 0x112   : > { %v7521_v39 = vpop.f32.mrf.mxu0  ;;  %7616 = vmatmul.mubr.msk.bf16.gmra.mxu0 %vm1154_vm1, %v1132_v16  ;;  %v3099_v16 = vsel %vm616_vm2, %v3094_v52, %v3098_v54  ;;  %v3114_v44 = vrot.slane %v3112_v13, 1 }
 0x113   : > { %v8567_v40 = vadd.f32 %v7655_v60, %v7521_v39  ;;  %v7659_v42 = vpop.f32.mrf.mxu1  ;;  %7754 = vmatmul.mubr.msk.bf16.gmra.mxu1 %vm1154_vm1, %v8108_v24  ;;  %7619 = vmatprep.mubr.msk.bf16.mxu0 %vm1154_vm1, %v1140_v23  ;;  %v4532_v60 = vrot.slane %v8564_v38, 1  ;;  %v4531_v12 = vsel %vm4526_vm3, %v4528_v11, %v4530_v50  ;;  %v3110_v39 = vor.u32 %v3108_v19, %v3106_v51 }
 0x114   : > { %v1503_v47 = vpop.f32.mrf.mxu0  ;;  %7893 = vmatprep.mubr.msk.bf16.mxu1 %vm1154_vm1, %v4529_v27  ;;  %v3102_v27 = vor.u32 %v3100_v4, %v3098_v54  ;;  %v3128_v19 = vshll.u32 %v8587_v26, 16 }
 0x115   : > { %v8572_v55 = vadd.f32 %v2204_v7, %v1503_v47  ;;  %v2220_v61 = vpop.f32.mrf.mxu1  ;;  %v8115_v7 = vld [vmem:[%s8231_s22 + $0x30] sm:$0xff]  }
 0x116   : > { %v7522_v63 = vpop.f32.mrf.mxu0  ;;  %v3120_v52 = vshll.u32 %v8115_v7, 16  ;;  %v3107_v0 = vsel %vm616_vm2, %v3102_v27, %v3106_v51 }
 0x117   : > { %v8575_v24 = vadd.f32 %v7656_v18, %v7522_v63  ;;  %v7660_v3 = vpop.f32.mrf.mxu1  ;;  %v4533_v18 = vsel %vm4526_vm3, %v4530_v50, %v4532_v60  ;;  %v4536_v50 = vrot.slane %v8587_v26, 1 }
 0x118   : > { %v1506_v9 = vpop.f32.mrf.mxu0 }
 0x119   : > { %v8583_v22 = vadd.f32 %v2207_v36, %v1506_v9  ;;  %v2223_v23 = vpop.f32.mrf.mxu1  ;;  %v4534_v36 = vrot.slane %v8115_v7, 1 }
 0x11a   : > { %v7525_v31 = vpop.f32.mrf.mxu0  ;;  %7620 = vmatmul.mubr.msk.bf16.gmra.mxu0 %vm1154_vm1, %v1148_v2  ;;  %v3116_v2 = vshrl.u32 %v8564_v38, 16  ;;  %v3122_v38 = vrot.slane %v3120_v52, 1 }
 0x11b   : > { %9722 = vst [vmem:[#allocation2_spill] sm:$0xff] %v8583_v22  ;;  %v8590_v32 = vadd.f32 %v7659_v42, %v7525_v31  ;;  %v7663_v11 = vpop.f32.mrf.mxu1  ;;  %7894 = vmatmul.mubr.msk.bf16.vlgmr.msra.gmra.mxu1 %vm1154_vm1, %v4531_v12  ;;  %7759 = vmatprep.mubr.msk.bf16.mxu0 %vm1154_vm1, %v3099_v16  ;;  %v4535_v9 = vsel %vm4526_vm3, %v4532_v60, %v4534_v36  ;;  %v3124_v16 = vshrl.u32 %v8115_v7, 16  ;;  %v8610_v31 = vld [vmem:[%s8231_s22 + $0x48] sm:$0xff]  }
 0x11c   : > { %v1519_v30 = vpop.f32.mrf.mxu0  ;;  %7897 = vmatprep.mubr.msk.bf16.mxu1 %vm1154_vm1, %v4533_v18  ;;  %v3115_v12 = vsel %vm616_vm2, %v3110_v39, %v3114_v44  ;;  %v3118_v27 = vor.u32 %v3116_v2, %v3114_v44  ;;  %v3130_v39 = vrot.slane %v3128_v19, 1  ;;  %v4540_v52 = vrot.slane %v8610_v31, 1 }
 0x11d   : > { %9723 = vst [vmem:[#allocation3_spill] sm:$0xff] %v8590_v32  ;;  %v8595_v46 = vadd.f32 %v2220_v61, %v1519_v30  ;;  %v2236_v47 = vpop.f32.mrf.mxu1  ;;  %v8117_v61 = vld [vmem:[%s8231_s22 + $0x40] sm:$0xff]   ;;  %v9163_v32 = vld [vmem:[%s8231_s22 + $0x1d0] sm:$0xff]  }
 0x11e   : > { %v7526_v42 = vpop.f32.mrf.mxu0  ;;  %v3123_v2 = vsel %vm616_vm2, %v3118_v27, %v3122_v38  ;;  %v3140_v19 = vshrl.u32 %v8117_v61, 16 }
 0x11f   : > { %9724 = vst [vmem:[#allocation4_spill] sm:$0xff] %v8595_v46  ;;  %v8598_v63 = vadd.f32 %v7660_v3, %v7526_v42  ;;  %v7664_v54 = vpop.f32.mrf.mxu1  ;;  %v4537_v3 = vsel %vm4526_vm3, %v4534_v36, %v4536_v50  ;;  %v3126_v36 = vor.u32 %v3124_v16, %v3122_v38 }
 0x120   : > { %v1522_v4 = vpop.f32.mrf.mxu0 }
 0x121   : > { %9725 = vst [vmem:[#allocation5_spill] sm:$0xff] %v8598_v63  ;;  %v8606_v13 = vadd.f32 %v2223_v23, %v1522_v4  ;;  %v2239_v18 = vpop.f32.mrf.mxu1  ;;  %v4538_v23 = vrot.slane %v8117_v61, 1  ;;  %v3131_v16 = vsel %vm616_vm2, %v3126_v36, %v3130_v39 }
 0x122   : > { %v7529_v30 = vpop.f32.mrf.mxu0  ;;  %7760 = vmatmul.mubr.msk.bf16.vlgmr.msra.gmra.mxu0 %vm1154_vm1, %v3107_v0  ;;  %v3136_v0 = vshll.u32 %v8117_v61, 16 }
 0x123   : > { %9726 = vst [vmem:[#allocation6_spill] sm:$0xff] %v8606_v13  ;;  %v8613_v51 = vadd.f32 %v7663_v11, %v7529_v30  ;;  %v7667_v60 = vpop.f32.mrf.mxu1  ;;  %7898 = vmatmul.mubr.msk.bf16.gmra.mxu1 %vm1154_vm1, %v4535_v9  ;;  %7763 = vmatprep.mubr.msk.bf16.mxu0 %vm1154_vm1, %v3115_v12  ;;  %v3132_v9 = vshrl.u32 %v8587_v26, 16 }
 0x124   : > { %v1535_v7 = vpop.f32.mrf.mxu0  ;;  %7901 = vmatprep.mubr.msk.bf16.mxu1 %vm1154_vm1, %v4537_v3  ;;  %v4539_v3 = vsel %vm4526_vm3, %v4536_v50, %v4538_v23  ;;  %v3138_v26 = vrot.slane %v3136_v0, 1 }
 0x125   : > { %9727 = vst [vmem:[#allocation7_spill] sm:$0xff] %v8613_v51  ;;  %v8618_v42 = vadd.f32 %v2236_v47, %v1535_v7  ;;  %v2252_v4 = vpop.f32.mrf.mxu1  ;;  %v8119_v47 = vld [vmem:[%s8231_s22 + $0x50] sm:$0xff]   ;;  %v3144_v7 = vshll.u32 %v8610_v31, 16  ;;  %v3134_v27 = vor.u32 %v3132_v9, %v3130_v39 }
 0x126   : > { %v7530_v11 = vpop.f32.mrf.mxu0 }
 0x127   : > { %9728 = vst [vmem:[#allocation8_spill] sm:$0xff] %v8618_v42  ;;  %v8621_v30 = vadd.f32 %v7664_v54, %v7530_v11  ;;  %v7668_v44 = vpop.f32.mrf.mxu1  ;;  %v4541_v54 = vsel %vm4526_vm3, %v4538_v23, %v4540_v52  ;;  %v8633_v11 = vld [vmem:[%s8231_s22 + $0x58] sm:$0xff]   ;;  %v3142_v23 = vor.u32 %v3140_v19, %v3138_v26  ;;  %v3146_v36 = vrot.slane %v3144_v7, 1 }
 0x128   : > { %v1538_v12 = vpop.f32.mrf.mxu0  ;;  %v4544_v0 = vrot.slane %v8633_v11, 1  ;;  %v3139_v9 = vsel %vm616_vm2, %v3134_v27, %v3138_v26  ;;  %v3156_v7 = vshrl.u32 %v8119_v47, 16 }
 0x129   : > { %9729 = vst [vmem:[#allocation9_spill] sm:$0xff] %v8621_v30  ;;  %v8629_v42 = vadd.f32 %v2239_v18, %v1538_v12  ;;  %v2255_v51 = vpop.f32.mrf.mxu1  ;;  %v4542_v18 = vrot.slane %v8119_v47, 1  ;;  %v3147_v19 = vsel %vm616_vm2, %v3142_v23, %v3146_v36 }
 0x12a   : > { %v7533_v30 = vpop.f32.mrf.mxu0  ;;  %7764 = vmatmul.mubr.msk.bf16.gmra.mxu0 %vm1154_vm1, %v3123_v2 }
 0x12b   : > { %9730 = vst [vmem:[#allocation10_spill] sm:$0xff] %v8629_v42  ;;  %v8636_v38 = vadd.f32 %v7667_v60, %v7533_v30  ;;  %v7671_v50 = vpop.f32.mrf.mxu1  ;;  %7902 = vmatmul.mubr.msk.bf16.gmra.mxu1 %vm1154_vm1, %v4539_v3  ;;  %7767 = vmatprep.mubr.msk.bf16.mxu0 %vm1154_vm1, %v3131_v16  ;;  %v3152_v30 = vshll.u32 %v8119_v47, 16  ;;  %v3148_v3 = vshrl.u32 %v8610_v31, 16 }
 0x12c   : > { %v1551_v61 = vpop.f32.mrf.mxu0  ;;  %7905 = vmatprep.mubr.msk.bf16.mxu1 %vm1154_vm1, %v4541_v54  ;;  %v4543_v54 = vsel %vm4526_vm3, %v4540_v52, %v4542_v18 }
 0x12d   : > { %9731 = vst [vmem:[#allocation11_spill] sm:$0xff] %v8636_v38  ;;  %v8641_v12 = vadd.f32 %v2252_v4, %v1551_v61  ;;  %v2268_v42 = vpop.f32.mrf.mxu1  ;;  %v8121_v4 = vld [vmem:[%s8231_s22 + $0x60] sm:$0xff]   ;;  %v3160_v61 = vshll.u32 %v8633_v11, 16  ;;  %v3154_v31 = vrot.slane %v3152_v30, 1  ;;  %v3150_v27 = vor.u32 %v3148_v3, %v3146_v36 }
 0x12e   : > { %v7534_v60 = vpop.f32.mrf.mxu0 }
 0x12f   : > { %9732 = vst [vmem:[#allocation12_spill] sm:$0xff] %v8641_v12  ;;  %v8644_v2 = vadd.f32 %v7668_v44, %v7534_v60  ;;  %v7672_v39 = vpop.f32.mrf.mxu1  ;;  %v4545_v44 = vsel %vm4526_vm3, %v4542_v18, %v4544_v0  ;;  %v8656_v60 = vld [vmem:[%s8231_s22 + $0x68] sm:$0xff]   ;;  %v3158_v18 = vor.u32 %v3156_v7, %v3154_v31  ;;  %v3162_v23 = vrot.slane %v3160_v61, 1 }
 0x130   : > { %v1554_v16 = vpop.f32.mrf.mxu0  ;;  %v4548_v30 = vrot.slane %v8656_v60, 1  ;;  %v3155_v3 = vsel %vm616_vm2, %v3150_v27, %v3154_v31  ;;  %v3172_v61 = vshrl.u32 %v8121_v4, 16 }
 0x131   : > { %9733 = vst [vmem:[#allocation13_spill] sm:$0xff] %v8644_v2  ;;  %v8652_v12 = vadd.f32 %v2255_v51, %v1554_v16  ;;  %v2271_v38 = vpop.f32.mrf.mxu1  ;;  %v4546_v51 = vrot.slane %v8121_v4, 1  ;;  %v3163_v7 = vsel %vm616_vm2, %v3158_v18, %v3162_v23 }
 0x132   : > { %v7537_v2 = vpop.f32.mrf.mxu0  ;;  %7768 = vmatmul.mubr.msk.bf16.gmra.mxu0 %vm1154_vm1, %v3139_v9 }
 0x133   : > { %9734 = vst [vmem:[#allocation14_spill] sm:$0xff] %v8652_v12  ;;  %v8659_v26 = vadd.f32 %v7671_v50, %v7537_v2  ;;  %v7675_v52 = vpop.f32.mrf.mxu1  ;;  %7906 = vmatmul.mubr.msk.bf16.gmra.mxu1 %vm1154_vm1, %v4543_v54  ;;  %7771 = vmatprep.mubr.msk.bf16.mxu0 %vm1154_vm1, %v3147_v19  ;;  %v3168_v2 = vshll.u32 %v8121_v4, 16  ;;  %v3164_v54 = vshrl.u32 %v8633_v11, 16 }
 0x134   : > { %v1567_v47 = vpop.f32.mrf.mxu0  ;;  %7909 = vmatprep.mubr.msk.bf16.mxu1 %vm1154_vm1, %v4545_v44  ;;  %v4547_v44 = vsel %vm4526_vm3, %v4544_v0, %v4546_v51 }
 0x135   : > { %9735 = vst [vmem:[#allocation15_spill] sm:$0xff] %v8659_v26  ;;  %v8664_v16 = vadd.f32 %v2268_v42, %v1567_v47  ;;  %v2284_v12 = vpop.f32.mrf.mxu1  ;;  %v8123_v42 = vld [vmem:[%s8231_s22 + $0x70] sm:$0xff]   ;;  %v3176_v47 = vshll.u32 %v8656_v60, 16  ;;  %v3170_v11 = vrot.slane %v3168_v2, 1  ;;  %v3166_v27 = vor.u32 %v3164_v54, %v3162_v23 }
 0x136   : > { %v7538_v50 = vpop.f32.mrf.mxu0 }
 0x137   : > { %9736 = vst [vmem:[#allocation16_spill] sm:$0xff] %v8664_v16  ;;  %v8667_v9 = vadd.f32 %v7672_v39, %v7538_v50  ;;  %v7676_v36 = vpop.f32.mrf.mxu1  ;;  %v4549_v39 = vsel %vm4526_vm3, %v4546_v51, %v4548_v30  ;;  %v8679_v50 = vld [vmem:[%s8231_s22 + $0x78] sm:$0xff]   ;;  %v3174_v51 = vor.u32 %v3172_v61, %v3170_v11  ;;  %v3178_v18 = vrot.slane %v3176_v47, 1 }
 0x138   : > { %v1570_v19 = vpop.f32.mrf.mxu0  ;;  %v4552_v2 = vrot.slane %v8679_v50, 1  ;;  %v3171_v54 = vsel %vm616_vm2, %v3166_v27, %v3170_v11  ;;  %v3188_v47 = vshrl.u32 %v8123_v42, 16 }
 0x139   : > { %9737 = vst [vmem:[#allocation17_spill] sm:$0xff] %v8667_v9  ;;  %v8675_v16 = vadd.f32 %v2271_v38, %v1570_v19  ;;  %v2287_v26 = vpop.f32.mrf.mxu1  ;;  %v4550_v38 = vrot.slane %v8123_v42, 1  ;;  %v3179_v61 = vsel %vm616_vm2, %v3174_v51, %v3178_v18 }
 0x13a   : > { %v7541_v9 = vpop.f32.mrf.mxu0  ;;  %7772 = vmatmul.mubr.msk.bf16.gmra.mxu0 %vm1154_vm1, %v3155_v3 }
 0x13b   : > { %9738 = vst [vmem:[#allocation18_spill] sm:$0xff] %v8675_v16  ;;  %v8682_v31 = vadd.f32 %v7675_v52, %v7541_v9  ;;  %v7679_v0 = vpop.f32.mrf.mxu1  ;;  %7910 = vmatmul.mubr.msk.bf16.gmra.mxu1 %vm1154_vm1, %v4547_v44  ;;  %7775 = vmatprep.mubr.msk.bf16.mxu0 %vm1154_vm1, %v3163_v7  ;;  %v3184_v9 = vshll.u32 %v8123_v42, 16  ;;  %v3180_v44 = vshrl.u32 %v8656_v60, 16 }
 0x13c   : > { %v1583_v4 = vpop.f32.mrf.mxu0  ;;  %7913 = vmatprep.mubr.msk.bf16.mxu1 %vm1154_vm1, %v4549_v39  ;;  %v4551_v39 = vsel %vm4526_vm3, %v4548_v30, %v4550_v38 }
 0x13d   : > { %9739 = vst [vmem:[#allocation19_spill] sm:$0xff] %v8682_v31  ;;  %v8687_v19 = vadd.f32 %v2284_v12, %v1583_v4  ;;  %v2300_v16 = vpop.f32.mrf.mxu1  ;;  %v8125_v12 = vld [vmem:[%s8231_s22 + $0x80] sm:$0xff]   ;;  %v3192_v4 = vshll.u32 %v8679_v50, 16  ;;  %v3186_v60 = vrot.slane %v3184_v9, 1  ;;  %v3182_v27 = vor.u32 %v3180_v44, %v3178_v18 }
 0x13e   : > { %v7542_v52 = vpop.f32.mrf.mxu0 }
 0x13f   : > { %9740 = vst [vmem:[#allocation20_spill] sm:$0xff] %v8687_v19  ;;  %v8690_v3 = vadd.f32 %v7676_v36, %v7542_v52  ;;  %v7680_v23 = vpop.f32.mrf.mxu1  ;;  %v4553_v36 = vsel %vm4526_vm3, %v4550_v38, %v4552_v2  ;;  %v8702_v52 = vld [vmem:[%s8231_s22 + $0x88] sm:$0xff]   ;;  %v3190_v38 = vor.u32 %v3188_v47, %v3186_v60  ;;  %v3194_v51 = vrot.slane %v3192_v4, 1 }
 0x140   : > { %v1586_v7 = vpop.f32.mrf.mxu0  ;;  %v4556_v9 = vrot.slane %v8702_v52, 1  ;;  %v3187_v44 = vsel %vm616_vm2, %v3182_v27, %v3186_v60  ;;  %v3204_v4 = vshrl.u32 %v8125_v12, 16 }
 0x141   : > { %9741 = vst [vmem:[#allocation21_spill] sm:$0xff] %v8690_v3  ;;  %v8698_v19 = vadd.f32 %v2287_v26, %v1586_v7  ;;  %v2303_v31 = vpop.f32.mrf.mxu1  ;;  %v4554_v26 = vrot.slane %v8125_v12, 1  ;;  %v3195_v47 = vsel %vm616_vm2, %v3190_v38, %v3194_v51 }
 0x142   : > { %v7545_v3 = vpop.f32.mrf.mxu0  ;;  %7776 = vmatmul.mubr.msk.bf16.gmra.mxu0 %vm1154_vm1, %v3171_v54 }
 0x143   : > { %9742 = vst [vmem:[#allocation22_spill] sm:$0xff] %v8698_v19  ;;  %v8705_v11 = vadd.f32 %v7679_v0, %v7545_v3  ;;  %v7683_v30 = vpop.f32.mrf.mxu1  ;;  %7914 = vmatmul.mubr.msk.bf16.gmra.mxu1 %vm1154_vm1, %v4551_v39  ;;  %7779 = vmatprep.mubr.msk.bf16.mxu0 %vm1154_vm1, %v3179_v61  ;;  %v3200_v3 = vshll.u32 %v8125_v12, 16  ;;  %v3196_v39 = vshrl.u32 %v8679_v50, 16 }
 0x144   : > { %v1599_v42 = vpop.f32.mrf.mxu0  ;;  %7917 = vmatprep.mubr.msk.bf16.mxu1 %vm1154_vm1, %v4553_v36  ;;  %v4555_v36 = vsel %vm4526_vm3, %v4552_v2, %v4554_v26 }
 0x145   : > { %9743 = vst [vmem:[#allocation23_spill] sm:$0xff] %v8705_v11  ;;  %v8710_v7 = vadd.f32 %v2300_v16, %v1599_v42  ;;  %v2316_v19 = vpop.f32.mrf.mxu1  ;;  %v8127_v16 = vld [vmem:[%s8231_s22 + $0x90] sm:$0xff]   ;;  %v3208_v42 = vshll.u32 %v8702_v52, 16  ;;  %v3202_v50 = vrot.slane %v3200_v3, 1  ;;  %v3198_v27 = vor.u32 %v3196_v39, %v3194_v51 }
 0x146   : > { %v7546_v0 = vpop.f32.mrf.mxu0 }
 0x147   : > { %9744 = vst [vmem:[#allocation24_spill] sm:$0xff] %v8710_v7  ;;  %v8713_v54 = vadd.f32 %v7680_v23, %v7546_v0  ;;  %v7684_v18 = vpop.f32.mrf.mxu1  ;;  %v4557_v23 = vsel %vm4526_vm3, %v4554_v26, %v4556_v9  ;;  %v8725_v0 = vld [vmem:[%s8231_s22 + $0x98] sm:$0xff]   ;;  %v3206_v26 = vor.u32 %v3204_v4, %v3202_v50  ;;  %v3210_v38 = vrot.slane %v3208_v42, 1 }
 0x148   : > { %v1602_v61 = vpop.f32.mrf.mxu0  ;;  %v4560_v3 = vrot.slane %v8725_v0, 1  ;;  %v3203_v39 = vsel %vm616_vm2, %v3198_v27, %v3202_v50  ;;  %v3220_v42 = vshrl.u32 %v8127_v16, 16 }
 0x149   : > { %9745 = vst [vmem:[#allocation25_spill] sm:$0xff] %v8713_v54  ;;  %v8721_v7 = vadd.f32 %v2303_v31, %v1602_v61  ;;  %v2319_v11 = vpop.f32.mrf.mxu1  ;;  %v4558_v31 = vrot.slane %v8127_v16, 1  ;;  %v3211_v4 = vsel %vm616_vm2, %v3206_v26, %v3210_v38 }
 0x14a   : > { %v7549_v54 = vpop.f32.mrf.mxu0  ;;  %7780 = vmatmul.mubr.msk.bf16.gmra.mxu0 %vm1154_vm1, %v3187_v44 }
 0x14b   : > { %9746 = vst [vmem:[#allocation26_spill] sm:$0xff] %v8721_v7  ;;  %v8728_v60 = vadd.f32 %v7683_v30, %v7549_v54  ;;  %v7687_v2 = vpop.f32.mrf.mxu1  ;;  %7918 = vmatmul.mubr.msk.bf16.gmra.mxu1 %vm1154_vm1, %v4555_v36  ;;  %7783 = vmatprep.mubr.msk.bf16.mxu0 %vm1154_vm1, %v3195_v47  ;;  %v3216_v54 = vshll.u32 %v8127_v16, 16  ;;  %v3212_v36 = vshrl.u32 %v8702_v52, 16 }
 0x14c   : > { %v1615_v12 = vpop.f32.mrf.mxu0  ;;  %7921 = vmatprep.mubr.msk.bf16.mxu1 %vm1154_vm1, %v4557_v23  ;;  %v4559_v23 = vsel %vm4526_vm3, %v4556_v9, %v4558_v31 }
 0x14d   : > { %9747 = vst [vmem:[#allocation27_spill] sm:$0xff] %v8728_v60  ;;  %v8733_v61 = vadd.f32 %v2316_v19, %v1615_v12  ;;  %v2332_v7 = vpop.f32.mrf.mxu1  ;;  %v8129_v19 = vld [vmem:[%s8231_s22 + $0xa0] sm:$0xff]   ;;  %v3224_v12 = vshll.u32 %v8725_v0, 16  ;;  %v3218_v52 = vrot.slane %v3216_v54, 1  ;;  %v3214_v27 = vor.u32 %v3212_v36, %v3210_v38 }
 0x14e   : > { %v7550_v30 = vpop.f32.mrf.mxu0 }
 0x14f   : > { %9748 = vst [vmem:[#allocation28_spill] sm:$0xff] %v8733_v61  ;;  %v8736_v44 = vadd.f32 %v7684_v18, %v7550_v30  ;;  %v7688_v51 = vpop.f32.mrf.mxu1  ;;  %v4561_v18 = vsel %vm4526_vm3, %v4558_v31, %v4560_v3  ;;  %v8748_v30 = vld [vmem:[%s8231_s22 + $0xa8] sm:$0xff]   ;;  %v3222_v31 = vor.u32 %v3220_v42, %v3218_v52  ;;  %v3226_v26 = vrot.slane %v3224_v12, 1 }
 0x150   : > { %v1618_v47 = vpop.f32.mrf.mxu0  ;;  %v4564_v54 = vrot.slane %v8748_v30, 1  ;;  %v3219_v36 = vsel %vm616_vm2, %v3214_v27, %v3218_v52  ;;  %v3236_v12 = vshrl.u32 %v8129_v19, 16 }
 0x151   : > { %9749 = vst [vmem:[#allocation29_spill] sm:$0xff] %v8736_v44  ;;  %v8744_v61 = vadd.f32 %v2319_v11, %v1618_v47  ;;  %v2335_v60 = vpop.f32.mrf.mxu1  ;;  %v4562_v11 = vrot.slane %v8129_v19, 1  ;;  %v3227_v42 = vsel %vm616_vm2, %v3222_v31, %v3226_v26 }
 0x152   : > { %v7553_v44 = vpop.f32.mrf.mxu0  ;;  %7784 = vmatmul.mubr.msk.bf16.gmra.mxu0 %vm1154_vm1, %v3203_v39 }
 0x153   : > { %9750 = vst [vmem:[#allocation30_spill] sm:$0xff] %v8744_v61  ;;  %v8751_v50 = vadd.f32 %v7687_v2, %v7553_v44  ;;  %v7691_v9 = vpop.f32.mrf.mxu1  ;;  %7922 = vmatmul.mubr.msk.bf16.gmra.mxu1 %vm1154_vm1, %v4559_v23  ;;  %7787 = vmatprep.mubr.msk.bf16.mxu0 %vm1154_vm1, %v3211_v4  ;;  %v3232_v44 = vshll.u32 %v8129_v19, 16  ;;  %v3228_v23 = vshrl.u32 %v8725_v0, 16 }
 0x154   : > { %v1631_v16 = vpop.f32.mrf.mxu0  ;;  %7925 = vmatprep.mubr.msk.bf16.mxu1 %vm1154_vm1, %v4561_v18  ;;  %v4563_v18 = vsel %vm4526_vm3, %v4560_v3, %v4562_v11 }
 0x155   : > { %9751 = vst [vmem:[#allocation31_spill] sm:$0xff] %v8751_v50  ;;  %v8756_v47 = vadd.f32 %v2332_v7, %v1631_v16  ;;  %v2348_v61 = vpop.f32.mrf.mxu1  ;;  %v8131_v7 = vld [vmem:[%s8231_s22 + $0xb0] sm:$0xff]   ;;  %v3240_v16 = vshll.u32 %v8748_v30, 16  ;;  %v3234_v0 = vrot.slane %v3232_v44, 1  ;;  %v3230_v27 = vor.u32 %v3228_v23, %v3226_v26 }
 0x156   : > { %v7554_v2 = vpop.f32.mrf.mxu0 }
 0x157   : > { %9752 = vst [vmem:[#allocation32_spill] sm:$0xff] %v8756_v47  ;;  %v8759_v39 = vadd.f32 %v7688_v51, %v7554_v2  ;;  %v7692_v38 = vpop.f32.mrf.mxu1  ;;  %v4565_v51 = vsel %vm4526_vm3, %v4562_v11, %v4564_v54  ;;  %v8771_v2 = vld [vmem:[%s8231_s22 + $0xb8] sm:$0xff]   ;;  %v3238_v11 = vor.u32 %v3236_v12, %v3234_v0  ;;  %v3242_v31 = vrot.slane %v3240_v16, 1 }
 0x158   : > { %v1634_v4 = vpop.f32.mrf.mxu0  ;;  %v4568_v44 = vrot.slane %v8771_v2, 1  ;;  %v3235_v23 = vsel %vm616_vm2, %v3230_v27, %v3234_v0  ;;  %v3252_v16 = vshrl.u32 %v8131_v7, 16 }
 0x159   : > { %9753 = vst [vmem:[#allocation33_spill] sm:$0xff] %v8759_v39  ;;  %v8767_v47 = vadd.f32 %v2335_v60, %v1634_v4  ;;  %v2351_v50 = vpop.f32.mrf.mxu1  ;;  %v4566_v60 = vrot.slane %v8131_v7, 1  ;;  %v3243_v12 = vsel %vm616_vm2, %v3238_v11, %v3242_v31 }
 0x15a   : > { %v7557_v39 = vpop.f32.mrf.mxu0  ;;  %7788 = vmatmul.mubr.msk.bf16.gmra.mxu0 %vm1154_vm1, %v3219_v36 }
 0x15b   : > { %9754 = vst [vmem:[#allocation34_spill] sm:$0xff] %v8767_v47  ;;  %v8774_v52 = vadd.f32 %v7691_v9, %v7557_v39  ;;  %v7695_v3 = vpop.f32.mrf.mxu1  ;;  %7926 = vmatmul.mubr.msk.bf16.gmra.mxu1 %vm1154_vm1, %v4563_v18  ;;  %7791 = vmatprep.mubr.msk.bf16.mxu0 %vm1154_vm1, %v3227_v42  ;;  %v3248_v39 = vshll.u32 %v8131_v7, 16  ;;  %v3244_v18 = vshrl.u32 %v8748_v30, 16 }
 0x15c   : > { %v1647_v19 = vpop.f32.mrf.mxu0  ;;  %7929 = vmatprep.mubr.msk.bf16.mxu1 %vm1154_vm1, %v4565_v51  ;;  %v4567_v51 = vsel %vm4526_vm3, %v4564_v54, %v4566_v60 }
 0x15d   : > { %9755 = vst [vmem:[#allocation35_spill] sm:$0xff] %v8774_v52  ;;  %v8779_v4 = vadd.f32 %v2348_v61, %v1647_v19  ;;  %v2364_v47 = vpop.f32.mrf.mxu1  ;;  %v8133_v61 = vld [vmem:[%s8231_s22 + $0xc0] sm:$0xff]   ;;  %v3256_v19 = vshll.u32 %v8771_v2, 16  ;;  %v3250_v30 = vrot.slane %v3248_v39, 1  ;;  %v3246_v27 = vor.u32 %v3244_v18, %v3242_v31 }
 0x15e   : > { %v7558_v9 = vpop.f32.mrf.mxu0 }
 0x15f   : > { %9756 = vst [vmem:[#allocation36_spill] sm:$0xff] %v8779_v4  ;;  %v8782_v36 = vadd.f32 %v7692_v38, %v7558_v9  ;;  %v7696_v26 = vpop.f32.mrf.mxu1  ;;  %v4569_v38 = vsel %vm4526_vm3, %v4566_v60, %v4568_v44  ;;  %v8794_v9 = vld [vmem:[%s8231_s22 + $0xc8] sm:$0xff]   ;;  %v3254_v60 = vor.u32 %v3252_v16, %v3250_v30  ;;  %v3258_v11 = vrot.slane %v3256_v19, 1 }
 0x160   : > { %v1650_v42 = vpop.f32.mrf.mxu0  ;;  %v4572_v39 = vrot.slane %v8794_v9, 1  ;;  %v3251_v18 = vsel %vm616_vm2, %v3246_v27, %v3250_v30  ;;  %v3268_v19 = vshrl.u32 %v8133_v61, 16 }
 0x161   : > { %9757 = vst [vmem:[#allocation37_spill] sm:$0xff] %v8782_v36  ;;  %v8790_v4 = vadd.f32 %v2351_v50, %v1650_v42  ;;  %v2367_v52 = vpop.f32.mrf.mxu1  ;;  %v4570_v50 = vrot.slane %v8133_v61, 1  ;;  %v3259_v16 = vsel %vm616_vm2, %v3254_v60, %v3258_v11 }
 0x162   : > { %v7561_v36 = vpop.f32.mrf.mxu0  ;;  %7792 = vmatmul.mubr.msk.bf16.gmra.mxu0 %vm1154_vm1, %v3235_v23 }
 0x163   : > { %9758 = vst [vmem:[#allocation38_spill] sm:$0xff] %v8790_v4  ;;  %v8797_v0 = vadd.f32 %v7695_v3, %v7561_v36  ;;  %v7699_v54 = vpop.f32.mrf.mxu1  ;;  %7930 = vmatmul.mubr.msk.bf16.gmra.mxu1 %vm1154_vm1, %v4567_v51  ;;  %7795 = vmatprep.mubr.msk.bf16.mxu0 %vm1154_vm1, %v3243_v12  ;;  %v3264_v36 = vshll.u32 %v8133_v61, 16  ;;  %v3260_v51 = vshrl.u32 %v8771_v2, 16 }
 0x164   : > { %v1663_v7 = vpop.f32.mrf.mxu0  ;;  %7933 = vmatprep.mubr.msk.bf16.mxu1 %vm1154_vm1, %v4569_v38  ;;  %v4571_v38 = vsel %vm4526_vm3, %v4568_v44, %v4570_v50 }
 0x165   : > { %9759 = vst [vmem:[#allocation39_spill] sm:$0xff] %v8797_v0  ;;  %v8802_v42 = vadd.f32 %v2364_v47, %v1663_v7  ;;  %v2380_v4 = vpop.f32.mrf.mxu1  ;;  %v8135_v47 = vld [vmem:[%s8231_s22 + $0xd0] sm:$0xff]   ;;  %v3272_v7 = vshll.u32 %v8794_v9, 16  ;;  %v3266_v2 = vrot.slane %v3264_v36, 1  ;;  %v3262_v27 = vor.u32 %v3260_v51, %v3258_v11 }
 0x166   : > { %v7562_v3 = vpop.f32.mrf.mxu0 }
 0x167   : > { %9760 = vst [vmem:[#allocation40_spill] sm:$0xff] %v8802_v42  ;;  %v8805_v23 = vadd.f32 %v7696_v26, %v7562_v3  ;;  %v7700_v31 = vpop.f32.mrf.mxu1  ;;  %v4573_v26 = vsel %vm4526_vm3, %v4570_v50, %v4572_v39  ;;  %v8817_v3 = vld [vmem:[%s8231_s22 + $0xd8] sm:$0xff]   ;;  %v3270_v50 = vor.u32 %v3268_v19, %v3266_v2  ;;  %v3274_v60 = vrot.slane %v3272_v7, 1 }
 0x168   : > { %v1666_v12 = vpop.f32.mrf.mxu0  ;;  %v4576_v36 = vrot.slane %v8817_v3, 1  ;;  %v3267_v51 = vsel %vm616_vm2, %v3262_v27, %v3266_v2  ;;  %v3284_v7 = vshrl.u32 %v8135_v47, 16 }
 0x169   : > { %9761 = vst [vmem:[#allocation41_spill] sm:$0xff] %v8805_v23  ;;  %v8813_v42 = vadd.f32 %v2367_v52, %v1666_v12  ;;  %v2383_v0 = vpop.f32.mrf.mxu1  ;;  %v4574_v52 = vrot.slane %v8135_v47, 1  ;;  %v3275_v19 = vsel %vm616_vm2, %v3270_v50, %v3274_v60 }
 0x16a   : > { %v7565_v23 = vpop.f32.mrf.mxu0  ;;  %7796 = vmatmul.mubr.msk.bf16.gmra.mxu0 %vm1154_vm1, %v3251_v18 }
 0x16b   : > { %9762 = vst [vmem:[#allocation42_spill] sm:$0xff] %v8813_v42  ;;  %v8820_v30 = vadd.f32 %v7699_v54, %v7565_v23  ;;  %v7703_v44 = vpop.f32.mrf.mxu1  ;;  %7934 = vmatmul.mubr.msk.bf16.gmra.mxu1 %vm1154_vm1, %v4571_v38  ;;  %7799 = vmatprep.mubr.msk.bf16.mxu0 %vm1154_vm1, %v3259_v16  ;;  %v3280_v23 = vshll.u32 %v8135_v47, 16  ;;  %v3276_v38 = vshrl.u32 %v8794_v9, 16 }
 0x16c   : > { %v1679_v61 = vpop.f32.mrf.mxu0  ;;  %7937 = vmatprep.mubr.msk.bf16.mxu1 %vm1154_vm1, %v4573_v26  ;;  %v4575_v26 = vsel %vm4526_vm3, %v4572_v39, %v4574_v52 }
 0x16d   : > { %9763 = vst [vmem:[#allocation43_spill] sm:$0xff] %v8820_v30  ;;  %v8825_v12 = vadd.f32 %v2380_v4, %v1679_v61  ;;  %v2396_v42 = vpop.f32.mrf.mxu1  ;;  %v8137_v4 = vld [vmem:[%s8231_s22 + $0xe0] sm:$0xff]   ;;  %v3288_v61 = vshll.u32 %v8817_v3, 16  ;;  %v3282_v9 = vrot.slane %v3280_v23, 1  ;;  %v3278_v27 = vor.u32 %v3276_v38, %v3274_v60 }
 0x16e   : > { %v7566_v54 = vpop.f32.mrf.mxu0 }
 0x16f   : > { %9764 = vst [vmem:[#allocation44_spill] sm:$0xff] %v8825_v12  ;;  %v8828_v18 = vadd.f32 %v7700_v31, %v7566_v54  ;;  %v7704_v11 = vpop.f32.mrf.mxu1  ;;  %v4577_v31 = vsel %vm4526_vm3, %v4574_v52, %v4576_v36  ;;  %v8840_v54 = vld [vmem:[%s8231_s22 + $0xe8] sm:$0xff]   ;;  %v3286_v52 = vor.u32 %v3284_v7, %v3282_v9  ;;  %v3290_v50 = vrot.slane %v3288_v61, 1 }
 0x170   : > { %v1682_v16 = vpop.f32.mrf.mxu0  ;;  %v4580_v23 = vrot.slane %v8840_v54, 1  ;;  %v3283_v38 = vsel %vm616_vm2, %v3278_v27, %v3282_v9  ;;  %v3300_v61 = vshrl.u32 %v8137_v4, 16 }
 0x171   : > { %9765 = vst [vmem:[#allocation45_spill] sm:$0xff] %v8828_v18  ;;  %v8836_v12 = vadd.f32 %v2383_v0, %v1682_v16  ;;  %v2399_v30 = vpop.f32.mrf.mxu1  ;;  %v4578_v0 = vrot.slane %v8137_v4, 1  ;;  %v3291_v7 = vsel %vm616_vm2, %v3286_v52, %v3290_v50 }
 0x172   : > { %v7569_v18 = vpop.f32.mrf.mxu0  ;;  %7800 = vmatmul.mubr.msk.bf16.gmra.mxu0 %vm1154_vm1, %v3267_v51 }
 0x173   : > { %9766 = vst [vmem:[#allocation46_spill] sm:$0xff] %v8836_v12  ;;  %v8843_v2 = vadd.f32 %v7703_v44, %v7569_v18  ;;  %v7707_v39 = vpop.f32.mrf.mxu1  ;;  %7938 = vmatmul.mubr.msk.bf16.gmra.mxu1 %vm1154_vm1, %v4575_v26  ;;  %7803 = vmatprep.mubr.msk.bf16.mxu0 %vm1154_vm1, %v3275_v19  ;;  %v3296_v18 = vshll.u32 %v8137_v4, 16  ;;  %v3292_v26 = vshrl.u32 %v8817_v3, 16 }
 0x174   : > { %v1695_v47 = vpop.f32.mrf.mxu0  ;;  %7941 = vmatprep.mubr.msk.bf16.mxu1 %vm1154_vm1, %v4577_v31  ;;  %v4579_v31 = vsel %vm4526_vm3, %v4576_v36, %v4578_v0 }
 0x175   : > { %9767 = vst [vmem:[#allocation47_spill] sm:$0xff] %v8843_v2  ;;  %v8848_v16 = vadd.f32 %v2396_v42, %v1695_v47  ;;  %v2412_v12 = vpop.f32.mrf.mxu1  ;;  %v8139_v42 = vld [vmem:[%s8231_s22 + $0xf0] sm:$0xff]   ;;  %v3304_v47 = vshll.u32 %v8840_v54, 16  ;;  %v3298_v3 = vrot.slane %v3296_v18, 1  ;;  %v3294_v27 = vor.u32 %v3292_v26, %v3290_v50 }
 0x176   : > { %v7570_v44 = vpop.f32.mrf.mxu0 }
 0x177   : > { %9768 = vst [vmem:[#allocation48_spill] sm:$0xff] %v8848_v16  ;;  %v8851_v51 = vadd.f32 %v7704_v11, %v7570_v44  ;;  %v7708_v60 = vpop.f32.mrf.mxu1  ;;  %v4581_v11 = vsel %vm4526_vm3, %v4578_v0, %v4580_v23  ;;  %v8863_v44 = vld [vmem:[%s8231_s22 + $0xf8] sm:$0xff]   ;;  %v3302_v0 = vor.u32 %v3300_v61, %v3298_v3  ;;  %v3306_v52 = vrot.slane %v3304_v47, 1 }
 0x178   : > { %v1698_v19 = vpop.f32.mrf.mxu0  ;;  %v4584_v18 = vrot.slane %v8863_v44, 1  ;;  %v3299_v26 = vsel %vm616_vm2, %v3294_v27, %v3298_v3  ;;  %v3316_v47 = vshrl.u32 %v8139_v42, 16 }
 0x179   : > { %9769 = vst [vmem:[#allocation49_spill] sm:$0xff] %v8851_v51  ;;  %v8859_v16 = vadd.f32 %v2399_v30, %v1698_v19  ;;  %v2415_v2 = vpop.f32.mrf.mxu1  ;;  %v4582_v30 = vrot.slane %v8139_v42, 1  ;;  %v3307_v61 = vsel %vm616_vm2, %v3302_v0, %v3306_v52 }
 0x17a   : > { %v7573_v51 = vpop.f32.mrf.mxu0  ;;  %7804 = vmatmul.mubr.msk.bf16.gmra.mxu0 %vm1154_vm1, %v3283_v38 }
 0x17b   : > { %9770 = vst [vmem:[#allocation50_spill] sm:$0xff] %v8859_v16  ;;  %v8866_v9 = vadd.f32 %v7707_v39, %v7573_v51  ;;  %v7711_v36 = vpop.f32.mrf.mxu1  ;;  %7942 = vmatmul.mubr.msk.bf16.gmra.mxu1 %vm1154_vm1, %v4579_v31  ;;  %7807 = vmatprep.mubr.msk.bf16.mxu0 %vm1154_vm1, %v3291_v7  ;;  %v3312_v51 = vshll.u32 %v8139_v42, 16  ;;  %v3308_v31 = vshrl.u32 %v8840_v54, 16 }
 0x17c   : > { %v1711_v4 = vpop.f32.mrf.mxu0  ;;  %7945 = vmatprep.mubr.msk.bf16.mxu1 %vm1154_vm1, %v4581_v11  ;;  %v4583_v11 = vsel %vm4526_vm3, %v4580_v23, %v4582_v30 }
 0x17d   : > { %9771 = vst [vmem:[#allocation51_spill] sm:$0xff] %v8866_v9  ;;  %v8871_v19 = vadd.f32 %v2412_v12, %v1711_v4  ;;  %v2428_v16 = vpop.f32.mrf.mxu1  ;;  %v8141_v12 = vld [vmem:[%s8231_s22 + $0x100] sm:$0xff]   ;;  %v3320_v4 = vshll.u32 %v8863_v44, 16  ;;  %v3314_v54 = vrot.slane %v3312_v51, 1  ;;  %v3310_v27 = vor.u32 %v3308_v31, %v3306_v52 }
 0x17e   : > { %v7574_v39 = vpop.f32.mrf.mxu0 }
 0x17f   : > { %9772 = vst [vmem:[#allocation52_spill] sm:$0xff] %v8871_v19  ;;  %v8874_v38 = vadd.f32 %v7708_v60, %v7574_v39  ;;  %v7712_v50 = vpop.f32.mrf.mxu1  ;;  %v4585_v60 = vsel %vm4526_vm3, %v4582_v30, %v4584_v18  ;;  %v8886_v39 = vld [vmem:[%s8231_s22 + $0x108] sm:$0xff]   ;;  %v3318_v30 = vor.u32 %v3316_v47, %v3314_v54  ;;  %v3322_v0 = vrot.slane %v3320_v4, 1 }
 0x180   : > { %v1714_v7 = vpop.f32.mrf.mxu0  ;;  %v4588_v51 = vrot.slane %v8886_v39, 1  ;;  %v3315_v31 = vsel %vm616_vm2, %v3310_v27, %v3314_v54  ;;  %v3332_v4 = vshrl.u32 %v8141_v12, 16 }
 0x181   : > { %9773 = vst [vmem:[#allocation53_spill] sm:$0xff] %v8874_v38  ;;  %v8882_v19 = vadd.f32 %v2415_v2, %v1714_v7  ;;  %v2431_v9 = vpop.f32.mrf.mxu1  ;;  %v4586_v2 = vrot.slane %v8141_v12, 1  ;;  %v3323_v47 = vsel %vm616_vm2, %v3318_v30, %v3322_v0 }
 0x182   : > { %v7577_v38 = vpop.f32.mrf.mxu0  ;;  %7808 = vmatmul.mubr.msk.bf16.gmra.mxu0 %vm1154_vm1, %v3299_v26 }
 0x183   : > { %9774 = vst [vmem:[#allocation54_spill] sm:$0xff] %v8882_v19  ;;  %v8889_v3 = vadd.f32 %v7711_v36, %v7577_v38  ;;  %v7715_v23 = vpop.f32.mrf.mxu1  ;;  %7946 = vmatmul.mubr.msk.bf16.gmra.mxu1 %vm1154_vm1, %v4583_v11  ;;  %7811 = vmatprep.mubr.msk.bf16.mxu0 %vm1154_vm1, %v3307_v61  ;;  %v3328_v38 = vshll.u32 %v8141_v12, 16  ;;  %v3324_v11 = vshrl.u32 %v8863_v44, 16 }
 0x184   : > { %v1727_v42 = vpop.f32.mrf.mxu0  ;;  %7949 = vmatprep.mubr.msk.bf16.mxu1 %vm1154_vm1, %v4585_v60  ;;  %v4587_v60 = vsel %vm4526_vm3, %v4584_v18, %v4586_v2 }
 0x185   : > { %9775 = vst [vmem:[#allocation55_spill] sm:$0xff] %v8889_v3  ;;  %v8894_v7 = vadd.f32 %v2428_v16, %v1727_v42  ;;  %v2444_v19 = vpop.f32.mrf.mxu1  ;;  %v8143_v16 = vld [vmem:[%s8231_s22 + $0x110] sm:$0xff]   ;;  %v3336_v42 = vshll.u32 %v8886_v39, 16  ;;  %v3330_v44 = vrot.slane %v3328_v38, 1  ;;  %v3326_v27 = vor.u32 %v3324_v11, %v3322_v0 }
 0x186   : > { %v7578_v36 = vpop.f32.mrf.mxu0 }
 0x187   : > { %9776 = vst [vmem:[#allocation56_spill] sm:$0xff] %v8894_v7  ;;  %v8897_v26 = vadd.f32 %v7712_v50, %v7578_v36  ;;  %v7716_v52 = vpop.f32.mrf.mxu1  ;;  %v4589_v50 = vsel %vm4526_vm3, %v4586_v2, %v4588_v51  ;;  %v8909_v36 = vld [vmem:[%s8231_s22 + $0x118] sm:$0xff]   ;;  %v3334_v2 = vor.u32 %v3332_v4, %v3330_v44  ;;  %v3338_v30 = vrot.slane %v3336_v42, 1 }
 0x188   : > { %v1730_v61 = vpop.f32.mrf.mxu0  ;;  %v4592_v38 = vrot.slane %v8909_v36, 1  ;;  %v3331_v11 = vsel %vm616_vm2, %v3326_v27, %v3330_v44  ;;  %v3348_v42 = vshrl.u32 %v8143_v16, 16 }
 0x189   : > { %9777 = vst [vmem:[#allocation57_spill] sm:$0xff] %v8897_v26  ;;  %v8905_v7 = vadd.f32 %v2431_v9, %v1730_v61  ;;  %v2447_v3 = vpop.f32.mrf.mxu1  ;;  %v4590_v9 = vrot.slane %v8143_v16, 1  ;;  %v3339_v4 = vsel %vm616_vm2, %v3334_v2, %v3338_v30 }
 0x18a   : > { %v7581_v26 = vpop.f32.mrf.mxu0  ;;  %7812 = vmatmul.mubr.msk.bf16.gmra.mxu0 %vm1154_vm1, %v3315_v31 }
 0x18b   : > { %9778 = vst [vmem:[#allocation58_spill] sm:$0xff] %v8905_v7  ;;  %v8912_v54 = vadd.f32 %v7715_v23, %v7581_v26  ;;  %v7719_v18 = vpop.f32.mrf.mxu1  ;;  %7950 = vmatmul.mubr.msk.bf16.gmra.mxu1 %vm1154_vm1, %v4587_v60  ;;  %7815 = vmatprep.mubr.msk.bf16.mxu0 %vm1154_vm1, %v3323_v47  ;;  %v3344_v26 = vshll.u32 %v8143_v16, 16  ;;  %v3340_v60 = vshrl.u32 %v8886_v39, 16 }
 0x18c   : > { %v1743_v12 = vpop.f32.mrf.mxu0  ;;  %7953 = vmatprep.mubr.msk.bf16.mxu1 %vm1154_vm1, %v4589_v50  ;;  %v4591_v50 = vsel %vm4526_vm3, %v4588_v51, %v4590_v9 }
 0x18d   : > { %9779 = vst [vmem:[#allocation59_spill] sm:$0xff] %v8912_v54  ;;  %v8917_v61 = vadd.f32 %v2444_v19, %v1743_v12  ;;  %v2460_v7 = vpop.f32.mrf.mxu1  ;;  %v8145_v19 = vld [vmem:[%s8231_s22 + $0x120] sm:$0xff]   ;;  %v3352_v12 = vshll.u32 %v8909_v36, 16  ;;  %v3346_v39 = vrot.slane %v3344_v26, 1  ;;  %v3342_v27 = vor.u32 %v3340_v60, %v3338_v30 }
 0x18e   : > { %v7582_v23 = vpop.f32.mrf.mxu0 }
 0x18f   : > { %9780 = vst [vmem:[#allocation60_spill] sm:$0xff] %v8917_v61  ;;  %v8920_v31 = vadd.f32 %v7716_v52, %v7582_v23  ;;  %v7720_v0 = vpop.f32.mrf.mxu1  ;;  %v4593_v52 = vsel %vm4526_vm3, %v4590_v9, %v4592_v38  ;;  %v8932_v23 = vld [vmem:[%s8231_s22 + $0x128] sm:$0xff]   ;;  %v3350_v9 = vor.u32 %v3348_v42, %v3346_v39  ;;  %v3354_v2 = vrot.slane %v3352_v12, 1 }
 0x190   : > { %v1746_v47 = vpop.f32.mrf.mxu0  ;;  %v4596_v26 = vrot.slane %v8932_v23, 1  ;;  %v3347_v60 = vsel %vm616_vm2, %v3342_v27, %v3346_v39  ;;  %v3364_v12 = vshrl.u32 %v8145_v19, 16 }
 0x191   : > { %9781 = vst [vmem:[#allocation61_spill] sm:$0xff] %v8920_v31  ;;  %v8928_v61 = vadd.f32 %v2447_v3, %v1746_v47  ;;  %v2463_v54 = vpop.f32.mrf.mxu1  ;;  %v4594_v3 = vrot.slane %v8145_v19, 1  ;;  %v3355_v42 = vsel %vm616_vm2, %v3350_v9, %v3354_v2 }
 0x192   : > { %v7585_v31 = vpop.f32.mrf.mxu0  ;;  %7816 = vmatmul.mubr.msk.bf16.gmra.mxu0 %vm1154_vm1, %v3331_v11 }
 0x193   : > { %9782 = vst [vmem:[#allocation62_spill] sm:$0xff] %v8928_v61  ;;  %v8935_v44 = vadd.f32 %v7719_v18, %v7585_v31  ;;  %v7723_v51 = vpop.f32.mrf.mxu1  ;;  %7954 = vmatmul.mubr.msk.bf16.gmra.mxu1 %vm1154_vm1, %v4591_v50  ;;  %7819 = vmatprep.mubr.msk.bf16.mxu0 %vm1154_vm1, %v3339_v4  ;;  %v3360_v31 = vshll.u32 %v8145_v19, 16  ;;  %v3356_v50 = vshrl.u32 %v8909_v36, 16 }
 0x194   : > { %v1759_v16 = vpop.f32.mrf.mxu0  ;;  %7957 = vmatprep.mubr.msk.bf16.mxu1 %vm1154_vm1, %v4593_v52  ;;  %v4595_v52 = vsel %vm4526_vm3, %v4592_v38, %v4594_v3 }
 0x195   : > { %9783 = vst [vmem:[#allocation63_spill] sm:$0xff] %v8935_v44  ;;  %v8940_v47 = vadd.f32 %v2460_v7, %v1759_v16  ;;  %v2476_v61 = vpop.f32.mrf.mxu1  ;;  %v8147_v7 = vld [vmem:[%s8231_s22 + $0x130] sm:$0xff]   ;;  %v3368_v16 = vshll.u32 %v8932_v23, 16  ;;  %v3362_v36 = vrot.slane %v3360_v31, 1  ;;  %v3358_v27 = vor.u32 %v3356_v50, %v3354_v2 }
 0x196   : > { %v7586_v18 = vpop.f32.mrf.mxu0 }
 0x197   : > { %9784 = vst [vmem:[#allocation64_spill] sm:$0xff] %v8940_v47  ;;  %v8943_v11 = vadd.f32 %v7720_v0, %v7586_v18  ;;  %v7724_v30 = vpop.f32.mrf.mxu1  ;;  %v4597_v0 = vsel %vm4526_vm3, %v4594_v3, %v4596_v26  ;;  %v8955_v18 = vld [vmem:[%s8231_s22 + $0x138] sm:$0xff]   ;;  %v3366_v3 = vor.u32 %v3364_v12, %v3362_v36  ;;  %v3370_v9 = vrot.slane %v3368_v16, 1 }
 0x198   : > { %v1762_v4 = vpop.f32.mrf.mxu0  ;;  %v4600_v31 = vrot.slane %v8955_v18, 1  ;;  %v3363_v50 = vsel %vm616_vm2, %v3358_v27, %v3362_v36  ;;  %v3380_v16 = vshrl.u32 %v8147_v7, 16 }
 0x199   : > { %9785 = vst [vmem:[#allocation65_spill] sm:$0xff] %v8943_v11  ;;  %v8951_v47 = vadd.f32 %v2463_v54, %v1762_v4  ;;  %v2479_v44 = vpop.f32.mrf.mxu1  ;;  %v4598_v54 = vrot.slane %v8147_v7, 1  ;;  %v3371_v12 = vsel %vm616_vm2, %v3366_v3, %v3370_v9 }
 0x19a   : > { %v7589_v11 = vpop.f32.mrf.mxu0  ;;  %7820 = vmatmul.mubr.msk.bf16.gmra.mxu0 %vm1154_vm1, %v3347_v60 }
 0x19b   : > { %9786 = vst [vmem:[#allocation66_spill] sm:$0xff] %v8951_v47  ;;  %v8958_v39 = vadd.f32 %v7723_v51, %v7589_v11  ;;  %v7727_v38 = vpop.f32.mrf.mxu1  ;;  %7958 = vmatmul.mubr.msk.bf16.gmra.mxu1 %vm1154_vm1, %v4595_v52  ;;  %7823 = vmatprep.mubr.msk.bf16.mxu0 %vm1154_vm1, %v3355_v42  ;;  %v3376_v11 = vshll.u32 %v8147_v7, 16  ;;  %v3372_v52 = vshrl.u32 %v8932_v23, 16 }
 0x19c   : > { %v1775_v19 = vpop.f32.mrf.mxu0  ;;  %7961 = vmatprep.mubr.msk.bf16.mxu1 %vm1154_vm1, %v4597_v0  ;;  %v4599_v0 = vsel %vm4526_vm3, %v4596_v26, %v4598_v54 }
 0x19d   : > { %9787 = vst [vmem:[#allocation67_spill] sm:$0xff] %v8958_v39  ;;  %v8963_v4 = vadd.f32 %v2476_v61, %v1775_v19  ;;  %v2492_v47 = vpop.f32.mrf.mxu1  ;;  %v8149_v61 = vld [vmem:[%s8231_s22 + $0x140] sm:$0xff]   ;;  %v3384_v19 = vshll.u32 %v8955_v18, 16  ;;  %v3378_v23 = vrot.slane %v3376_v11, 1  ;;  %v3374_v27 = vor.u32 %v3372_v52, %v3370_v9 }
 0x19e   : > { %v7590_v51 = vpop.f32.mrf.mxu0 }
 0x19f   : > { %9788 = vst [vmem:[#allocation68_spill] sm:$0xff] %v8963_v4  ;;  %v8966_v60 = vadd.f32 %v7724_v30, %v7590_v51  ;;  %v7728_v2 = vpop.f32.mrf.mxu1  ;;  %v4601_v30 = vsel %vm4526_vm3, %v4598_v54, %v4600_v31  ;;  %v8978_v51 = vld [vmem:[%s8231_s22 + $0x148] sm:$0xff]   ;;  %v3382_v54 = vor.u32 %v3380_v16, %v3378_v23  ;;  %v3386_v3 = vrot.slane %v3384_v19, 1 }
 0x1a0   : > { %v1778_v42 = vpop.f32.mrf.mxu0  ;;  %v4604_v11 = vrot.slane %v8978_v51, 1  ;;  %v3379_v52 = vsel %vm616_vm2, %v3374_v27, %v3378_v23  ;;  %v3396_v19 = vshrl.u32 %v8149_v61, 16 }
 0x1a1   : > { %9789 = vst [vmem:[#allocation69_spill] sm:$0xff] %v8966_v60  ;;  %v8974_v4 = vadd.f32 %v2479_v44, %v1778_v42  ;;  %v2495_v39 = vpop.f32.mrf.mxu1  ;;  %v4602_v44 = vrot.slane %v8149_v61, 1  ;;  %v3387_v16 = vsel %vm616_vm2, %v3382_v54, %v3386_v3 }
 0x1a2   : > { %v7593_v60 = vpop.f32.mrf.mxu0  ;;  %7824 = vmatmul.mubr.msk.bf16.gmra.mxu0 %vm1154_vm1, %v3363_v50 }
 0x1a3   : > { %9790 = vst [vmem:[#allocation70_spill] sm:$0xff] %v8974_v4  ;;  %v8981_v36 = vadd.f32 %v7727_v38, %v7593_v60  ;;  %v7731_v26 = vpop.f32.mrf.mxu1  ;;  %7962 = vmatmul.mubr.msk.bf16.gmra.mxu1 %vm1154_vm1, %v4599_v0  ;;  %7827 = vmatprep.mubr.msk.bf16.mxu0 %vm1154_vm1, %v3371_v12  ;;  %v3392_v60 = vshll.u32 %v8149_v61, 16  ;;  %v3388_v0 = vshrl.u32 %v8955_v18, 16 }
 0x1a4   : > { %v1791_v7 = vpop.f32.mrf.mxu0  ;;  %7965 = vmatprep.mubr.msk.bf16.mxu1 %vm1154_vm1, %v4601_v30  ;;  %v4603_v30 = vsel %vm4526_vm3, %v4600_v31, %v4602_v44 }
 0x1a5   : > { %9791 = vst [vmem:[#allocation71_spill] sm:$0xff] %v8981_v36  ;;  %v8986_v42 = vadd.f32 %v2492_v47, %v1791_v7  ;;  %v2508_v4 = vpop.f32.mrf.mxu1  ;;  %v8151_v47 = vld [vmem:[%s8231_s22 + $0x150] sm:$0xff]   ;;  %v3400_v7 = vshll.u32 %v8978_v51, 16  ;;  %v3394_v18 = vrot.slane %v3392_v60, 1  ;;  %v3390_v27 = vor.u32 %v3388_v0, %v3386_v3 }
 0x1a6   : > { %v7594_v38 = vpop.f32.mrf.mxu0 }
 0x1a7   : > { %9792 = vst [vmem:[#allocation72_spill] sm:$0xff] %v8986_v42  ;;  %v8989_v50 = vadd.f32 %v7728_v2, %v7594_v38  ;;  %v7732_v9 = vpop.f32.mrf.mxu1  ;;  %v4605_v2 = vsel %vm4526_vm3, %v4602_v44, %v4604_v11  ;;  %v9001_v38 = vld [vmem:[%s8231_s22 + $0x158] sm:$0xff]   ;;  %v3398_v44 = vor.u32 %v3396_v19, %v3394_v18  ;;  %v3402_v54 = vrot.slane %v3400_v7, 1 }
 0x1a8   : > { %v1794_v12 = vpop.f32.mrf.mxu0  ;;  %v4608_v60 = vrot.slane %v9001_v38, 1  ;;  %v3395_v0 = vsel %vm616_vm2, %v3390_v27, %v3394_v18  ;;  %v3412_v7 = vshrl.u32 %v8151_v47, 16 }
 0x1a9   : > { %9793 = vst [vmem:[#allocation73_spill] sm:$0xff] %v8989_v50  ;;  %v8997_v42 = vadd.f32 %v2495_v39, %v1794_v12  ;;  %v2511_v36 = vpop.f32.mrf.mxu1  ;;  %v4606_v39 = vrot.slane %v8151_v47, 1  ;;  %v3403_v19 = vsel %vm616_vm2, %v3398_v44, %v3402_v54 }
 0x1aa   : > { %v7597_v50 = vpop.f32.mrf.mxu0  ;;  %7828 = vmatmul.mubr.msk.bf16.gmra.mxu0 %vm1154_vm1, %v3379_v52 }
 0x1ab   : > { %9794 = vst [vmem:[#allocation74_spill] sm:$0xff] %v8997_v42  ;;  %v9004_v23 = vadd.f32 %v7731_v26, %v7597_v50  ;;  %v7735_v31 = vpop.f32.mrf.mxu1  ;;  %7966 = vmatmul.mubr.msk.bf16.gmra.mxu1 %vm1154_vm1, %v4603_v30  ;;  %7831 = vmatprep.mubr.msk.bf16.mxu0 %vm1154_vm1, %v3387_v16  ;;  %v3408_v50 = vshll.u32 %v8151_v47, 16  ;;  %v3404_v30 = vshrl.u32 %v8978_v51, 16 }
 0x1ac   : > { %v1807_v61 = vpop.f32.mrf.mxu0  ;;  %7969 = vmatprep.mubr.msk.bf16.mxu1 %vm1154_vm1, %v4605_v2  ;;  %v4607_v2 = vsel %vm4526_vm3, %v4604_v11, %v4606_v39 }
 0x1ad   : > { %9795 = vst [vmem:[#allocation75_spill] sm:$0xff] %v9004_v23  ;;  %v9009_v12 = vadd.f32 %v2508_v4, %v1807_v61  ;;  %v2524_v42 = vpop.f32.mrf.mxu1  ;;  %v8153_v4 = vld [vmem:[%s8231_s22 + $0x160] sm:$0xff]   ;;  %v3416_v61 = vshll.u32 %v9001_v38, 16  ;;  %v3410_v51 = vrot.slane %v3408_v50, 1  ;;  %v3406_v27 = vor.u32 %v3404_v30, %v3402_v54 }
 0x1ae   : > { %v7598_v26 = vpop.f32.mrf.mxu0 }
 0x1af   : > { %9796 = vst [vmem:[#allocation76_spill] sm:$0xff] %v9009_v12  ;;  %v9012_v52 = vadd.f32 %v7732_v9, %v7598_v26  ;;  %v7736_v3 = vpop.f32.mrf.mxu1  ;;  %v4609_v9 = vsel %vm4526_vm3, %v4606_v39, %v4608_v60  ;;  %v9024_v26 = vld [vmem:[%s8231_s22 + $0x168] sm:$0xff]   ;;  %v3414_v39 = vor.u32 %v3412_v7, %v3410_v51  ;;  %v3418_v44 = vrot.slane %v3416_v61, 1 }
 0x1b0   : > { %v1810_v16 = vpop.f32.mrf.mxu0  ;;  %v4612_v50 = vrot.slane %v9024_v26, 1  ;;  %v3411_v30 = vsel %vm616_vm2, %v3406_v27, %v3410_v51  ;;  %v3428_v61 = vshrl.u32 %v8153_v4, 16 }
 0x1b1   : > { %9797 = vst [vmem:[#allocation77_spill] sm:$0xff] %v9012_v52  ;;  %v9020_v12 = vadd.f32 %v2511_v36, %v1810_v16  ;;  %v2527_v23 = vpop.f32.mrf.mxu1  ;;  %v4610_v36 = vrot.slane %v8153_v4, 1  ;;  %v3419_v7 = vsel %vm616_vm2, %v3414_v39, %v3418_v44 }
 0x1b2   : > { %v7601_v52 = vpop.f32.mrf.mxu0  ;;  %7832 = vmatmul.mubr.msk.bf16.gmra.mxu0 %vm1154_vm1, %v3395_v0 }
 0x1b3   : > { %9798 = vst [vmem:[#allocation78_spill] sm:$0xff] %v9020_v12  ;;  %v9027_v18 = vadd.f32 %v7735_v31, %v7601_v52  ;;  %v7739_v11 = vpop.f32.mrf.mxu1  ;;  %7970 = vmatmul.mubr.msk.bf16.gmra.mxu1 %vm1154_vm1, %v4607_v2  ;;  %7835 = vmatprep.mubr.msk.bf16.mxu0 %vm1154_vm1, %v3403_v19  ;;  %v3424_v52 = vshll.u32 %v8153_v4, 16  ;;  %v3420_v2 = vshrl.u32 %v9001_v38, 16 }
 0x1b4   : > { %v1823_v47 = vpop.f32.mrf.mxu0  ;;  %7973 = vmatprep.mubr.msk.bf16.mxu1 %vm1154_vm1, %v4609_v9  ;;  %v4611_v9 = vsel %vm4526_vm3, %v4608_v60, %v4610_v36 }
 0x1b5   : > { %9799 = vst [vmem:[#allocation79_spill] sm:$0xff] %v9027_v18  ;;  %v9032_v16 = vadd.f32 %v2524_v42, %v1823_v47  ;;  %v2540_v12 = vpop.f32.mrf.mxu1  ;;  %v8155_v42 = vld [vmem:[%s8231_s22 + $0x170] sm:$0xff]   ;;  %v3432_v47 = vshll.u32 %v9024_v26, 16  ;;  %v3426_v38 = vrot.slane %v3424_v52, 1  ;;  %v3422_v27 = vor.u32 %v3420_v2, %v3418_v44 }
 0x1b6   : > { %v7602_v31 = vpop.f32.mrf.mxu0 }
 0x1b7   : > { %9800 = vst [vmem:[#allocation80_spill] sm:$0xff] %v9032_v16  ;;  %v9035_v0 = vadd.f32 %v7736_v3, %v7602_v31  ;;  %v7740_v54 = vpop.f32.mrf.mxu1  ;;  %v4613_v3 = vsel %vm4526_vm3, %v4610_v36, %v4612_v50  ;;  %v9047_v31 = vld [vmem:[%s8231_s22 + $0x178] sm:$0xff]   ;;  %v3430_v36 = vor.u32 %v3428_v61, %v3426_v38  ;;  %v3434_v39 = vrot.slane %v3432_v47, 1 }
 0x1b8   : > { %v1826_v19 = vpop.f32.mrf.mxu0  ;;  %v4616_v52 = vrot.slane %v9047_v31, 1  ;;  %v3427_v2 = vsel %vm616_vm2, %v3422_v27, %v3426_v38  ;;  %v3444_v47 = vshrl.u32 %v8155_v42, 16 }
 0x1b9   : > { %9801 = vst [vmem:[#allocation81_spill] sm:$0xff] %v9035_v0  ;;  %v9043_v16 = vadd.f32 %v2527_v23, %v1826_v19  ;;  %v2543_v18 = vpop.f32.mrf.mxu1  ;;  %v4614_v23 = vrot.slane %v8155_v42, 1  ;;  %v3435_v61 = vsel %vm616_vm2, %v3430_v36, %v3434_v39 }
 0x1ba   : > { %v7605_v0 = vpop.f32.mrf.mxu0  ;;  %7836 = vmatmul.mubr.msk.bf16.gmra.mxu0 %vm1154_vm1, %v3411_v30 }
 0x1bb   : > { %9802 = vst [vmem:[#allocation82_spill] sm:$0xff] %v9043_v16  ;;  %v9050_v51 = vadd.f32 %v7739_v11, %v7605_v0  ;;  %v7743_v60 = vpop.f32.mrf.mxu1  ;;  %7974 = vmatmul.mubr.msk.bf16.gmra.mxu1 %vm1154_vm1, %v4611_v9  ;;  %7839 = vmatprep.mubr.msk.bf16.mxu0 %vm1154_vm1, %v3419_v7  ;;  %v3440_v0 = vshll.u32 %v8155_v42, 16  ;;  %v3436_v9 = vshrl.u32 %v9024_v26, 16 }
 0x1bc   : > { %v1839_v4 = vpop.f32.mrf.mxu0  ;;  %7977 = vmatprep.mubr.msk.bf16.mxu1 %vm1154_vm1, %v4613_v3  ;;  %v4615_v3 = vsel %vm4526_vm3, %v4612_v50, %v4614_v23 }
 0x1bd   : > { %9803 = vst [vmem:[#allocation83_spill] sm:$0xff] %v9050_v51  ;;  %v9055_v19 = vadd.f32 %v2540_v12, %v1839_v4  ;;  %v2556_v16 = vpop.f32.mrf.mxu1  ;;  %v8157_v12 = vld [vmem:[%s8231_s22 + $0x180] sm:$0xff]   ;;  %v3448_v4 = vshll.u32 %v9047_v31, 16  ;;  %v3442_v26 = vrot.slane %v3440_v0, 1  ;;  %v3438_v27 = vor.u32 %v3436_v9, %v3434_v39 }
 0x1be   : > { %v7606_v11 = vpop.f32.mrf.mxu0 }
 0x1bf   : > { %9804 = vst [vmem:[#allocation84_spill] sm:$0xff] %v9055_v19  ;;  %v9058_v30 = vadd.f32 %v7740_v54, %v7606_v11  ;;  %v7744_v44 = vpop.f32.mrf.mxu1  ;;  %v4617_v54 = vsel %vm4526_vm3, %v4614_v23, %v4616_v52  ;;  %v9070_v11 = vld [vmem:[%s8231_s22 + $0x188] sm:$0xff]   ;;  %v3446_v23 = vor.u32 %v3444_v47, %v3442_v26  ;;  %v3450_v36 = vrot.slane %v3448_v4, 1 }
 0x1c0   : > { %v1842_v7 = vpop.f32.mrf.mxu0  ;;  %v4620_v0 = vrot.slane %v9070_v11, 1  ;;  %v3443_v9 = vsel %vm616_vm2, %v3438_v27, %v3442_v26  ;;  %v3460_v4 = vshrl.u32 %v8157_v12, 16 }
 0x1c1   : > { %9805 = vst [vmem:[#allocation85_spill] sm:$0xff] %v9058_v30  ;;  %v9066_v19 = vadd.f32 %v2543_v18, %v1842_v7  ;;  %v2559_v51 = vpop.f32.mrf.mxu1  ;;  %v4618_v18 = vrot.slane %v8157_v12, 1  ;;  %v3451_v47 = vsel %vm616_vm2, %v3446_v23, %v3450_v36 }
 0x1c2   : > { %v7609_v30 = vpop.f32.mrf.mxu0  ;;  %7840 = vmatmul.mubr.msk.bf16.gmra.mxu0 %vm1154_vm1, %v3427_v2 }
 0x1c3   : > { %9806 = vst [vmem:[#allocation86_spill] sm:$0xff] %v9066_v19  ;;  %v9073_v38 = vadd.f32 %v7743_v60, %v7609_v30  ;;  %v7747_v50 = vpop.f32.mrf.mxu1  ;;  %7978 = vmatmul.mubr.msk.bf16.gmra.mxu1 %vm1154_vm1, %v4615_v3  ;;  %7843 = vmatprep.mubr.msk.bf16.mxu0 %vm1154_vm1, %v3435_v61  ;;  %v3456_v30 = vshll.u32 %v8157_v12, 16  ;;  %v3452_v3 = vshrl.u32 %v9047_v31, 16 }
 0x1c4   : > { %v1855_v42 = vpop.f32.mrf.mxu0  ;;  %7981 = vmatprep.mubr.msk.bf16.mxu1 %vm1154_vm1, %v4617_v54  ;;  %v4619_v54 = vsel %vm4526_vm3, %v4616_v52, %v4618_v18 }
 0x1c5   : > { %9807 = vst [vmem:[#allocation87_spill] sm:$0xff] %v9073_v38  ;;  %v9078_v7 = vadd.f32 %v2556_v16, %v1855_v42  ;;  %v2572_v19 = vpop.f32.mrf.mxu1  ;;  %v8159_v16 = vld [vmem:[%s8231_s22 + $0x190] sm:$0xff]   ;;  %v3464_v42 = vshll.u32 %v9070_v11, 16  ;;  %v3458_v31 = vrot.slane %v3456_v30, 1  ;;  %v3454_v27 = vor.u32 %v3452_v3, %v3450_v36 }
 0x1c6   : > { %v7610_v60 = vpop.f32.mrf.mxu0 }
 0x1c7   : > { %9808 = vst [vmem:[#allocation88_spill] sm:$0xff] %v9078_v7  ;;  %v9081_v2 = vadd.f32 %v7744_v44, %v7610_v60  ;;  %v7748_v39 = vpop.f32.mrf.mxu1  ;;  %v4621_v44 = vsel %vm4526_vm3, %v4618_v18, %v4620_v0  ;;  %v9093_v60 = vld [vmem:[%s8231_s22 + $0x198] sm:$0xff]   ;;  %v3462_v18 = vor.u32 %v3460_v4, %v3458_v31  ;;  %v3466_v23 = vrot.slane %v3464_v42, 1 }
 0x1c8   : > { %v1858_v61 = vpop.f32.mrf.mxu0  ;;  %v4624_v30 = vrot.slane %v9093_v60, 1  ;;  %v3459_v3 = vsel %vm616_vm2, %v3454_v27, %v3458_v31  ;;  %v3476_v42 = vshrl.u32 %v8159_v16, 16 }
 0x1c9   : > { %9809 = vst [vmem:[#allocation89_spill] sm:$0xff] %v9081_v2  ;;  %v9089_v7 = vadd.f32 %v2559_v51, %v1858_v61  ;;  %v2575_v38 = vpop.f32.mrf.mxu1  ;;  %v4622_v51 = vrot.slane %v8159_v16, 1  ;;  %v3467_v4 = vsel %vm616_vm2, %v3462_v18, %v3466_v23 }
 0x1ca   : > { %v7613_v2 = vpop.f32.mrf.mxu0  ;;  %7844 = vmatmul.mubr.msk.bf16.gmra.mxu0 %vm1154_vm1, %v3443_v9 }
 0x1cb   : > { %9810 = vst [vmem:[#allocation90_spill] sm:$0xff] %v9089_v7  ;;  %v9096_v26 = vadd.f32 %v7747_v50, %v7613_v2  ;;  %v7751_v52 = vpop.f32.mrf.mxu1  ;;  %7982 = vmatmul.mubr.msk.bf16.gmra.mxu1 %vm1154_vm1, %v4619_v54  ;;  %7847 = vmatprep.mubr.msk.bf16.mxu0 %vm1154_vm1, %v3451_v47  ;;  %v3472_v2 = vshll.u32 %v8159_v16, 16  ;;  %v3468_v54 = vshrl.u32 %v9070_v11, 16 }
 0x1cc   : > { %v1871_v12 = vpop.f32.mrf.mxu0  ;;  %7985 = vmatprep.mubr.msk.bf16.mxu1 %vm1154_vm1, %v4621_v44  ;;  %v4623_v44 = vsel %vm4526_vm3, %v4620_v0, %v4622_v51 }
 0x1cd   : > { %9811 = vst [vmem:[#allocation91_spill] sm:$0xff] %v9096_v26  ;;  %v9101_v61 = vadd.f32 %v2572_v19, %v1871_v12  ;;  %v2588_v7 = vpop.f32.mrf.mxu1  ;;  %v8161_v19 = vld [vmem:[%s8231_s22 + $0x1a0] sm:$0xff]   ;;  %v3480_v12 = vshll.u32 %v9093_v60, 16  ;;  %v3474_v11 = vrot.slane %v3472_v2, 1  ;;  %v3470_v27 = vor.u32 %v3468_v54, %v3466_v23 }
 0x1ce   : > { %v7614_v50 = vpop.f32.mrf.mxu0  ;;  %v4626_v16 = vrot.slane %v8161_v19, 1 }
 0x1cf   : > { %9812 = vst [vmem:[#allocation92_spill] sm:$0xff] %v9101_v61  ;;  %v9104_v9 = vadd.f32 %v7748_v39, %v7614_v50  ;;  %v7752_v36 = vpop.f32.mrf.mxu1  ;;  %v4625_v39 = vsel %vm4526_vm3, %v4622_v51, %v4624_v30  ;;  %v9116_v50 = vld [vmem:[%s8231_s22 + $0x1a8] sm:$0xff]   ;;  %v3478_v51 = vor.u32 %v3476_v42, %v3474_v11  ;;  %v3482_v18 = vrot.slane %v3480_v12, 1 }
 0x1d0   : > { %v1874_v47 = vpop.f32.mrf.mxu0  ;;  %v4627_v42 = vsel %vm4526_vm3, %v4624_v30, %v4626_v16  ;;  %v3492_v12 = vshrl.u32 %v8161_v19, 16 }
 0x1d1   : > { %9813 = vst [vmem:[#allocation93_spill] sm:$0xff] %v9104_v9  ;;  %v9112_v61 = vadd.f32 %v2575_v38, %v1874_v47  ;;  %v2591_v26 = vpop.f32.mrf.mxu1 }
 0x1d2   : > { %v7617_v9 = vpop.f32.mrf.mxu0  ;;  %7848 = vmatmul.mubr.msk.bf16.gmra.mxu0 %vm1154_vm1, %v3459_v3 }
 0x1d3   : > { %9814 = vst [vmem:[#allocation94_spill] sm:$0xff] %v9112_v61  ;;  %v9119_v31 = vadd.f32 %v7751_v52, %v7617_v9  ;;  %v7755_v0 = vpop.f32.mrf.mxu1  ;;  %7986 = vmatmul.mubr.msk.bf16.gmra.mxu1 %vm1154_vm1, %v4623_v44  ;;  %7851 = vmatprep.mubr.msk.bf16.mxu0 %vm1154_vm1, %v3467_v4  ;;  %v4628_v52 = vrot.slane %v9116_v50, 1  ;;  %v3484_v9 = vshrl.u32 %v9093_v60, 16  ;;  %v3488_v44 = vshll.u32 %v8161_v19, 16  ;;  %v9133_v61 = vld [vmem:[%s8231_s22 + $0x1b8] sm:$0xff]  }
 0x1d4   : > { %v1887_v38 = vpop.f32.mrf.mxu0  ;;  %7989 = vmatprep.mubr.msk.bf16.mxu1 %vm1154_vm1, %v4625_v39  ;;  %v3475_v4 = vsel %vm616_vm2, %v3470_v27, %v3474_v11 }
 0x1d5   : > { %9815 = vst [vmem:[#allocation95_spill] sm:$0xff] %v9119_v31  ;;  %v9124_v47 = vadd.f32 %v2588_v7, %v1887_v38  ;;  %v2604_v3 = vpop.f32.mrf.mxu1  ;;  %v8163_v31 = vld [vmem:[%s8231_s22 + $0x1b0] sm:$0xff]   ;;  %v3483_v7 = vsel %vm616_vm2, %v3478_v51, %v3482_v18  ;;  %v3496_v38 = vshll.u32 %v9116_v50, 16  ;;  %v3486_v11 = vor.u32 %v3484_v9, %v3482_v18 }
 0x1d6   : > { %v7618_v2 = vpop.f32.mrf.mxu0  ;;  %v3490_v27 = vrot.slane %v3488_v44, 1  ;;  %v4630_v30 = vrot.slane %v8163_v31, 1  ;;  %v3500_v18 = vshrl.u32 %v9116_v50, 16  ;;  %v3504_v9 = vshll.u32 %v8163_v31, 16 }
 0x1d7   : > { %9816 = vst [vmem:[#allocation96_spill] sm:$0xff] %v9124_v47  ;;  %v9128_v23 = vadd.f32 %v7752_v36, %v7618_v2  ;;  %v7756_v54 = vpop.f32.mrf.mxu1  ;;  %v4629_v36 = vsel %vm4526_vm3, %v4626_v16, %v4628_v52  ;;  %v3498_v51 = vrot.slane %v3496_v38, 1  ;;  %v3516_v50 = vshrl.u32 %v9133_v61, 16 }
 0x1d8   : > { %v1890_v39 = vpop.f32.mrf.mxu0  ;;  %v3494_v16 = vor.u32 %v3492_v12, %v3490_v27  ;;  %v3506_v46 = vrot.slane %v3504_v9, 1 }
 0x1d9   : > { %9817 = vst [vmem:[#allocation97_spill] sm:$0xff] %v9128_v23  ;;  %v9138_v47 = vadd.f32 %v2591_v26, %v1890_v39  ;;  %v2607_v60 = vpop.f32.mrf.mxu1  ;;  %v3512_v26 = vshll.u32 %v9133_v61, 16  ;;  %v8165_v39 = vld [vmem:[%s8231_s22 + $0x1c0] sm:$0xff]   ;;  %v3502_v63 = vor.u32 %v3500_v18, %v3498_v51 }
 0x1da   : > { %v7621_v2 = vpop.f32.mrf.mxu0  ;;  %7852 = vmatmul.mubr.msk.bf16.gmra.mxu0 %vm1154_vm1, %v3475_v4  ;;  %v4632_v4 = vrot.slane %v9133_v61, 1 }
 0x1db   : > { %9818 = vst [vmem:[#allocation98_spill] sm:$0xff] %v9138_v47  ;;  %v9142_v23 = vadd.f32 %v7755_v0, %v7621_v2  ;;  %v7895_v13 = vpop.f32.mrf.mxu1  ;;  %7990 = vmatmul.mubr.msk.bf16.gmra.mxu1 %vm1154_vm1, %v4627_v42  ;;  %7855 = vmatprep.mubr.msk.bf16.mxu0 %vm1154_vm1, %v3483_v7  ;;  %v3491_v7 = vsel %vm616_vm2, %v3486_v11, %v3490_v27  ;;  %v3508_v2 = vshrl.u32 %v8163_v31, 16  ;;  %v3514_v38 = vrot.slane %v3512_v26, 1 }
 0x1dc   : > { %v1903_v19 = vpop.f32.mrf.mxu0  ;;  %7993 = vmatprep.mubr.msk.bf16.mxu1 %vm1154_vm1, %v4629_v36  ;;  %v3520_v36 = vshll.u32 %v8165_v39, 16  ;;  %v4634_v27 = vrot.slane %v8165_v39, 1  ;;  %v3507_v18 = vsel %vm616_vm2, %v3502_v63, %v3506_v46 }
 0x1dd   : > { %9819 = vst [vmem:[#allocation99_spill] sm:$0xff] %v9142_v23  ;;  %v9149_v44 = vadd.f32 %v2604_v3, %v1903_v19  ;;  %v4900_v0 = vpop.f32.mrf.mxu1  ;;  %v9155_v23 = vld [vmem:[%s8231_s22 + $0x1c8] sm:$0xff]   ;;  %v4631_v19 = vsel %vm4526_vm3, %v4628_v52, %v4630_v30  ;;  %v3510_v61 = vor.u32 %v3508_v2, %v3506_v46  ;;  %v3524_v2 = vshrl.u32 %v8165_v39, 16 }
 0x1de   : > { %v7622_v42 = vpop.f32.mrf.mxu0  ;;  %v3528_v26 = vshll.u32 %v9155_v23, 16  ;;  %v4636_v9 = vrot.slane %v9155_v23, 1 }
 0x1df   : > { %9820 = vst [vmem:[#allocation100_spill] sm:$0xff] %v9149_v44  ;;  %v9157_v47 = vadd.f32 %v7756_v54, %v7622_v42  ;;  %v7896_v12 = vpop.f32.mrf.mxu1  ;;  %v3499_v44 = vsel %vm616_vm2, %v3494_v16, %v3498_v51  ;;  %v4633_v54 = vsel %vm4526_vm3, %v4630_v30, %v4632_v4  ;;  %v3522_v51 = vrot.slane %v3520_v36, 1 }
 0x1e0   : > { %v1906_v3 = vpop.f32.mrf.mxu0  ;;  %v3515_v46 = vsel %vm616_vm2, %v3510_v61, %v3514_v38  ;;  %v3530_v63 = vrot.slane %v3528_v26, 1  ;;  %v3532_v36 = vshrl.u32 %v9155_v23, 16 }
 0x1e1   : > { %9821 = vst [vmem:[#allocation101_spill] sm:$0xff] %v9157_v47  ;;  %v9165_v11 = vadd.f32 %v2607_v60, %v1906_v3  ;;  %v4903_v31 = vpop.f32.mrf.mxu1  ;;  %v3518_v60 = vor.u32 %v3516_v50, %v3514_v38  ;;  %v3526_v38 = vor.u32 %v3524_v2, %v3522_v51  ;;  %v9206_v2 = vld [vmem:[%s8231_s22 + $0x1e0] sm:$0xff]  }
 0x1e2   : > { %v7761_v42 = vpop.f32.mrf.mxu0  ;;  %7856 = vmatmul.mubr.msk.bf16.gmra.mxu0 %vm1154_vm1, %v3491_v7  ;;  %v4638_v7 = vrot.slane %v9163_v32, 1 }
 0x1e3   : > { %9822 = vst [vmem:[#allocation102_spill] sm:$0xff] %v9165_v11  ;;  %v4389_v52 = vadd.f32 %v7761_v42, %v8444_v10  ;;  %v9171_v16 = vpop.f32.mrf.mxu1  ;;  %7994 = vmatmul.mubr.msk.bf16.gmra.mxu1 %vm1154_vm1, %v4631_v19  ;;  %7859 = vmatprep.mubr.msk.bf16.mxu0 %vm1154_vm1, %v3499_v44  ;;  %v9180_v10 = vld [vmem:[%s8231_s22 + $0x1d8] sm:$0xff]   ;;  %v4635_v44 = vsel %vm4526_vm3, %v4632_v4, %v4634_v27 }
 0x1e4   : > { %v3860_v30 = vpop.f32.mrf.mxu0  ;;  %7997 = vmatprep.mubr.msk.bf16.mxu1 %vm1154_vm1, %v4633_v54  ;;  %v3536_v54 = vshll.u32 %v9163_v32, 16  ;;  %v4637_v4 = vsel %vm4526_vm3, %v4634_v27, %v4636_v9  ;;  %v3544_v23 = vshll.u32 %v9180_v10, 16  ;;  %v3534_v27 = vor.u32 %v3532_v36, %v3530_v63 }
 0x1e5   : > { %v5429_v3 = vadd.f32 %v7895_v13, %v4389_v52  ;;  %v4387_v19 = vadd.f32 %v3860_v30, %v8450_v17  ;;  %v4916_v42 = vpop.f32.mrf.mxu1  ;;  %v9190_v52 = vsel %vm616_vm2, %v3518_v60, %v3522_v51  ;;  %v9194_v30 = vsel %vm4526_vm3, %v4636_v9, %v4638_v7 }
 0x1e6   : > { %v7762_v50 = vpop.f32.mrf.mxu0  ;;  %v3538_v9 = vrot.slane %v3536_v54, 1  ;;  %v4640_v51 = vrot.slane %v9180_v10, 1  ;;  %v3546_v36 = vrot.slane %v3544_v23, 1  ;;  %v3548_v54 = vshrl.u32 %v9180_v10, 16 }
 0x1e7   : > { %v5561_v11 = vmul.f32 0.2, %v5429_v3  ;;  %v5427_v39 = vadd.f32 %v4900_v0, %v4387_v19  ;;  %v4390_v47 = vadd.f32 %v7762_v50, %v8452_v21  ;;  %v7900_v13 = vpop.f32.mrf.mxu1  ;;  %v4642_v10 = vrot.slane %v9206_v2, 1 }
 0x1e8   : > { %v3863_v17 = vpop.f32.mrf.mxu0  ;;  %v4641_v23 = vsel %vm4526_vm3, %v4638_v7, %v4640_v51 }
 0x1e9   : > { %v5693_v61 = vmax.f32 %v5429_v3, %v5561_v11  ;;  %v5559_v26 = vmul.f32 0.2, %v5427_v39  ;;  %v5430_v22 = vadd.f32 %v7896_v12, %v4390_v47  ;;  %v4388_v0 = vadd.f32 %v3863_v17, %v8456_v29  ;;  %v4919_v21 = vpop.f32.mrf.mxu1 }
 0x1ea   : > { %v7765_v60 = vpop.f32.mrf.mxu0  ;;  %7860 = vmatmul.mubr.msk.bf16.gmra.mxu0 %vm1154_vm1, %v3507_v18  ;;  %v3540_v47 = vshrl.u32 %v9163_v32, 16  ;;  %v3552_v32 = vshll.u32 %v9206_v2, 16 }
 0x1eb   : > { %v7091_v12 = vpack.c.bf16 %v5693_v61, %v5693_v61  ;;  %v5691_v29 = vmax.f32 %v5427_v39, %v5559_v26  ;;  %v5562_v11 = vmul.f32 0.2, %v5430_v22  ;;  %v5428_v3 = vadd.f32 %v4903_v31, %v4388_v0  ;;  %v7903_v19 = vpop.f32.mrf.mxu1  ;;  %7998 = vmatmul.mubr.msk.bf16.gmra.mxu1 %vm1154_vm1, %v4635_v44  ;;  %7863 = vmatprep.mubr.msk.bf16.mxu0 %vm1154_vm1, %v3515_v46  ;;  %v9225_v26 = vld [vmem:[%s8231_s22 + $0x1e8] sm:$0xff]  }
 0x1ec   : > { %v4393_v18 = vadd.f32 %v7765_v60, %v8460_v34  ;;  %v3876_v50 = vpop.f32.mrf.mxu0  ;;  %8001 = vmatprep.mubr.msk.bf16.mxu1 %vm1154_vm1, %v4637_v4  ;;  %v3531_v4 = vsel %vm616_vm2, %v3526_v38, %v3530_v63  ;;  %v3550_v63 = vor.u32 %v3548_v54, %v3546_v36  ;;  %v3554_v38 = vrot.slane %v3552_v32, 1  ;;  %v9239_v32 = vld [vmem:[%s8231_s22 + $0x1f0] sm:$0xff]  }
 0x1ed   : > { %6354 = vst.msk [vmem:[%s9201_s26 + $0x8] sm:$0xf] %vm6351_vm4, %v7091_v12  ;;  %v7089_v31 = vpack.c.bf16 %v5691_v29, %v5691_v29  ;;  %v5694_v39 = vmax.f32 %v5430_v22, %v5562_v11  ;;  %v5560_v17 = vmul.f32 0.2, %v5428_v3  ;;  %v4391_v44 = vadd.f32 %v3876_v50, %v8466_v41  ;;  %v9218_v46 = vpop.f32.mrf.mxu1 }
 0x1ee   : > { %v5433_v34 = vadd.f32 %v9171_v16, %v4393_v18  ;;  %v7766_v61 = vpop.f32.mrf.mxu0  ;;  %v3542_v11 = vor.u32 %v3540_v47, %v3538_v9  ;;  %v4643_v47 = vsel %vm4526_vm3, %v4640_v51, %v4642_v10  ;;  %v4644_v54 = vrot.slane %v9225_v26, 1 }
 0x1ef   : > { %6352 = vst.msk [vmem:[%s9201_s26] sm:$0xf] %vm6351_vm4, %v7089_v31  ;;  %v7092_v22 = vpack.c.bf16 %v5694_v39, %v5694_v39  ;;  %v5692_v0 = vmax.f32 %v5428_v3, %v5560_v17  ;;  %v5431_v60 = vadd.f32 %v4916_v42, %v4391_v44  ;;  %v4394_v41 = vadd.f32 %v7766_v61, %v8468_v45  ;;  %v7904_v12 = vpop.f32.mrf.mxu1 }
 0x1f0   : > { %v5565_v29 = vmul.f32 0.2, %v5433_v34  ;;  %v3879_v16 = vpop.f32.mrf.mxu0  ;;  %v3539_v45 = vsel %vm616_vm2, %v3534_v27, %v3538_v9  ;;  %v3547_v9 = vsel %vm616_vm2, %v3542_v11, %v3546_v36  ;;  %v9250_v51 = vsel %vm616_vm2, %v3550_v63, %v3554_v38 }
 0x1f1   : > { %6355 = vst.msk [vmem:[%s9201_s26 + $0xc] sm:$0xf] %vm6351_vm4, %v7092_v22  ;;  %v7090_v7 = vpack.c.bf16 %v5692_v0, %v5692_v0  ;;  %v5563_v18 = vmul.f32 0.2, %v5431_v60  ;;  %v5434_v50 = vadd.f32 %v7900_v13, %v4394_v41  ;;  %v4392_v31 = vadd.f32 %v3879_v16, %v8472_v53  ;;  %v4935_v39 = vpop.f32.mrf.mxu1 }
 0x1f2   : > { %v5697_v3 = vmax.f32 %v5433_v34, %v5565_v29  ;;  %v7769_v42 = vpop.f32.mrf.mxu0  ;;  %7864 = vmatmul.mubr.msk.bf16.gmra.mxu0 %vm1154_vm1, %v9190_v52  ;;  %v4646_v36 = vrot.slane %v9239_v32, 1  ;;  %v3556_v41 = vshrl.u32 %v9206_v2, 16  ;;  %v9260_v29 = vld [vmem:[%s8231_s22 + $0x1f8] sm:$0xff]   ;;  %v3568_v2 = vshll.u32 %v9239_v32, 16 }
 0x1f3   : > { %6353 = vst.msk [vmem:[%s9201_s26 + $0x4] sm:$0xf] %vm6351_vm4, %v7090_v7  ;;  %v5695_v17 = vmax.f32 %v5431_v60, %v5563_v18  ;;  %v5566_v13 = vmul.f32 0.2, %v5434_v50  ;;  %v5432_v44 = vadd.f32 %v4919_v21, %v4392_v31  ;;  %v4397_v53 = vadd.f32 %v7769_v42, %v8476_v58  ;;  %v7907_v34 = vpop.f32.mrf.mxu1  ;;  %8002 = vmatmul.mubr.msk.bf16.gmra.mxu1 %vm1154_vm1, %v9194_v30 }
 0x1f4   : > { %7867 = vmatprep.mubr.msk.bf16.mxu0 %vm1154_vm1, %v3531_v4  ;;  %v7095_v52 = vpack.c.bf16 %v5697_v3, %v5697_v3  ;;  %v3892_v27 = vpop.f32.mrf.mxu0  ;;  %8005 = vmatprep.mubr.msk.bf16.mxu1 %vm1154_vm1, %v4641_v23  ;;  %v3560_v21 = vshll.u32 %v9225_v26, 16  ;;  %v4645_v23 = vsel %vm4526_vm3, %v4642_v10, %v4644_v54  ;;  %v3564_v10 = vshrl.u32 %v9225_v26, 16  ;;  %v9275_v26 = vld [vmem:[%s8231_s22 + $0x200] sm:$0xff]  }
 0x1f5   : > { %v7093_v58 = vpack.c.bf16 %v5695_v17, %v5695_v17  ;;  %v5698_v61 = vmax.f32 %v5434_v50, %v5566_v13  ;;  %v5564_v22 = vmul.f32 0.2, %v5432_v44  ;;  %v5437_v0 = vadd.f32 %v7903_v19, %v4397_v53  ;;  %v4948_v30 = vpop.f32.mrf.mxu1 }
 0x1f6   : > { %6358 = vst.msk [vmem:[%s9201_s26 + $0x18] sm:$0xf] %vm6351_vm4, %v7095_v52  ;;  %v4395_v4 = vadd.f32 %v3892_v27, %v8482_v1  ;;  %v7770_v60 = vpop.f32.mrf.mxu0  ;;  %v3562_v50 = vrot.slane %v3560_v21, 1  ;;  %v3558_v53 = vor.u32 %v3556_v41, %v3554_v38  ;;  %v4648_v52 = vrot.slane %v9260_v29, 1 }
 0x1f7   : > { %6356 = vst.msk [vmem:[%s9201_s26 + $0x10] sm:$0xf] %vm6351_vm4, %v7093_v58  ;;  %v7096_v16 = vpack.c.bf16 %v5698_v61, %v5698_v61  ;;  %v5696_v11 = vmax.f32 %v5432_v44, %v5564_v22  ;;  %v5569_v19 = vmul.f32 0.2, %v5437_v0  ;;  %v4398_v63 = vadd.f32 %v7770_v60, %v8484_v5  ;;  %v7908_v7 = vpop.f32.mrf.mxu1 }
 0x1f8   : > { %v5435_v1 = vadd.f32 %v9218_v46, %v4395_v4  ;;  %v3895_v18 = vpop.f32.mrf.mxu0  ;;  %v4647_v46 = vsel %vm4526_vm3, %v4644_v54, %v4646_v36  ;;  %v3566_v38 = vor.u32 %v3564_v10, %v3562_v50  ;;  %v3570_v61 = vrot.slane %v3568_v2, 1 }
 0x1f9   : > { %6359 = vst.msk [vmem:[%s9201_s26 + $0x1c] sm:$0xf] %vm6351_vm4, %v7096_v16  ;;  %v7094_v31 = vpack.c.bf16 %v5696_v11, %v5696_v11  ;;  %v5701_v3 = vmax.f32 %v5437_v0, %v5569_v19  ;;  %v5438_v42 = vadd.f32 %v7904_v12, %v4398_v63  ;;  %v4396_v17 = vadd.f32 %v3895_v18, %v8488_v14  ;;  %v4951_v13 = vpop.f32.mrf.mxu1 }
 0x1fa   : > { %v5567_v5 = vmul.f32 0.2, %v5435_v1  ;;  %v7773_v44 = vpop.f32.mrf.mxu0  ;;  %7868 = vmatmul.mubr.msk.bf16.gmra.mxu0 %vm1154_vm1, %v3539_v45  ;;  %v3576_v22 = vshll.u32 %v9260_v29, 16  ;;  %v3563_v41 = vsel %vm616_vm2, %v3558_v53, %v3562_v50  ;;  %v4650_v16 = vrot.slane %v9275_v26, 1 }
 0x1fb   : > { %6357 = vst.msk [vmem:[%s9201_s26 + $0x14] sm:$0xf] %vm6351_vm4, %v7094_v31  ;;  %v7099_v27 = vpack.c.bf16 %v5701_v3, %v5701_v3  ;;  %v5570_v21 = vmul.f32 0.2, %v5438_v42  ;;  %v5436_v12 = vadd.f32 %v4935_v39, %v4396_v17  ;;  %v4401_v14 = vadd.f32 %v7773_v44, %v8492_v20  ;;  %v7911_v58 = vpop.f32.mrf.mxu1  ;;  %8006 = vmatmul.mubr.msk.bf16.gmra.mxu1 %vm1154_vm1, %v4643_v47  ;;  %v9296_v31 = vld [vmem:[%s8231_s22 + $0x208] sm:$0xff]  }
 0x1fc   : > { %7871 = vmatprep.mubr.msk.bf16.mxu0 %vm1154_vm1, %v3547_v9  ;;  %v5699_v45 = vmax.f32 %v5435_v1, %v5567_v5  ;;  %v3908_v54 = vpop.f32.mrf.mxu0  ;;  %8009 = vmatprep.mubr.msk.bf16.mxu1 %vm1154_vm1, %v4645_v23  ;;  %v4649_v23 = vsel %vm4526_vm3, %v4646_v36, %v4648_v52  ;;  %v3572_v10 = vshrl.u32 %v9239_v32, 16  ;;  %v3578_v2 = vrot.slane %v3576_v22, 1 }
 0x1fd   : > { %6362 = vst.msk [vmem:[%s9201_s26 + $0x28] sm:$0xf] %vm6351_vm4, %v7099_v27  ;;  %v5702_v0 = vmax.f32 %v5438_v42, %v5570_v21  ;;  %v5568_v39 = vmul.f32 0.2, %v5436_v12  ;;  %v5441_v4 = vadd.f32 %v7907_v34, %v4401_v14  ;;  %v4399_v20 = vadd.f32 %v3908_v54, %v8498_v28  ;;  %v4964_v60 = vpop.f32.mrf.mxu1  ;;  %v9316_v54 = vld [vmem:[%s8231_s22 + $0x210] sm:$0xff]  }
 0x1fe   : > { %v7097_v47 = vpack.c.bf16 %v5699_v45, %v5699_v45  ;;  %v7774_v9 = vpop.f32.mrf.mxu0  ;;  %v3580_v50 = vshrl.u32 %v9260_v29, 16  ;;  %v3571_v32 = vsel %vm616_vm2, %v3566_v38, %v3570_v61  ;;  %v4651_v29 = vsel %vm4526_vm3, %v4648_v52, %v4650_v16 }
 0x1ff   : > { %v7100_v11 = vpack.c.bf16 %v5702_v0, %v5702_v0  ;;  %v5700_v19 = vmax.f32 %v5436_v12, %v5568_v39  ;;  %v5573_v63 = vmul.f32 0.2, %v5441_v4  ;;  %v5439_v1 = vadd.f32 %v4948_v30, %v4399_v20  ;;  %v7912_v18 = vpop.f32.mrf.mxu1 }
 0x200   : > { %6360 = vst.msk [vmem:[%s9201_s26 + $0x20] sm:$0xf] %vm6351_vm4, %v7097_v47  ;;  %v4402_v28 = vadd.f32 %v7774_v9, %v8500_v33  ;;  %v3911_v34 = vpop.f32.mrf.mxu0  ;;  %v3584_v44 = vshll.u32 %v9275_v26, 16  ;;  %v3574_v52 = vor.u32 %v3572_v10, %v3570_v61  ;;  %v3582_v14 = vor.u32 %v3580_v50, %v3578_v2 }
 0x201   : > { %6363 = vst.msk [vmem:[%s9201_s26 + $0x2c] sm:$0xf] %vm6351_vm4, %v7100_v11  ;;  %v7098_v36 = vpack.c.bf16 %v5700_v19, %v5700_v19  ;;  %v5705_v3 = vmax.f32 %v5441_v4, %v5573_v63  ;;  %v5571_v42 = vmul.f32 0.2, %v5439_v1  ;;  %v4400_v30 = vadd.f32 %v3911_v34, %v8504_v43  ;;  %v9301_v17 = vpop.f32.mrf.mxu1 }
 0x202   : > { %v5442_v5 = vadd.f32 %v7908_v7, %v4402_v28  ;;  %v7777_v33 = vpop.f32.mrf.mxu0  ;;  %7872 = vmatmul.mubr.msk.bf16.gmra.mxu0 %vm1154_vm1, %v9250_v51  ;;  %v4652_v45 = vrot.slane %v9296_v31, 1  ;;  %v3586_v4 = vrot.slane %v3584_v44, 1  ;;  %v3588_v20 = vshrl.u32 %v9275_v26, 16 }
 0x203   : > { %6361 = vst.msk [vmem:[%s9201_s26 + $0x24] sm:$0xf] %vm6351_vm4, %v7098_v36  ;;  %v7103_v53 = vpack.c.bf16 %v5705_v3, %v5705_v3  ;;  %v5703_v27 = vmax.f32 %v5439_v1, %v5571_v42  ;;  %v5440_v43 = vadd.f32 %v4951_v13, %v4400_v30  ;;  %v4405_v21 = vadd.f32 %v7777_v33, %v8508_v49  ;;  %v7915_v7 = vpop.f32.mrf.mxu1  ;;  %v9330_v1 = vld [vmem:[%s8231_s22 + $0x218] sm:$0xff]  }
 0x204   : > { %8010 = vmatmul.mubr.msk.bf16.gmra.mxu1 %vm1154_vm1, %v4647_v46  ;;  %v5574_v12 = vmul.f32 0.2, %v5442_v5  ;;  %v3924_v51 = vpop.f32.mrf.mxu0  ;;  %7875 = vmatprep.mubr.msk.bf16.mxu0 %vm1154_vm1, %v3563_v41  ;;  %v3592_v61 = vshll.u32 %v9296_v31, 16  ;;  %v3579_v19 = vsel %vm616_vm2, %v3574_v52, %v3578_v2  ;;  %v4653_v63 = vsel %vm4526_vm3, %v4650_v16, %v4652_v45 }
 0x205   : > { %8013 = vmatprep.mubr.msk.bf16.mxu1 %vm1154_vm1, %v4649_v23  ;;  %6366 = vst.msk [vmem:[%s9201_s26 + $0x38] sm:$0xf] %vm6351_vm4, %v7103_v53  ;;  %v7101_v13 = vpack.c.bf16 %v5703_v27, %v5703_v27  ;;  %v5572_v49 = vmul.f32 0.2, %v5440_v43  ;;  %v5445_v38 = vadd.f32 %v7911_v58, %v4405_v21  ;;  %v4403_v46 = vadd.f32 %v3924_v51, %v8514_v57  ;;  %v4980_v22 = vpop.f32.mrf.mxu1 }
 0x206   : > { %v5706_v0 = vmax.f32 %v5442_v5, %v5574_v12  ;;  %v7778_v39 = vpop.f32.mrf.mxu0  ;;  %v4654_v26 = vrot.slane %v9316_v54, 1  ;;  %v3590_v3 = vor.u32 %v3588_v20, %v3586_v4  ;;  %v3594_v2 = vrot.slane %v3592_v61, 1 }
 0x207   : > { %6364 = vst.msk [vmem:[%s9201_s26 + $0x30] sm:$0xf] %vm6351_vm4, %v7101_v13  ;;  %v5704_v47 = vmax.f32 %v5440_v43, %v5572_v49  ;;  %v5577_v9 = vmul.f32 0.2, %v5445_v38  ;;  %v5443_v41 = vadd.f32 %v4964_v60, %v4403_v46  ;;  %v4406_v23 = vadd.f32 %v7778_v39, %v8516_v62  ;;  %v7916_v58 = vpop.f32.mrf.mxu1 }
 0x208   : > { %v7104_v11 = vpack.c.bf16 %v5706_v0, %v5706_v0  ;;  %v3927_v57 = vpop.f32.mrf.mxu0  ;;  %v4655_v44 = vsel %vm4526_vm3, %v4652_v45, %v4654_v26  ;;  %v4656_v53 = vrot.slane %v9330_v1, 1  ;;  %v3595_v51 = vsel %vm616_vm2, %v3590_v3, %v3594_v2  ;;  %v8177_v39 = vld [vmem:[%s8231_s22 + $0x220] ss:$0 sps:$4 sm:$0x11]  }
 0x209   : > { %v7102_v28 = vpack.c.bf16 %v5704_v47, %v5704_v47  ;;  %v5709_v34 = vmax.f32 %v5445_v38, %v5577_v9  ;;  %v5575_v10 = vmul.f32 0.2, %v5443_v41  ;;  %v5446_v50 = vadd.f32 %v7912_v18, %v4406_v23  ;;  %v4983_v36 = vpop.f32.mrf.mxu1 }
 0x20a   : > { %6367 = vst.msk [vmem:[%s9201_s26 + $0x3c] sm:$0xf] %vm6351_vm4, %v7104_v11  ;;  %v4404_v62 = vadd.f32 %v3927_v57, %v8520_v8  ;;  %v7781_v60 = vpop.f32.mrf.mxu0  ;;  %7876 = vmatmul.mubr.msk.bf16.gmra.mxu0 %vm1154_vm1, %v3571_v32  ;;  %v3587_v32 = vsel %vm616_vm2, %v3582_v14, %v3586_v4  ;;  %v3596_v52 = vshrl.u32 %v9296_v31, 16  ;;  %v3600_v14 = vshll.u32 %v9316_v54, 16 }
 0x20b   : > { %6365 = vst.msk [vmem:[%s9201_s26 + $0x34] sm:$0xf] %vm6351_vm4, %v7102_v28  ;;  %v7107_v16 = vpack.c.bf16 %v5709_v34, %v5709_v34  ;;  %v5707_v42 = vmax.f32 %v5443_v41, %v5575_v10  ;;  %v5578_v30 = vmul.f32 0.2, %v5446_v50  ;;  %v4409_v5 = vadd.f32 %v7781_v60, %v8524_v15  ;;  %v9339_v33 = vpop.f32.mrf.mxu1  ;;  %7879 = vmatprep.mubr.msk.bf16.mxu0 %vm1154_vm1, %v3579_v19 }
 0x20c   : > { %8014 = vmatmul.mubr.msk.bf16.gmra.mxu1 %vm1154_vm1, %v4651_v29  ;;  %v5444_v8 = vadd.f32 %v9301_v17, %v4404_v62  ;;  %v3940_v18 = vpop.f32.mrf.mxu0  ;;  %v4657_v0 = vsel %vm4526_vm3, %v4654_v26, %v4656_v53  ;;  %v3604_v4 = vshrl.u32 %v9316_v54, 16  ;;  %v3608_v31 = vshll.u32 %v9330_v1, 16 }
 0x20d   : > { %8017 = vmatprep.mubr.msk.bf16.mxu1 %vm1154_vm1, %v4653_v63  ;;  %6370 = vst.msk [vmem:[%s9201_s26 + $0x48] sm:$0xf] %vm6351_vm4, %v7107_v16  ;;  %v7105_v15 = vpack.c.bf16 %v5707_v42, %v5707_v42  ;;  %v5710_v27 = vmax.f32 %v5446_v50, %v5578_v30  ;;  %v5449_v43 = vadd.f32 %v7915_v7, %v4409_v5  ;;  %v4996_v21 = vpop.f32.mrf.mxu1  ;;  %v3602_v11 = vrot.slane %v3600_v14, 1 }
 0x20e   : > { %v4407_v29 = vadd.f32 %v3940_v18, %v8530_v25  ;;  %v5576_v17 = vmul.f32 0.2, %v5444_v8  ;;  %v7782_v12 = vpop.f32.mrf.mxu0  ;;  %v3598_v23 = vor.u32 %v3596_v52, %v3594_v2  ;;  %v4658_v28 = vrot.slane %v8177_v39, 1 }
 0x20f   : > { %6368 = vst.msk [vmem:[%s9201_s26 + $0x40] sm:$0xf] %vm6351_vm4, %v7105_v15  ;;  %v7108_v45 = vpack.c.bf16 %v5710_v27, %v5710_v27  ;;  %v5581_v13 = vmul.f32 0.2, %v5449_v43  ;;  %v4410_v7 = vadd.f32 %v7782_v12, %v8535_v37  ;;  %v7920_v38 = vpop.f32.mrf.mxu1  ;;  %v3606_v34 = vor.u32 %v3604_v4, %v3602_v11 }
 0x210   : > { %v5447_v49 = vadd.f32 %v4980_v22, %v4407_v29  ;;  %v5708_v25 = vmax.f32 %v5444_v8, %v5576_v17  ;;  %v3943_v46 = vpop.f32.mrf.mxu0  ;;  %v3610_v10 = vrot.slane %v3608_v31, 1  ;;  %v3612_v42 = vshrl.u32 %v9330_v1, 16 }
 0x211   : > { %6371 = vst.msk [vmem:[%s9201_s26 + $0x4c] sm:$0xf] %vm6351_vm4, %v7108_v45  ;;  %v5713_v20 = vmax.f32 %v5449_v43, %v5581_v13  ;;  %v5450_v22 = vadd.f32 %v7916_v58, %v4410_v7  ;;  %v4408_v37 = vadd.f32 %v3943_v46, %v8539_v48  ;;  %v4999_v47 = vpop.f32.mrf.mxu1  ;;  %v3616_v30 = vshll.u32 %v8177_v39, 16 }
 0x212   : > { %v5579_v61 = vmul.f32 0.2, %v5447_v49  ;;  %v7106_v9 = vpack.c.bf16 %v5708_v25, %v5708_v25  ;;  %v7785_v41 = vpop.f32.mrf.mxu0  ;;  %7880 = vmatmul.mubr.msk.bf16.gmra.mxu0 %vm1154_vm1, %v3587_v32  ;;  %v3611_v27 = vsel %vm616_vm2, %v3606_v34, %v3610_v10  ;;  %v3614_v52 = vor.u32 %v3612_v42, %v3610_v10 }
 0x213   : > { %v7111_v57 = vpack.c.bf16 %v5713_v20, %v5713_v20  ;;  %v5582_v19 = vmul.f32 0.2, %v5450_v22  ;;  %v5448_v63 = vadd.f32 %v4983_v36, %v4408_v37  ;;  %v7923_v26 = vpop.f32.mrf.mxu1  ;;  %7883 = vmatprep.mubr.msk.bf16.mxu0 %vm1154_vm1, %v3595_v51  ;;  %v4413_v48 = vadd.f32 %v7785_v41, %v8545_v59 }
 0x214   : > { %v5711_v54 = vmax.f32 %v5447_v49, %v5579_v61  ;;  %8018 = vmatmul.mubr.msk.bf16.gmra.mxu1 %vm1154_vm1, %v4655_v44  ;;  %6369 = vst.msk [vmem:[%s9201_s26 + $0x44] sm:$0xf] %vm6351_vm4, %v7106_v9  ;;  %v3956_v58 = vpop.f32.mrf.mxu0  ;;  %v3603_v59 = vsel %vm616_vm2, %v3598_v23, %v3602_v11  ;;  %v3618_v14 = vrot.slane %v3616_v30, 1 }
 0x215   : > { %8021 = vmatprep.mubr.msk.bf16.mxu1 %vm1154_vm1, %v4657_v0  ;;  %6374 = vst.msk [vmem:[%s9201_s26 + $0x58] sm:$0xf] %vm6351_vm4, %v7111_v57  ;;  %v5714_v36 = vmax.f32 %v5450_v22, %v5582_v19  ;;  %v5580_v62 = vmul.f32 0.2, %v5448_v63  ;;  %v4411_v60 = vadd.f32 %v3956_v58, %v8551_v6  ;;  %v5012_v3 = vpop.f32.mrf.mxu1  ;;  %v5453_v2 = vadd.f32 %v9339_v33, %v4413_v48  ;;  %v9823_v57 = vld [vmem:[#allocation2_spill] sm:$0xff] }
 0x216   : > { %v7109_v50 = vpack.c.bf16 %v5711_v54, %v5711_v54  ;;  %v7786_v16 = vpop.f32.mrf.mxu0  ;;  %v4659_v33 = vsel %vm4526_vm3, %v4656_v53, %v4658_v28  ;;  %v9824_v28 = vld [vmem:[#allocation3_spill] sm:$0xff] }
 0x217   : > { %v7112_v5 = vpack.c.bf16 %v5714_v36, %v5714_v36  ;;  %v5712_v8 = vmax.f32 %v5448_v63, %v5580_v62  ;;  %v5451_v18 = vadd.f32 %v4996_v21, %v4411_v60  ;;  %v4414_v32 = vadd.f32 %v7786_v16, %v8554_v56  ;;  %v7924_v44 = vpop.f32.mrf.mxu1 }
 0x218   : > { %6372 = vst.msk [vmem:[%s9201_s26 + $0x50] sm:$0xf] %vm6351_vm4, %v7109_v50  ;;  %v5585_v6 = vmul.f32 0.2, %v5453_v2  ;;  %v3959_v15 = vpop.f32.mrf.mxu0 }
 0x219   : > { %6375 = vst.msk [vmem:[%s9201_s26 + $0x5c] sm:$0xf] %vm6351_vm4, %v7112_v5  ;;  %v7110_v43 = vpack.c.bf16 %v5712_v8, %v5712_v8  ;;  %v5583_v29 = vmul.f32 0.2, %v5451_v18  ;;  %v5454_v17 = vadd.f32 %v7920_v38, %v4414_v32  ;;  %v4412_v12 = vadd.f32 %v3959_v15, %v8560_v35  ;;  %v5015_v21 = vpop.f32.mrf.mxu1 }
 0x21a   : > { %v5717_v51 = vmax.f32 %v5453_v2, %v5585_v6  ;;  %v7789_v56 = vpop.f32.mrf.mxu0  ;;  %7884 = vmatmul.mubr.msk.bf16.gmra.mxu0 %vm1154_vm1, %v3603_v59  ;;  %v9825_v2 = vld [vmem:[#allocation4_spill] sm:$0xff]  ;;  %v9826_v6 = vld [vmem:[#allocation5_spill] sm:$0xff] }
 0x21b   : > { %6373 = vst.msk [vmem:[%s9201_s26 + $0x54] sm:$0xf] %vm6351_vm4, %v7110_v43  ;;  %v5715_v1 = vmax.f32 %v5451_v18, %v5583_v29  ;;  %v5586_v53 = vmul.f32 0.2, %v5454_v17  ;;  %v5452_v45 = vadd.f32 %v4999_v47, %v4412_v12  ;;  %v4417_v13 = vadd.f32 %v7789_v56, %v8567_v40  ;;  %v7927_v49 = vpop.f32.mrf.mxu1  ;;  %7887 = vmatprep.mubr.msk.bf16.mxu0 %vm1154_vm1, %v3611_v27 }
 0x21c   : > { %8022 = vmatmul.mubr.msk.bf16.gmra.mxu1 %vm1154_vm1, %v4659_v33  ;;  %v7115_v35 = vpack.c.bf16 %v5717_v51, %v5717_v51  ;;  %v3972_v7 = vpop.f32.mrf.mxu0  ;;  %v3619_v40 = vsel %vm616_vm2, %v3614_v52, %v3618_v14 }
 0x21d   : > { %v7113_v38 = vpack.c.bf16 %v5715_v1, %v5715_v1  ;;  %v5718_v25 = vmax.f32 %v5454_v17, %v5586_v53  ;;  %v5584_v46 = vmul.f32 0.2, %v5452_v45  ;;  %v5457_v0 = vadd.f32 %v7923_v26, %v4417_v13  ;;  %v5028_v39 = vpop.f32.mrf.mxu1  ;;  %v9827_v17 = vld [vmem:[#allocation6_spill] sm:$0xff]  ;;  %v9828_v53 = vld [vmem:[#allocation7_spill] sm:$0xff] }
 0x21e   : > { %6378 = vst.msk [vmem:[%s9201_s26 + $0x68] sm:$0xf] %vm6351_vm4, %v7115_v35  ;;  %v4415_v4 = vadd.f32 %v3972_v7, %v8572_v55  ;;  %v7790_v31 = vpop.f32.mrf.mxu0 }
 0x21f   : > { %6376 = vst.msk [vmem:[%s9201_s26 + $0x60] sm:$0xf] %vm6351_vm4, %v7113_v38  ;;  %v7116_v20 = vpack.c.bf16 %v5718_v25, %v5718_v25  ;;  %v5716_v61 = vmax.f32 %v5452_v45, %v5584_v46  ;;  %v5589_v22 = vmul.f32 0.2, %v5457_v0  ;;  %v4418_v37 = vadd.f32 %v7790_v31, %v8575_v24  ;;  %v7928_v47 = vpop.f32.mrf.mxu1  ;;  %v9829_v46 = vld [vmem:[#allocation8_spill] sm:$0xff] }
 0x220   : > { %v5455_v9 = vadd.f32 %v5012_v3, %v4415_v4  ;;  %v3975_v41 = vpop.f32.mrf.mxu0 }
 0x221   : > { %6379 = vst.msk [vmem:[%s9201_s26 + $0x6c] sm:$0xf] %vm6351_vm4, %v7116_v20  ;;  %v7114_v23 = vpack.c.bf16 %v5716_v61, %v5716_v61  ;;  %v5721_v11 = vmax.f32 %v5457_v0, %v5589_v22  ;;  %v5458_v55 = vadd.f32 %v7924_v44, %v4418_v37  ;;  %v4416_v54 = vadd.f32 %v3975_v41, %v9823_v57  ;;  %v5031_v19 = vpop.f32.mrf.mxu1  ;;  %v9830_v22 = vld [vmem:[#allocation9_spill] sm:$0xff] }
 0x222   : > { %v5587_v63 = vmul.f32 0.2, %v5455_v9  ;;  %v7793_v26 = vpop.f32.mrf.mxu0  ;;  %7888 = vmatmul.mubr.msk.bf16.gmra.mxu0 %vm1154_vm1, %v3619_v40 }
 0x223   : > { %6377 = vst.msk [vmem:[%s9201_s26 + $0x64] sm:$0xf] %vm6351_vm4, %v7114_v23  ;;  %v7119_v48 = vpack.c.bf16 %v5721_v11, %v5721_v11  ;;  %v5590_v24 = vmul.f32 0.2, %v5458_v55  ;;  %v5456_v58 = vadd.f32 %v5015_v21, %v4416_v54  ;;  %v4421_v34 = vadd.f32 %v7793_v26, %v9824_v28  ;;  %v7931_v10 = vpop.f32.mrf.mxu1  ;;  %v9832_v28 = vld [vmem:[#allocation11_spill] sm:$0xff] }
 0x224   : > { %v5719_v50 = vmax.f32 %v5455_v9, %v5587_v63  ;;  %v3988_v36 = vpop.f32.mrf.mxu0 }
 0x225   : > { %6382 = vst.msk [vmem:[%s9201_s26 + $0x78] sm:$0xf] %vm6351_vm4, %v7119_v48  ;;  %v5722_v62 = vmax.f32 %v5458_v55, %v5590_v24  ;;  %v5588_v60 = vmul.f32 0.2, %v5456_v58  ;;  %v5461_v3 = vadd.f32 %v7927_v49, %v4421_v34  ;;  %v4419_v16 = vadd.f32 %v3988_v36, %v9825_v2  ;;  %v5044_v59 = vpop.f32.mrf.mxu1  ;;  %v9833_v2 = vld [vmem:[#allocation12_spill] sm:$0xff] }
 0x226   : > { %v7117_v42 = vpack.c.bf16 %v5719_v50, %v5719_v50  ;;  %v7794_v30 = vpop.f32.mrf.mxu0 }
 0x227   : > { %v7120_v5 = vpack.c.bf16 %v5722_v62, %v5722_v62  ;;  %v5720_v8 = vmax.f32 %v5456_v58, %v5588_v60  ;;  %v5593_v18 = vmul.f32 0.2, %v5461_v3  ;;  %v5459_v32 = vadd.f32 %v5028_v39, %v4419_v16  ;;  %v7932_v44 = vpop.f32.mrf.mxu1 }
 0x228   : > { %6380 = vst.msk [vmem:[%s9201_s26 + $0x70] sm:$0xf] %vm6351_vm4, %v7117_v42  ;;  %v4422_v15 = vadd.f32 %v7794_v30, %v9826_v6  ;;  %v3991_v33 = vpop.f32.mrf.mxu0 }
 0x229   : > { %6383 = vst.msk [vmem:[%s9201_s26 + $0x7c] sm:$0xf] %vm6351_vm4, %v7120_v5  ;;  %v7118_v27 = vpack.c.bf16 %v5720_v8, %v5720_v8  ;;  %v5725_v43 = vmax.f32 %v5461_v3, %v5593_v18  ;;  %v5591_v29 = vmul.f32 0.2, %v5459_v32  ;;  %v4420_v12 = vadd.f32 %v3991_v33, %v9827_v17  ;;  %v5047_v21 = vpop.f32.mrf.mxu1  ;;  %v9835_v17 = vld [vmem:[#allocation14_spill] sm:$0xff] }
 0x22a   : > { %v5462_v51 = vadd.f32 %v7928_v47, %v4422_v15  ;;  %v7797_v56 = vpop.f32.mrf.mxu0 }
 0x22b   : > { %6381 = vst.msk [vmem:[%s9201_s26 + $0x74] sm:$0xf] %vm6351_vm4, %v7118_v27  ;;  %v7123_v52 = vpack.c.bf16 %v5725_v43, %v5725_v43  ;;  %v5723_v14 = vmax.f32 %v5459_v32, %v5591_v29  ;;  %v5460_v1 = vadd.f32 %v5031_v19, %v4420_v12  ;;  %v4425_v45 = vadd.f32 %v7797_v56, %v9828_v53  ;;  %v7935_v13 = vpop.f32.mrf.mxu1  ;;  %v9831_v19 = vld [vmem:[#allocation10_spill] sm:$0xff]  ;;  %v9834_v32 = vld [vmem:[#allocation13_spill] sm:$0xff] }
 0x22c   : > { %v5594_v49 = vmul.f32 0.2, %v5462_v51  ;;  %v4004_v35 = vpop.f32.mrf.mxu0 }
 0x22d   : > { %6386 = vst.msk [vmem:[%s9201_s26 + $0x88] sm:$0xf] %vm6351_vm4, %v7123_v52  ;;  %v7121_v7 = vpack.c.bf16 %v5723_v14, %v5723_v14  ;;  %v5592_v38 = vmul.f32 0.2, %v5460_v1  ;;  %v5465_v25 = vadd.f32 %v7931_v10, %v4425_v45  ;;  %v4423_v0 = vadd.f32 %v4004_v35, %v9829_v46  ;;  %v5060_v39 = vpop.f32.mrf.mxu1  ;;  %v9837_v46 = vld [vmem:[#allocation16_spill] sm:$0xff] }
 0x22e   : > { %v5726_v4 = vmax.f32 %v5462_v51, %v5594_v49  ;;  %v7798_v31 = vpop.f32.mrf.mxu0 }
 0x22f   : > { %6384 = vst.msk [vmem:[%s9201_s26 + $0x80] sm:$0xf] %vm6351_vm4, %v7121_v7  ;;  %v5724_v40 = vmax.f32 %v5460_v1, %v5592_v38  ;;  %v5597_v20 = vmul.f32 0.2, %v5465_v25  ;;  %v5463_v61 = vadd.f32 %v5044_v59, %v4423_v0  ;;  %v4426_v37 = vadd.f32 %v7798_v31, %v9830_v22  ;;  %v7936_v47 = vpop.f32.mrf.mxu1  ;;  %v9838_v22 = vld [vmem:[#allocation17_spill] sm:$0xff] }
 0x230   : > { %v7124_v9 = vpack.c.bf16 %v5726_v4, %v5726_v4  ;;  %v4007_v41 = vpop.f32.mrf.mxu0 }
 0x231   : > { %v7122_v23 = vpack.c.bf16 %v5724_v40, %v5724_v40  ;;  %v5729_v11 = vmax.f32 %v5465_v25, %v5597_v20  ;;  %v5595_v55 = vmul.f32 0.2, %v5463_v61  ;;  %v5466_v57 = vadd.f32 %v7932_v44, %v4426_v37  ;;  %v5063_v54 = vpop.f32.mrf.mxu1 }
 0x232   : > { %6387 = vst.msk [vmem:[%s9201_s26 + $0x8c] sm:$0xf] %vm6351_vm4, %v7124_v9  ;;  %v4424_v63 = vadd.f32 %v4007_v41, %v9831_v19  ;;  %v7801_v26 = vpop.f32.mrf.mxu0 }
 0x233   : > { %6385 = vst.msk [vmem:[%s9201_s26 + $0x84] sm:$0xf] %vm6351_vm4, %v7122_v23  ;;  %v7127_v48 = vpack.c.bf16 %v5729_v11, %v5729_v11  ;;  %v5727_v24 = vmax.f32 %v5463_v61, %v5595_v55  ;;  %v5598_v58 = vmul.f32 0.2, %v5466_v57  ;;  %v4429_v34 = vadd.f32 %v7801_v26, %v9832_v28  ;;  %v7939_v10 = vpop.f32.mrf.mxu1  ;;  %v9840_v28 = vld [vmem:[#allocation19_spill] sm:$0xff] }
 0x234   : > { %v5464_v50 = vadd.f32 %v5047_v21, %v4424_v63  ;;  %v4020_v36 = vpop.f32.mrf.mxu0 }
 0x235   : > { %6390 = vst.msk [vmem:[%s9201_s26 + $0x98] sm:$0xf] %vm6351_vm4, %v7127_v48  ;;  %v7125_v62 = vpack.c.bf16 %v5727_v24, %v5727_v24  ;;  %v5730_v60 = vmax.f32 %v5466_v57, %v5598_v58  ;;  %v5469_v3 = vadd.f32 %v7935_v13, %v4429_v34  ;;  %v4427_v16 = vadd.f32 %v4020_v36, %v9833_v2  ;;  %v5076_v59 = vpop.f32.mrf.mxu1  ;;  %v9836_v13 = vld [vmem:[#allocation15_spill] sm:$0xff]  ;;  %v9839_v57 = vld [vmem:[#allocation18_spill] sm:$0xff] }
 0x236   : > { %v5596_v42 = vmul.f32 0.2, %v5464_v50  ;;  %v7802_v30 = vpop.f32.mrf.mxu0 }
 0x237   : > { %6388 = vst.msk [vmem:[%s9201_s26 + $0x90] sm:$0xf] %vm6351_vm4, %v7125_v62  ;;  %v7128_v5 = vpack.c.bf16 %v5730_v60, %v5730_v60  ;;  %v5601_v8 = vmul.f32 0.2, %v5469_v3  ;;  %v5467_v18 = vadd.f32 %v5060_v39, %v4427_v16  ;;  %v4430_v44 = vadd.f32 %v7802_v30, %v9834_v32  ;;  %v7940_v6 = vpop.f32.mrf.mxu1  ;;  %v9842_v32 = vld [vmem:[#allocation21_spill] sm:$0xff] }
 0x238   : > { %v5728_v15 = vmax.f32 %v5464_v50, %v5596_v42  ;;  %v4023_v33 = vpop.f32.mrf.mxu0 }
 0x239   : > { %6391 = vst.msk [vmem:[%s9201_s26 + $0x9c] sm:$0xf] %vm6351_vm4, %v7128_v5  ;;  %v5733_v27 = vmax.f32 %v5469_v3, %v5601_v8  ;;  %v5599_v43 = vmul.f32 0.2, %v5467_v18  ;;  %v5470_v29 = vadd.f32 %v7936_v47, %v4430_v44  ;;  %v4428_v12 = vadd.f32 %v4023_v33, %v9835_v17  ;;  %v5079_v21 = vpop.f32.mrf.mxu1  ;;  %v9843_v17 = vld [vmem:[#allocation22_spill] sm:$0xff] }
 0x23a   : > { %v7126_v51 = vpack.c.bf16 %v5728_v15, %v5728_v15  ;;  %v7805_v56 = vpop.f32.mrf.mxu0 }
 0x23b   : > { %v7131_v52 = vpack.c.bf16 %v5733_v27, %v5733_v27  ;;  %v5731_v14 = vmax.f32 %v5467_v18, %v5599_v43  ;;  %v5602_v1 = vmul.f32 0.2, %v5470_v29  ;;  %v5468_v53 = vadd.f32 %v5063_v54, %v4428_v12  ;;  %v7943_v45 = vpop.f32.mrf.mxu1 }
 0x23c   : > { %6389 = vst.msk [vmem:[%s9201_s26 + $0x94] sm:$0xf] %vm6351_vm4, %v7126_v51  ;;  %v4433_v49 = vadd.f32 %v7805_v56, %v9836_v13  ;;  %v4036_v35 = vpop.f32.mrf.mxu0 }
 0x23d   : > { %6394 = vst.msk [vmem:[%s9201_s26 + $0xa8] sm:$0xf] %vm6351_vm4, %v7131_v52  ;;  %v7129_v7 = vpack.c.bf16 %v5731_v14, %v5731_v14  ;;  %v5734_v38 = vmax.f32 %v5470_v29, %v5602_v1  ;;  %v5600_v25 = vmul.f32 0.2, %v5468_v53  ;;  %v4431_v0 = vadd.f32 %v4036_v35, %v9837_v46  ;;  %v5092_v39 = vpop.f32.mrf.mxu1  ;;  %v9845_v46 = vld [vmem:[#allocation24_spill] sm:$0xff] }
 0x23e   : > { %v5473_v4 = vadd.f32 %v7939_v10, %v4433_v49  ;;  %v7806_v31 = vpop.f32.mrf.mxu0 }
 0x23f   : > { %6392 = vst.msk [vmem:[%s9201_s26 + $0xa0] sm:$0xf] %vm6351_vm4, %v7129_v7  ;;  %v7132_v40 = vpack.c.bf16 %v5734_v38, %v5734_v38  ;;  %v5732_v20 = vmax.f32 %v5468_v53, %v5600_v25  ;;  %v5471_v61 = vadd.f32 %v5076_v59, %v4431_v0  ;;  %v4434_v37 = vadd.f32 %v7806_v31, %v9838_v22  ;;  %v7944_v47 = vpop.f32.mrf.mxu1  ;;  %v9841_v59 = vld [vmem:[#allocation20_spill] sm:$0xff]  ;;  %v9844_v53 = vld [vmem:[#allocation23_spill] sm:$0xff] }
 0x240   : > { %v5605_v9 = vmul.f32 0.2, %v5473_v4  ;;  %v4039_v41 = vpop.f32.mrf.mxu0 }
 0x241   : > { %6395 = vst.msk [vmem:[%s9201_s26 + $0xac] sm:$0xf] %vm6351_vm4, %v7132_v40  ;;  %v7130_v23 = vpack.c.bf16 %v5732_v20, %v5732_v20  ;;  %v5603_v11 = vmul.f32 0.2, %v5471_v61  ;;  %v5474_v55 = vadd.f32 %v7940_v6, %v4434_v37  ;;  %v4432_v54 = vadd.f32 %v4039_v41, %v9839_v57  ;;  %v5095_v19 = vpop.f32.mrf.mxu1  ;;  %v9847_v57 = vld [vmem:[#allocation26_spill] sm:$0xff] }
 0x242   : > { %v5737_v63 = vmax.f32 %v5473_v4, %v5605_v9  ;;  %v7809_v26 = vpop.f32.mrf.mxu0 }
 0x243   : > { %6393 = vst.msk [vmem:[%s9201_s26 + $0xa4] sm:$0xf] %vm6351_vm4, %v7130_v23  ;;  %v5735_v48 = vmax.f32 %v5471_v61, %v5603_v11  ;;  %v5606_v24 = vmul.f32 0.2, %v5474_v55  ;;  %v5472_v58 = vadd.f32 %v5079_v21, %v4432_v54  ;;  %v4437_v34 = vadd.f32 %v7809_v26, %v9840_v28  ;;  %v7947_v10 = vpop.f32.mrf.mxu1  ;;  %v9848_v28 = vld [vmem:[#allocation27_spill] sm:$0xff] }
 0x244   : > { %v7135_v50 = vpack.c.bf16 %v5737_v63, %v5737_v63  ;;  %v4052_v36 = vpop.f32.mrf.mxu0 }
 0x245   : > { %v7133_v62 = vpack.c.bf16 %v5735_v48, %v5735_v48  ;;  %v5738_v60 = vmax.f32 %v5474_v55, %v5606_v24  ;;  %v5604_v3 = vmul.f32 0.2, %v5472_v58  ;;  %v5477_v2 = vadd.f32 %v7943_v45, %v4437_v34  ;;  %v5108_v16 = vpop.f32.mrf.mxu1 }
 0x246   : > { %6398 = vst.msk [vmem:[%s9201_s26 + $0xb8] sm:$0xf] %vm6351_vm4, %v7135_v50  ;;  %v4435_v42 = vadd.f32 %v4052_v36, %v9841_v59  ;;  %v7810_v30 = vpop.f32.mrf.mxu0 }
 0x247   : > { %6396 = vst.msk [vmem:[%s9201_s26 + $0xb0] sm:$0xf] %vm6351_vm4, %v7133_v62  ;;  %v7136_v5 = vpack.c.bf16 %v5738_v60, %v5738_v60  ;;  %v5736_v8 = vmax.f32 %v5472_v58, %v5604_v3  ;;  %v5609_v18 = vmul.f32 0.2, %v5477_v2  ;;  %v4438_v44 = vadd.f32 %v7810_v30, %v9842_v32  ;;  %v7948_v6 = vpop.f32.mrf.mxu1  ;;  %v9850_v32 = vld [vmem:[#allocation29_spill] sm:$0xff] }
 0x248   : > { %v5475_v15 = vadd.f32 %v5092_v39, %v4435_v42  ;;  %v4055_v33 = vpop.f32.mrf.mxu0 }
 0x249   : > { %6399 = vst.msk [vmem:[%s9201_s26 + $0xbc] sm:$0xf] %vm6351_vm4, %v7136_v5  ;;  %v7134_v27 = vpack.c.bf16 %v5736_v8, %v5736_v8  ;;  %v5741_v43 = vmax.f32 %v5477_v2, %v5609_v18  ;;  %v5478_v29 = vadd.f32 %v7944_v47, %v4438_v44  ;;  %v4436_v12 = vadd.f32 %v4055_v33, %v9843_v17  ;;  %v5111_v21 = vpop.f32.mrf.mxu1  ;;  %v9846_v47 = vld [vmem:[#allocation25_spill] sm:$0xff]  ;;  %v9849_v2 = vld [vmem:[#allocation28_spill] sm:$0xff] }
 0x24a   : > { %v5607_v51 = vmul.f32 0.2, %v5475_v15  ;;  %v7813_v56 = vpop.f32.mrf.mxu0 }
 0x24b   : > { %6397 = vst.msk [vmem:[%s9201_s26 + $0xb4] sm:$0xf] %vm6351_vm4, %v7134_v27  ;;  %v7139_v52 = vpack.c.bf16 %v5741_v43, %v5741_v43  ;;  %v5610_v14 = vmul.f32 0.2, %v5478_v29  ;;  %v5476_v1 = vadd.f32 %v5095_v19, %v4436_v12  ;;  %v4441_v45 = vadd.f32 %v7813_v56, %v9844_v53  ;;  %v7951_v13 = vpop.f32.mrf.mxu1  ;;  %v9852_v53 = vld [vmem:[#allocation31_spill] sm:$0xff] }
 0x24c   : > { %v5739_v49 = vmax.f32 %v5475_v15, %v5607_v51  ;;  %v4068_v35 = vpop.f32.mrf.mxu0 }
 0x24d   : > { %6402 = vst.msk [vmem:[%s9201_s26 + $0xc8] sm:$0xf] %vm6351_vm4, %v7139_v52  ;;  %v5742_v7 = vmax.f32 %v5478_v29, %v5610_v14  ;;  %v5608_v38 = vmul.f32 0.2, %v5476_v1  ;;  %v5481_v25 = vadd.f32 %v7947_v10, %v4441_v45  ;;  %v4439_v0 = vadd.f32 %v4068_v35, %v9845_v46  ;;  %v5124_v39 = vpop.f32.mrf.mxu1  ;;  %v9853_v46 = vld [vmem:[#allocation32_spill] sm:$0xff] }
 0x24e   : > { %v7137_v4 = vpack.c.bf16 %v5739_v49, %v5739_v49  ;;  %v7814_v31 = vpop.f32.mrf.mxu0 }
 0x24f   : > { %v7140_v40 = vpack.c.bf16 %v5742_v7, %v5742_v7  ;;  %v5740_v20 = vmax.f32 %v5476_v1, %v5608_v38  ;;  %v5613_v61 = vmul.f32 0.2, %v5481_v25  ;;  %v5479_v22 = vadd.f32 %v5108_v16, %v4439_v0  ;;  %v7952_v37 = vpop.f32.mrf.mxu1 }
 0x250   : > { %6400 = vst.msk [vmem:[%s9201_s26 + $0xc0] sm:$0xf] %vm6351_vm4, %v7137_v4  ;;  %v4442_v9 = vadd.f32 %v7814_v31, %v9846_v47  ;;  %v4071_v41 = vpop.f32.mrf.mxu0 }
 0x251   : > { %6403 = vst.msk [vmem:[%s9201_s26 + $0xcc] sm:$0xf] %vm6351_vm4, %v7140_v40  ;;  %v7138_v23 = vpack.c.bf16 %v5740_v20, %v5740_v20  ;;  %v5745_v11 = vmax.f32 %v5481_v25, %v5613_v61  ;;  %v5611_v55 = vmul.f32 0.2, %v5479_v22  ;;  %v4440_v54 = vadd.f32 %v4071_v41, %v9847_v57  ;;  %v5127_v19 = vpop.f32.mrf.mxu1  ;;  %v9855_v57 = vld [vmem:[#allocation34_spill] sm:$0xff] }
 0x252   : > { %v5482_v63 = vadd.f32 %v7948_v6, %v4442_v9  ;;  %v7817_v26 = vpop.f32.mrf.mxu0 }
 0x253   : > { %6401 = vst.msk [vmem:[%s9201_s26 + $0xc4] sm:$0xf] %vm6351_vm4, %v7138_v23  ;;  %v7143_v48 = vpack.c.bf16 %v5745_v11, %v5745_v11  ;;  %v5743_v24 = vmax.f32 %v5479_v22, %v5611_v55  ;;  %v5480_v58 = vadd.f32 %v5111_v21, %v4440_v54  ;;  %v4445_v34 = vadd.f32 %v7817_v26, %v9848_v28  ;;  %v7955_v10 = vpop.f32.mrf.mxu1  ;;  %v9851_v21 = vld [vmem:[#allocation30_spill] sm:$0xff]  ;;  %v9854_v22 = vld [vmem:[#allocation33_spill] sm:$0xff] }
 0x254   : > { %v5614_v50 = vmul.f32 0.2, %v5482_v63  ;;  %v4084_v36 = vpop.f32.mrf.mxu0 }
 0x255   : > { %6406 = vst.msk [vmem:[%s9201_s26 + $0xd8] sm:$0xf] %vm6351_vm4, %v7143_v48  ;;  %v7141_v62 = vpack.c.bf16 %v5743_v24, %v5743_v24  ;;  %v5612_v60 = vmul.f32 0.2, %v5480_v58  ;;  %v5485_v3 = vadd.f32 %v7951_v13, %v4445_v34  ;;  %v4443_v16 = vadd.f32 %v4084_v36, %v9849_v2  ;;  %v5140_v59 = vpop.f32.mrf.mxu1  ;;  %v9857_v2 = vld [vmem:[#allocation36_spill] sm:$0xff] }
 0x256   : > { %v5746_v42 = vmax.f32 %v5482_v63, %v5614_v50  ;;  %v7818_v30 = vpop.f32.mrf.mxu0 }
 0x257   : > { %6404 = vst.msk [vmem:[%s9201_s26 + $0xd0] sm:$0xf] %vm6351_vm4, %v7141_v62  ;;  %v5744_v5 = vmax.f32 %v5480_v58, %v5612_v60  ;;  %v5617_v8 = vmul.f32 0.2, %v5485_v3  ;;  %v5483_v18 = vadd.f32 %v5124_v39, %v4443_v16  ;;  %v4446_v44 = vadd.f32 %v7818_v30, %v9850_v32  ;;  %v7956_v6 = vpop.f32.mrf.mxu1  ;;  %v9858_v32 = vld [vmem:[#allocation37_spill] sm:$0xff] }
 0x258   : > { %v7144_v15 = vpack.c.bf16 %v5746_v42, %v5746_v42  ;;  %v4087_v33 = vpop.f32.mrf.mxu0 }
 0x259   : > { %v7142_v27 = vpack.c.bf16 %v5744_v5, %v5744_v5  ;;  %v5749_v43 = vmax.f32 %v5485_v3, %v5617_v8  ;;  %v5615_v29 = vmul.f32 0.2, %v5483_v18  ;;  %v5486_v17 = vadd.f32 %v7952_v37, %v4446_v44  ;;  %v5143_v12 = vpop.f32.mrf.mxu1 }
 0x25a   : > { %6407 = vst.msk [vmem:[%s9201_s26 + $0xdc] sm:$0xf] %vm6351_vm4, %v7144_v15  ;;  %v4444_v51 = vadd.f32 %v4087_v33, %v9851_v21  ;;  %v7821_v56 = vpop.f32.mrf.mxu0 }
 0x25b   : > { %6405 = vst.msk [vmem:[%s9201_s26 + $0xd4] sm:$0xf] %vm6351_vm4, %v7142_v27  ;;  %v7147_v52 = vpack.c.bf16 %v5749_v43, %v5749_v43  ;;  %v5747_v14 = vmax.f32 %v5483_v18, %v5615_v29  ;;  %v5618_v1 = vmul.f32 0.2, %v5486_v17  ;;  %v4449_v45 = vadd.f32 %v7821_v56, %v9852_v53  ;;  %v7959_v13 = vpop.f32.mrf.mxu1  ;;  %v9860_v53 = vld [vmem:[#allocation39_spill] sm:$0xff] }
 0x25c   : > { %v5484_v49 = vadd.f32 %v5127_v19, %v4444_v51  ;;  %v4100_v35 = vpop.f32.mrf.mxu0 }
 0x25d   : > { %6410 = vst.msk [vmem:[%s9201_s26 + $0xe8] sm:$0xf] %vm6351_vm4, %v7147_v52  ;;  %v7145_v7 = vpack.c.bf16 %v5747_v14, %v5747_v14  ;;  %v5750_v38 = vmax.f32 %v5486_v17, %v5618_v1  ;;  %v5489_v25 = vadd.f32 %v7955_v10, %v4449_v45  ;;  %v4447_v0 = vadd.f32 %v4100_v35, %v9853_v46  ;;  %v5156_v39 = vpop.f32.mrf.mxu1  ;;  %v9856_v10 = vld [vmem:[#allocation35_spill] sm:$0xff]  ;;  %v9859_v17 = vld [vmem:[#allocation38_spill] sm:$0xff] }
 0x25e   : > { %v5616_v4 = vmul.f32 0.2, %v5484_v49  ;;  %v7822_v31 = vpop.f32.mrf.mxu0 }
 0x25f   : > { %6408 = vst.msk [vmem:[%s9201_s26 + $0xe0] sm:$0xf] %vm6351_vm4, %v7145_v7  ;;  %v7148_v40 = vpack.c.bf16 %v5750_v38, %v5750_v38  ;;  %v5621_v20 = vmul.f32 0.2, %v5489_v25  ;;  %v5487_v61 = vadd.f32 %v5140_v59, %v4447_v0  ;;  %v4450_v37 = vadd.f32 %v7822_v31, %v9854_v22  ;;  %v7960_v47 = vpop.f32.mrf.mxu1  ;;  %v9862_v22 = vld [vmem:[#allocation41_spill] sm:$0xff] }
 0x260   : > { %v5748_v9 = vmax.f32 %v5484_v49, %v5616_v4  ;;  %v4103_v41 = vpop.f32.mrf.mxu0 }
 0x261   : > { %6411 = vst.msk [vmem:[%s9201_s26 + $0xec] sm:$0xf] %vm6351_vm4, %v7148_v40  ;;  %v5753_v23 = vmax.f32 %v5489_v25, %v5621_v20  ;;  %v5619_v11 = vmul.f32 0.2, %v5487_v61  ;;  %v5490_v55 = vadd.f32 %v7956_v6, %v4450_v37  ;;  %v4448_v54 = vadd.f32 %v4103_v41, %v9855_v57  ;;  %v5159_v19 = vpop.f32.mrf.mxu1  ;;  %v9863_v57 = vld [vmem:[#allocation42_spill] sm:$0xff] }
 0x262   : > { %v7146_v63 = vpack.c.bf16 %v5748_v9, %v5748_v9  ;;  %v7825_v26 = vpop.f32.mrf.mxu0 }
 0x263   : > { %v7151_v48 = vpack.c.bf16 %v5753_v23, %v5753_v23  ;;  %v5751_v24 = vmax.f32 %v5487_v61, %v5619_v11  ;;  %v5622_v58 = vmul.f32 0.2, %v5490_v55  ;;  %v5488_v28 = vadd.f32 %v5143_v12, %v4448_v54  ;;  %v7963_v34 = vpop.f32.mrf.mxu1 }
 0x264   : > { %6409 = vst.msk [vmem:[%s9201_s26 + $0xe4] sm:$0xf] %vm6351_vm4, %v7146_v63  ;;  %v4453_v50 = vadd.f32 %v7825_v26, %v9856_v10  ;;  %v4116_v36 = vpop.f32.mrf.mxu0 }
 0x265   : > { %6414 = vst.msk [vmem:[%s9201_s26 + $0xf8] sm:$0xf] %vm6351_vm4, %v7151_v48  ;;  %v7149_v62 = vpack.c.bf16 %v5751_v24, %v5751_v24  ;;  %v5754_v60 = vmax.f32 %v5490_v55, %v5622_v58  ;;  %v5620_v3 = vmul.f32 0.2, %v5488_v28  ;;  %v4451_v16 = vadd.f32 %v4116_v36, %v9857_v2  ;;  %v5172_v59 = vpop.f32.mrf.mxu1  ;;  %v9865_v2 = vld [vmem:[#allocation44_spill] sm:$0xff] }
 0x266   : > { %v5493_v42 = vadd.f32 %v7959_v13, %v4453_v50  ;;  %v7826_v30 = vpop.f32.mrf.mxu0 }
 0x267   : > { %6412 = vst.msk [vmem:[%s9201_s26 + $0xf0] sm:$0xf] %vm6351_vm4, %v7149_v62  ;;  %v7152_v5 = vpack.c.bf16 %v5754_v60, %v5754_v60  ;;  %v5752_v8 = vmax.f32 %v5488_v28, %v5620_v3  ;;  %v5491_v18 = vadd.f32 %v5156_v39, %v4451_v16  ;;  %v4454_v44 = vadd.f32 %v7826_v30, %v9858_v32  ;;  %v7964_v6 = vpop.f32.mrf.mxu1  ;;  %v9861_v39 = vld [vmem:[#allocation40_spill] sm:$0xff]  ;;  %v9864_v28 = vld [vmem:[#allocation43_spill] sm:$0xff] }
 0x268   : > { %v5625_v15 = vmul.f32 0.2, %v5493_v42  ;;  %v4119_v33 = vpop.f32.mrf.mxu0 }
 0x269   : > { %6415 = vst.msk [vmem:[%s9201_s26 + $0xfc] sm:$0xf] %vm6351_vm4, %v7152_v5  ;;  %v7150_v27 = vpack.c.bf16 %v5752_v8, %v5752_v8  ;;  %v5623_v43 = vmul.f32 0.2, %v5491_v18  ;;  %v5494_v29 = vadd.f32 %v7960_v47, %v4454_v44  ;;  %v4452_v12 = vadd.f32 %v4119_v33, %v9859_v17  ;;  %v5175_v21 = vpop.f32.mrf.mxu1  ;;  %v9867_v17 = vld [vmem:[#allocation46_spill] sm:$0xff] }
 0x26a   : > { %v5757_v51 = vmax.f32 %v5493_v42, %v5625_v15  ;;  %v7829_v56 = vpop.f32.mrf.mxu0 }
 0x26b   : > { %6413 = vst.msk [vmem:[%s9201_s26 + $0xf4] sm:$0xf] %vm6351_vm4, %v7150_v27  ;;  %v5755_v52 = vmax.f32 %v5491_v18, %v5623_v43  ;;  %v5626_v14 = vmul.f32 0.2, %v5494_v29  ;;  %v5492_v1 = vadd.f32 %v5159_v19, %v4452_v12  ;;  %v4457_v45 = vadd.f32 %v7829_v56, %v9860_v53  ;;  %v7967_v13 = vpop.f32.mrf.mxu1  ;;  %v9868_v53 = vld [vmem:[#allocation47_spill] sm:$0xff] }
 0x26c   : > { %v7155_v49 = vpack.c.bf16 %v5757_v51, %v5757_v51  ;;  %v4132_v35 = vpop.f32.mrf.mxu0 }
 0x26d   : > { %v7153_v7 = vpack.c.bf16 %v5755_v52, %v5755_v52  ;;  %v5758_v38 = vmax.f32 %v5494_v29, %v5626_v14  ;;  %v5624_v25 = vmul.f32 0.2, %v5492_v1  ;;  %v5497_v46 = vadd.f32 %v7963_v34, %v4457_v45  ;;  %v5188_v0 = vpop.f32.mrf.mxu1 }
 0x26e   : > { %6418 = vst.msk [vmem:[%s9201_s26 + $0x108] sm:$0xf] %vm6351_vm4, %v7155_v49  ;;  %v4455_v4 = vadd.f32 %v4132_v35, %v9861_v39  ;;  %v7830_v31 = vpop.f32.mrf.mxu0 }
 0x26f   : > { %6416 = vst.msk [vmem:[%s9201_s26 + $0x100] sm:$0xf] %vm6351_vm4, %v7153_v7  ;;  %v7156_v40 = vpack.c.bf16 %v5758_v38, %v5758_v38  ;;  %v5756_v20 = vmax.f32 %v5492_v1, %v5624_v25  ;;  %v5629_v61 = vmul.f32 0.2, %v5497_v46  ;;  %v4458_v37 = vadd.f32 %v7830_v31, %v9862_v22  ;;  %v7968_v47 = vpop.f32.mrf.mxu1  ;;  %v9870_v22 = vld [vmem:[#allocation49_spill] sm:$0xff] }
 0x270   : > { %v5495_v9 = vadd.f32 %v5172_v59, %v4455_v4  ;;  %v4135_v41 = vpop.f32.mrf.mxu0 }
 0x271   : > { %6419 = vst.msk [vmem:[%s9201_s26 + $0x10c] sm:$0xf] %vm6351_vm4, %v7156_v40  ;;  %v7154_v23 = vpack.c.bf16 %v5756_v20, %v5756_v20  ;;  %v5761_v11 = vmax.f32 %v5497_v46, %v5629_v61  ;;  %v5498_v55 = vadd.f32 %v7964_v6, %v4458_v37  ;;  %v4456_v54 = vadd.f32 %v4135_v41, %v9863_v57  ;;  %v5191_v19 = vpop.f32.mrf.mxu1  ;;  %v9866_v6 = vld [vmem:[#allocation45_spill] sm:$0xff]  ;;  %v9869_v46 = vld [vmem:[#allocation48_spill] sm:$0xff] }
 0x272   : > { %v5627_v63 = vmul.f32 0.2, %v5495_v9  ;;  %v7833_v26 = vpop.f32.mrf.mxu0 }
 0x273   : > { %6417 = vst.msk [vmem:[%s9201_s26 + $0x104] sm:$0xf] %vm6351_vm4, %v7154_v23  ;;  %v7159_v48 = vpack.c.bf16 %v5761_v11, %v5761_v11  ;;  %v5630_v24 = vmul.f32 0.2, %v5498_v55  ;;  %v5496_v58 = vadd.f32 %v5175_v21, %v4456_v54  ;;  %v4461_v34 = vadd.f32 %v7833_v26, %v9864_v28  ;;  %v7971_v10 = vpop.f32.mrf.mxu1  ;;  %v9872_v28 = vld [vmem:[#allocation51_spill] sm:$0xff] }
 0x274   : > { %v5759_v50 = vmax.f32 %v5495_v9, %v5627_v63  ;;  %v4148_v36 = vpop.f32.mrf.mxu0 }
 0x275   : > { %6422 = vst.msk [vmem:[%s9201_s26 + $0x118] sm:$0xf] %vm6351_vm4, %v7159_v48  ;;  %v5762_v62 = vmax.f32 %v5498_v55, %v5630_v24  ;;  %v5628_v60 = vmul.f32 0.2, %v5496_v58  ;;  %v5501_v3 = vadd.f32 %v7967_v13, %v4461_v34  ;;  %v4459_v16 = vadd.f32 %v4148_v36, %v9865_v2  ;;  %v5204_v59 = vpop.f32.mrf.mxu1  ;;  %v9873_v2 = vld [vmem:[#allocation52_spill] sm:$0xff] }
 0x276   : > { %v7157_v42 = vpack.c.bf16 %v5759_v50, %v5759_v50  ;;  %v7834_v30 = vpop.f32.mrf.mxu0 }
 0x277   : > { %v7160_v5 = vpack.c.bf16 %v5762_v62, %v5762_v62  ;;  %v5760_v8 = vmax.f32 %v5496_v58, %v5628_v60  ;;  %v5633_v18 = vmul.f32 0.2, %v5501_v3  ;;  %v5499_v32 = vadd.f32 %v5188_v0, %v4459_v16  ;;  %v7972_v44 = vpop.f32.mrf.mxu1 }
 0x278   : > { %6420 = vst.msk [vmem:[%s9201_s26 + $0x110] sm:$0xf] %vm6351_vm4, %v7157_v42  ;;  %v4462_v15 = vadd.f32 %v7834_v30, %v9866_v6  ;;  %v4151_v33 = vpop.f32.mrf.mxu0 }
 0x279   : > { %6423 = vst.msk [vmem:[%s9201_s26 + $0x11c] sm:$0xf] %vm6351_vm4, %v7160_v5  ;;  %v7158_v27 = vpack.c.bf16 %v5760_v8, %v5760_v8  ;;  %v5765_v43 = vmax.f32 %v5501_v3, %v5633_v18  ;;  %v5631_v29 = vmul.f32 0.2, %v5499_v32  ;;  %v4460_v12 = vadd.f32 %v4151_v33, %v9867_v17  ;;  %v5207_v21 = vpop.f32.mrf.mxu1  ;;  %v9875_v17 = vld [vmem:[#allocation54_spill] sm:$0xff] }
 0x27a   : > { %v5502_v51 = vadd.f32 %v7968_v47, %v4462_v15  ;;  %v7837_v56 = vpop.f32.mrf.mxu0 }
 0x27b   : > { %6421 = vst.msk [vmem:[%s9201_s26 + $0x114] sm:$0xf] %vm6351_vm4, %v7158_v27  ;;  %v7163_v52 = vpack.c.bf16 %v5765_v43, %v5765_v43  ;;  %v5763_v14 = vmax.f32 %v5499_v32, %v5631_v29  ;;  %v5500_v1 = vadd.f32 %v5191_v19, %v4460_v12  ;;  %v4465_v45 = vadd.f32 %v7837_v56, %v9868_v53  ;;  %v7975_v13 = vpop.f32.mrf.mxu1  ;;  %v9871_v19 = vld [vmem:[#allocation50_spill] sm:$0xff]  ;;  %v9874_v32 = vld [vmem:[#allocation53_spill] sm:$0xff] }
 0x27c   : > { %v5634_v49 = vmul.f32 0.2, %v5502_v51  ;;  %v4164_v35 = vpop.f32.mrf.mxu0 }
 0x27d   : > { %6426 = vst.msk [vmem:[%s9201_s26 + $0x128] sm:$0xf] %vm6351_vm4, %v7163_v52  ;;  %v7161_v7 = vpack.c.bf16 %v5763_v14, %v5763_v14  ;;  %v5632_v38 = vmul.f32 0.2, %v5500_v1  ;;  %v5505_v25 = vadd.f32 %v7971_v10, %v4465_v45  ;;  %v4463_v0 = vadd.f32 %v4164_v35, %v9869_v46  ;;  %v5220_v39 = vpop.f32.mrf.mxu1  ;;  %v9877_v46 = vld [vmem:[#allocation56_spill] sm:$0xff] }
 0x27e   : > { %v5766_v4 = vmax.f32 %v5502_v51, %v5634_v49  ;;  %v7838_v31 = vpop.f32.mrf.mxu0 }
 0x27f   : > { %6424 = vst.msk [vmem:[%s9201_s26 + $0x120] sm:$0xf] %vm6351_vm4, %v7161_v7  ;;  %v5764_v40 = vmax.f32 %v5500_v1, %v5632_v38  ;;  %v5637_v20 = vmul.f32 0.2, %v5505_v25  ;;  %v5503_v61 = vadd.f32 %v5204_v59, %v4463_v0  ;;  %v4466_v37 = vadd.f32 %v7838_v31, %v9870_v22  ;;  %v7976_v47 = vpop.f32.mrf.mxu1  ;;  %v9878_v22 = vld [vmem:[#allocation57_spill] sm:$0xff] }
 0x280   : > { %v7164_v9 = vpack.c.bf16 %v5766_v4, %v5766_v4  ;;  %v4167_v41 = vpop.f32.mrf.mxu0 }
 0x281   : > { %v7162_v23 = vpack.c.bf16 %v5764_v40, %v5764_v40  ;;  %v5769_v11 = vmax.f32 %v5505_v25, %v5637_v20  ;;  %v5635_v55 = vmul.f32 0.2, %v5503_v61  ;;  %v5506_v57 = vadd.f32 %v7972_v44, %v4466_v37  ;;  %v5223_v54 = vpop.f32.mrf.mxu1 }
 0x282   : > { %6427 = vst.msk [vmem:[%s9201_s26 + $0x12c] sm:$0xf] %vm6351_vm4, %v7164_v9  ;;  %v4464_v63 = vadd.f32 %v4167_v41, %v9871_v19  ;;  %v7841_v26 = vpop.f32.mrf.mxu0 }
 0x283   : > { %6425 = vst.msk [vmem:[%s9201_s26 + $0x124] sm:$0xf] %vm6351_vm4, %v7162_v23  ;;  %v7167_v48 = vpack.c.bf16 %v5769_v11, %v5769_v11  ;;  %v5767_v24 = vmax.f32 %v5503_v61, %v5635_v55  ;;  %v5638_v58 = vmul.f32 0.2, %v5506_v57  ;;  %v4469_v34 = vadd.f32 %v7841_v26, %v9872_v28  ;;  %v7979_v10 = vpop.f32.mrf.mxu1  ;;  %v9880_v28 = vld [vmem:[#allocation59_spill] sm:$0xff] }
 0x284   : > { %v5504_v50 = vadd.f32 %v5207_v21, %v4464_v63  ;;  %v4180_v36 = vpop.f32.mrf.mxu0 }
 0x285   : > { %6430 = vst.msk [vmem:[%s9201_s26 + $0x138] sm:$0xf] %vm6351_vm4, %v7167_v48  ;;  %v7165_v62 = vpack.c.bf16 %v5767_v24, %v5767_v24  ;;  %v5770_v60 = vmax.f32 %v5506_v57, %v5638_v58  ;;  %v5509_v3 = vadd.f32 %v7975_v13, %v4469_v34  ;;  %v4467_v16 = vadd.f32 %v4180_v36, %v9873_v2  ;;  %v5236_v59 = vpop.f32.mrf.mxu1  ;;  %v9876_v13 = vld [vmem:[#allocation55_spill] sm:$0xff]  ;;  %v9879_v57 = vld [vmem:[#allocation58_spill] sm:$0xff] }
 0x286   : > { %v5636_v42 = vmul.f32 0.2, %v5504_v50  ;;  %v7842_v30 = vpop.f32.mrf.mxu0 }
 0x287   : > { %6428 = vst.msk [vmem:[%s9201_s26 + $0x130] sm:$0xf] %vm6351_vm4, %v7165_v62  ;;  %v7168_v5 = vpack.c.bf16 %v5770_v60, %v5770_v60  ;;  %v5641_v8 = vmul.f32 0.2, %v5509_v3  ;;  %v5507_v18 = vadd.f32 %v5220_v39, %v4467_v16  ;;  %v4470_v44 = vadd.f32 %v7842_v30, %v9874_v32  ;;  %v7980_v6 = vpop.f32.mrf.mxu1  ;;  %v9882_v32 = vld [vmem:[#allocation61_spill] sm:$0xff] }
 0x288   : > { %v5768_v15 = vmax.f32 %v5504_v50, %v5636_v42  ;;  %v4183_v33 = vpop.f32.mrf.mxu0 }
 0x289   : > { %6431 = vst.msk [vmem:[%s9201_s26 + $0x13c] sm:$0xf] %vm6351_vm4, %v7168_v5  ;;  %v5773_v27 = vmax.f32 %v5509_v3, %v5641_v8  ;;  %v5639_v43 = vmul.f32 0.2, %v5507_v18  ;;  %v5510_v29 = vadd.f32 %v7976_v47, %v4470_v44  ;;  %v4468_v12 = vadd.f32 %v4183_v33, %v9875_v17  ;;  %v5239_v21 = vpop.f32.mrf.mxu1  ;;  %v9883_v17 = vld [vmem:[#allocation62_spill] sm:$0xff] }
 0x28a   : > { %v7166_v51 = vpack.c.bf16 %v5768_v15, %v5768_v15  ;;  %v7845_v56 = vpop.f32.mrf.mxu0 }
 0x28b   : > { %v7171_v52 = vpack.c.bf16 %v5773_v27, %v5773_v27  ;;  %v5771_v14 = vmax.f32 %v5507_v18, %v5639_v43  ;;  %v5642_v1 = vmul.f32 0.2, %v5510_v29  ;;  %v5508_v53 = vadd.f32 %v5223_v54, %v4468_v12  ;;  %v7983_v45 = vpop.f32.mrf.mxu1 }
 0x28c   : > { %6429 = vst.msk [vmem:[%s9201_s26 + $0x134] sm:$0xf] %vm6351_vm4, %v7166_v51  ;;  %v4473_v49 = vadd.f32 %v7845_v56, %v9876_v13  ;;  %v4196_v35 = vpop.f32.mrf.mxu0 }
 0x28d   : > { %6434 = vst.msk [vmem:[%s9201_s26 + $0x148] sm:$0xf] %vm6351_vm4, %v7171_v52  ;;  %v7169_v7 = vpack.c.bf16 %v5771_v14, %v5771_v14  ;;  %v5774_v38 = vmax.f32 %v5510_v29, %v5642_v1  ;;  %v5640_v25 = vmul.f32 0.2, %v5508_v53  ;;  %v4471_v0 = vadd.f32 %v4196_v35, %v9877_v46  ;;  %v5252_v39 = vpop.f32.mrf.mxu1  ;;  %v9885_v46 = vld [vmem:[#allocation64_spill] sm:$0xff] }
 0x28e   : > { %v5513_v4 = vadd.f32 %v7979_v10, %v4473_v49  ;;  %v7846_v31 = vpop.f32.mrf.mxu0 }
 0x28f   : > { %6432 = vst.msk [vmem:[%s9201_s26 + $0x140] sm:$0xf] %vm6351_vm4, %v7169_v7  ;;  %v7172_v40 = vpack.c.bf16 %v5774_v38, %v5774_v38  ;;  %v5772_v20 = vmax.f32 %v5508_v53, %v5640_v25  ;;  %v5511_v61 = vadd.f32 %v5236_v59, %v4471_v0  ;;  %v4474_v37 = vadd.f32 %v7846_v31, %v9878_v22  ;;  %v7984_v47 = vpop.f32.mrf.mxu1  ;;  %v9881_v59 = vld [vmem:[#allocation60_spill] sm:$0xff]  ;;  %v9884_v53 = vld [vmem:[#allocation63_spill] sm:$0xff] }
 0x290   : > { %v5645_v9 = vmul.f32 0.2, %v5513_v4  ;;  %v4199_v41 = vpop.f32.mrf.mxu0 }
 0x291   : > { %6435 = vst.msk [vmem:[%s9201_s26 + $0x14c] sm:$0xf] %vm6351_vm4, %v7172_v40  ;;  %v7170_v23 = vpack.c.bf16 %v5772_v20, %v5772_v20  ;;  %v5643_v11 = vmul.f32 0.2, %v5511_v61  ;;  %v5514_v55 = vadd.f32 %v7980_v6, %v4474_v37  ;;  %v4472_v54 = vadd.f32 %v4199_v41, %v9879_v57  ;;  %v5255_v19 = vpop.f32.mrf.mxu1  ;;  %v9887_v57 = vld [vmem:[#allocation66_spill] sm:$0xff] }
 0x292   : > { %v5777_v63 = vmax.f32 %v5513_v4, %v5645_v9  ;;  %v7849_v26 = vpop.f32.mrf.mxu0 }
 0x293   : > { %6433 = vst.msk [vmem:[%s9201_s26 + $0x144] sm:$0xf] %vm6351_vm4, %v7170_v23  ;;  %v5775_v48 = vmax.f32 %v5511_v61, %v5643_v11  ;;  %v5646_v24 = vmul.f32 0.2, %v5514_v55  ;;  %v5512_v58 = vadd.f32 %v5239_v21, %v4472_v54  ;;  %v4477_v34 = vadd.f32 %v7849_v26, %v9880_v28  ;;  %v7987_v10 = vpop.f32.mrf.mxu1  ;;  %v9888_v28 = vld [vmem:[#allocation67_spill] sm:$0xff] }
 0x294   : > { %v7175_v50 = vpack.c.bf16 %v5777_v63, %v5777_v63  ;;  %v4212_v36 = vpop.f32.mrf.mxu0 }
 0x295   : > { %v7173_v62 = vpack.c.bf16 %v5775_v48, %v5775_v48  ;;  %v5778_v60 = vmax.f32 %v5514_v55, %v5646_v24  ;;  %v5644_v3 = vmul.f32 0.2, %v5512_v58  ;;  %v5517_v2 = vadd.f32 %v7983_v45, %v4477_v34  ;;  %v5268_v16 = vpop.f32.mrf.mxu1 }
 0x296   : > { %6438 = vst.msk [vmem:[%s9201_s26 + $0x158] sm:$0xf] %vm6351_vm4, %v7175_v50  ;;  %v4475_v42 = vadd.f32 %v4212_v36, %v9881_v59  ;;  %v7850_v30 = vpop.f32.mrf.mxu0 }
 0x297   : > { %6436 = vst.msk [vmem:[%s9201_s26 + $0x150] sm:$0xf] %vm6351_vm4, %v7173_v62  ;;  %v7176_v5 = vpack.c.bf16 %v5778_v60, %v5778_v60  ;;  %v5776_v8 = vmax.f32 %v5512_v58, %v5644_v3  ;;  %v5649_v18 = vmul.f32 0.2, %v5517_v2  ;;  %v4478_v44 = vadd.f32 %v7850_v30, %v9882_v32  ;;  %v7988_v6 = vpop.f32.mrf.mxu1  ;;  %v9890_v32 = vld [vmem:[#allocation69_spill] sm:$0xff] }
 0x298   : > { %v5515_v15 = vadd.f32 %v5252_v39, %v4475_v42  ;;  %v4215_v33 = vpop.f32.mrf.mxu0 }
 0x299   : > { %6439 = vst.msk [vmem:[%s9201_s26 + $0x15c] sm:$0xf] %vm6351_vm4, %v7176_v5  ;;  %v7174_v27 = vpack.c.bf16 %v5776_v8, %v5776_v8  ;;  %v5781_v43 = vmax.f32 %v5517_v2, %v5649_v18  ;;  %v5518_v29 = vadd.f32 %v7984_v47, %v4478_v44  ;;  %v4476_v12 = vadd.f32 %v4215_v33, %v9883_v17  ;;  %v5271_v21 = vpop.f32.mrf.mxu1  ;;  %v9886_v47 = vld [vmem:[#allocation65_spill] sm:$0xff]  ;;  %v9889_v2 = vld [vmem:[#allocation68_spill] sm:$0xff] }
 0x29a   : > { %v5647_v51 = vmul.f32 0.2, %v5515_v15  ;;  %v7853_v56 = vpop.f32.mrf.mxu0 }
 0x29b   : > { %6437 = vst.msk [vmem:[%s9201_s26 + $0x154] sm:$0xf] %vm6351_vm4, %v7174_v27  ;;  %v7179_v52 = vpack.c.bf16 %v5781_v43, %v5781_v43  ;;  %v5650_v14 = vmul.f32 0.2, %v5518_v29  ;;  %v5516_v1 = vadd.f32 %v5255_v19, %v4476_v12  ;;  %v4481_v45 = vadd.f32 %v7853_v56, %v9884_v53  ;;  %v7991_v13 = vpop.f32.mrf.mxu1  ;;  %v9892_v53 = vld [vmem:[#allocation71_spill] sm:$0xff] }
 0x29c   : > { %v5779_v49 = vmax.f32 %v5515_v15, %v5647_v51  ;;  %v4228_v35 = vpop.f32.mrf.mxu0 }
 0x29d   : > { %6442 = vst.msk [vmem:[%s9201_s26 + $0x168] sm:$0xf] %vm6351_vm4, %v7179_v52  ;;  %v5782_v7 = vmax.f32 %v5518_v29, %v5650_v14  ;;  %v5648_v38 = vmul.f32 0.2, %v5516_v1  ;;  %v5521_v25 = vadd.f32 %v7987_v10, %v4481_v45  ;;  %v4479_v0 = vadd.f32 %v4228_v35, %v9885_v46  ;;  %v5284_v39 = vpop.f32.mrf.mxu1  ;;  %v9893_v46 = vld [vmem:[#allocation72_spill] sm:$0xff] }
 0x29e   : > { %v7177_v4 = vpack.c.bf16 %v5779_v49, %v5779_v49  ;;  %v7854_v31 = vpop.f32.mrf.mxu0 }
 0x29f   : > { %v7180_v40 = vpack.c.bf16 %v5782_v7, %v5782_v7  ;;  %v5780_v20 = vmax.f32 %v5516_v1, %v5648_v38  ;;  %v5653_v61 = vmul.f32 0.2, %v5521_v25  ;;  %v5519_v22 = vadd.f32 %v5268_v16, %v4479_v0  ;;  %v7992_v37 = vpop.f32.mrf.mxu1 }
 0x2a0   : > { %6440 = vst.msk [vmem:[%s9201_s26 + $0x160] sm:$0xf] %vm6351_vm4, %v7177_v4  ;;  %v4482_v9 = vadd.f32 %v7854_v31, %v9886_v47  ;;  %v4231_v41 = vpop.f32.mrf.mxu0 }
 0x2a1   : > { %6443 = vst.msk [vmem:[%s9201_s26 + $0x16c] sm:$0xf] %vm6351_vm4, %v7180_v40  ;;  %v7178_v23 = vpack.c.bf16 %v5780_v20, %v5780_v20  ;;  %v5785_v11 = vmax.f32 %v5521_v25, %v5653_v61  ;;  %v5651_v55 = vmul.f32 0.2, %v5519_v22  ;;  %v4480_v54 = vadd.f32 %v4231_v41, %v9887_v57  ;;  %v5287_v19 = vpop.f32.mrf.mxu1  ;;  %v9895_v57 = vld [vmem:[#allocation74_spill] sm:$0xff] }
 0x2a2   : > { %v5522_v63 = vadd.f32 %v7988_v6, %v4482_v9  ;;  %v7857_v26 = vpop.f32.mrf.mxu0 }
 0x2a3   : > { %6441 = vst.msk [vmem:[%s9201_s26 + $0x164] sm:$0xf] %vm6351_vm4, %v7178_v23  ;;  %v7183_v48 = vpack.c.bf16 %v5785_v11, %v5785_v11  ;;  %v5783_v24 = vmax.f32 %v5519_v22, %v5651_v55  ;;  %v5520_v58 = vadd.f32 %v5271_v21, %v4480_v54  ;;  %v4485_v34 = vadd.f32 %v7857_v26, %v9888_v28  ;;  %v7995_v10 = vpop.f32.mrf.mxu1  ;;  %v9891_v21 = vld [vmem:[#allocation70_spill] sm:$0xff]  ;;  %v9894_v22 = vld [vmem:[#allocation73_spill] sm:$0xff] }
 0x2a4   : > { %v5654_v50 = vmul.f32 0.2, %v5522_v63  ;;  %v4244_v36 = vpop.f32.mrf.mxu0 }
 0x2a5   : > { %6446 = vst.msk [vmem:[%s9201_s26 + $0x178] sm:$0xf] %vm6351_vm4, %v7183_v48  ;;  %v7181_v62 = vpack.c.bf16 %v5783_v24, %v5783_v24  ;;  %v5652_v60 = vmul.f32 0.2, %v5520_v58  ;;  %v5525_v3 = vadd.f32 %v7991_v13, %v4485_v34  ;;  %v4483_v16 = vadd.f32 %v4244_v36, %v9889_v2  ;;  %v5300_v59 = vpop.f32.mrf.mxu1  ;;  %v9897_v2 = vld [vmem:[#allocation76_spill] sm:$0xff] }
 0x2a6   : > { %v5786_v42 = vmax.f32 %v5522_v63, %v5654_v50  ;;  %v7858_v30 = vpop.f32.mrf.mxu0 }
 0x2a7   : > { %6444 = vst.msk [vmem:[%s9201_s26 + $0x170] sm:$0xf] %vm6351_vm4, %v7181_v62  ;;  %v5784_v5 = vmax.f32 %v5520_v58, %v5652_v60  ;;  %v5657_v8 = vmul.f32 0.2, %v5525_v3  ;;  %v5523_v18 = vadd.f32 %v5284_v39, %v4483_v16  ;;  %v4486_v44 = vadd.f32 %v7858_v30, %v9890_v32  ;;  %v7996_v6 = vpop.f32.mrf.mxu1  ;;  %v9898_v32 = vld [vmem:[#allocation77_spill] sm:$0xff] }
 0x2a8   : > { %v7184_v15 = vpack.c.bf16 %v5786_v42, %v5786_v42  ;;  %v4247_v33 = vpop.f32.mrf.mxu0 }
 0x2a9   : > { %v7182_v27 = vpack.c.bf16 %v5784_v5, %v5784_v5  ;;  %v5789_v43 = vmax.f32 %v5525_v3, %v5657_v8  ;;  %v5655_v29 = vmul.f32 0.2, %v5523_v18  ;;  %v5526_v17 = vadd.f32 %v7992_v37, %v4486_v44  ;;  %v5303_v12 = vpop.f32.mrf.mxu1 }
 0x2aa   : > { %6447 = vst.msk [vmem:[%s9201_s26 + $0x17c] sm:$0xf] %vm6351_vm4, %v7184_v15  ;;  %v4484_v51 = vadd.f32 %v4247_v33, %v9891_v21  ;;  %v7861_v56 = vpop.f32.mrf.mxu0 }
 0x2ab   : > { %6445 = vst.msk [vmem:[%s9201_s26 + $0x174] sm:$0xf] %vm6351_vm4, %v7182_v27  ;;  %v7187_v52 = vpack.c.bf16 %v5789_v43, %v5789_v43  ;;  %v5787_v14 = vmax.f32 %v5523_v18, %v5655_v29  ;;  %v5658_v1 = vmul.f32 0.2, %v5526_v17  ;;  %v4489_v45 = vadd.f32 %v7861_v56, %v9892_v53  ;;  %v7999_v13 = vpop.f32.mrf.mxu1  ;;  %v9900_v53 = vld [vmem:[#allocation79_spill] sm:$0xff] }
 0x2ac   : > { %v5524_v49 = vadd.f32 %v5287_v19, %v4484_v51  ;;  %v4260_v35 = vpop.f32.mrf.mxu0 }
 0x2ad   : > { %6450 = vst.msk [vmem:[%s9201_s26 + $0x188] sm:$0xf] %vm6351_vm4, %v7187_v52  ;;  %v7185_v7 = vpack.c.bf16 %v5787_v14, %v5787_v14  ;;  %v5790_v38 = vmax.f32 %v5526_v17, %v5658_v1  ;;  %v5529_v25 = vadd.f32 %v7995_v10, %v4489_v45  ;;  %v4487_v0 = vadd.f32 %v4260_v35, %v9893_v46  ;;  %v5316_v39 = vpop.f32.mrf.mxu1  ;;  %v9896_v10 = vld [vmem:[#allocation75_spill] sm:$0xff]  ;;  %v9899_v17 = vld [vmem:[#allocation78_spill] sm:$0xff] }
 0x2ae   : > { %v5656_v4 = vmul.f32 0.2, %v5524_v49  ;;  %v7862_v31 = vpop.f32.mrf.mxu0 }
 0x2af   : > { %6448 = vst.msk [vmem:[%s9201_s26 + $0x180] sm:$0xf] %vm6351_vm4, %v7185_v7  ;;  %v7188_v40 = vpack.c.bf16 %v5790_v38, %v5790_v38  ;;  %v5661_v20 = vmul.f32 0.2, %v5529_v25  ;;  %v5527_v61 = vadd.f32 %v5300_v59, %v4487_v0  ;;  %v4490_v37 = vadd.f32 %v7862_v31, %v9894_v22  ;;  %v8000_v47 = vpop.f32.mrf.mxu1  ;;  %v9902_v22 = vld [vmem:[#allocation81_spill] sm:$0xff] }
 0x2b0   : > { %v5788_v9 = vmax.f32 %v5524_v49, %v5656_v4  ;;  %v4263_v41 = vpop.f32.mrf.mxu0 }
 0x2b1   : > { %6451 = vst.msk [vmem:[%s9201_s26 + $0x18c] sm:$0xf] %vm6351_vm4, %v7188_v40  ;;  %v5793_v23 = vmax.f32 %v5529_v25, %v5661_v20  ;;  %v5659_v11 = vmul.f32 0.2, %v5527_v61  ;;  %v5530_v55 = vadd.f32 %v7996_v6, %v4490_v37  ;;  %v4488_v54 = vadd.f32 %v4263_v41, %v9895_v57  ;;  %v5319_v19 = vpop.f32.mrf.mxu1  ;;  %v9903_v57 = vld [vmem:[#allocation82_spill] sm:$0xff] }
 0x2b2   : > { %v7186_v63 = vpack.c.bf16 %v5788_v9, %v5788_v9  ;;  %v7865_v26 = vpop.f32.mrf.mxu0 }
 0x2b3   : > { %v7191_v48 = vpack.c.bf16 %v5793_v23, %v5793_v23  ;;  %v5791_v24 = vmax.f32 %v5527_v61, %v5659_v11  ;;  %v5662_v58 = vmul.f32 0.2, %v5530_v55  ;;  %v5528_v28 = vadd.f32 %v5303_v12, %v4488_v54  ;;  %v8003_v34 = vpop.f32.mrf.mxu1 }
 0x2b4   : > { %6449 = vst.msk [vmem:[%s9201_s26 + $0x184] sm:$0xf] %vm6351_vm4, %v7186_v63  ;;  %v4493_v50 = vadd.f32 %v7865_v26, %v9896_v10  ;;  %v4276_v36 = vpop.f32.mrf.mxu0 }
 0x2b5   : > { %6454 = vst.msk [vmem:[%s9201_s26 + $0x198] sm:$0xf] %vm6351_vm4, %v7191_v48  ;;  %v7189_v62 = vpack.c.bf16 %v5791_v24, %v5791_v24  ;;  %v5794_v60 = vmax.f32 %v5530_v55, %v5662_v58  ;;  %v5660_v3 = vmul.f32 0.2, %v5528_v28  ;;  %v4491_v16 = vadd.f32 %v4276_v36, %v9897_v2  ;;  %v5332_v59 = vpop.f32.mrf.mxu1  ;;  %v9905_v2 = vld [vmem:[#allocation84_spill] sm:$0xff] }
 0x2b6   : > { %v5533_v42 = vadd.f32 %v7999_v13, %v4493_v50  ;;  %v7866_v30 = vpop.f32.mrf.mxu0 }
 0x2b7   : > { %6452 = vst.msk [vmem:[%s9201_s26 + $0x190] sm:$0xf] %vm6351_vm4, %v7189_v62  ;;  %v7192_v5 = vpack.c.bf16 %v5794_v60, %v5794_v60  ;;  %v5792_v8 = vmax.f32 %v5528_v28, %v5660_v3  ;;  %v5531_v18 = vadd.f32 %v5316_v39, %v4491_v16  ;;  %v4494_v44 = vadd.f32 %v7866_v30, %v9898_v32  ;;  %v8004_v6 = vpop.f32.mrf.mxu1  ;;  %v9901_v39 = vld [vmem:[#allocation80_spill] sm:$0xff]  ;;  %v9904_v28 = vld [vmem:[#allocation83_spill] sm:$0xff] }
 0x2b8   : > { %v5665_v15 = vmul.f32 0.2, %v5533_v42  ;;  %v4279_v33 = vpop.f32.mrf.mxu0 }
 0x2b9   : > { %6455 = vst.msk [vmem:[%s9201_s26 + $0x19c] sm:$0xf] %vm6351_vm4, %v7192_v5  ;;  %v7190_v27 = vpack.c.bf16 %v5792_v8, %v5792_v8  ;;  %v5663_v43 = vmul.f32 0.2, %v5531_v18  ;;  %v5534_v29 = vadd.f32 %v8000_v47, %v4494_v44  ;;  %v4492_v12 = vadd.f32 %v4279_v33, %v9899_v17  ;;  %v5335_v21 = vpop.f32.mrf.mxu1  ;;  %v9907_v17 = vld [vmem:[#allocation86_spill] sm:$0xff] }
 0x2ba   : > { %v5797_v51 = vmax.f32 %v5533_v42, %v5665_v15  ;;  %v7869_v56 = vpop.f32.mrf.mxu0 }
 0x2bb   : > { %6453 = vst.msk [vmem:[%s9201_s26 + $0x194] sm:$0xf] %vm6351_vm4, %v7190_v27  ;;  %v5795_v52 = vmax.f32 %v5531_v18, %v5663_v43  ;;  %v5666_v14 = vmul.f32 0.2, %v5534_v29  ;;  %v5532_v1 = vadd.f32 %v5319_v19, %v4492_v12  ;;  %v4497_v45 = vadd.f32 %v7869_v56, %v9900_v53  ;;  %v8007_v13 = vpop.f32.mrf.mxu1  ;;  %v9908_v53 = vld [vmem:[#allocation87_spill] sm:$0xff] }
 0x2bc   : > { %v7195_v49 = vpack.c.bf16 %v5797_v51, %v5797_v51  ;;  %v4292_v35 = vpop.f32.mrf.mxu0 }
 0x2bd   : > { %v7193_v7 = vpack.c.bf16 %v5795_v52, %v5795_v52  ;;  %v5798_v38 = vmax.f32 %v5534_v29, %v5666_v14  ;;  %v5664_v25 = vmul.f32 0.2, %v5532_v1  ;;  %v5537_v46 = vadd.f32 %v8003_v34, %v4497_v45  ;;  %v5348_v0 = vpop.f32.mrf.mxu1 }
 0x2be   : > { %6458 = vst.msk [vmem:[%s9201_s26 + $0x1a8] sm:$0xf] %vm6351_vm4, %v7195_v49  ;;  %v4495_v4 = vadd.f32 %v4292_v35, %v9901_v39  ;;  %v7870_v31 = vpop.f32.mrf.mxu0 }
 0x2bf   : > { %6456 = vst.msk [vmem:[%s9201_s26 + $0x1a0] sm:$0xf] %vm6351_vm4, %v7193_v7  ;;  %v7196_v40 = vpack.c.bf16 %v5798_v38, %v5798_v38  ;;  %v5796_v20 = vmax.f32 %v5532_v1, %v5664_v25  ;;  %v5669_v61 = vmul.f32 0.2, %v5537_v46  ;;  %v4498_v37 = vadd.f32 %v7870_v31, %v9902_v22  ;;  %v8008_v47 = vpop.f32.mrf.mxu1  ;;  %v9910_v22 = vld [vmem:[#allocation89_spill] sm:$0xff] }
 0x2c0   : > { %v5535_v9 = vadd.f32 %v5332_v59, %v4495_v4  ;;  %v4295_v41 = vpop.f32.mrf.mxu0 }
 0x2c1   : > { %6459 = vst.msk [vmem:[%s9201_s26 + $0x1ac] sm:$0xf] %vm6351_vm4, %v7196_v40  ;;  %v7194_v23 = vpack.c.bf16 %v5796_v20, %v5796_v20  ;;  %v5801_v11 = vmax.f32 %v5537_v46, %v5669_v61  ;;  %v5538_v55 = vadd.f32 %v8004_v6, %v4498_v37  ;;  %v4496_v54 = vadd.f32 %v4295_v41, %v9903_v57  ;;  %v5351_v19 = vpop.f32.mrf.mxu1  ;;  %v9906_v6 = vld [vmem:[#allocation85_spill] sm:$0xff]  ;;  %v9909_v46 = vld [vmem:[#allocation88_spill] sm:$0xff] }
 0x2c2   : > { %v5667_v63 = vmul.f32 0.2, %v5535_v9  ;;  %v7873_v26 = vpop.f32.mrf.mxu0 }
 0x2c3   : > { %6457 = vst.msk [vmem:[%s9201_s26 + $0x1a4] sm:$0xf] %vm6351_vm4, %v7194_v23  ;;  %v7199_v48 = vpack.c.bf16 %v5801_v11, %v5801_v11  ;;  %v5670_v24 = vmul.f32 0.2, %v5538_v55  ;;  %v5536_v58 = vadd.f32 %v5335_v21, %v4496_v54  ;;  %v4501_v34 = vadd.f32 %v7873_v26, %v9904_v28  ;;  %v9912_v28 = vld [vmem:[#allocation91_spill] sm:$0xff] }
 0x2c4   : > { %v8011_v10 = vpop.f32.mrf.mxu1  ;;  %v5799_v50 = vmax.f32 %v5535_v9, %v5667_v63  ;;  %v4308_v36 = vpop.f32.mrf.mxu0 }
 0x2c5   : > { %6462 = vst.msk [vmem:[%s9201_s26 + $0x1b8] sm:$0xf] %vm6351_vm4, %v7199_v48  ;;  %v5802_v62 = vmax.f32 %v5538_v55, %v5670_v24  ;;  %v5668_v60 = vmul.f32 0.2, %v5536_v58  ;;  %v5541_v3 = vadd.f32 %v8007_v13, %v4501_v34  ;;  %v4499_v16 = vadd.f32 %v4308_v36, %v9905_v2  ;;  %v9913_v2 = vld [vmem:[#allocation92_spill] sm:$0xff] }
 0x2c6   : > { %v5364_v59 = vpop.f32.mrf.mxu1  ;;  %v7197_v42 = vpack.c.bf16 %v5799_v50, %v5799_v50  ;;  %v7874_v30 = vpop.f32.mrf.mxu0 }
 0x2c7   : > { %v7200_v5 = vpack.c.bf16 %v5802_v62, %v5802_v62  ;;  %v5800_v8 = vmax.f32 %v5536_v58, %v5668_v60  ;;  %v5673_v18 = vmul.f32 0.2, %v5541_v3  ;;  %v5539_v32 = vadd.f32 %v5348_v0, %v4499_v16 }
 0x2c8   : > { %v8012_v44 = vpop.f32.mrf.mxu1  ;;  %6460 = vst.msk [vmem:[%s9201_s26 + $0x1b0] sm:$0xf] %vm6351_vm4, %v7197_v42  ;;  %v4502_v15 = vadd.f32 %v7874_v30, %v9906_v6  ;;  %v4311_v33 = vpop.f32.mrf.mxu0 }
 0x2c9   : > { %6463 = vst.msk [vmem:[%s9201_s26 + $0x1bc] sm:$0xf] %vm6351_vm4, %v7200_v5  ;;  %v7198_v27 = vpack.c.bf16 %v5800_v8, %v5800_v8  ;;  %v5805_v43 = vmax.f32 %v5541_v3, %v5673_v18  ;;  %v5671_v29 = vmul.f32 0.2, %v5539_v32  ;;  %v4500_v12 = vadd.f32 %v4311_v33, %v9907_v17  ;;  %v9915_v17 = vld [vmem:[#allocation94_spill] sm:$0xff] }
 0x2ca   : > { %v5367_v21 = vpop.f32.mrf.mxu1  ;;  %v5542_v51 = vadd.f32 %v8008_v47, %v4502_v15  ;;  %v7877_v56 = vpop.f32.mrf.mxu0 }
 0x2cb   : > { %6461 = vst.msk [vmem:[%s9201_s26 + $0x1b4] sm:$0xf] %vm6351_vm4, %v7198_v27  ;;  %v7203_v52 = vpack.c.bf16 %v5805_v43, %v5805_v43  ;;  %v5803_v14 = vmax.f32 %v5539_v32, %v5671_v29  ;;  %v5540_v1 = vadd.f32 %v5351_v19, %v4500_v12  ;;  %v4505_v45 = vadd.f32 %v7877_v56, %v9908_v53  ;;  %v9911_v19 = vld [vmem:[#allocation90_spill] sm:$0xff]  ;;  %v9914_v32 = vld [vmem:[#allocation93_spill] sm:$0xff] }
 0x2cc   : > { %v8015_v13 = vpop.f32.mrf.mxu1  ;;  %v5674_v49 = vmul.f32 0.2, %v5542_v51  ;;  %v4324_v35 = vpop.f32.mrf.mxu0 }
 0x2cd   : > { %6466 = vst.msk [vmem:[%s9201_s26 + $0x1c8] sm:$0xf] %vm6351_vm4, %v7203_v52  ;;  %v7201_v7 = vpack.c.bf16 %v5803_v14, %v5803_v14  ;;  %v5672_v38 = vmul.f32 0.2, %v5540_v1  ;;  %v5545_v25 = vadd.f32 %v8011_v10, %v4505_v45  ;;  %v4503_v0 = vadd.f32 %v4324_v35, %v9909_v46  ;;  %v9916_v45 = vld [vmem:[#allocation95_spill] sm:$0xff] }
 0x2ce   : > { %v5380_v39 = vpop.f32.mrf.mxu1  ;;  %v5806_v4 = vmax.f32 %v5542_v51, %v5674_v49  ;;  %v7878_v31 = vpop.f32.mrf.mxu0 }
 0x2cf   : > { %6464 = vst.msk [vmem:[%s9201_s26 + $0x1c0] sm:$0xf] %vm6351_vm4, %v7201_v7  ;;  %v5804_v40 = vmax.f32 %v5540_v1, %v5672_v38  ;;  %v5677_v20 = vmul.f32 0.2, %v5545_v25  ;;  %v5543_v61 = vadd.f32 %v5364_v59, %v4503_v0  ;;  %v4506_v37 = vadd.f32 %v7878_v31, %v9910_v22 }
 0x2d0   : > { %v8016_v47 = vpop.f32.mrf.mxu1  ;;  %v7204_v9 = vpack.c.bf16 %v5806_v4, %v5806_v4  ;;  %v4327_v41 = vpop.f32.mrf.mxu0 }
 0x2d1   : > { %v7202_v23 = vpack.c.bf16 %v5804_v40, %v5804_v40  ;;  %v5809_v11 = vmax.f32 %v5545_v25, %v5677_v20  ;;  %v5675_v55 = vmul.f32 0.2, %v5543_v61  ;;  %v5546_v57 = vadd.f32 %v8012_v44, %v4506_v37  ;;  %v9917_v25 = vld [vmem:[#allocation96_spill] sm:$0xff] }
 0x2d2   : > { %v5383_v54 = vpop.f32.mrf.mxu1  ;;  %6467 = vst.msk [vmem:[%s9201_s26 + $0x1cc] sm:$0xf] %vm6351_vm4, %v7204_v9  ;;  %v4504_v63 = vadd.f32 %v4327_v41, %v9911_v19  ;;  %v7881_v26 = vpop.f32.mrf.mxu0 }
 0x2d3   : > { %6465 = vst.msk [vmem:[%s9201_s26 + $0x1c4] sm:$0xf] %vm6351_vm4, %v7202_v23  ;;  %v7207_v48 = vpack.c.bf16 %v5809_v11, %v5809_v11  ;;  %v5807_v24 = vmax.f32 %v5543_v61, %v5675_v55  ;;  %v5678_v58 = vmul.f32 0.2, %v5546_v57  ;;  %v4509_v34 = vadd.f32 %v7881_v26, %v9912_v28  ;;  %v9918_v61 = vld [vmem:[#allocation97_spill] sm:$0xff]  ;;  %v9919_v11 = vld [vmem:[#allocation98_spill] sm:$0xff] }
 0x2d4   : > { %v8019_v10 = vpop.f32.mrf.mxu1  ;;  %v5544_v50 = vadd.f32 %v5367_v21, %v4504_v63  ;;  %v4340_v36 = vpop.f32.mrf.mxu0 }
 0x2d5   : > { %6470 = vst.msk [vmem:[%s9201_s26 + $0x1d8] sm:$0xf] %vm6351_vm4, %v7207_v48  ;;  %v7205_v62 = vpack.c.bf16 %v5807_v24, %v5807_v24  ;;  %v5810_v60 = vmax.f32 %v5546_v57, %v5678_v58  ;;  %v5549_v3 = vadd.f32 %v8015_v13, %v4509_v34  ;;  %v4507_v16 = vadd.f32 %v4340_v36, %v9913_v2  ;;  %v9920_v24 = vld [vmem:[#allocation99_spill] sm:$0xff] }
 0x2d6   : > { %v5396_v59 = vpop.f32.mrf.mxu1  ;;  %v5676_v42 = vmul.f32 0.2, %v5544_v50  ;;  %v7882_v30 = vpop.f32.mrf.mxu0 }
 0x2d7   : > { %6468 = vst.msk [vmem:[%s9201_s26 + $0x1d0] sm:$0xf] %vm6351_vm4, %v7205_v62  ;;  %v7208_v5 = vpack.c.bf16 %v5810_v60, %v5810_v60  ;;  %v5681_v8 = vmul.f32 0.2, %v5549_v3  ;;  %v5547_v18 = vadd.f32 %v5380_v39, %v4507_v16  ;;  %v4510_v44 = vadd.f32 %v7882_v30, %v9914_v32 }
 0x2d8   : > { %v8020_v6 = vpop.f32.mrf.mxu1  ;;  %v5808_v15 = vmax.f32 %v5544_v50, %v5676_v42  ;;  %v4343_v33 = vpop.f32.mrf.mxu0 }
 0x2d9   : > { %6471 = vst.msk [vmem:[%s9201_s26 + $0x1dc] sm:$0xf] %vm6351_vm4, %v7208_v5  ;;  %v5813_v27 = vmax.f32 %v5549_v3, %v5681_v8  ;;  %v5679_v43 = vmul.f32 0.2, %v5547_v18  ;;  %v5550_v29 = vadd.f32 %v8016_v47, %v4510_v44  ;;  %v4508_v12 = vadd.f32 %v4343_v33, %v9915_v17  ;;  %v9921_v3 = vld [vmem:[#allocation100_spill] sm:$0xff]  ;;  %v9922_v5 = vld [vmem:[#allocation101_spill] sm:$0xff] }
 0x2da   : > { %v7206_v21 = vpack.c.bf16 %v5808_v15, %v5808_v15  ;;  %v7885_v51 = vpop.f32.mrf.mxu0  ;;  %v5399_v56 = vpop.f32.mrf.mxu1  ;;  %v9923_v33 = vld [vmem:[#allocation102_spill] sm:$0xff] }
 0x2db   : > { %v7211_v52 = vpack.c.bf16 %v5813_v27, %v5813_v27  ;;  %v5811_v14 = vmax.f32 %v5547_v18, %v5679_v43  ;;  %v5682_v1 = vmul.f32 0.2, %v5550_v29  ;;  %v5548_v53 = vadd.f32 %v5383_v54, %v4508_v12 }
 0x2dc   : > { %6469 = vst.msk [vmem:[%s9201_s26 + $0x1d4] sm:$0xf] %vm6351_vm4, %v7206_v21  ;;  %v4513_v13 = vadd.f32 %v7885_v51, %v9916_v45  ;;  %v4356_v49 = vpop.f32.mrf.mxu0  ;;  %v8023_v4 = vpop.f32.mrf.mxu1 }
 0x2dd   : > { %6474 = vst.msk [vmem:[%s9201_s26 + $0x1e8] sm:$0xf] %vm6351_vm4, %v7211_v52  ;;  %v7209_v35 = vpack.c.bf16 %v5811_v14, %v5811_v14  ;;  %v5814_v7 = vmax.f32 %v5550_v29, %v5682_v1  ;;  %v5680_v38 = vmul.f32 0.2, %v5548_v53  ;;  %v4511_v46 = vadd.f32 %v4356_v49, %v9917_v25 }
 0x2de   : > { %v5553_v0 = vadd.f32 %v8019_v10, %v4513_v13  ;;  %v7886_v39 = vpop.f32.mrf.mxu0  ;;  %v5412_v54 = vpop.f32.mrf.mxu1 }
 0x2df   : > { %6472 = vst.msk [vmem:[%s9201_s26 + $0x1e0] sm:$0xf] %vm6351_vm4, %v7209_v35  ;;  %v7212_v31 = vpack.c.bf16 %v5814_v7, %v5814_v7  ;;  %v5812_v40 = vmax.f32 %v5548_v53, %v5680_v38  ;;  %v5551_v20 = vadd.f32 %v5396_v59, %v4511_v46  ;;  %v4514_v22 = vadd.f32 %v7886_v39, %v9918_v61 }
 0x2e0   : > { %v5685_v37 = vmul.f32 0.2, %v5553_v0  ;;  %v4359_v47 = vpop.f32.mrf.mxu0  ;;  %v8024_v60 = vpop.f32.mrf.mxu1 }
 0x2e1   : > { %6475 = vst.msk [vmem:[%s9201_s26 + $0x1ec] sm:$0xf] %vm6351_vm4, %v7212_v31  ;;  %v7210_v9 = vpack.c.bf16 %v5812_v40, %v5812_v40  ;;  %v5683_v41 = vmul.f32 0.2, %v5551_v20  ;;  %v5554_v23 = vadd.f32 %v8020_v6, %v4514_v22  ;;  %v4512_v55 = vadd.f32 %v4359_v47, %v9919_v11 }
 0x2e2   : > { %v5817_v57 = vmax.f32 %v5553_v0, %v5685_v37  ;;  %v7889_v19 = vpop.f32.mrf.mxu0  ;;  %v5415_v29 = vpop.f32.mrf.mxu1 }
 0x2e3   : > { %6473 = vst.msk [vmem:[%s9201_s26 + $0x1e4] sm:$0xf] %vm6351_vm4, %v7210_v9  ;;  %v5815_v63 = vmax.f32 %v5551_v20, %v5683_v41  ;;  %v5686_v26 = vmul.f32 0.2, %v5554_v23  ;;  %v5552_v48 = vadd.f32 %v5399_v56, %v4512_v55  ;;  %v4517_v58 = vadd.f32 %v7889_v19, %v9920_v24 }
 0x2e4   : > { %v7215_v28 = vpack.c.bf16 %v5817_v57, %v5817_v57  ;;  %v4372_v34 = vpop.f32.mrf.mxu0 }
 0x2e5   : > { %v7213_v10 = vpack.c.bf16 %v5815_v63, %v5815_v63  ;;  %v5818_v50 = vmax.f32 %v5554_v23, %v5686_v26  ;;  %v5684_v36 = vmul.f32 0.2, %v5552_v48  ;;  %v5557_v62 = vadd.f32 %v8023_v4, %v4517_v58 }
 0x2e6   : > { %6478 = vst.msk [vmem:[%s9201_s26 + $0x1f8] sm:$0xf] %vm6351_vm4, %v7215_v28  ;;  %v4515_v2 = vadd.f32 %v4372_v34, %v9921_v3  ;;  %v7890_v16 = vpop.f32.mrf.mxu0 }
 0x2e7   : > { %6476 = vst.msk [vmem:[%s9201_s26 + $0x1f0] sm:$0xf] %vm6351_vm4, %v7213_v10  ;;  %v7216_v59 = vpack.c.bf16 %v5818_v50, %v5818_v50  ;;  %v5816_v42 = vmax.f32 %v5552_v48, %v5684_v36  ;;  %v5689_v30 = vmul.f32 0.2, %v5557_v62  ;;  %v4518_v8 = vadd.f32 %v7890_v16, %v9922_v5 }
 0x2e8   : > { %v5555_v18 = vadd.f32 %v5412_v54, %v4515_v2  ;;  %v4375_v32 = vpop.f32.mrf.mxu0 }
 0x2e9   : > { %6479 = vst.msk [vmem:[%s9201_s26 + $0x1fc] sm:$0xf] %vm6351_vm4, %v7216_v59  ;;  %v7214_v44 = vpack.c.bf16 %v5816_v42, %v5816_v42  ;;  %v5821_v6 = vmax.f32 %v5557_v62, %v5689_v30  ;;  %v5558_v15 = vadd.f32 %v8024_v60, %v4518_v8  ;;  %v4516_v27 = vadd.f32 %v4375_v32, %v9923_v33 }
 0x2ea   : > { %v5687_v43 = vmul.f32 0.2, %v5555_v18 }
 0x2eb   : > { %6477 = vst.msk [vmem:[%s9201_s26 + $0x1f4] sm:$0xf] %vm6351_vm4, %v7214_v44  ;;  %v7219_v17 = vpack.c.bf16 %v5821_v6, %v5821_v6  ;;  %v5690_v12 = vmul.f32 0.2, %v5558_v15  ;;  %v5556_v21 = vadd.f32 %v5415_v29, %v4516_v27 }
 0x2ec   : > { %v5819_v51 = vmax.f32 %v5555_v18, %v5687_v43 }
 0x2ed   : > { %6482 = vst.msk [vmem:[%s9201_s26 + $0x208] sm:$0xf] %vm6351_vm4, %v7219_v17  ;;  %v5822_v56 = vmax.f32 %v5558_v15, %v5690_v12  ;;  %v5688_v52 = vmul.f32 0.2, %v5556_v21 }
 0x2ee   : > { %v7217_v14 = vpack.c.bf16 %v5819_v51, %v5819_v51 }
 0x2ef   : > { %v7220_v1 = vpack.c.bf16 %v5822_v56, %v5822_v56  ;;  %v5820_v53 = vmax.f32 %v5556_v21, %v5688_v52 }
 0x2f0   : > { %6480 = vst.msk [vmem:[%s9201_s26 + $0x200] sm:$0xf] %vm6351_vm4, %v7217_v14 }
 0x2f1   : > { %6483 = vst.msk [vmem:[%s9201_s26 + $0x20c] sm:$0xf] %vm6351_vm4, %v7220_v1  ;;  %v7218_v45 = vpack.c.bf16 %v5820_v53, %v5820_v53 }
 0x2f3   : > { %6481 = vst.msk [vmem:[%s9201_s26 + $0x204] sm:$0xf] %vm6351_vm4, %v7218_v45 }
 0x2f4 PF: > { %s12_s9 = sadd.s32 1, %s8184_s9  }
 0x2f5   : > { %p9_p4 = scmp.ge.s32.totalorder %s12_s9, 4  }
 0x2f7   :  { %11 = sbr.rel (!%p9_p4) target bundleno = 1 (0x1), region = 61 }

// kernel: cnn_forward.6
= control target key start
LH: loop header
LB: loop body
LE: loop exit
PB: predicated region body
PF: predicated region fallthrough
CT: control target
= control target key end

     0   :  { %s3118_s15 = smov 0   ;;  %s3812_s0 = inlined_call_operand.vmem [shape: bf16[2,290,32], index: 0, kind: input, shape index: {}]   ;;  %s3813_s1 = inlined_call_operand.vmem [shape: bf16[4,32,16], index: 1, kind: input, shape index: {}]   ;;  %s3814_s2 = inlined_call_operand.vmem [shape: f32[272,1], index: 2, kind: input, shape index: {}]   ;;  %s3815_s3 = inlined_call_operand.vmem [shape: bf16[2,272,16], index: 3, kind: output, shape index: {0}]   ;;  %s3816_s4 = inlined_call_operand.vmem [shape: f32[2,2,16], index: 4, kind: output, shape index: {1}]  }
   0x1 LB: > { %s2455_s16 = sadd.s32 4294967295, %s3088_s15   ;;  %p2459_p0 = scmp.ge.s32.totalorder %s3088_s15, 1  ;;  %s3088_s15 = sphi %s3118_s15, %s15_s15  }
   0x2   : > { %p165_p1 = scmp.lt.s32.totalorder %s3088_s15, 3 }
   0x4   : > { %p166_p2 = pnand %p2459_p0, %p165_p1 }
   0x5   : > { %p195_p3 = scmp.lt.s32.totalorder (!%p166_p2), %s2455_s16, 1 }
   0x6   : > { %169 = sbr.rel (%p166_p2) target bundleno = 508 (0x1fc), region = 32 }
   0xb   : > { %v3037_v0 = vld [vmem:[%s3813_s1 + $0x8] sm:$0xff]   ;;  %v3090_v1 = vmov 0.0   ;;  %v3038_v2 = vld [vmem:[%s3813_s1 + $0x18] sm:$0xff]   ;;  %v3039_v3 = vld [vmem:[%s3813_s1] sm:$0xff]   ;;  %vm3091_vm0 = vmmov 0   ;;  %s3818_s16 = smov (!%p195_p3, %s2455_s16), 1 }
   0xc   : > { %2806 = vmatprep.subr.bf16.mxu1 %v3090_v1  ;;  %2734 = vmatprep.subr.bf16.mxu0 %v3090_v1  ;;  %v3040_v4 = vld [vmem:[%s3813_s1 + $0x10] sm:$0xff]   ;;  %s3022_s25 = smul.u32 148, %s3818_s16  ;;  %vm495_vm1 = vcmask 261120   ;;  %v3044_v5 = vld [vmem:[%s3813_s1 + $0x38] sm:$0xff]   ;;  %vm342_vm2 = vsmask.f32 7424 }
   0xd   : > { %2807 = vmatpush3.bf16.msra.mxu1 %v3037_v0  ;;  %2810 = vmatprep.mubr.msk.bf16.mxu1 %vm3091_vm0, %v3090_v1  ;;  %v3054_v12 = vld [vmem:[%s3813_s1 + $0x30] sm:$0xff]   ;;  %v3043_v15 = vld [vmem:[%s3813_s1 + $0x28] sm:$0xff]   ;;  %v3053_v23 = vld [vmem:[%s3813_s1 + $0x20] sm:$0xff]   ;;  %vm1474_vm3 = vcmask 1046528   ;;  %vm1912_vm4 = vcmask 125952   ;;  %vm2185_vm5 = vcmask 130048  }
   0xe   : > { %2735 = vmatpush3.bf16.msra.mxu0 %v3038_v2  ;;  %2808 = vmatprep.subr.bf16.mxu1 %v3090_v1  ;;  %s3153_s28 = scalar_lea.vmem %s3812_s0, %s3022_s25  ;;  %s2462_s13 = sshll.u32 %s3818_s16, 1  ;;  %vm2259_vm6 = vcmask 122880  }
   0xf   : > { %2736 = vmatprep.subr.bf16.mxu0 %v3090_v1  ;;  %2738 = vmatprep.mubr.msk.bf16.mxu0 %vm3091_vm0, %v3090_v1  ;;  %v3041_v6 = vld [vmem:[%s3153_s28] sm:$0xff]   ;;  %v3042_v7 = vld [vmem:[%s3153_s28 + $0x8] sm:$0xff]   ;;  %v3045_v11 = vld [vmem:[%s3153_s28 + $0x10] sm:$0xff]   ;;  %s208_s18 = scalar_lea.vmem %s3816_s4, %s2462_s13 }
  0x10   : > { %v344_v8 = vshrl.u32 %v3041_v6, 16  ;;  %v346_v9 = vshll.u32 %v3041_v6, 16  ;;  %v351_v10 = vshll.u32 %v3042_v7, 16  ;;  %v355_v17 = vshrl.u32 %v3042_v7, 16  ;;  %v3046_v22 = vld [vmem:[%s3153_s28 + $0x18] sm:$0xff]   ;;  %v3047_v29 = vld [vmem:[%s3153_s28 + $0x20] sm:$0xff]  }
  0x11   : > { %2809 = vmatpush3.bf16.msra.mxu1 %v3039_v3  ;;  %v359_v18 = vshll.u32 %v3045_v11, 16  ;;  %v363_v25 = vshrl.u32 %v3045_v11, 16  ;;  %v367_v26 = vshll.u32 %v3046_v22, 16  ;;  %v371_v31 = vshrl.u32 %v3046_v22, 16  ;;  %v3048_v35 = vld [vmem:[%s3153_s28 + $0x28] sm:$0xff]   ;;  %v3049_v39 = vld [vmem:[%s3153_s28 + $0x30] sm:$0xff]  }
  0x12   : > { %2737 = vmatpush3.bf16.msra.mxu0 %v3040_v4  ;;  %2950 = vmatprep.subr.bf16.mxu1 %v3090_v1  ;;  %v348_v13 = vrot.slane %v346_v9, 1  ;;  %v353_v14 = vrot.slane %v351_v10, 1  ;;  %v375_v32 = vshll.u32 %v3047_v29, 16  ;;  %v379_v37 = vshrl.u32 %v3047_v29, 16  ;;  %v3050_v47 = vld [vmem:[%s3153_s28 + $0x38] sm:$0xff]   ;;  %v3051_v53 = vld [vmem:[%s3153_s28 + $0x40] sm:$0xff]  }
  0x13   : > { %2878 = vmatprep.subr.bf16.mxu0 %v3090_v1  ;;  %v361_v21 = vrot.slane %v359_v18, 1  ;;  %v369_v28 = vrot.slane %v367_v26, 1  ;;  %v383_v38 = vshll.u32 %v3048_v35, 16  ;;  %v387_v42 = vshrl.u32 %v3048_v35, 16  ;;  %v3052_v59 = vld [vmem:[%s3153_s28 + $0x48] sm:$0xff]   ;;  %v3055_v2 = vld [vmem:[%s3153_s28 + $0x50] sm:$0xff]  }
  0x14   : > { %2811 = vmatmul.mubr.msk.bf16.vlgmr.msra.gmra.mxu1 %vm495_vm1, %v3041_v6  ;;  %v349_v16 = vor.u32 %v348_v13, %v344_v8  ;;  %v357_v20 = vor.u32 %v355_v17, %v353_v14  ;;  %v377_v34 = vrot.slane %v375_v32, 1  ;;  %v391_v43 = vshll.u32 %v3049_v39, 16  ;;  %v3056_v8 = vld [vmem:[%s3153_s28 + $0x58] sm:$0xff]   ;;  %v3059_v32 = vld [vmem:[%s3153_s28 + $0x70] sm:$0xff]  }
  0x15   : > { %2951 = vmatpush3.bf16.msra.mxu1 %v3044_v5  ;;  %2814 = vmatprep.mubr.msk.bf16.mxu1 %vm3091_vm0, %v3090_v1  ;;  %v365_v27 = vor.u32 %v363_v25, %v361_v21  ;;  %v373_v33 = vor.u32 %v371_v31, %v369_v28  ;;  %v385_v41 = vrot.slane %v383_v38, 1  ;;  %v395_v49 = vshrl.u32 %v3049_v39, 16  ;;  %v1954_v38 = vld [vmem:[%s3814_s2 + $0x38] sm:$0xff] }
  0x16   : > { %2952 = vmatprep.subr.bf16.mxu1 %v3090_v1  ;;  %v354_v19 = vsel %vm342_vm2, %v349_v16, %v353_v14  ;;  %v362_v24 = vsel %vm342_vm2, %v357_v20, %v361_v21  ;;  %v381_v40 = vor.u32 %v379_v37, %v377_v34  ;;  %v393_v46 = vrot.slane %v391_v43, 1  ;;  %v3057_v14 = vld [vmem:[%s3153_s28 + $0x60] sm:$0xff]   ;;  %v1956_v43 = vld [vmem:[%s3814_s2 + $0x48] sm:$0xff] }
  0x17   : > { %2739 = vmatmul.mubr.msk.bf16.vlgmr.msra.gmra.mxu0 %vm495_vm1, %v354_v19  ;;  %v370_v30 = vsel %vm342_vm2, %v365_v27, %v369_v28  ;;  %v378_v36 = vsel %vm342_vm2, %v373_v33, %v377_v34  ;;  %v389_v45 = vor.u32 %v387_v42, %v385_v41  ;;  %v399_v50 = vshll.u32 %v3050_v47, 16  ;;  %v1947_v19 = vld [vmem:[%s3814_s2] sm:$0xff]  ;;  %v1950_v28 = vld [vmem:[%s3814_s2 + $0x18] sm:$0xff]  ;;  %v1952_v33 = vld [vmem:[%s3814_s2 + $0x28] sm:$0xff] }
  0x18   : > { %2879 = vmatpush3.bf16.msra.mxu0 %v3043_v15  ;;  %2742 = vmatprep.mubr.msk.bf16.mxu0 %vm3091_vm0, %v3090_v1  ;;  %v386_v44 = vsel %vm342_vm2, %v381_v40, %v385_v41  ;;  %v397_v51 = vor.u32 %v395_v49, %v393_v46  ;;  %v403_v55 = vshrl.u32 %v3050_v47, 16  ;;  %v407_v56 = vshll.u32 %v3051_v53, 16  ;;  %v1953_v34 = vld [vmem:[%s3814_s2 + $0x30] sm:$0xff]  ;;  %v3060_v42 = vld [vmem:[%s3153_s28 + $0x78] sm:$0xff]   ;;  %v1959_v49 = vld [vmem:[%s3814_s2 + $0x60] sm:$0xff] }
  0x19   : > { %2953 = vmatpush3.bf16.msra.mxu1 %v3054_v12  ;;  %2880 = vmatprep.subr.bf16.mxu0 %v3090_v1  ;;  %v394_v48 = vsel %vm342_vm2, %v389_v45, %v393_v46  ;;  %v401_v52 = vrot.slane %v399_v50, 1  ;;  %v411_v61 = vshrl.u32 %v3051_v53, 16  ;;  %v415_v62 = vshll.u32 %v3052_v59, 16 }
  0x1a   : > { %v409_v58 = vrot.slane %v407_v56, 1  ;;  %v419_v4 = vshrl.u32 %v3052_v59, 16  ;;  %v423_v5 = vshll.u32 %v3055_v2, 16  ;;  %v427_v10 = vshrl.u32 %v3055_v2, 16 }
  0x1b   : > { %v402_v54 = vsel %vm342_vm2, %v397_v51, %v401_v52  ;;  %v405_v57 = vor.u32 %v403_v55, %v401_v52  ;;  %v417_v0 = vrot.slane %v415_v62, 1  ;;  %v435_v16 = vshrl.u32 %v3056_v8, 16  ;;  %v3061_v52 = vld [vmem:[%s3153_s28 + $0x80] sm:$0xff]   ;;  %v3062_v62 = vld [vmem:[%s3153_s28 + $0x88] ss:$0 sps:$4 sm:$0x11]  }
  0x1c   : > { %2815 = vmatmul.mubr.msk.bf16.gmra.mxu1 %vm495_vm1, %v3042_v7  ;;  %2881 = vmatpush3.bf16.msra.mxu0 %v3053_v23  ;;  %v413_v63 = vor.u32 %v411_v61, %v409_v58  ;;  %v425_v7 = vrot.slane %v423_v5, 1  ;;  %v439_v17 = vshll.u32 %v3057_v14, 16  ;;  %v3092_v18 = vmov 0   ;;  %v1949_v23 = vld [vmem:[%s3814_s2 + $0x10] sm:$0xff] }
  0x1d   : > { %2818 = vmatprep.mubr.msk.bf16.mxu1 %vm3091_vm0, %v3090_v1  ;;  %v410_v60 = vsel %vm342_vm2, %v405_v57, %v409_v58  ;;  %v421_v6 = vor.u32 %v419_v4, %v417_v0  ;;  %3035 = vset.pattern.permute.xlu0 %v3092_v18  ;;  %v443_v26 = vshrl.u32 %v3057_v14, 16  ;;  %v455_v37 = vshll.u32 %v3059_v32, 16  ;;  %v1962_v58 = vld [vmem:[%s3814_s2 + $0x78] sm:$0xff]  ;;  %v1965_v4 = vld [vmem:[%s3814_s2 + $0x90] sm:$0xff] }
  0x1e   : > { %v418_v3 = vsel %vm342_vm2, %v413_v63, %v417_v0  ;;  %v429_v12 = vor.u32 %v427_v10, %v425_v7  ;;  %3036 = vset.pattern.permute.xlu1 %v3092_v18  ;;  %v441_v21 = vrot.slane %v439_v17, 1  ;;  %1983 = vperm.xlu0 %3035, %v1947_v19   ;;  %v459_v46 = vshrl.u32 %v3059_v32, 16  ;;  %v931_v63 = vld [vmem:[%s3153_s28 + $0x8] sm:$0xf]  ;;  %v932_v0 = vld [vmem:[%s3153_s28 + $0xc] sm:$0xf] }
  0x1f   : > { %2743 = vmatmul.mubr.msk.bf16.gmra.mxu0 %vm495_vm1, %v362_v24  ;;  %v426_v9 = vsel %vm342_vm2, %v421_v6, %v425_v7  ;;  %v1948_v24 = vld [vmem:[%s3814_s2 + $0x8] sm:$0xff]  ;;  %1993 = vperm.xlu1 %3036, %v1949_v23   ;;  %v457_v41 = vrot.slane %v455_v37, 1  ;;  %v467_v56 = vshrl.u32 %v3060_v42, 16  ;;  %v471_v57 = vshll.u32 %v3061_v52, 16  ;;  %v1969_v19 = vld [vmem:[%s3814_s2 + $0xb0] sm:$0xff]  ;;  %v3067_v37 = vld [vmem:[%s3153_s28 + $0x20] sm:$0xff]  }
  0x20   : > { %2746 = vmatprep.mubr.msk.bf16.mxu0 %vm3091_vm0, %v3090_v1  ;;  %v475_v6 = vshrl.u32 %v3061_v52, 16  ;;  %v479_v7 = vshll.u32 %v3062_v62, 16  ;;  %v1968_v18 = vld [vmem:[%s3814_s2 + $0xa8] sm:$0xff] }
  0x21   : > { %v461_v50 = vor.u32 %v459_v46, %v457_v41  ;;  %v473_v61 = vrot.slane %v471_v57, 1  ;;  %v1087_v57 = vshrl.u32 %v3067_v37, 16 }
  0x22   : > { %1988 = vperm.xlu0 %3035, %v1948_v24  }
  0x23   : > { %1998 = vperm.xlu1 %3036, %v1950_v28  }
  0x24   : > { %2819 = vmatmul.mubr.msk.bf16.gmra.mxu1 %vm495_vm1, %v3045_v11  ;;  %v431_v11 = vshll.u32 %v3056_v8, 16 }
  0x25   : > { %2822 = vmatprep.mubr.msk.bf16.mxu1 %vm3091_vm0, %v3090_v1 }
  0x26   : > { %v433_v13 = vrot.slane %v431_v11, 1  ;;  %v1966_v11 = vld [vmem:[%s3814_s2 + $0x98] sm:$0xff] }
  0x27   : > { %2747 = vmatmul.mubr.msk.bf16.gmra.mxu0 %vm495_vm1, %v370_v30  ;;  %v445_v30 = vor.u32 %v443_v26, %v441_v21  ;;  %2008 = vperm.xlu1 %3036, %v1952_v33   ;;  %v1970_v26 = vld [vmem:[%s3814_s2 + $0xb8] sm:$0xff] }
  0x28   : > { %2750 = vmatprep.mubr.msk.bf16.mxu0 %vm3091_vm0, %v3090_v1  ;;  %v434_v15 = vsel %vm342_vm2, %v429_v12, %v433_v13  ;;  %v437_v20 = vor.u32 %v435_v16, %v433_v13  ;;  %v1967_v12 = vld [vmem:[%s3814_s2 + $0xa0] sm:$0xff]  ;;  %v477_v13 = vor.u32 %v475_v6, %v473_v61 }
  0x2a   : > { %v442_v25 = vsel %vm342_vm2, %v437_v20, %v441_v21 }
  0x2b   : > { %2018 = vperm.xlu1 %3036, %v1954_v38   ;;  %v1974_v38 = vld [vmem:[%s3814_s2 + $0xd8] sm:$0xff] }
  0x2c   : > { %2823 = vmatmul.mubr.msk.bf16.gmra.mxu1 %vm495_vm1, %v3046_v22  ;;  %v3058_v22 = vld [vmem:[%s3153_s28 + $0x68] sm:$0xff]  }
  0x2d   : > { %2826 = vmatprep.mubr.msk.bf16.mxu1 %vm3091_vm0, %v3090_v1  ;;  %v447_v27 = vshll.u32 %v3058_v22, 16 }
  0x2f   : > { %2751 = vmatmul.mubr.msk.bf16.gmra.mxu0 %vm495_vm1, %v378_v36  ;;  %v449_v31 = vrot.slane %v447_v27, 1  ;;  %v451_v36 = vshrl.u32 %v3058_v22, 16  ;;  %2028 = vperm.xlu1 %3036, %v1956_v43   ;;  %v1971_v27 = vld [vmem:[%s3814_s2 + $0xc0] sm:$0xff]  ;;  %v1976_v43 = vld [vmem:[%s3814_s2 + $0xe8] sm:$0xff] }
  0x30   : > { %2754 = vmatprep.mubr.msk.bf16.mxu0 %vm3091_vm0, %v3090_v1 }
  0x31   : > { %v453_v40 = vor.u32 %v451_v36, %v449_v31 }
  0x33   : > { %v458_v45 = vsel %vm342_vm2, %v453_v40, %v457_v41 }
  0x34   : > { %2827 = vmatmul.mubr.msk.bf16.gmra.mxu1 %vm495_vm1, %v3047_v29  ;;  %v1951_v29 = vld [vmem:[%s3814_s2 + $0x20] sm:$0xff] }
  0x35   : > { %2830 = vmatprep.mubr.msk.bf16.mxu1 %vm3091_vm0, %v3090_v1  ;;  %2003 = vperm.xlu0 %3035, %v1951_v29  }
  0x37   : > { %2755 = vmatmul.mubr.msk.bf16.gmra.mxu0 %vm495_vm1, %v386_v44  ;;  %v1957_v44 = vld [vmem:[%s3814_s2 + $0x50] sm:$0xff] }
  0x38   : > { %2758 = vmatprep.mubr.msk.bf16.mxu0 %vm3091_vm0, %v3090_v1 }
  0x39   : > { %2013 = vperm.xlu0 %3035, %v1953_v34  }
  0x3c   : > { %2831 = vmatmul.mubr.msk.bf16.gmra.mxu1 %vm495_vm1, %v3048_v35  ;;  %v450_v35 = vsel %vm342_vm2, %v445_v30, %v449_v31  ;;  %v1972_v31 = vld [vmem:[%s3814_s2 + $0xc8] sm:$0xff] }
  0x3d   : > { %2834 = vmatprep.mubr.msk.bf16.mxu1 %vm3091_vm0, %v3090_v1 }
  0x3f   : > { %2759 = vmatmul.mubr.msk.bf16.gmra.mxu0 %vm495_vm1, %v394_v48  ;;  %v1958_v48 = vld [vmem:[%s3814_s2 + $0x58] sm:$0xff] }
  0x40   : > { %2762 = vmatprep.mubr.msk.bf16.mxu0 %vm3091_vm0, %v3090_v1  ;;  %2038 = vperm.xlu1 %3036, %v1958_v48  }
  0x44   : > { %2835 = vmatmul.mubr.msk.bf16.gmra.mxu1 %vm495_vm1, %v3049_v39  ;;  %v1955_v39 = vld [vmem:[%s3814_s2 + $0x40] sm:$0xff] }
  0x45   : > { %2838 = vmatprep.mubr.msk.bf16.mxu1 %vm3091_vm0, %v3090_v1  ;;  %2023 = vperm.xlu0 %3035, %v1955_v39   ;;  %v1975_v39 = vld [vmem:[%s3814_s2 + $0xe0] sm:$0xff] }
  0x47   : > { %2763 = vmatmul.mubr.msk.bf16.gmra.mxu0 %vm495_vm1, %v402_v54  ;;  %v1961_v54 = vld [vmem:[%s3814_s2 + $0x70] sm:$0xff] }
  0x48   : > { %2766 = vmatprep.mubr.msk.bf16.mxu0 %vm3091_vm0, %v3090_v1 }
  0x49   : > { %2033 = vperm.xlu0 %3035, %v1957_v44   ;;  %v1977_v44 = vld [vmem:[%s3814_s2 + $0xf0] sm:$0xff] }
  0x4c   : > { %2839 = vmatmul.mubr.msk.bf16.gmra.mxu1 %vm495_vm1, %v3050_v47  ;;  %v463_v47 = vshll.u32 %v3060_v42, 16 }
  0x4d   : > { %2842 = vmatprep.mubr.msk.bf16.mxu1 %vm3091_vm0, %v3090_v1  ;;  %2043 = vperm.xlu0 %3035, %v1959_v49   ;;  %v3068_v49 = vld [vmem:[%s3153_s28 + $0x28] sm:$0xff]  }
  0x4e   : > { %v465_v51 = vrot.slane %v463_v47, 1  ;;  %v1083_v47 = vshll.u32 %v3067_v37, 16 }
  0x4f   : > { %2767 = vmatmul.mubr.msk.bf16.gmra.mxu0 %vm495_vm1, %v410_v60 }
  0x50   : > { %2770 = vmatprep.mubr.msk.bf16.mxu0 %vm3091_vm0, %v3090_v1  ;;  %v466_v55 = vsel %vm342_vm2, %v461_v50, %v465_v51  ;;  %v469_v60 = vor.u32 %v467_v56, %v465_v51  ;;  %v1978_v50 = vld [vmem:[%s3814_s2 + $0xf8] sm:$0xff]  ;;  %v1979_v51 = vld [vmem:[%s3814_s2 + $0x100] sm:$0xff] }
  0x51   : > { %2053 = vperm.xlu0 %3035, %v1961_v54   ;;  %v1482_v54 = vrot.slane %v3068_v49, 1 }
  0x52   : > { %v474_v5 = vsel %vm342_vm2, %v469_v60, %v473_v61  ;;  %v3069_v60 = vld [vmem:[%s3153_s28 + $0x30] sm:$0xff]  }
  0x54   : > { %2843 = vmatmul.mubr.msk.bf16.gmra.mxu1 %vm495_vm1, %v3051_v53  ;;  %v1960_v53 = vld [vmem:[%s3814_s2 + $0x68] sm:$0xff] }
  0x55   : > { %2846 = vmatprep.mubr.msk.bf16.mxu1 %vm3091_vm0, %v3090_v1  ;;  %2048 = vperm.xlu1 %3036, %v1960_v53   ;;  %v1085_v53 = vrot.slane %v1083_v47, 1 }
  0x57   : > { %2771 = vmatmul.mubr.msk.bf16.gmra.mxu0 %vm495_vm1, %v418_v3  ;;  %v1964_v3 = vld [vmem:[%s3814_s2 + $0x88] sm:$0xff]  ;;  %v1089_v61 = vor.u32 %v1087_v57, %v1085_v53 }
  0x58   : > { %2774 = vmatprep.mubr.msk.bf16.mxu0 %vm3091_vm0, %v3090_v1 }
  0x59   : > { %2058 = vperm.xlu1 %3036, %v1962_v58   ;;  %v1091_v58 = vshll.u32 %v3068_v49, 16 }
  0x5b   : > { %v1093_v62 = vrot.slane %v1091_v58, 1  ;;  %v3075_v58 = vld [vmem:[%s3153_s28 + $0x60] sm:$0xff]  }
  0x5c   : > { %2847 = vmatmul.mubr.msk.bf16.gmra.mxu1 %vm495_vm1, %v3052_v59  ;;  %v1963_v59 = vld [vmem:[%s3814_s2 + $0x80] sm:$0xff] }
  0x5d   : > { %2850 = vmatprep.mubr.msk.bf16.mxu1 %vm3091_vm0, %v3090_v1  ;;  %2063 = vperm.xlu0 %3035, %v1963_v59  }
  0x5e   : > { %2068 = vperm.xlu1 %3036, %v1964_v3   ;;  %v1099_v3 = vshll.u32 %v3069_v60, 16 }
  0x5f   : > { %2775 = vmatmul.mubr.msk.bf16.gmra.mxu0 %vm495_vm1, %v426_v9  ;;  %v3064_v9 = vld [vmem:[%s3153_s28 + $0x10] sm:$0xff]  }
  0x60   : > { %2778 = vmatprep.mubr.msk.bf16.mxu0 %vm3091_vm0, %v3090_v1  ;;  %v1476_v17 = vrot.slane %v3064_v9, 1  ;;  %v1067_v23 = vshll.u32 %v3064_v9, 16  ;;  %v1071_v34 = vshrl.u32 %v3064_v9, 16 }
  0x61   : > { %2073 = vperm.xlu0 %3035, %v1965_v4  }
  0x62   : > { %2078 = vperm.xlu1 %3036, %v1966_v11   ;;  %v1069_v29 = vrot.slane %v1067_v23, 1 }
  0x64   : > { %2851 = vmatmul.mubr.msk.bf16.gmra.mxu1 %vm495_vm1, %v3055_v2  ;;  %v1465_v2 = vld [vmem:[%s3153_s28 + $0x8] sm:$0xe]  ;;  %v1073_v40 = vor.u32 %v1071_v34, %v1069_v29 }
  0x65   : > { %2854 = vmatprep.mubr.msk.bf16.mxu1 %vm3091_vm0, %v3090_v1  ;;  %v2568_v10 = vcombine.low %v1465_v2, %v932_v0  ;;  %2083 = vperm.xlu0 %3035, %v1967_v12   ;;  %v1095_v2 = vshrl.u32 %v3068_v49, 16 }
  0x66   : > { %2088 = vperm.xlu1 %3036, %v1968_v18  }
  0x67   : > { %2779 = vmatmul.mubr.msk.bf16.gmra.mxu0 %vm495_vm1, %v434_v15  ;;  %v1475_v16 = vrot.slane %v2568_v10, 1  ;;  %v1097_v6 = vor.u32 %v1095_v2, %v1093_v62  ;;  %v1103_v10 = vshrl.u32 %v3069_v60, 16 }
  0x68   : > { %2782 = vmatprep.mubr.msk.bf16.mxu0 %vm3091_vm0, %v3090_v1 }
  0x69   : > { %v1477_v24 = vsel %vm1474_vm3, %v1475_v16, %v1476_v17  ;;  %2093 = vperm.xlu0 %3035, %v1969_v19  }
  0x6a   : > { %2098 = vperm.xlu1 %3036, %v1970_v26  }
  0x6c   : > { %2855 = vmatmul.mubr.msk.bf16.gmra.mxu1 %vm495_vm1, %v3056_v8  ;;  %v2527_v8 = vcombine.low %v931_v63, %v932_v0  ;;  %v1484_v63 = vrot.slane %v3069_v60, 1  ;;  %v1094_v0 = vsel %vm342_vm2, %v1089_v61, %v1093_v62 }
  0x6d   : > { %2858 = vmatprep.mubr.msk.bf16.mxu1 %vm3091_vm0, %v3090_v1  ;;  %2103 = vperm.xlu0 %3035, %v1971_v27  }
  0x6e   : > { %v1062_v15 = vshll.u32 %v2527_v8, 16  ;;  %v1060_v21 = vshrl.u32 %v2527_v8, 16  ;;  %2108 = vperm.xlu1 %3036, %v1972_v31   ;;  %v1485_v4 = vsel %vm1474_vm3, %v1482_v54, %v1484_v63 }
  0x6f   : > { %2783 = vmatmul.mubr.msk.bf16.gmra.mxu0 %vm495_vm1, %v442_v25  ;;  %v3066_v25 = vld [vmem:[%s3153_s28 + $0x18] sm:$0xff]  }
  0x70   : > { %2786 = vmatprep.mubr.msk.bf16.mxu0 %vm3091_vm0, %v3090_v1  ;;  %v1478_v30 = vrot.slane %v3066_v25, 1  ;;  %v1079_v46 = vshrl.u32 %v3066_v25, 16 }
  0x72   : > { %v1479_v36 = vsel %vm1474_vm3, %v1476_v17, %v1478_v30  ;;  %2118 = vperm.xlu1 %3036, %v1974_v38  }
  0x74   : > { %2859 = vmatmul.mubr.msk.bf16.gmra.mxu1 %vm495_vm1, %v3057_v14  ;;  %v481_v14 = vrot.slane %v479_v7, 1  ;;  %v1101_v7 = vrot.slane %v1099_v3, 1  ;;  %v1496_v3 = vrot.slane %v3075_v58, 1 }
  0x75   : > { %2862 = vmatprep.mubr.msk.bf16.mxu1 %vm3091_vm0, %v3090_v1 }
  0x76   : > { %v482_v20 = vsel %vm342_vm2, %v477_v13, %v481_v14  ;;  %2128 = vperm.xlu1 %3036, %v1976_v43   ;;  %v1102_v9 = vsel %vm342_vm2, %v1097_v6, %v1101_v7  ;;  %v3071_v13 = vld [vmem:[%s3153_s28 + $0x40] sm:$0xff]   ;;  %v1105_v14 = vor.u32 %v1103_v10, %v1101_v7  ;;  %v1147_v10 = vshll.u32 %v3075_v58, 16 }
  0x77   : > { %2787 = vmatmul.mubr.msk.bf16.gmra.mxu0 %vm495_vm1, %v450_v35  ;;  %v1075_v35 = vshll.u32 %v3066_v25, 16  ;;  %v1488_v16 = vrot.slane %v3071_v13, 1  ;;  %v1115_v19 = vshll.u32 %v3071_v13, 16  ;;  %v1119_v26 = vshrl.u32 %v3071_v13, 16  ;;  %v3076_v13 = vld [vmem:[%s3153_s28 + $0x68] sm:$0xff]  }
  0x78   : > { %2790 = vmatprep.mubr.msk.bf16.mxu0 %vm3091_vm0, %v3090_v1 }
  0x79   : > { %v1077_v41 = vrot.slane %v1075_v35, 1  ;;  %v1117_v23 = vrot.slane %v1115_v19, 1  ;;  %v1149_v19 = vrot.slane %v1147_v10, 1 }
  0x7a   : > { %2138 = vperm.xlu1 %3036, %v1978_v50  }
  0x7b   : > { %v1121_v31 = vor.u32 %v1119_v26, %v1117_v23 }
  0x7c   : > { %2863 = vmatmul.mubr.msk.bf16.gmra.mxu1 %vm495_vm1, %v3058_v22  ;;  %v1064_v22 = vrot.slane %v1062_v15, 1 }
  0x7d   : > { %2866 = vmatprep.mubr.msk.bf16.mxu1 %vm3091_vm0, %v3090_v1 }
  0x7e   : > { %v1065_v28 = vor.u32 %v1064_v22, %v1060_v21  ;;  %v3072_v21 = vld [vmem:[%s3153_s28 + $0x48] sm:$0xff]  }
  0x7f   : > { %2791 = vmatmul.mubr.msk.bf16.gmra.mxu0 %vm495_vm1, %v458_v45  ;;  %v1078_v45 = vsel %vm342_vm2, %v1073_v40, %v1077_v41  ;;  %v1123_v27 = vshll.u32 %v3072_v21, 16  ;;  %v3074_v40 = vld [vmem:[%s3153_s28 + $0x58] sm:$0xff]  }
  0x80   : > { %2794 = vmatprep.mubr.msk.bf16.mxu0 %vm3091_vm0, %v3090_v1  ;;  %v1070_v33 = vsel %vm342_vm2, %v1065_v28, %v1069_v29  ;;  %v3073_v29 = vld [vmem:[%s3153_s28 + $0x50] sm:$0xff]  }
  0x81   : > { %v1131_v38 = vshll.u32 %v3073_v29, 16 }
  0x84   : > { %2867 = vmatmul.mubr.msk.bf16.gmra.mxu1 %vm495_vm1, %v3059_v32  ;;  %v1973_v32 = vld [vmem:[%s3814_s2 + $0xd0] sm:$0xff] }
  0x85   : > { %2870 = vmatprep.mubr.msk.bf16.mxu1 %vm3091_vm0, %v3090_v1  ;;  %2113 = vperm.xlu0 %3035, %v1973_v32   ;;  %v1125_v32 = vrot.slane %v1123_v27, 1  ;;  %v1151_v27 = vshrl.u32 %v3075_v58, 16 }
  0x87   : > { %2795 = vmatmul.mubr.msk.bf16.gmra.mxu0 %vm495_vm1, %v466_v55  ;;  %v1980_v55 = vld [vmem:[%s3814_s2 + $0x108] sm:$0xff] }
  0x88   : > { %2798 = vmatprep.mubr.msk.bf16.mxu0 %vm3091_vm0, %v3090_v1  ;;  %2148 = vperm.xlu1 %3036, %v1980_v55   ;;  %v1139_v55 = vshll.u32 %v3074_v40, 16 }
  0x89   : > { %2123 = vperm.xlu0 %3035, %v1975_v39  }
  0x8c   : > { %2871 = vmatmul.mubr.msk.bf16.gmra.mxu1 %vm495_vm1, %v3060_v42  ;;  %v1480_v42 = vrot.slane %v3067_v37, 1  ;;  %v1127_v37 = vshrl.u32 %v3072_v21, 16 }
  0x8d   : > { %2874 = vmatprep.mubr.msk.bf16.mxu1 %vm3091_vm0, %v3090_v1  ;;  %2133 = vperm.xlu0 %3035, %v1977_v44  }
  0x8e   : > { %v1481_v48 = vsel %vm1474_vm3, %v1478_v30, %v1480_v42  ;;  %v1483_v59 = vsel %vm1474_vm3, %v1480_v42, %v1482_v54  ;;  %v1135_v54 = vshrl.u32 %v3073_v29, 16 }
  0x8f   : > { %2799 = vmatmul.mubr.msk.bf16.gmra.mxu0 %vm495_vm1, %v474_v5  ;;  %v3070_v5 = vld [vmem:[%s3153_s28 + $0x38] sm:$0xff]  }
  0x90   : > { %2802 = vmatprep.mubr.msk.bf16.mxu0 %vm3091_vm0, %v3090_v1  ;;  %v1486_v8 = vrot.slane %v3070_v5, 1  ;;  %v1107_v11 = vshll.u32 %v3070_v5, 16  ;;  %v1111_v18 = vshrl.u32 %v3070_v5, 16 }
  0x91   : > { %2143 = vperm.xlu0 %3035, %v1979_v51  }
  0x92   : > { %v1487_v12 = vsel %vm1474_vm3, %v1484_v63, %v1486_v8  ;;  %v1109_v15 = vrot.slane %v1107_v11, 1 }
  0x94   : > { %2875 = vmatmul.mubr.msk.bf16.gmra.mxu1 %vm495_vm1, %v3061_v52  ;;  %v1081_v52 = vor.u32 %v1079_v46, %v1077_v41  ;;  %v1110_v17 = vsel %vm342_vm2, %v1105_v14, %v1109_v15  ;;  %v1113_v22 = vor.u32 %v1111_v18, %v1109_v15  ;;  %v1133_v46 = vrot.slane %v1131_v38, 1 }
  0x95   : > { %2954 = vmatprep.mubr.msk.bf16.mxu1 %vm3091_vm0, %v3090_v1 }
  0x96   : > { %v1086_v56 = vsel %vm342_vm2, %v1081_v52, %v1085_v53  ;;  %v1118_v25 = vsel %vm342_vm2, %v1113_v22, %v1117_v23  ;;  %v1137_v63 = vor.u32 %v1135_v54, %v1133_v46 }
  0x97   : > { %2803 = vmatmul.mubr.msk.bf16.gmra.mxu0 %vm495_vm1, %v482_v20  ;;  %v1489_v20 = vsel %vm1474_vm3, %v1486_v8, %v1488_v16 }
  0x98   : > { %2882 = vmatprep.mubr.msk.bf16.mxu0 %vm3091_vm0, %v3090_v1 }
  0x9c   : > { %2955 = vmatmul.mubr.msk.bf16.vlgmr.msra.gmra.mxu1 %vm495_vm1, %v1477_v24  ;;  %v1490_v24 = vrot.slane %v3072_v21, 1  ;;  %v1498_v21 = vrot.slane %v3076_v13, 1 }
  0x9d   : > { %2958 = vmatprep.mubr.msk.bf16.mxu1 %vm3091_vm0, %v3090_v1 }
  0x9e   : > { %v1491_v28 = vsel %vm1474_vm3, %v1488_v16, %v1490_v24 }
  0x9f   : > { %2883 = vmatmul.mubr.msk.bf16.vlgmr.msra.gmra.mxu0 %vm495_vm1, %v1070_v33  ;;  %v1492_v33 = vrot.slane %v3073_v29, 1 }
  0xa0   : > { %2886 = vmatprep.mubr.msk.bf16.mxu0 %vm3091_vm0, %v3090_v1 }
  0xa1   : > { %v1493_v39 = vsel %vm1474_vm3, %v1490_v24, %v1492_v33 }
  0xa4   : > { %2959 = vmatmul.mubr.msk.bf16.gmra.mxu1 %vm495_vm1, %v1479_v36  ;;  %v1126_v36 = vsel %vm342_vm2, %v1121_v31, %v1125_v32  ;;  %v3077_v31 = vld [vmem:[%s3153_s28 + $0x70] sm:$0xff]  }
  0xa5   : > { %2962 = vmatprep.mubr.msk.bf16.mxu1 %vm3091_vm0, %v3090_v1 }
  0xa7   : > { %2887 = vmatmul.mubr.msk.bf16.gmra.mxu0 %vm495_vm1, %v1078_v45  ;;  %v1129_v45 = vor.u32 %v1127_v37, %v1125_v32 }
  0xa8   : > { %2890 = vmatprep.mubr.msk.bf16.mxu0 %vm3091_vm0, %v3090_v1 }
  0xa9   : > { %v1134_v53 = vsel %vm342_vm2, %v1129_v45, %v1133_v46  ;;  %v1159_v46 = vshrl.u32 %v3076_v13, 16 }
  0xac   : > { %2963 = vmatmul.mubr.msk.bf16.gmra.mxu1 %vm495_vm1, %v1481_v48  ;;  %v1494_v48 = vrot.slane %v3074_v40, 1 }
  0xad   : > { %2966 = vmatprep.mubr.msk.bf16.mxu1 %vm3091_vm0, %v3090_v1 }
  0xae   : > { %v1495_v57 = vsel %vm1474_vm3, %v1492_v33, %v1494_v48 }
  0xaf   : > { %2891 = vmatmul.mubr.msk.bf16.gmra.mxu0 %vm495_vm1, %v1086_v56 }
  0xb0   : > { %2894 = vmatprep.mubr.msk.bf16.mxu0 %vm3091_vm0, %v3090_v1 }
  0xb4   : > { %2967 = vmatmul.mubr.msk.bf16.gmra.mxu1 %vm495_vm1, %v1483_v59 }
  0xb5   : > { %2970 = vmatprep.mubr.msk.bf16.mxu1 %vm3091_vm0, %v3090_v1 }
  0xb7   : > { %2895 = vmatmul.mubr.msk.bf16.gmra.mxu0 %vm495_vm1, %v1094_v0  ;;  %v1141_v0 = vrot.slane %v1139_v55, 1 }
  0xb8   : > { %2898 = vmatprep.mubr.msk.bf16.mxu0 %vm3091_vm0, %v3090_v1 }
  0xb9   : > { %v1142_v8 = vsel %vm342_vm2, %v1137_v63, %v1141_v0 }
  0xbc   : > { %2971 = vmatmul.mubr.msk.bf16.gmra.mxu1 %vm495_vm1, %v1485_v4 }
  0xbd   : > { %2974 = vmatprep.mubr.msk.bf16.mxu1 %vm3091_vm0, %v3090_v1 }
  0xbf   : > { %2899 = vmatmul.mubr.msk.bf16.gmra.mxu0 %vm495_vm1, %v1102_v9  ;;  %v1143_v9 = vshrl.u32 %v3074_v40, 16 }
  0xc0   : > { %2902 = vmatprep.mubr.msk.bf16.mxu0 %vm3091_vm0, %v3090_v1 }
  0xc1   : > { %v1145_v18 = vor.u32 %v1143_v9, %v1141_v0 }
  0xc3   : > { %v1150_v26 = vsel %vm342_vm2, %v1145_v18, %v1149_v19 }
  0xc4   : > { %2975 = vmatmul.mubr.msk.bf16.gmra.mxu1 %vm495_vm1, %v1487_v12  ;;  %v1497_v12 = vsel %vm1474_vm3, %v1494_v48, %v1496_v3 }
  0xc5   : > { %2978 = vmatprep.mubr.msk.bf16.mxu1 %vm3091_vm0, %v3090_v1 }
  0xc7   : > { %2903 = vmatmul.mubr.msk.bf16.gmra.mxu0 %vm495_vm1, %v1110_v17 }
  0xc8   : > { %2906 = vmatprep.mubr.msk.bf16.mxu0 %vm3091_vm0, %v3090_v1 }
  0xcc   : > { %2979 = vmatmul.mubr.msk.bf16.gmra.mxu1 %vm495_vm1, %v1489_v20 }
  0xcd   : > { %2982 = vmatprep.mubr.msk.bf16.mxu1 %vm3091_vm0, %v3090_v1 }
  0xcf   : > { %2907 = vmatmul.mubr.msk.bf16.gmra.mxu0 %vm495_vm1, %v1118_v25 }
  0xd0   : > { %2910 = vmatprep.mubr.msk.bf16.mxu0 %vm3091_vm0, %v3090_v1 }
  0xd4   : > { %v796_v30 = vpop.f32.mrf.mxu1  ;;  %2983 = vmatmul.mubr.msk.bf16.gmra.mxu1 %vm495_vm1, %v1491_v28  ;;  %v1155_v28 = vshll.u32 %v3076_v13, 16 }
  0xd5   : > { %2986 = vmatprep.mubr.msk.bf16.mxu1 %vm3091_vm0, %v3090_v1 }
  0xd6   : > { %v2812_v34 = vpop.f32.mrf.mxu1  ;;  %v1157_v37 = vrot.slane %v1155_v28, 1  ;;  %v3080_v28 = vld [vmem:[%s3153_s28 + $0x88] sm:$0xff]  }
  0xd7   : > { %v581_v42 = vpop.f32.mrf.mxu0  ;;  %2911 = vmatmul.mubr.msk.bf16.gmra.mxu0 %vm495_vm1, %v1126_v36 }
  0xd8   : > { %v799_v35 = vpop.f32.mrf.mxu1  ;;  %v3485_v43 = vadd.f32 %v796_v30, %v581_v42  ;;  %2914 = vmatprep.mubr.msk.bf16.mxu0 %vm3091_vm0, %v3090_v1  ;;  %v1499_v30 = vsel %vm1474_vm3, %v1496_v3, %v1498_v21  ;;  %v1167_v3 = vshrl.u32 %v3077_v31, 16 }
  0xd9   : > { %v2740_v47 = vpop.f32.mrf.mxu0 }
  0xda   : > { %v2813_v41 = vpop.f32.mrf.mxu1  ;;  %v1163_v47 = vshll.u32 %v3077_v31, 16 }
  0xdb   : > { %v584_v50 = vpop.f32.mrf.mxu0 }
  0xdc   : > { %v804_v44 = vpop.f32.mrf.mxu1  ;;  %2987 = vmatmul.mubr.msk.bf16.gmra.mxu1 %vm495_vm1, %v1493_v39  ;;  %v3492_v51 = vadd.f32 %v799_v35, %v584_v50  ;;  %v1153_v35 = vor.u32 %v1151_v27, %v1149_v19  ;;  %v1500_v39 = vrot.slane %v3077_v31, 1  ;;  %v3078_v50 = vld [vmem:[%s3153_s28 + $0x78] sm:$0xff]  }
  0xdd   : > { %2990 = vmatprep.mubr.msk.bf16.mxu1 %vm3091_vm0, %v3090_v1  ;;  %v2741_v56 = vpop.f32.mrf.mxu0 }
  0xde   : > { %v2816_v49 = vpop.f32.mrf.mxu1  ;;  %v1158_v45 = vsel %vm342_vm2, %v1153_v35, %v1157_v37  ;;  %v1161_v56 = vor.u32 %v1159_v46, %v1157_v37  ;;  %v1506_v37 = vrot.slane %v3080_v28, 1  ;;  %v1187_v46 = vshll.u32 %v3080_v28, 16 }
  0xdf   : > { %v589_v60 = vpop.f32.mrf.mxu0  ;;  %2915 = vmatmul.mubr.msk.bf16.gmra.mxu0 %vm495_vm1, %v1134_v53  ;;  %v1501_v49 = vsel %vm1474_vm3, %v1498_v21, %v1500_v39 }
  0xe0   : > { %v807_v52 = vpop.f32.mrf.mxu1  ;;  %v3498_v61 = vadd.f32 %v804_v44, %v589_v60  ;;  %2918 = vmatprep.mubr.msk.bf16.mxu0 %vm3091_vm0, %v3090_v1 }
  0xe1   : > { %v2744_v2 = vpop.f32.mrf.mxu0 }
  0xe2   : > { %v2817_v59 = vpop.f32.mrf.mxu1 }
  0xe3   : > { %v592_v5 = vpop.f32.mrf.mxu0  ;;  %v1502_v59 = vrot.slane %v3078_v50, 1 }
  0xe4   : > { %v812_v62 = vpop.f32.mrf.mxu1  ;;  %2991 = vmatmul.mubr.msk.bf16.gmra.mxu1 %vm495_vm1, %v1495_v57  ;;  %v3505_v6 = vadd.f32 %v807_v52, %v592_v5  ;;  %v1165_v57 = vrot.slane %v1163_v47, 1 }
  0xe5   : > { %2994 = vmatprep.mubr.msk.bf16.mxu1 %vm3091_vm0, %v3090_v1  ;;  %v2745_v11 = vpop.f32.mrf.mxu0 }
  0xe6   : > { %v2820_v4 = vpop.f32.mrf.mxu1  ;;  %v1166_v2 = vsel %vm342_vm2, %v1161_v56, %v1165_v57  ;;  %v1169_v13 = vor.u32 %v1167_v3, %v1165_v57  ;;  %v1189_v57 = vrot.slane %v1187_v46, 1 }
  0xe7   : > { %v597_v15 = vpop.f32.mrf.mxu0  ;;  %2919 = vmatmul.mubr.msk.bf16.gmra.mxu0 %vm495_vm1, %v1142_v8  ;;  %v1171_v4 = vshll.u32 %v3078_v50, 16  ;;  %v3079_v8 = vld [vmem:[%s3153_s28 + $0x80] sm:$0xff]  }
  0xe8   : > { %v815_v7 = vpop.f32.mrf.mxu1  ;;  %v3511_v16 = vadd.f32 %v812_v62, %v597_v15  ;;  %2922 = vmatprep.mubr.msk.bf16.mxu0 %vm3091_vm0, %v3090_v1 }
  0xe9   : > { %v2748_v20 = vpop.f32.mrf.mxu0 }
  0xea   : > { %v2821_v14 = vpop.f32.mrf.mxu1 }
  0xeb   : > { %v600_v23 = vpop.f32.mrf.mxu0  ;;  %v1173_v14 = vrot.slane %v1171_v4, 1  ;;  %v1191_v4 = vshrl.u32 %v3080_v28, 16 }
  0xec   : > { %v820_v17 = vpop.f32.mrf.mxu1  ;;  %2995 = vmatmul.mubr.msk.bf16.gmra.mxu1 %vm495_vm1, %v1497_v12  ;;  %v3518_v24 = vadd.f32 %v815_v7, %v600_v23  ;;  %v1503_v7 = vsel %vm1474_vm3, %v1500_v39, %v1502_v59  ;;  %v1175_v23 = vshrl.u32 %v3078_v50, 16 }
  0xed   : > { %2998 = vmatprep.mubr.msk.bf16.mxu1 %vm3091_vm0, %v3090_v1  ;;  %v2749_v29 = vpop.f32.mrf.mxu0 }
  0xee   : > { %v2824_v22 = vpop.f32.mrf.mxu1 }
  0xef   : > { %v605_v33 = vpop.f32.mrf.mxu0  ;;  %2923 = vmatmul.mubr.msk.bf16.gmra.mxu0 %vm495_vm1, %v1150_v26  ;;  %v1174_v22 = vsel %vm342_vm2, %v1169_v13, %v1173_v14 }
  0xf0   : > { %v823_v25 = vpop.f32.mrf.mxu1  ;;  %v3524_v34 = vadd.f32 %v820_v17, %v605_v33  ;;  %2926 = vmatprep.mubr.msk.bf16.mxu0 %vm3091_vm0, %v3090_v1  ;;  %v1504_v17 = vrot.slane %v3079_v8, 1  ;;  %v1177_v33 = vor.u32 %v1175_v23, %v1173_v14  ;;  %v1193_v14 = vor.u32 %v1191_v4, %v1189_v57 }
  0xf1   : > { %v2752_v38 = vpop.f32.mrf.mxu0 }
  0xf2   : > { %v2825_v32 = vpop.f32.mrf.mxu1  ;;  %v1505_v27 = vsel %vm1474_vm3, %v1502_v59, %v1504_v17 }
  0xf3   : > { %v608_v41 = vpop.f32.mrf.mxu0 }
  0xf4   : > { %v828_v36 = vpop.f32.mrf.mxu1  ;;  %2999 = vmatmul.mubr.msk.bf16.gmra.mxu1 %vm495_vm1, %v1499_v30  ;;  %v3531_v42 = vadd.f32 %v823_v25, %v608_v41  ;;  %v1179_v25 = vshll.u32 %v3079_v8, 16 }
  0xf5   : > { %3002 = vmatprep.mubr.msk.bf16.mxu1 %vm3091_vm0, %v3090_v1  ;;  %v2753_v48 = vpop.f32.mrf.mxu0 }
  0xf6   : > { %v2828_v40 = vpop.f32.mrf.mxu1  ;;  %v1181_v35 = vrot.slane %v1179_v25, 1  ;;  %v1507_v48 = vsel %vm1474_vm3, %v1504_v17, %v1506_v37 }
  0xf7   : > { %v613_v53 = vpop.f32.mrf.mxu0  ;;  %2927 = vmatmul.mubr.msk.bf16.gmra.mxu0 %vm495_vm1, %v1158_v45  ;;  %v1183_v45 = vshrl.u32 %v3079_v8, 16 }
  0xf8   : > { %v831_v44 = vpop.f32.mrf.mxu1  ;;  %v3537_v54 = vadd.f32 %v828_v36, %v613_v53  ;;  %2930 = vmatprep.mubr.msk.bf16.mxu0 %vm3091_vm0, %v3090_v1 }
  0xf9   : > { %v2756_v58 = vpop.f32.mrf.mxu0  ;;  %v1185_v56 = vor.u32 %v1183_v45, %v1181_v35 }
  0xfa   : > { %v2829_v52 = vpop.f32.mrf.mxu1 }
  0xfb   : > { %v616_v62 = vpop.f32.mrf.mxu0  ;;  %v1190_v3 = vsel %vm342_vm2, %v1185_v56, %v1189_v57 }
  0xfc   : > { %v836_v55 = vpop.f32.mrf.mxu1  ;;  %3003 = vmatmul.mubr.msk.bf16.gmra.mxu1 %vm495_vm1, %v1501_v49  ;;  %v3544_v63 = vadd.f32 %v831_v44, %v616_v62  ;;  %v1182_v44 = vsel %vm342_vm2, %v1177_v33, %v1181_v35  ;;  %v3081_v49 = vld [vmem:[%s3153_s28 + $0x90] ss:$0 sps:$4 sm:$0x11]   ;;  %s3023_s28 = smul.u32 136, %s3818_s16 }
  0xfd   : > { %3006 = vmatprep.mubr.msk.bf16.mxu1 %vm3091_vm0, %v3090_v1  ;;  %v2757_v5 = vpop.f32.mrf.mxu0  ;;  %v1508_v59 = vrot.slane %v3081_v49, 1 }
  0xfe   : > { %v2832_v60 = vpop.f32.mrf.mxu1  ;;  %v1195_v5 = vshll.u32 %v3081_v49, 16  ;;  %s3634_s12 = scalar_lea.vmem %s3815_s3, %s3023_s28 }
  0xff   : > { %v621_v10 = vpop.f32.mrf.mxu0  ;;  %2931 = vmatmul.mubr.msk.bf16.gmra.mxu0 %vm495_vm1, %v1166_v2  ;;  %v1509_v8 = vsel %vm1474_vm3, %v1506_v37, %v1508_v59 }
 0x100   : > { %v839_v0 = vpop.f32.mrf.mxu1  ;;  %v3550_v11 = vadd.f32 %v836_v55, %v621_v10  ;;  %2934 = vmatprep.mubr.msk.bf16.mxu0 %vm3091_vm0, %v3090_v1 }
 0x101   : > { %v2760_v15 = vpop.f32.mrf.mxu0 }
 0x102   : > { %v2833_v9 = vpop.f32.mrf.mxu1  ;;  %v1197_v15 = vrot.slane %v1195_v5, 1 }
 0x103   : > { %v624_v19 = vpop.f32.mrf.mxu0 }
 0x104   : > { %v844_v12 = vpop.f32.mrf.mxu1  ;;  %3007 = vmatmul.mubr.msk.bf16.gmra.mxu1 %vm495_vm1, %v1503_v7  ;;  %v3557_v20 = vadd.f32 %v839_v0, %v624_v19  ;;  %v1198_v23 = vsel %vm342_vm2, %v1193_v14, %v1197_v15 }
 0x105   : > { %3010 = vmatprep.mubr.msk.bf16.mxu1 %vm3091_vm0, %v3090_v1  ;;  %v2761_v26 = vpop.f32.mrf.mxu0 }
 0x106   : > { %v2836_v18 = vpop.f32.mrf.mxu1 }
 0x107   : > { %v629_v30 = vpop.f32.mrf.mxu0  ;;  %2935 = vmatmul.mubr.msk.bf16.gmra.mxu0 %vm495_vm1, %v1174_v22 }
 0x108   : > { %v847_v21 = vpop.f32.mrf.mxu1  ;;  %v3563_v31 = vadd.f32 %v844_v12, %v629_v30  ;;  %2938 = vmatprep.mubr.msk.bf16.mxu0 %vm3091_vm0, %v3090_v1 }
 0x109   : > { %v2764_v36 = vpop.f32.mrf.mxu0 }
 0x10a   : > { %v2837_v29 = vpop.f32.mrf.mxu1 }
 0x10b   : > { %v632_v39 = vpop.f32.mrf.mxu0 }
 0x10c   : > { %v852_v32 = vpop.f32.mrf.mxu1  ;;  %3011 = vmatmul.mubr.msk.bf16.gmra.mxu1 %vm495_vm1, %v1505_v27  ;;  %v3570_v40 = vadd.f32 %v847_v21, %v632_v39 }
 0x10d   : > { %3014 = vmatprep.mubr.msk.bf16.mxu1 %vm3091_vm0, %v3090_v1  ;;  %v2765_v47 = vpop.f32.mrf.mxu0 }
 0x10e   : > { %v2840_v38 = vpop.f32.mrf.mxu1 }
 0x10f   : > { %v637_v52 = vpop.f32.mrf.mxu0  ;;  %2939 = vmatmul.mubr.msk.bf16.gmra.mxu0 %vm495_vm1, %v1182_v44 }
 0x110   : > { %v855_v41 = vpop.f32.mrf.mxu1  ;;  %v3576_v53 = vadd.f32 %v852_v32, %v637_v52  ;;  %2942 = vmatprep.mubr.msk.bf16.mxu0 %vm3091_vm0, %v3090_v1 }
 0x111   : > { %v2768_v58 = vpop.f32.mrf.mxu0 }
 0x112   : > { %v2841_v50 = vpop.f32.mrf.mxu1 }
 0x113   : > { %v640_v62 = vpop.f32.mrf.mxu0 }
 0x114   : > { %v860_v55 = vpop.f32.mrf.mxu1  ;;  %3015 = vmatmul.mubr.msk.bf16.gmra.mxu1 %vm495_vm1, %v1507_v48  ;;  %v3583_v0 = vadd.f32 %v855_v41, %v640_v62 }
 0x115   : > { %3018 = vmatprep.mubr.msk.bf16.mxu1 %vm3091_vm0, %v3090_v1  ;;  %v2769_v7 = vpop.f32.mrf.mxu0 }
 0x116   : > { %v2844_v60 = vpop.f32.mrf.mxu1 }
 0x117   : > { %v645_v10 = vpop.f32.mrf.mxu0  ;;  %2943 = vmatmul.mubr.msk.bf16.gmra.mxu0 %vm495_vm1, %v1190_v3 }
 0x118   : > { %v863_v2 = vpop.f32.mrf.mxu1  ;;  %v3588_v12 = vadd.f32 %v860_v55, %v645_v10  ;;  %2946 = vmatprep.mubr.msk.bf16.mxu0 %vm3091_vm0, %v3090_v1 }
 0x119   : > { %v2772_v17 = vpop.f32.mrf.mxu0 }
 0x11a   : > { %v2845_v9 = vpop.f32.mrf.mxu1 }
 0x11b   : > { %v648_v19 = vpop.f32.mrf.mxu0 }
 0x11c   : > { %v868_v13 = vpop.f32.mrf.mxu1  ;;  %3019 = vmatmul.mubr.msk.bf16.gmra.mxu1 %vm495_vm1, %v1509_v8  ;;  %v3593_v21 = vadd.f32 %v863_v2, %v648_v19 }
 0x11d   : > { %v2773_v25 = vpop.f32.mrf.mxu0 }
 0x11e   : > { %v2848_v18 = vpop.f32.mrf.mxu1 }
 0x11f   : > { %v653_v27 = vpop.f32.mrf.mxu0  ;;  %2947 = vmatmul.mubr.msk.bf16.gmra.mxu0 %vm495_vm1, %v1198_v23 }
 0x120   : > { %v871_v22 = vpop.f32.mrf.mxu1  ;;  %v3597_v28 = vadd.f32 %v868_v13, %v653_v27 }
 0x121   : > { %v2776_v30 = vpop.f32.mrf.mxu0 }
 0x122   : > { %v2849_v26 = vpop.f32.mrf.mxu1 }
 0x123   : > { %v656_v32 = vpop.f32.mrf.mxu0 }
 0x124   : > { %v876_v29 = vpop.f32.mrf.mxu1  ;;  %v3599_v33 = vadd.f32 %v871_v22, %v656_v32 }
 0x125   : > { %v2777_v36 = vpop.f32.mrf.mxu0 }
 0x126   : > { %v2852_v1 = vpop.f32.mrf.mxu1 }
 0x127   : > { %v661_v38 = vpop.f32.mrf.mxu0 }
 0x128   : > { %v879_v35 = vpop.f32.mrf.mxu1  ;;  %v3601_v39 = vadd.f32 %v876_v29, %v661_v38 }
 0x129   : > { %v2780_v44 = vpop.f32.mrf.mxu0 }
 0x12a   : > { %v2853_v37 = vpop.f32.mrf.mxu1 }
 0x12b   : > { %v664_v46 = vpop.f32.mrf.mxu0 }
 0x12c   : > { %v884_v41 = vpop.f32.mrf.mxu1  ;;  %v3603_v47 = vadd.f32 %v879_v35, %v664_v46 }
 0x12d   : > { %v2781_v49 = vpop.f32.mrf.mxu0 }
 0x12e   : > { %v2856_v45 = vpop.f32.mrf.mxu1 }
 0x12f   : > { %v669_v52 = vpop.f32.mrf.mxu0 }
 0x130   : > { %v887_v48 = vpop.f32.mrf.mxu1  ;;  %v3605_v55 = vadd.f32 %v884_v41, %v669_v52 }
 0x131   : > { %v2784_v57 = vpop.f32.mrf.mxu0 }
 0x132   : > { %v2857_v50 = vpop.f32.mrf.mxu1 }
 0x133   : > { %v672_v59 = vpop.f32.mrf.mxu0 }
 0x134   : > { %v892_v56 = vpop.f32.mrf.mxu1  ;;  %v3607_v60 = vadd.f32 %v887_v48, %v672_v59 }
 0x135   : > { %v2785_v2 = vpop.f32.mrf.mxu0 }
 0x136   : > { %v2860_v58 = vpop.f32.mrf.mxu1 }
 0x137   : > { %v677_v4 = vpop.f32.mrf.mxu0 }
 0x138   : > { %v895_v62 = vpop.f32.mrf.mxu1  ;;  %v3609_v5 = vadd.f32 %v892_v56, %v677_v4 }
 0x139   : > { %v2788_v8 = vpop.f32.mrf.mxu0 }
 0x13a   : > { %v2861_v3 = vpop.f32.mrf.mxu1 }
 0x13b   : > { %v680_v10 = vpop.f32.mrf.mxu0 }
 0x13c   : > { %v900_v7 = vpop.f32.mrf.mxu1  ;;  %v3611_v13 = vadd.f32 %v895_v62, %v680_v10 }
 0x13d   : > { %v2789_v15 = vpop.f32.mrf.mxu0 }
 0x13e   : > { %v2864_v9 = vpop.f32.mrf.mxu1 }
 0x13f   : > { %v685_v18 = vpop.f32.mrf.mxu0 }
 0x140   : > { %v903_v14 = vpop.f32.mrf.mxu1  ;;  %v3613_v19 = vadd.f32 %v900_v7, %v685_v18 }
 0x141   : > { %v2792_v23 = vpop.f32.mrf.mxu0 }
 0x142   : > { %v2865_v17 = vpop.f32.mrf.mxu1 }
 0x143   : > { %v688_v26 = vpop.f32.mrf.mxu0 }
 0x144   : > { %v908_v22 = vpop.f32.mrf.mxu1  ;;  %v3615_v27 = vadd.f32 %v903_v14, %v688_v26 }
 0x145   : > { %v2793_v30 = vpop.f32.mrf.mxu0 }
 0x146   : > { %v2868_v25 = vpop.f32.mrf.mxu1 }
 0x147   : > { %v693_v32 = vpop.f32.mrf.mxu0  ;;  %v1984_v25 = vpop.permute.xlu0 %1983 }
 0x148   : > { %v911_v29 = vpop.f32.mrf.mxu1  ;;  %v3617_v35 = vadd.f32 %v908_v22, %v693_v32 }
 0x149   : > { %v2796_v37 = vpop.f32.mrf.mxu0 }
 0x14a   : > { %v2869_v1 = vpop.f32.mrf.mxu1 }
 0x14b   : > { %v696_v41 = vpop.f32.mrf.mxu0 }
 0x14c   : > { %v916_v36 = vpop.f32.mrf.mxu1  ;;  %v3619_v44 = vadd.f32 %v911_v29, %v696_v41 }
 0x14d   : > { %v2797_v46 = vpop.f32.mrf.mxu0 }
 0x14e   : > { %v2872_v38 = vpop.f32.mrf.mxu1 }
 0x14f   : > { %v701_v49 = vpop.f32.mrf.mxu0 }
 0x150   : > { %v919_v45 = vpop.f32.mrf.mxu1  ;;  %v3621_v50 = vadd.f32 %v916_v36, %v701_v49 }
 0x151   : > { %v2800_v56 = vpop.f32.mrf.mxu0 }
 0x152   : > { %v2873_v48 = vpop.f32.mrf.mxu1 }
 0x153   : > { %v704_v58 = vpop.f32.mrf.mxu0 }
 0x154   : > { %v924_v52 = vpop.f32.mrf.mxu1  ;;  %v3623_v59 = vadd.f32 %v919_v45, %v704_v58 }
 0x155   : > { %v2801_v2 = vpop.f32.mrf.mxu0 }
 0x156   : > { %v2876_v57 = vpop.f32.mrf.mxu1 }
 0x157   : > { %v709_v4 = vpop.f32.mrf.mxu0 }
 0x158   : > { %v927_v62 = vpop.f32.mrf.mxu1  ;;  %v3625_v7 = vadd.f32 %v924_v52, %v709_v4 }
 0x159   : > { %v2804_v9 = vpop.f32.mrf.mxu0 }
 0x15a   : > { %v2877_v3 = vpop.f32.mrf.mxu1 }
 0x15b   : > { %v712_v14 = vpop.f32.mrf.mxu0  ;;  %v1994_v3 = vpop.permute.xlu1 %1993 }
 0x15c   : > { %v1607_v8 = vpop.f32.mrf.mxu1  ;;  %v3627_v15 = vadd.f32 %v927_v62, %v712_v14 }
 0x15d   : > { %v2805_v18 = vpop.f32.mrf.mxu0 }
 0x15e   : > { %v2956_v10 = vpop.f32.mrf.mxu1 }
 0x15f   : > { %v1296_v23 = vpop.f32.mrf.mxu0 }
 0x160   : > { %v1610_v17 = vpop.f32.mrf.mxu1  ;;  %v1431_v26 = vadd.f32 %v1296_v23, %v3485_v43  ;;  %v1989_v43 = vpop.permute.xlu0 %1988 }
 0x161   : > { %v2884_v30 = vpop.f32.mrf.mxu0 }
 0x162   : > { %v2957_v22 = vpop.f32.mrf.mxu1  ;;  %v1742_v1 = vadd.f32 %v1607_v8, %v1431_v26 }
 0x163   : > { %v1299_v36 = vpop.f32.mrf.mxu0 }
 0x164   : > { %v1615_v29 = vpop.f32.mrf.mxu1  ;;  %v2624_v37 = vpack.c.bf16 %v1742_v1, %v1742_v1  ;;  %v2151_v38 = vmul.f32 %v1984_v25, %v1742_v1  ;;  %v1432_v41 = vadd.f32 %v1299_v36, %v3492_v51 }
 0x165   : > { %v2885_v46 = vpop.f32.mrf.mxu0 }
 0x166   : > { %v2960_v32 = vpop.f32.mrf.mxu1  ;;  %1913 = vst.msk [vmem:[%s3634_s12] sm:$0xf] %vm1912_vm4, %v2624_v37  ;;  %v1743_v48 = vadd.f32 %v1610_v17, %v1432_v41  ;;  %v2261_v52 = vmul.f32 %v2151_v38, %v1742_v1  ;;  %v2186_v51 = vsel %vm2185_vm5, %v2151_v38, 0.0  ;;  %v1999_v46 = vpop.permute.xlu1 %1998 }
 0x167   : > { %v1304_v56 = vpop.f32.mrf.mxu0 }
 0x168   : > { %v1618_v45 = vpop.f32.mrf.mxu1  ;;  %v2625_v57 = vpack.c.bf16 %v1743_v48, %v1743_v48  ;;  %v2152_v58 = vmul.f32 %v1989_v43, %v1743_v48  ;;  %v1433_v62 = vadd.f32 %v1304_v56, %v3498_v61  ;;  %v2295_v17 = vsel %vm2185_vm5, %v2261_v52, 0.0 }
 0x169   : > { %v2888_v4 = vpop.f32.mrf.mxu0 }
 0x16a   : > { %v2961_v49 = vpop.f32.mrf.mxu1  ;;  %1914 = vst.msk [vmem:[%s3634_s12 + $0x4] sm:$0xf] %vm1912_vm4, %v2625_v57  ;;  %v2187_v8 = vsel %vm2185_vm5, %v2152_v58, 0.0  ;;  %v2262_v9 = vmul.f32 %v2152_v58, %v1743_v48  ;;  %v1744_v10 = vadd.f32 %v1615_v29, %v1433_v62 }
 0x16b   : > { %v2188_v18 = vadd.f32 %v2187_v8, %v2186_v51  ;;  %v1307_v22 = vpop.f32.mrf.mxu0  ;;  %v2004_v51 = vpop.permute.xlu0 %2003 }
 0x16c   : > { %v1623_v2 = vpop.f32.mrf.mxu1  ;;  %v2296_v23 = vsel %vm2185_vm5, %v2262_v9, 0.0  ;;  %v2626_v61 = vpack.c.bf16 %v1744_v10, %v1744_v10  ;;  %v2153_v25 = vmul.f32 %v1994_v3, %v1744_v10  ;;  %v1434_v26 = vadd.f32 %v1307_v22, %v3505_v6 }
 0x16d   : > { %v2297_v1 = vadd.f32 %v2296_v23, %v2295_v17  ;;  %v2889_v32 = vpop.f32.mrf.mxu0 }
 0x16e   : > { %v2964_v14 = vpop.f32.mrf.mxu1  ;;  %1915 = vst.msk [vmem:[%s3634_s12 + $0x8] sm:$0xf] %vm1912_vm4, %v2626_v61  ;;  %v2189_v36 = vsel %vm2185_vm5, %v2153_v25, 0.0  ;;  %v2263_v29 = vmul.f32 %v2153_v25, %v1744_v10  ;;  %v1745_v37 = vadd.f32 %v1618_v45, %v1434_v26 }
 0x16f   : > { %v2190_v41 = vadd.f32 %v2189_v36, %v2188_v18  ;;  %v1312_v43 = vpop.f32.mrf.mxu0 }
 0x170   : > { %v1626_v30 = vpop.f32.mrf.mxu1  ;;  %v2298_v48 = vsel %vm2185_vm5, %v2263_v29, 0.0  ;;  %v2627_v49 = vpack.c.bf16 %v1745_v37, %v1745_v37  ;;  %v2154_v52 = vmul.f32 %v1999_v46, %v1745_v37  ;;  %v1435_v6 = vadd.f32 %v1312_v43, %v3511_v16 }
 0x171   : > { %v2299_v57 = vadd.f32 %v2298_v48, %v2297_v1  ;;  %v2892_v58 = vpop.f32.mrf.mxu0  ;;  %v2009_v1 = vpop.permute.xlu1 %2008 }
 0x172   : > { %v2965_v38 = vpop.f32.mrf.mxu1  ;;  %1916 = vst.msk [vmem:[%s3634_s12 + $0xc] sm:$0xf] %vm1912_vm4, %v2627_v49  ;;  %v2191_v62 = vsel %vm2185_vm5, %v2154_v52, 0.0  ;;  %v2264_v3 = vmul.f32 %v2154_v52, %v1745_v37  ;;  %v1746_v45 = vadd.f32 %v1623_v2, %v1435_v6  ;;  %v2014_v6 = vpop.permute.xlu0 %2013 }
 0x173   : > { %v2192_v8 = vadd.f32 %v2191_v62, %v2190_v41  ;;  %v1315_v9 = vpop.f32.mrf.mxu0 }
 0x174   : > { %v1631_v56 = vpop.f32.mrf.mxu1  ;;  %v2300_v10 = vsel %vm2185_vm5, %v2264_v3, 0.0  ;;  %v2628_v14 = vpack.c.bf16 %v1746_v45, %v1746_v45  ;;  %v2155_v17 = vmul.f32 %v2004_v51, %v1746_v45  ;;  %v1436_v16 = vadd.f32 %v1315_v9, %v3518_v24 }
 0x175   : > { %v2301_v22 = vadd.f32 %v2300_v10, %v2299_v57  ;;  %v2893_v23 = vpop.f32.mrf.mxu0 }
 0x176   : > { %v2968_v4 = vpop.f32.mrf.mxu1  ;;  %1917 = vst.msk [vmem:[%s3634_s12 + $0x10] sm:$0xf] %vm1912_vm4, %v2628_v14  ;;  %v2193_v61 = vsel %vm2185_vm5, %v2155_v17, 0.0  ;;  %v2265_v25 = vmul.f32 %v2155_v17, %v1746_v45  ;;  %v1747_v2 = vadd.f32 %v1626_v30, %v1436_v16  ;;  %v2019_v17 = vpop.permute.xlu1 %2018 }
 0x177   : > { %v2194_v32 = vadd.f32 %v2193_v61, %v2192_v8  ;;  %v1320_v36 = vpop.f32.mrf.mxu0 }
 0x178   : > { %v1634_v18 = vpop.f32.mrf.mxu1  ;;  %v2302_v29 = vsel %vm2185_vm5, %v2265_v25, 0.0  ;;  %v2629_v37 = vpack.c.bf16 %v1747_v2, %v1747_v2  ;;  %v2156_v38 = vmul.f32 %v2009_v1, %v1747_v2  ;;  %v1437_v24 = vadd.f32 %v1320_v36, %v3524_v34 }
 0x179   : > { %v2303_v46 = vadd.f32 %v2302_v29, %v2301_v22  ;;  %v2896_v43 = vpop.f32.mrf.mxu0 }
 0x17a   : > { %v2969_v26 = vpop.f32.mrf.mxu1  ;;  %1918 = vst.msk [vmem:[%s3634_s12 + $0x14] sm:$0xf] %vm1912_vm4, %v2629_v37  ;;  %v2195_v48 = vsel %vm2185_vm5, %v2156_v38, 0.0  ;;  %v2266_v49 = vmul.f32 %v2156_v38, %v1747_v2  ;;  %v1748_v30 = vadd.f32 %v1631_v56, %v1437_v24  ;;  %v2024_v37 = vpop.permute.xlu0 %2023 }
 0x17b   : > { %v2196_v57 = vadd.f32 %v2195_v48, %v2194_v32  ;;  %v1323_v58 = vpop.f32.mrf.mxu0 }
 0x17c   : > { %v1639_v41 = vpop.f32.mrf.mxu1  ;;  %v2304_v62 = vsel %vm2185_vm5, %v2266_v49, 0.0  ;;  %v2630_v3 = vpack.c.bf16 %v1748_v30, %v1748_v30  ;;  %v2157_v45 = vmul.f32 %v2014_v6, %v1748_v30  ;;  %v1438_v34 = vadd.f32 %v1323_v58, %v3531_v42 }
 0x17d   : > { %v2305_v51 = vadd.f32 %v2304_v62, %v2303_v46  ;;  %v2897_v8 = vpop.f32.mrf.mxu0  ;;  %v2029_v62 = vpop.permute.xlu1 %2028 }
 0x17e   : > { %v2972_v52 = vpop.f32.mrf.mxu1  ;;  %1919 = vst.msk [vmem:[%s3634_s12 + $0x18] sm:$0xf] %vm1912_vm4, %v2630_v3  ;;  %v2197_v9 = vsel %vm2185_vm5, %v2157_v45, 0.0  ;;  %v2267_v10 = vmul.f32 %v2157_v45, %v1748_v30  ;;  %v1749_v56 = vadd.f32 %v1634_v18, %v1438_v34 }
 0x17f   : > { %v2198_v16 = vadd.f32 %v2197_v9, %v2196_v57  ;;  %v1328_v22 = vpop.f32.mrf.mxu0 }
 0x180   : > { %v1642_v4 = vpop.f32.mrf.mxu1  ;;  %v2306_v23 = vsel %vm2185_vm5, %v2267_v10, 0.0  ;;  %v2631_v61 = vpack.c.bf16 %v1749_v56, %v1749_v56  ;;  %v2158_v25 = vmul.f32 %v2019_v17, %v1749_v56  ;;  %v1439_v42 = vadd.f32 %v1328_v22, %v3537_v54  ;;  %v2034_v22 = vpop.permute.xlu0 %2033 }
 0x181   : > { %v2307_v26 = vadd.f32 %v2306_v23, %v2305_v51  ;;  %v2900_v1 = vpop.f32.mrf.mxu0 }
 0x182   : > { %v2973_v14 = vpop.f32.mrf.mxu1  ;;  %1920 = vst.msk [vmem:[%s3634_s12 + $0x1c] sm:$0xf] %vm1912_vm4, %v2631_v61  ;;  %v2199_v32 = vsel %vm2185_vm5, %v2158_v25, 0.0  ;;  %v2268_v36 = vmul.f32 %v2158_v25, %v1749_v56  ;;  %v1750_v18 = vadd.f32 %v1639_v41, %v1439_v42 }
 0x183   : > { %v2200_v38 = vadd.f32 %v2199_v32, %v2198_v16  ;;  %v1331_v24 = vpop.f32.mrf.mxu0 }
 0x184   : > { %v1647_v2 = vpop.f32.mrf.mxu1  ;;  %v2308_v46 = vsel %vm2185_vm5, %v2268_v36, 0.0  ;;  %v2632_v43 = vpack.c.bf16 %v1750_v18, %v1750_v18  ;;  %v2159_v48 = vmul.f32 %v2024_v37, %v1750_v18  ;;  %v1440_v54 = vadd.f32 %v1331_v24, %v3544_v63 }
 0x185   : > { %v2309_v30 = vadd.f32 %v2308_v46, %v2307_v26  ;;  %v2901_v52 = vpop.f32.mrf.mxu0 }
 0x186   : > { %v2976_v29 = vpop.f32.mrf.mxu1  ;;  %1921 = vst.msk [vmem:[%s3634_s12 + $0x20] sm:$0xf] %vm1912_vm4, %v2632_v43  ;;  %v2201_v6 = vsel %vm2185_vm5, %v2159_v48, 0.0  ;;  %v2269_v57 = vmul.f32 %v2159_v48, %v1750_v18  ;;  %v1751_v41 = vadd.f32 %v1642_v4, %v1440_v54 }
 0x187   : > { %v2202_v3 = vadd.f32 %v2201_v6, %v2200_v38  ;;  %v1336_v45 = vpop.f32.mrf.mxu0  ;;  %v2039_v38 = vpop.permute.xlu1 %2038 }
 0x188   : > { %v1650_v49 = vpop.f32.mrf.mxu1  ;;  %v2310_v34 = vsel %vm2185_vm5, %v2269_v57, 0.0  ;;  %v2633_v51 = vpack.c.bf16 %v1751_v41, %v1751_v41  ;;  %v2160_v8 = vmul.f32 %v2029_v62, %v1751_v41  ;;  %v1441_v63 = vadd.f32 %v1336_v45, %v3550_v11  ;;  %v2044_v62 = vpop.permute.xlu0 %2043 }
 0x189   : > { %v2311_v10 = vadd.f32 %v2310_v34, %v2309_v30  ;;  %v2904_v56 = vpop.f32.mrf.mxu0 }
 0x18a   : > { %v2977_v58 = vpop.f32.mrf.mxu1  ;;  %1922 = vst.msk [vmem:[%s3634_s12 + $0x24] sm:$0xf] %vm1912_vm4, %v2633_v51  ;;  %v2203_v14 = vsel %vm2185_vm5, %v2160_v8, 0.0  ;;  %v2270_v17 = vmul.f32 %v2160_v8, %v1751_v41  ;;  %v1752_v4 = vadd.f32 %v1647_v2, %v1441_v63 }
 0x18b   : > { %v2204_v23 = vadd.f32 %v2203_v14, %v2202_v3  ;;  %v1339_v61 = vpop.f32.mrf.mxu0 }
 0x18c   : > { %v1655_v9 = vpop.f32.mrf.mxu1  ;;  %v2312_v25 = vsel %vm2185_vm5, %v2270_v17, 0.0  ;;  %v2634_v42 = vpack.c.bf16 %v1752_v4, %v1752_v4  ;;  %v2161_v26 = vmul.f32 %v2034_v22, %v1752_v4  ;;  %v1442_v11 = vadd.f32 %v1339_v61, %v3557_v20 }
 0x18d   : > { %v2313_v32 = vadd.f32 %v2312_v25, %v2311_v10  ;;  %v2905_v36 = vpop.f32.mrf.mxu0 }
 0x18e   : > { %v2980_v16 = vpop.f32.mrf.mxu1  ;;  %1923 = vst.msk [vmem:[%s3634_s12 + $0x28] sm:$0xf] %vm1912_vm4, %v2634_v42  ;;  %v2205_v18 = vsel %vm2185_vm5, %v2161_v26, 0.0  ;;  %v2271_v29 = vmul.f32 %v2161_v26, %v1752_v4  ;;  %v1753_v2 = vadd.f32 %v1650_v49, %v1442_v11 }
 0x18f   : > { %v2206_v24 = vadd.f32 %v2205_v18, %v2204_v23  ;;  %v1344_v46 = vpop.f32.mrf.mxu0  ;;  %v2049_v16 = vpop.permute.xlu1 %2048 }
 0x190   : > { %v1658_v1 = vpop.f32.mrf.mxu1  ;;  %v2314_v43 = vsel %vm2185_vm5, %v2271_v29, 0.0  ;;  %v2635_v48 = vpack.c.bf16 %v1753_v2, %v1753_v2  ;;  %v2162_v54 = vmul.f32 %v2039_v38, %v1753_v2  ;;  %v1443_v20 = vadd.f32 %v1344_v46, %v3563_v31 }
 0x191   : > { %v2315_v52 = vadd.f32 %v2314_v43, %v2313_v32  ;;  %v2908_v6 = vpop.f32.mrf.mxu0 }
 0x192   : > { %v2981_v37 = vpop.f32.mrf.mxu1  ;;  %1924 = vst.msk [vmem:[%s3634_s12 + $0x2c] sm:$0xf] %vm1912_vm4, %v2635_v48  ;;  %v2207_v57 = vsel %vm2185_vm5, %v2162_v54, 0.0  ;;  %v2272_v41 = vmul.f32 %v2162_v54, %v1753_v2  ;;  %v1754_v49 = vadd.f32 %v1655_v9, %v1443_v20  ;;  %v2054_v2 = vpop.permute.xlu0 %2053 }
 0x193   : > { %v2208_v3 = vadd.f32 %v2207_v57, %v2206_v24  ;;  %v1347_v45 = vpop.f32.mrf.mxu0 }
 0x194   : > { %v1663_v30 = vpop.f32.mrf.mxu1  ;;  %v2316_v34 = vsel %vm2185_vm5, %v2272_v41, 0.0  ;;  %v2636_v51 = vpack.c.bf16 %v1754_v49, %v1754_v49  ;;  %v2163_v8 = vmul.f32 %v2044_v62, %v1754_v49  ;;  %v1444_v31 = vadd.f32 %v1347_v45, %v3570_v40  ;;  %v2059_v41 = vpop.permute.xlu1 %2058 }
 0x195   : > { %v2317_v10 = vadd.f32 %v2316_v34, %v2315_v52  ;;  %v2909_v56 = vpop.f32.mrf.mxu0 }
 0x196   : > { %v2984_v58 = vpop.f32.mrf.mxu1  ;;  %1925 = vst.msk [vmem:[%s3634_s12 + $0x30] sm:$0xf] %vm1912_vm4, %v2636_v51  ;;  %v2209_v14 = vsel %vm2185_vm5, %v2163_v8, 0.0  ;;  %v2273_v17 = vmul.f32 %v2163_v8, %v1754_v49  ;;  %v1755_v9 = vadd.f32 %v1658_v1, %v1444_v31 }
 0x197   : > { %v2210_v22 = vadd.f32 %v2209_v14, %v2208_v3  ;;  %v1352_v23 = vpop.f32.mrf.mxu0  ;;  %v2064_v14 = vpop.permute.xlu0 %2063 }
 0x198   : > { %v1666_v63 = vpop.f32.mrf.mxu1  ;;  %v2318_v61 = vsel %vm2185_vm5, %v2273_v17, 0.0  ;;  %v2637_v25 = vpack.c.bf16 %v1755_v9, %v1755_v9  ;;  %v2164_v42 = vmul.f32 %v2049_v16, %v1755_v9  ;;  %v1445_v40 = vadd.f32 %v1352_v23, %v3576_v53 }
 0x199   : > { %v2319_v11 = vadd.f32 %v2318_v61, %v2317_v10  ;;  %v2912_v32 = vpop.f32.mrf.mxu0 }
 0x19a   : > { %v2985_v4 = vpop.f32.mrf.mxu1  ;;  %1926 = vst.msk [vmem:[%s3634_s12 + $0x34] sm:$0xf] %vm1912_vm4, %v2637_v25  ;;  %v2211_v36 = vsel %vm2185_vm5, %v2164_v42, 0.0  ;;  %v2274_v18 = vmul.f32 %v2164_v42, %v1755_v9  ;;  %v1756_v1 = vadd.f32 %v1663_v30, %v1445_v40  ;;  %v2069_v32 = vpop.permute.xlu1 %2068 }
 0x19b   : > { %v2212_v37 = vadd.f32 %v2211_v36, %v2210_v22  ;;  %v1355_v38 = vpop.f32.mrf.mxu0 }
 0x19c   : > { %v1671_v26 = vpop.f32.mrf.mxu1  ;;  %v2320_v24 = vsel %vm2185_vm5, %v2274_v18, 0.0  ;;  %v2638_v46 = vpack.c.bf16 %v1756_v1, %v1756_v1  ;;  %v2165_v43 = vmul.f32 %v2054_v2, %v1756_v1  ;;  %v1446_v53 = vadd.f32 %v1355_v38, %v3583_v0 }
 0x19d   : > { %v2321_v54 = vadd.f32 %v2320_v24, %v2319_v11  ;;  %v2913_v20 = vpop.f32.mrf.mxu0 }
 0x19e   : > { %v2988_v29 = vpop.f32.mrf.mxu1  ;;  %1927 = vst.msk [vmem:[%s3634_s12 + $0x38] sm:$0xf] %vm1912_vm4, %v2638_v46  ;;  %v2213_v52 = vsel %vm2185_vm5, %v2165_v43, 0.0  ;;  %v2275_v6 = vmul.f32 %v2165_v43, %v1756_v1  ;;  %v1757_v30 = vadd.f32 %v1666_v63, %v1446_v53 }
 0x19f   : > { %v2214_v49 = vadd.f32 %v2213_v52, %v2212_v37  ;;  %v1360_v58 = vpop.f32.mrf.mxu0 }
 0x1a0   : > { %v1674_v48 = vpop.f32.mrf.mxu1  ;;  %v2322_v62 = vsel %vm2185_vm5, %v2275_v6, 0.0  ;;  %v2639_v3 = vpack.c.bf16 %v1757_v30, %v1757_v30  ;;  %v2166_v45 = vmul.f32 %v2059_v41, %v1757_v30  ;;  %v1447_v0 = vadd.f32 %v1360_v58, %v3588_v12 }
 0x1a1   : > { %v2323_v51 = vadd.f32 %v2322_v62, %v2321_v54  ;;  %v2916_v8 = vpop.f32.mrf.mxu0  ;;  %v2074_v54 = vpop.permute.xlu0 %2073 }
 0x1a2   : > { %v2989_v57 = vpop.f32.mrf.mxu1  ;;  %1928 = vst.msk [vmem:[%s3634_s12 + $0x3c] sm:$0xf] %vm1912_vm4, %v2639_v3  ;;  %v2215_v31 = vsel %vm2185_vm5, %v2166_v45, 0.0  ;;  %v2276_v10 = vmul.f32 %v2166_v45, %v1757_v30  ;;  %v1758_v63 = vadd.f32 %v1671_v26, %v1447_v0 }
 0x1a3   : > { %v2216_v17 = vadd.f32 %v2215_v31, %v2214_v49  ;;  %v1363_v9 = vpop.f32.mrf.mxu0 }
 0x1a4   : > { %v1679_v34 = vpop.f32.mrf.mxu1  ;;  %v2324_v4 = vsel %vm2185_vm5, %v2276_v10, 0.0  ;;  %v2640_v16 = vpack.c.bf16 %v1758_v63, %v1758_v63  ;;  %v2167_v22 = vmul.f32 %v2064_v14, %v1758_v63  ;;  %v1448_v12 = vadd.f32 %v1363_v9, %v3593_v21 }
 0x1a5   : > { %v2325_v61 = vadd.f32 %v2324_v4, %v2323_v51  ;;  %v2917_v25 = vpop.f32.mrf.mxu0 }
 0x1a6   : > { %v2992_v56 = vpop.f32.mrf.mxu1  ;;  %1929 = vst.msk [vmem:[%s3634_s12 + $0x40] sm:$0xf] %vm1912_vm4, %v2640_v16  ;;  %v2217_v42 = vsel %vm2185_vm5, %v2167_v22, 0.0  ;;  %v2277_v40 = vmul.f32 %v2167_v22, %v1758_v63  ;;  %v1759_v26 = vadd.f32 %v1674_v48, %v1448_v12  ;;  %v2084_v12 = vpop.permute.xlu0 %2083 }
 0x1a7   : > { %v2218_v36 = vadd.f32 %v2217_v42, %v2216_v17  ;;  %v1368_v18 = vpop.f32.mrf.mxu0 }
 0x1a8   : > { %v1682_v23 = vpop.f32.mrf.mxu1  ;;  %v2326_v1 = vsel %vm2185_vm5, %v2277_v40, 0.0  ;;  %v2641_v29 = vpack.c.bf16 %v1759_v26, %v1759_v26  ;;  %v2168_v2 = vmul.f32 %v2069_v32, %v1759_v26  ;;  %v1449_v21 = vadd.f32 %v1368_v18, %v3597_v28 }
 0x1a9   : > { %v2327_v38 = vadd.f32 %v2326_v1, %v2325_v61  ;;  %v2920_v24 = vpop.f32.mrf.mxu0 }
 0x1aa   : > { %v2993_v11 = vpop.f32.mrf.mxu1  ;;  %1930 = vst.msk [vmem:[%s3634_s12 + $0x44] sm:$0xf] %vm1912_vm4, %v2641_v29  ;;  %v2219_v46 = vsel %vm2185_vm5, %v2168_v2, 0.0  ;;  %v2278_v43 = vmul.f32 %v2168_v2, %v1759_v26  ;;  %v1760_v53 = vadd.f32 %v1679_v34, %v1449_v21  ;;  %v2079_v34 = vpop.permute.xlu1 %2078 }
 0x1ab   : > { %v2220_v20 = vadd.f32 %v2219_v46, %v2218_v36  ;;  %v1371_v52 = vpop.f32.mrf.mxu0 }
 0x1ac   : > { %v1687_v37 = vpop.f32.mrf.mxu1  ;;  %v2328_v6 = vsel %vm2185_vm5, %v2278_v43, 0.0  ;;  %v2642_v30 = vpack.c.bf16 %v1760_v53, %v1760_v53  ;;  %v2169_v57 = vmul.f32 %v2074_v54, %v1760_v53  ;;  %v1450_v28 = vadd.f32 %v1371_v52, %v3599_v33 }
 0x1ad   : > { %v2329_v49 = vadd.f32 %v2328_v6, %v2327_v38  ;;  %v2921_v58 = vpop.f32.mrf.mxu0 }
 0x1ae   : > { %v2996_v48 = vpop.f32.mrf.mxu1  ;;  %1931 = vst.msk [vmem:[%s3634_s12 + $0x48] sm:$0xf] %vm1912_vm4, %v2642_v30  ;;  %v2221_v62 = vsel %vm2185_vm5, %v2169_v57, 0.0  ;;  %v2279_v3 = vmul.f32 %v2169_v57, %v1760_v53  ;;  %v1761_v45 = vadd.f32 %v1682_v23, %v1450_v28  ;;  %v2089_v2 = vpop.permute.xlu1 %2088 }
 0x1af   : > { %v2222_v51 = vadd.f32 %v2221_v62, %v2220_v20  ;;  %v1376_v8 = vpop.f32.mrf.mxu0  ;;  %v2094_v30 = vpop.permute.xlu0 %2093 }
 0x1b0   : > { %v1690_v41 = vpop.f32.mrf.mxu1  ;;  %v2330_v31 = vsel %vm2185_vm5, %v2279_v3, 0.0  ;;  %v2643_v10 = vpack.c.bf16 %v1761_v45, %v1761_v45  ;;  %v2170_v63 = vmul.f32 %v2079_v34, %v1761_v45  ;;  %v1451_v33 = vadd.f32 %v1376_v8, %v3601_v39 }
 0x1b1   : > { %v2331_v14 = vadd.f32 %v2330_v31, %v2329_v49  ;;  %v2924_v17 = vpop.f32.mrf.mxu0 }
 0x1b2   : > { %v2997_v0 = vpop.f32.mrf.mxu1  ;;  %1932 = vst.msk [vmem:[%s3634_s12 + $0x4c] sm:$0xf] %vm1912_vm4, %v2643_v10  ;;  %v2223_v9 = vsel %vm2185_vm5, %v2170_v63, 0.0  ;;  %v2280_v4 = vmul.f32 %v2170_v63, %v1761_v45  ;;  %v1762_v16 = vadd.f32 %v1687_v37, %v1451_v33  ;;  %v2099_v31 = vpop.permute.xlu1 %2098 }
 0x1b3   : > { %v2224_v23 = vadd.f32 %v2223_v9, %v2222_v51  ;;  %v1379_v61 = vpop.f32.mrf.mxu0 }
 0x1b4   : > { %v1695_v56 = vpop.f32.mrf.mxu1  ;;  %v2332_v25 = vsel %vm2185_vm5, %v2280_v4, 0.0  ;;  %v2644_v42 = vpack.c.bf16 %v1762_v16, %v1762_v16  ;;  %v2171_v40 = vmul.f32 %v2084_v12, %v1762_v16  ;;  %v1452_v39 = vadd.f32 %v1379_v61, %v3603_v47  ;;  %v2104_v61 = vpop.permute.xlu0 %2103 }
 0x1b5   : > { %v2333_v11 = vadd.f32 %v2332_v25, %v2331_v14  ;;  %v2925_v32 = vpop.f32.mrf.mxu0 }
 0x1b6   : > { %v3000_v22 = vpop.f32.mrf.mxu1  ;;  %1933 = vst.msk [vmem:[%s3634_s12 + $0x50] sm:$0xf] %vm1912_vm4, %v2644_v42  ;;  %v2225_v36 = vsel %vm2185_vm5, %v2171_v40, 0.0  ;;  %v2281_v18 = vmul.f32 %v2171_v40, %v1762_v16  ;;  %v1763_v1 = vadd.f32 %v1690_v41, %v1452_v39 }
 0x1b7   : > { %v2226_v21 = vadd.f32 %v2225_v36, %v2224_v23  ;;  %v1384_v37 = vpop.f32.mrf.mxu0 }
 0x1b8   : > { %v1698_v26 = vpop.f32.mrf.mxu1  ;;  %v2334_v38 = vsel %vm2185_vm5, %v2281_v18, 0.0  ;;  %v2645_v24 = vpack.c.bf16 %v1763_v1, %v1763_v1  ;;  %v2172_v46 = vmul.f32 %v2089_v2, %v1763_v1  ;;  %v1453_v47 = vadd.f32 %v1384_v37, %v3605_v55 }
 0x1b9   : > { %v2335_v53 = vadd.f32 %v2334_v38, %v2333_v11  ;;  %v2928_v48 = vpop.f32.mrf.mxu0 }
 0x1ba   : > { %v3001_v29 = vpop.f32.mrf.mxu1  ;;  %1934 = vst.msk [vmem:[%s3634_s12 + $0x54] sm:$0xf] %vm1912_vm4, %v2645_v24  ;;  %v2227_v54 = vsel %vm2185_vm5, %v2172_v46, 0.0  ;;  %v2282_v20 = vmul.f32 %v2172_v46, %v1763_v1  ;;  %v1764_v52 = vadd.f32 %v1695_v56, %v1453_v47 }
 0x1bb   : > { %v2228_v57 = vadd.f32 %v2227_v54, %v2226_v21  ;;  %v1387_v28 = vpop.f32.mrf.mxu0  ;;  %v2109_v21 = vpop.permute.xlu1 %2108 }
 0x1bc   : > { %v1703_v43 = vpop.f32.mrf.mxu1  ;;  %v2336_v41 = vsel %vm2185_vm5, %v2282_v20, 0.0  ;;  %v2646_v49 = vpack.c.bf16 %v1764_v52, %v1764_v52  ;;  %v2173_v58 = vmul.f32 %v2094_v30, %v1764_v52  ;;  %v1454_v55 = vadd.f32 %v1387_v28, %v3607_v60  ;;  %v2114_v30 = vpop.permute.xlu0 %2113 }
 0x1bd   : > { %v2337_v3 = vadd.f32 %v2336_v41, %v2335_v53  ;;  %v2929_v45 = vpop.f32.mrf.mxu0 }
 0x1be   : > { %v3004_v6 = vpop.f32.mrf.mxu1  ;;  %1935 = vst.msk [vmem:[%s3634_s12 + $0x58] sm:$0xf] %vm1912_vm4, %v2646_v49  ;;  %v2229_v0 = vsel %vm2185_vm5, %v2173_v58, 0.0  ;;  %v2283_v34 = vmul.f32 %v2173_v58, %v1764_v52  ;;  %v1765_v51 = vadd.f32 %v1698_v26, %v1454_v55 }
 0x1bf   : > { %v2230_v10 = vadd.f32 %v2229_v0, %v2228_v57  ;;  %v1392_v63 = vpop.f32.mrf.mxu0 }
 0x1c0   : > { %v1706_v62 = vpop.f32.mrf.mxu1  ;;  %v2338_v33 = vsel %vm2185_vm5, %v2283_v34, 0.0  ;;  %v2647_v56 = vpack.c.bf16 %v1765_v51, %v1765_v51  ;;  %v2174_v14 = vmul.f32 %v2099_v31, %v1765_v51  ;;  %v1455_v60 = vadd.f32 %v1392_v63, %v3609_v5 }
 0x1c1   : > { %v2339_v9 = vadd.f32 %v2338_v33, %v2337_v3  ;;  %v2932_v4 = vpop.f32.mrf.mxu0 }
 0x1c2   : > { %v3005_v8 = vpop.f32.mrf.mxu1  ;;  %1936 = vst.msk [vmem:[%s3634_s12 + $0x5c] sm:$0xf] %vm1912_vm4, %v2647_v56  ;;  %v2231_v16 = vsel %vm2185_vm5, %v2174_v14, 0.0  ;;  %v2284_v22 = vmul.f32 %v2174_v14, %v1765_v51  ;;  %v1766_v12 = vadd.f32 %v1703_v43, %v1455_v60 }
 0x1c3   : > { %v2232_v25 = vadd.f32 %v2231_v16, %v2230_v10  ;;  %v1395_v42 = vpop.f32.mrf.mxu0  ;;  %v2119_v8 = vpop.permute.xlu1 %2118 }
 0x1c4   : > { %v1711_v17 = vpop.f32.mrf.mxu1  ;;  %v2340_v40 = vsel %vm2185_vm5, %v2284_v22, 0.0  ;;  %v2648_v39 = vpack.c.bf16 %v1766_v12, %v1766_v12  ;;  %v2175_v26 = vmul.f32 %v2104_v61, %v1766_v12  ;;  %v1456_v5 = vadd.f32 %v1395_v42, %v3611_v13 }
 0x1c5   : > { %v2341_v32 = vadd.f32 %v2340_v40, %v2339_v9  ;;  %v2933_v36 = vpop.f32.mrf.mxu0 }
 0x1c6   : > { %v3008_v23 = vpop.f32.mrf.mxu1  ;;  %1937 = vst.msk [vmem:[%s3634_s12 + $0x60] sm:$0xf] %vm1912_vm4, %v2648_v39  ;;  %v2233_v18 = vsel %vm2185_vm5, %v2175_v26, 0.0  ;;  %v2285_v1 = vmul.f32 %v2175_v26, %v1766_v12  ;;  %v1767_v29 = vadd.f32 %v1706_v62, %v1456_v5  ;;  %v2124_v12 = vpop.permute.xlu0 %2123 }
 0x1c7   : > { %v2234_v37 = vadd.f32 %v2233_v18, %v2232_v25  ;;  %v1400_v38 = vpop.f32.mrf.mxu0 }
 0x1c8   : > { %v1714_v11 = vpop.f32.mrf.mxu1  ;;  %v2342_v24 = vsel %vm2185_vm5, %v2285_v1, 0.0  ;;  %v2649_v46 = vpack.c.bf16 %v1767_v29, %v1767_v29  ;;  %v2176_v47 = vmul.f32 %v2109_v21, %v1767_v29  ;;  %v1457_v13 = vadd.f32 %v1400_v38, %v3613_v19  ;;  %v2129_v1 = vpop.permute.xlu1 %2128 }
 0x1c9   : > { %v2343_v53 = vadd.f32 %v2342_v24, %v2341_v32  ;;  %v2936_v48 = vpop.f32.mrf.mxu0 }
 0x1ca   : > { %v3009_v2 = vpop.f32.mrf.mxu1  ;;  %1938 = vst.msk [vmem:[%s3634_s12 + $0x64] sm:$0xf] %vm1912_vm4, %v2649_v46  ;;  %v2235_v54 = vsel %vm2185_vm5, %v2176_v47, 0.0  ;;  %v2286_v20 = vmul.f32 %v2176_v47, %v1767_v29  ;;  %v1768_v52 = vadd.f32 %v1711_v17, %v1457_v13 }
 0x1cb   : > { %v2236_v57 = vadd.f32 %v2235_v54, %v2234_v37  ;;  %v1403_v28 = vpop.f32.mrf.mxu0  ;;  %v2134_v54 = vpop.permute.xlu0 %2133 }
 0x1cc   : > { %v1719_v43 = vpop.f32.mrf.mxu1  ;;  %v2344_v41 = vsel %vm2185_vm5, %v2286_v20, 0.0  ;;  %v2650_v49 = vpack.c.bf16 %v1768_v52, %v1768_v52  ;;  %v2177_v58 = vmul.f32 %v2114_v30, %v1768_v52  ;;  %v1458_v19 = vadd.f32 %v1403_v28, %v3615_v27 }
 0x1cd   : > { %v2345_v62 = vadd.f32 %v2344_v41, %v2343_v53  ;;  %v2937_v3 = vpop.f32.mrf.mxu0 }
 0x1ce   : > { %v3012_v6 = vpop.f32.mrf.mxu1  ;;  %1939 = vst.msk [vmem:[%s3634_s12 + $0x68] sm:$0xf] %vm1912_vm4, %v2650_v49  ;;  %v2237_v45 = vsel %vm2185_vm5, %v2177_v58, 0.0  ;;  %v2287_v0 = vmul.f32 %v2177_v58, %v1768_v52  ;;  %v1769_v34 = vadd.f32 %v1714_v11, %v1458_v19  ;;  %v2139_v3 = vpop.permute.xlu1 %2138 }
 0x1cf   : > { %v2238_v31 = vadd.f32 %v2237_v45, %v2236_v57  ;;  %v1408_v10 = vpop.f32.mrf.mxu0 }
 0x1d0   : > { %v1722_v55 = vpop.f32.mrf.mxu1  ;;  %v2346_v63 = vsel %vm2185_vm5, %v2287_v0, 0.0  ;;  %v2651_v33 = vpack.c.bf16 %v1769_v34, %v1769_v34  ;;  %v2178_v56 = vmul.f32 %v2119_v8, %v1769_v34  ;;  %v1459_v27 = vadd.f32 %v1408_v10, %v3617_v35 }
 0x1d1   : > { %v2347_v60 = vadd.f32 %v2346_v63, %v2345_v62  ;;  %v2940_v17 = vpop.f32.mrf.mxu0 }
 0x1d2   : > { %v3013_v51 = vpop.f32.mrf.mxu1  ;;  %1940 = vst.msk [vmem:[%s3634_s12 + $0x6c] sm:$0xf] %vm1912_vm4, %v2651_v33  ;;  %v2239_v9 = vsel %vm2185_vm5, %v2178_v56, 0.0  ;;  %v2288_v4 = vmul.f32 %v2178_v56, %v1769_v34  ;;  %v1770_v16 = vadd.f32 %v1719_v43, %v1459_v27  ;;  %v2144_v27 = vpop.permute.xlu0 %2143 }
 0x1d3   : > { %v2240_v23 = vadd.f32 %v2239_v9, %v2238_v31  ;;  %v1411_v61 = vpop.f32.mrf.mxu0 }
 0x1d4   : > { %v1727_v14 = vpop.f32.mrf.mxu1  ;;  %v2348_v25 = vsel %vm2185_vm5, %v2288_v4, 0.0  ;;  %v2652_v42 = vpack.c.bf16 %v1770_v16, %v1770_v16  ;;  %v2179_v40 = vmul.f32 %v2124_v12, %v1770_v16  ;;  %v1460_v35 = vadd.f32 %v1411_v61, %v3619_v44 }
 0x1d5   : > { %v2349_v26 = vadd.f32 %v2348_v25, %v2347_v60  ;;  %v2941_v5 = vpop.f32.mrf.mxu0  ;;  %v2149_v25 = vpop.permute.xlu1 %2148 }
 0x1d6   : > { %v3016_v22 = vpop.f32.mrf.mxu1  ;;  %1941 = vst.msk [vmem:[%s3634_s12 + $0x70] sm:$0xf] %vm1912_vm4, %v2652_v42  ;;  %v2241_v11 = vsel %vm2185_vm5, %v2179_v40, 0.0  ;;  %v2289_v32 = vmul.f32 %v2179_v40, %v1770_v16  ;;  %v1771_v36 = vadd.f32 %v1722_v55, %v1460_v35 }
 0x1d7   : > { %v2242_v29 = vadd.f32 %v2241_v11, %v2240_v23  ;;  %v1416_v2 = vpop.f32.mrf.mxu0 }
 0x1d8   : > { %v1730_v39 = vpop.f32.mrf.mxu1  ;;  %v2350_v21 = vsel %vm2185_vm5, %v2289_v32, 0.0  ;;  %v2653_v37 = vpack.c.bf16 %v1771_v36, %v1771_v36  ;;  %v2180_v38 = vmul.f32 %v2129_v1, %v1771_v36  ;;  %v1461_v44 = vadd.f32 %v1416_v2, %v3621_v50 }
 0x1d9   : > { %v2351_v46 = vadd.f32 %v2350_v21, %v2349_v26  ;;  %v2944_v47 = vpop.f32.mrf.mxu0 }
 0x1da   : > { %v3017_v18 = vpop.f32.mrf.mxu1  ;;  %1942 = vst.msk [vmem:[%s3634_s12 + $0x74] sm:$0xf] %vm1912_vm4, %v2653_v37  ;;  %v2243_v13 = vsel %vm2185_vm5, %v2180_v38, 0.0  ;;  %v2290_v43 = vmul.f32 %v2180_v38, %v1771_v36  ;;  %v1772_v53 = vadd.f32 %v1727_v14, %v1461_v44 }
 0x1db   : > { %v2244_v20 = vadd.f32 %v2243_v13, %v2242_v29  ;;  %v1419_v52 = vpop.f32.mrf.mxu0 }
 0x1dc   : > { %v1735_v24 = vpop.f32.mrf.mxu1  ;;  %v2352_v6 = vsel %vm2185_vm5, %v2290_v43, 0.0  ;;  %v2654_v30 = vpack.c.bf16 %v1772_v53, %v1772_v53  ;;  %v2181_v57 = vmul.f32 %v2134_v54, %v1772_v53  ;;  %v1462_v50 = vadd.f32 %v1419_v52, %v3623_v59 }
 0x1dd   : > { %v2353_v41 = vadd.f32 %v2352_v6, %v2351_v46  ;;  %v2945_v49 = vpop.f32.mrf.mxu0 }
 0x1de   : > { %v3020_v48 = vpop.f32.mrf.mxu1  ;;  %1943 = vst.msk [vmem:[%s3634_s12 + $0x78] sm:$0xf] %vm1912_vm4, %v2654_v30  ;;  %v2245_v58 = vsel %vm2185_vm5, %v2181_v57, 0.0  ;;  %v2291_v19 = vmul.f32 %v2181_v57, %v1772_v53  ;;  %v1773_v55 = vadd.f32 %v1730_v39, %v1462_v50 }
 0x1df   : > { %v2246_v45 = vadd.f32 %v2245_v58, %v2244_v20  ;;  %v1424_v0 = vpop.f32.mrf.mxu0 }
 0x1e0   : > { %v1738_v28 = vpop.f32.mrf.mxu1  ;;  %v2354_v34 = vsel %vm2185_vm5, %v2291_v19, 0.0  ;;  %v2655_v51 = vpack.c.bf16 %v1773_v55, %v1773_v55  ;;  %v2182_v8 = vmul.f32 %v2139_v3, %v1773_v55  ;;  %v1463_v59 = vadd.f32 %v1424_v0, %v3625_v7 }
 0x1e1   : > { %v2355_v31 = vadd.f32 %v2354_v34, %v2353_v41  ;;  %v2948_v10 = vpop.f32.mrf.mxu0 }
 0x1e2   : > { %v3021_v62 = vpop.f32.mrf.mxu1  ;;  %1944 = vst.msk [vmem:[%s3634_s12 + $0x7c] sm:$0xf] %vm1912_vm4, %v2655_v51  ;;  %v2247_v63 = vsel %vm2185_vm5, %v2182_v8, 0.0  ;;  %v2292_v33 = vmul.f32 %v2182_v8, %v1773_v55  ;;  %v1774_v56 = vadd.f32 %v1735_v24, %v1463_v59 }
 0x1e3   : > { %v2248_v14 = vadd.f32 %v2247_v63, %v2246_v45  ;;  %v1427_v60 = vpop.f32.mrf.mxu0 }
 0x1e4   : > { %v2356_v17 = vsel %vm2185_vm5, %v2292_v33, 0.0  ;;  %v2656_v9 = vpack.c.bf16 %v1774_v56, %v1774_v56  ;;  %v2183_v4 = vmul.f32 %v2144_v27, %v1774_v56  ;;  %v1464_v16 = vadd.f32 %v1427_v60, %v3627_v15 }
 0x1e5   : > { %v2357_v7 = vadd.f32 %v2356_v17, %v2355_v31  ;;  %v2949_v22 = vpop.f32.mrf.mxu0 }
 0x1e6   : > { %1945 = vst.msk [vmem:[%s3634_s12 + $0x80] sm:$0xf] %vm1912_vm4, %v2656_v9  ;;  %v2249_v12 = vsel %vm2185_vm5, %v2183_v4, 0.0  ;;  %v2293_v23 = vmul.f32 %v2183_v4, %v1774_v56  ;;  %v1775_v61 = vadd.f32 %v1738_v28, %v1464_v16 }
 0x1e7   : > { %v2250_v42 = vadd.f32 %v2249_v12, %v2248_v14 }
 0x1e8   : > { %v2358_v40 = vsel %vm2185_vm5, %v2293_v23, 0.0  ;;  %v2657_v35 = vpack.c.bf16 %v1775_v61, %v1775_v61  ;;  %v2184_v39 = vmul.f32 %v2149_v25, %v1775_v61 }
 0x1e9   : > { %v2359_v26 = vadd.f32 %v2358_v40, %v2357_v7 }
 0x1ea   : > { %1946 = vst.msk [vmem:[%s3634_s12 + $0x84] sm:$0xf] %vm1912_vm4, %v2657_v35  ;;  %v2251_v15 = vsel %vm2185_vm5, %v2184_v39, 0.0  ;;  %v2294_v5 = vmul.f32 %v2184_v39, %v1775_v61 }
 0x1eb   : > { %v2252_v11 = vadd.f32 %v2251_v15, %v2250_v42 }
 0x1ec   : > { %v2360_v32 = vsel %vm2185_vm5, %v2294_v5, 0.0 }
 0x1ed   : > { %v2253_v36 = vrot.slane %v2252_v11, 4  ;;  %v2361_v18 = vadd.f32 %v2360_v32, %v2359_v26 }
 0x1ef   : > { %v2254_v1 = vadd.f32 %v2253_v36, %v2252_v11  ;;  %v2362_v29 = vrot.slane %v2361_v18, 4 }
 0x1f1   : > { %v2255_v2 = vrot.slane %v2254_v1, 2  ;;  %v2363_v21 = vadd.f32 %v2362_v29, %v2361_v18 }
 0x1f3   : > { %v2256_v37 = vadd.f32 %v2255_v2, %v2254_v1  ;;  %v2364_v38 = vrot.slane %v2363_v21, 2 }
 0x1f5   : > { %v2257_v44 = vrot.slane %v2256_v37, 1  ;;  %v2365_v24 = vadd.f32 %v2364_v38, %v2363_v21 }
 0x1f7   : > { %v2258_v46 = vadd.f32 %v2257_v44, %v2256_v37  ;;  %v2366_v47 = vrot.slane %v2365_v24, 1 }
 0x1f9   : > { %2260 = vst.msk [vmem:[%s208_s18] sm:$0x1] %vm2259_vm6, %v2258_v46  ;;  %v2367_v13 = vadd.f32 %v2366_v47, %v2365_v24 }
 0x1fb   : > { %2368 = vst.msk [vmem:[%s208_s18 + $0x1] sm:$0x1] %vm2259_vm6, %v2367_v13 }
 0x1fc PF: > { %s15_s15 = sadd.s32 1, %s3088_s15  }
 0x1fd   : > { %p12_p4 = scmp.ge.s32.totalorder %s15_s15, 4  }
 0x1ff   :  { %14 = sbr.rel (!%p12_p4) target bundleno = 1 (0x1), region = 77 }

// kernel: cnn_forward.7
= control target key start
LH: loop header
LB: loop body
LE: loop exit
PB: predicated region body
PF: predicated region fallthrough
CT: control target
= control target key end

     0   :  { %s1450_s15 = smov 0   ;;  %s1751_s0 = inlined_call_operand.vmem [shape: bf16[2,82,64], index: 0, kind: input, shape index: {}]   ;;  %s1752_s1 = inlined_call_operand.vmem [shape: bf16[4,64,32], index: 1, kind: input, shape index: {}]   ;;  %s1753_s2 = inlined_call_operand.vmem [shape: f32[72,1], index: 2, kind: input, shape index: {}]   ;;  %s1754_s3 = inlined_call_operand.vmem [shape: bf16[2,72,32], index: 3, kind: output, shape index: {0}]   ;;  %s1755_s4 = inlined_call_operand.vmem [shape: f32[2,2,32], index: 4, kind: output, shape index: {1}]  }
   0x1 LB: > { %s1123_s16 = sadd.s32 4294967295, %s1420_s15   ;;  %p1127_p0 = scmp.ge.s32.totalorder %s1420_s15, 1  ;;  %s1420_s15 = sphi %s1450_s15, %s15_s15  }
   0x2   : > { %p165_p1 = scmp.lt.s32.totalorder %s1420_s15, 3 }
   0x4   : > { %p166_p2 = pnand %p1127_p0, %p165_p1 }
   0x5   : > { %p195_p3 = scmp.lt.s32.totalorder (!%p166_p2), %s1123_s16, 1 }
   0x6   : > { %169 = sbr.rel (%p166_p2) target bundleno = 317 (0x13d), region = 32 }
   0xb   : > { %v1386_v0 = vld [vmem:[%s1752_s1 + $0x38] sm:$0xff]   ;;  %v1422_v1 = vmov 0.0   ;;  %v1388_v3 = vld [vmem:[%s1752_s1 + $0x30] sm:$0xff]   ;;  %vm1423_vm0 = vmmov 0   ;;  %s1757_s16 = smov (!%p195_p3, %s1123_s16), 1  ;;  %v1390_v5 = vld [vmem:[%s1752_s1 + $0x28] sm:$0xff]  }
   0xc   : > { %1259 = vmatprep.subr.bf16.mxu0 %v1422_v1  ;;  %1287 = vmatprep.subr.bf16.mxu1 %v1422_v1  ;;  %v1387_v2 = vld [vmem:[%s1752_s1 + $0x18] sm:$0xff]   ;;  %v1389_v4 = vld [vmem:[%s1752_s1 + $0x10] sm:$0xff]   ;;  %s1371_s27 = smul.u32 44, %s1757_s16  ;;  %v1391_v6 = vld [vmem:[%s1752_s1 + $0x8] sm:$0xff]   ;;  %v1424_v8 = vmov 0   ;;  %vm326_vm1 = vcmask 523264  }
   0xd   : > { %1260 = vmatpush3.bf16.msra.mxu0 %v1386_v0  ;;  %1267 = vmatprep.mubr.msk.bf16.mxu0 %vm1423_vm0, %v1422_v1  ;;  %v1392_v7 = vld [vmem:[%s1752_s1 + $0x20] sm:$0xff]   ;;  %vm262_vm2 = vsmask.f32 7424  ;;  %v1397_v18 = vld [vmem:[%s1752_s1 + $0x78] sm:$0xff]   ;;  %v1399_v25 = vld [vmem:[%s1752_s1 + $0x50] sm:$0xff]   ;;  %vm738_vm3 = vcmask 1046528  }
   0xe   : > { %1288 = vmatpush3.bf16.msra.mxu1 %v1387_v2  ;;  %1261 = vmatprep.subr.bf16.mxu0 %v1422_v1  ;;  %s1495_s8 = scalar_lea.vmem %s1751_s0, %s1371_s27  ;;  %v1393_v11 = vld [vmem:[%s1752_s1] sm:$0xff]   ;;  %v1396_v21 = vld [vmem:[%s1752_s1 + $0x58] sm:$0xff]   ;;  %v1400_v26 = vld [vmem:[%s1752_s1 + $0x70] sm:$0xff]   ;;  %vm905_vm4 = vcmask 257024   ;;  %vm978_vm5 = vcmask 261120   ;;  %s1130_s27 = sshll.u32 %s1757_s16, 1 }
   0xf   : > { %1289 = vmatprep.subr.bf16.mxu1 %v1422_v1  ;;  %1295 = vmatprep.mubr.msk.bf16.mxu1 %vm1423_vm0, %v1422_v1  ;;  %v1394_v9 = vld [vmem:[%s1495_s8] sm:$0xff]   ;;  %v1395_v10 = vld [vmem:[%s1495_s8 + $0x8] sm:$0xff]   ;;  %v1505_v15 = vld [vmem:[%s1495_s8 + $0x10] sm:$0xff]   ;;  %s208_s30 = scalar_lea.vmem %s1755_s4, %s1130_s27  ;;  %vm1002_vm6 = vcmask 253952  }
  0x10   : > { %1384 = vset.pattern.permute.xlu0 %v1424_v8  ;;  %1385 = vset.pattern.permute.xlu1 %v1424_v8  ;;  %v264_v12 = vshrl.u32 %v1394_v9, 16  ;;  %v266_v13 = vshll.u32 %v1394_v9, 16  ;;  %v271_v14 = vshll.u32 %v1395_v10, 16  ;;  %v279_v19 = vshll.u32 %v1505_v15, 16  ;;  %v1526_v27 = vld [vmem:[%s1495_s8 + $0x18] sm:$0xff]   ;;  %v1402_v30 = vld [vmem:[%s1752_s1 + $0x48] sm:$0xff]  }
  0x11   : > { %1262 = vmatpush3.bf16.msra.mxu0 %v1388_v3  ;;  %v275_v22 = vshrl.u32 %v1395_v10, 16  ;;  %v283_v29 = vshrl.u32 %v1505_v15, 16  ;;  %v287_v32 = vshll.u32 %v1526_v27, 16  ;;  %v1403_v33 = vld [vmem:[%s1752_s1 + $0x68] sm:$0xff]   ;;  %v1546_v34 = vld [vmem:[%s1495_s8 + $0x20] sm:$0xf] }
  0x12   : > { %1290 = vmatpush3.bf16.msra.mxu1 %v1389_v4  ;;  %1263 = vmatprep.subr.bf16.mxu0 %v1422_v1  ;;  %v268_v16 = vrot.slane %v266_v13, 1  ;;  %v273_v17 = vrot.slane %v271_v14, 1  ;;  %v281_v24 = vrot.slane %v279_v19, 1  ;;  %v227_v35 = vld [vmem:[%s1495_s8 + $0x24] sm:$0x1]  ;;  %v1551_v36 = vld [vmem:[%s1495_s8 + $0x1c] sm:$0xff]  }
  0x13   : > { %1291 = vmatprep.subr.bf16.mxu1 %v1422_v1  ;;  %v915_v37 = vld [vmem:[%s1753_s2] sm:$0xff]  ;;  %v289_v39 = vrot.slane %v287_v32, 1  ;;  %v1143_v40 = vcombine.low %v1546_v34, %v227_v35  ;;  %v590_v42 = vshll.u32 %v1551_v36, 16  ;;  %v917_v45 = vld [vmem:[%s1753_s2 + $0x10] sm:$0xff]  ;;  %v594_v47 = vshrl.u32 %v1551_v36, 16  ;;  %v916_v49 = vld [vmem:[%s1753_s2 + $0x8] sm:$0xff] }
  0x14   : > { %v269_v20 = vor.u32 %v268_v16, %v264_v12  ;;  %v277_v28 = vor.u32 %v275_v22, %v273_v17  ;;  %v285_v38 = vor.u32 %v283_v29, %v281_v24  ;;  %v1405_v41 = vld [vmem:[%s1752_s1 + $0x40] sm:$0xff]   ;;  %926 = vperm.xlu0 %1384, %v915_v37   ;;  %936 = vperm.xlu1 %1385, %v917_v45   ;;  %v291_v51 = vshrl.u32 %v1526_v27, 16  ;;  %v918_v55 = vld [vmem:[%s1753_s2 + $0x18] sm:$0xff]  ;;  %v523_v61 = vld [vmem:[%s1495_s8 + $0x8] sm:$0xf] }
  0x15   : > { %1264 = vmatpush3.bf16.msra.mxu0 %v1390_v5  ;;  %v1407_v43 = vld [vmem:[%s1752_s1 + $0x60] sm:$0xff]   ;;  %v1577_v46 = vrot.slane %v590_v42, 1  ;;  %v295_v52 = vshll.u32 %v1143_v40, 16  ;;  %v920_v62 = vld [vmem:[%s1753_s2 + $0x28] sm:$0xff]  ;;  %v921_v63 = vld [vmem:[%s1753_s2 + $0x30] sm:$0xff]  ;;  %v299_v4 = vshrl.u32 %v1143_v40, 16 }
  0x16   : > { %1292 = vmatpush3.bf16.msra.mxu1 %v1391_v6  ;;  %1265 = vmatprep.subr.bf16.mxu0 %v1422_v1  ;;  %v274_v23 = vsel %vm262_vm2, %v269_v20, %v273_v17  ;;  %v282_v31 = vsel %vm262_vm2, %v277_v28, %v281_v24  ;;  %v1571_v44 = vld [vmem:[%s1495_s8 + $0x24] sm:$0x1f]   ;;  %v290_v50 = vsel %vm262_vm2, %v285_v38, %v289_v39  ;;  %v922_v3 = vld [vmem:[%s1753_s2 + $0x38] sm:$0xff]  ;;  %v1409_v6 = vld [vmem:[%s1495_s8 + $0xc] sm:$0xff]  }
  0x17   : > { %1293 = vmatprep.subr.bf16.mxu1 %v1422_v1  ;;  %v598_v48 = vshll.u32 %v1571_v44, 16  ;;  %v596_v53 = vor.u32 %v594_v47, %v1577_v46  ;;  %v919_v57 = vld [vmem:[%s1753_s2 + $0x20] sm:$0xff]  ;;  %v293_v58 = vor.u32 %v291_v51, %v289_v39  ;;  %v297_v59 = vrot.slane %v295_v52, 1  ;;  %v1411_v19 = vld [vmem:[%s1495_s8 + $0x14] sm:$0xff]  }
  0x18   : > { %931 = vperm.xlu0 %1384, %v916_v49   ;;  %941 = vperm.xlu1 %1385, %v918_v55   ;;  %v522_v60 = vld [vmem:[%s1495_s8 + $0x4] sm:$0xf]  ;;  %v574_v14 = vshll.u32 %v1409_v6, 16  ;;  %v740_v16 = vrot.slane %v1409_v6, 1  ;;  %v578_v22 = vshrl.u32 %v1409_v6, 16  ;;  %v742_v24 = vrot.slane %v1411_v19, 1 }
  0x19   : > { %1266 = vmatpush3.bf16.msra.mxu0 %v1392_v7  ;;  %v1587_v54 = vrot.slane %v598_v48, 1  ;;  %v298_v0 = vsel %vm262_vm2, %v293_v58, %v297_v59  ;;  %v1171_v2 = vcombine.low %v522_v60, %v523_v61  ;;  %v923_v5 = vld [vmem:[%s1753_s2 + $0x40] sm:$0xff]  ;;  %v586_v29 = vshrl.u32 %v1411_v19, 16 }
  0x1a   : > { %1294 = vmatpush3.bf16.msra.mxu1 %v1393_v11  ;;  %1315 = vmatprep.subr.bf16.mxu0 %v1422_v1  ;;  %v725_v8 = vld [vmem:[%s1495_s8 + $0x4] sm:$0xe]  ;;  %s1372_s8 = smul.u32 36, %s1757_s16 }
  0x1b   : > { %1343 = vmatprep.subr.bf16.mxu1 %v1422_v1  ;;  %v1599_v56 = vsel %vm262_vm2, %v596_v53, %v1587_v54  ;;  %v569_v7 = vshll.u32 %v1171_v2, 16  ;;  %v1193_v11 = vcombine.low %v725_v8, %v523_v61  ;;  %v567_v12 = vshrl.u32 %v1171_v2, 16 }
  0x1c   : > { %1268 = vmatmul.mubr.msk.bf16.vlgmr.msra.gmra.mxu0 %vm326_vm1, %v274_v23  ;;  %946 = vperm.xlu0 %1384, %v919_v57   ;;  %v582_v23 = vshll.u32 %v1411_v19, 16  ;;  %s1698_s26 = scalar_lea.vmem %s1754_s3, %s1372_s8 }
  0x1d   : > { %1296 = vmatmul.mubr.msk.bf16.vlgmr.msra.gmra.mxu1 %vm326_vm1, %v1394_v9  ;;  %1316 = vmatpush3.bf16.msra.mxu0 %v1396_v21  ;;  %v1153_v9 = vcombine.low %v1546_v34, %v1546_v34  ;;  %v571_v13 = vrot.slane %v569_v7, 1  ;;  %v746_v34 = vrot.slane %v1571_v44, 1 }
  0x1e   : > { %1344 = vmatpush3.bf16.msra.mxu1 %v1397_v18  ;;  %1271 = vmatprep.mubr.msk.bf16.mxu0 %vm1423_vm0, %v1422_v1  ;;  %v576_v18 = vrot.slane %v574_v14, 1 }
  0x1f   : > { %1299 = vmatprep.mubr.msk.bf16.mxu1 %vm1423_vm0, %v1422_v1  ;;  %1317 = vmatprep.subr.bf16.mxu0 %v1422_v1  ;;  %v572_v17 = vor.u32 %v571_v13, %v567_v12 }
  0x20   : > { %1345 = vmatprep.subr.bf16.mxu1 %v1422_v1  ;;  %951 = vperm.xlu1 %1385, %v920_v62  }
  0x21   : > { %1318 = vmatpush3.bf16.msra.mxu0 %v1399_v25  ;;  %956 = vperm.xlu0 %1384, %v921_v63   ;;  %v577_v21 = vsel %vm262_vm2, %v572_v17, %v576_v18  ;;  %v580_v25 = vor.u32 %v578_v22, %v576_v18 }
  0x22   : > { %1346 = vmatpush3.bf16.msra.mxu1 %v1400_v26  ;;  %1319 = vmatprep.subr.bf16.mxu0 %v1422_v1  ;;  %v584_v26 = vrot.slane %v582_v23, 1 }
  0x23   : > { %1347 = vmatprep.subr.bf16.mxu1 %v1422_v1 }
  0x24   : > { %1272 = vmatmul.mubr.msk.bf16.gmra.mxu0 %vm326_vm1, %v282_v31  ;;  %961 = vperm.xlu1 %1385, %v922_v3   ;;  %v585_v28 = vsel %vm262_vm2, %v580_v25, %v584_v26  ;;  %v588_v31 = vor.u32 %v586_v29, %v584_v26 }
  0x25   : > { %1300 = vmatmul.mubr.msk.bf16.gmra.mxu1 %vm326_vm1, %v1395_v10  ;;  %1275 = vmatprep.mubr.msk.bf16.mxu0 %vm1423_vm0, %v1422_v1  ;;  %v301_v10 = vor.u32 %v299_v4, %v297_v59 }
  0x26   : > { %1303 = vmatprep.mubr.msk.bf16.mxu1 %vm1423_vm0, %v1422_v1  ;;  %1320 = vmatpush3.bf16.msra.mxu0 %v1402_v30  ;;  %v744_v30 = vrot.slane %v1551_v36, 1  ;;  %v602_v36 = vshrl.u32 %v1571_v44, 16 }
  0x27   : > { %1348 = vmatpush3.bf16.msra.mxu1 %v1403_v33  ;;  %1321 = vmatprep.subr.bf16.mxu0 %v1422_v1  ;;  %v593_v33 = vsel %vm262_vm2, %v588_v31, %v1577_v46 }
  0x28   : > { %1349 = vmatprep.subr.bf16.mxu1 %v1422_v1  ;;  %966 = vperm.xlu0 %1384, %v923_v5   ;;  %v745_v32 = vsel %vm738_vm3, %v742_v24, %v744_v30  ;;  %v747_v35 = vsel %vm738_vm3, %v744_v30, %v746_v34  ;;  %v604_v37 = vor.u32 %v602_v36, %v1587_v54 }
  0x2a   : > { %1322 = vmatpush3.bf16.msra.mxu0 %v1405_v41 }
  0x2b   : > { %1350 = vmatpush3.bf16.msra.mxu1 %v1407_v43 }
  0x2c   : > { %1276 = vmatmul.mubr.msk.bf16.gmra.mxu0 %vm326_vm1, %v290_v50 }
  0x2d   : > { %1304 = vmatmul.mubr.msk.bf16.gmra.mxu1 %vm326_vm1, %v1505_v15  ;;  %1279 = vmatprep.mubr.msk.bf16.mxu0 %vm1423_vm0, %v1422_v1  ;;  %v739_v15 = vrot.slane %v1193_v11, 1 }
  0x2e   : > { %1307 = vmatprep.mubr.msk.bf16.mxu1 %vm1423_vm0, %v1422_v1 }
  0x2f   : > { %v741_v20 = vsel %vm738_vm3, %v739_v15, %v740_v16 }
  0x34   : > { %1280 = vmatmul.mubr.msk.bf16.gmra.mxu0 %vm326_vm1, %v298_v0 }
  0x35   : > { %1308 = vmatmul.mubr.msk.bf16.gmra.mxu1 %vm326_vm1, %v1526_v27  ;;  %1283 = vmatprep.mubr.msk.bf16.mxu0 %vm1423_vm0, %v1422_v1  ;;  %v743_v27 = vsel %vm738_vm3, %v740_v16, %v742_v24 }
  0x36   : > { %1311 = vmatprep.mubr.msk.bf16.mxu1 %vm1423_vm0, %v1422_v1 }
  0x3c   : > { %1284 = vmatmul.mubr.msk.bf16.gmra.mxu0 %vm326_vm1, %v301_v10 }
  0x3d   : > { %1312 = vmatmul.mubr.msk.bf16.gmra.mxu1 %vm326_vm1, %v1153_v9  ;;  %1323 = vmatprep.mubr.msk.bf16.mxu0 %vm1423_vm0, %v1422_v1 }
  0x3e   : > { %1351 = vmatprep.mubr.msk.bf16.mxu1 %vm1423_vm0, %v1422_v1 }
  0x44   : > { %1324 = vmatmul.mubr.msk.bf16.vlgmr.msra.gmra.mxu0 %vm326_vm1, %v577_v21 }
  0x45   : > { %1352 = vmatmul.mubr.msk.bf16.vlgmr.msra.gmra.mxu1 %vm326_vm1, %v741_v20  ;;  %1327 = vmatprep.mubr.msk.bf16.mxu0 %vm1423_vm0, %v1422_v1 }
  0x46   : > { %1355 = vmatprep.mubr.msk.bf16.mxu1 %vm1423_vm0, %v1422_v1 }
  0x4c   : > { %1328 = vmatmul.mubr.msk.bf16.gmra.mxu0 %vm326_vm1, %v585_v28 }
  0x4d   : > { %1356 = vmatmul.mubr.msk.bf16.gmra.mxu1 %vm326_vm1, %v743_v27  ;;  %1331 = vmatprep.mubr.msk.bf16.mxu0 %vm1423_vm0, %v1422_v1 }
  0x4e   : > { %1359 = vmatprep.mubr.msk.bf16.mxu1 %vm1423_vm0, %v1422_v1 }
  0x54   : > { %1332 = vmatmul.mubr.msk.bf16.gmra.mxu0 %vm326_vm1, %v593_v33 }
  0x55   : > { %1360 = vmatmul.mubr.msk.bf16.gmra.mxu1 %vm326_vm1, %v745_v32  ;;  %1335 = vmatprep.mubr.msk.bf16.mxu0 %vm1423_vm0, %v1422_v1 }
  0x56   : > { %1363 = vmatprep.mubr.msk.bf16.mxu1 %vm1423_vm0, %v1422_v1 }
  0x5c   : > { %1336 = vmatmul.mubr.msk.bf16.gmra.mxu0 %vm326_vm1, %v1599_v56 }
  0x5d   : > { %1364 = vmatmul.mubr.msk.bf16.gmra.mxu1 %vm326_vm1, %v747_v35  ;;  %1339 = vmatprep.mubr.msk.bf16.mxu0 %vm1423_vm0, %v1422_v1 }
  0x5e   : > { %1367 = vmatprep.mubr.msk.bf16.mxu1 %vm1423_vm0, %v1422_v1 }
  0x64   : > { %1340 = vmatmul.mubr.msk.bf16.gmra.mxu0 %vm326_vm1, %v604_v37 }
  0x65   : > { %1368 = vmatmul.mubr.msk.bf16.gmra.mxu1 %vm326_vm1, %v746_v34 }
  0x8f   : > { %v927_v32 = vpop.permute.xlu0 %926 }
  0xdc   : > { %v376_v39 = vpop.f32.mrf.mxu0 }
  0xdd   : > { %v484_v38 = vpop.f32.mrf.mxu1 }
  0xde   : > { %v1269_v41 = vpop.f32.mrf.mxu0  ;;  %v485_v14 = vadd.f32 %v484_v38, %v376_v39 }
  0xdf   : > { %v1297_v40 = vpop.f32.mrf.mxu1 }
  0xe0   : > { %v379_v43 = vpop.f32.mrf.mxu0  ;;  %v937_v40 = vpop.permute.xlu1 %936 }
  0xe1   : > { %v487_v42 = vpop.f32.mrf.mxu1 }
  0xe2   : > { %v1270_v46 = vpop.f32.mrf.mxu0  ;;  %v488_v20 = vadd.f32 %v487_v42, %v379_v43 }
  0xe3   : > { %v1298_v45 = vpop.f32.mrf.mxu1 }
  0xe4   : > { %v384_v48 = vpop.f32.mrf.mxu0 }
  0xe5   : > { %v492_v47 = vpop.f32.mrf.mxu1 }
  0xe6   : > { %v1273_v49 = vpop.f32.mrf.mxu0  ;;  %v493_v28 = vadd.f32 %v492_v47, %v384_v48  ;;  %v932_v48 = vpop.permute.xlu0 %931 }
  0xe7   : > { %v1301_v44 = vpop.f32.mrf.mxu1 }
  0xe8   : > { %v387_v1 = vpop.f32.mrf.mxu0 }
  0xe9   : > { %v495_v50 = vpop.f32.mrf.mxu1 }
  0xea   : > { %v1274_v52 = vpop.f32.mrf.mxu0  ;;  %v496_v37 = vadd.f32 %v495_v50, %v387_v1 }
  0xeb   : > { %v1302_v51 = vpop.f32.mrf.mxu1 }
  0xec   : > { %v392_v54 = vpop.f32.mrf.mxu0 }
  0xed   : > { %v500_v53 = vpop.f32.mrf.mxu1 }
  0xee   : > { %v1277_v56 = vpop.f32.mrf.mxu0  ;;  %v501_v47 = vadd.f32 %v500_v53, %v392_v54 }
  0xef   : > { %v1305_v55 = vpop.f32.mrf.mxu1 }
  0xf0   : > { %v1680_v58 = vpop.f32.mrf.mxu0 }
  0xf1   : > { %v1678_v57 = vpop.f32.mrf.mxu1 }
  0xf2   : > { %v1278_v60 = vpop.f32.mrf.mxu0 }
  0xf3   : > { %v1306_v59 = vpop.f32.mrf.mxu1 }
  0xf4   : > { %v1684_v62 = vpop.f32.mrf.mxu0  ;;  %v942_v59 = vpop.permute.xlu1 %941 }
  0xf5   : > { %v1682_v61 = vpop.f32.mrf.mxu1 }
  0xf6   : > { %v1281_v0 = vpop.f32.mrf.mxu0 }
  0xf7   : > { %v1309_v63 = vpop.f32.mrf.mxu1 }
  0xf8   : > { %v1688_v3 = vpop.f32.mrf.mxu0  ;;  %v504_v63 = vadd.f32 %v1678_v57, %v1680_v58 }
  0xf9   : > { %v1686_v2 = vpop.f32.mrf.mxu1 }
  0xfa   : > { %v1282_v5 = vpop.f32.mrf.mxu0 }
  0xfb   : > { %v1310_v4 = vpop.f32.mrf.mxu1 }
  0xfc   : > { %v1692_v7 = vpop.f32.mrf.mxu0 }
  0xfd   : > { %v1690_v6 = vpop.f32.mrf.mxu1 }
  0xfe   : > { %v1285_v9 = vpop.f32.mrf.mxu0 }
  0xff   : > { %v1313_v8 = vpop.f32.mrf.mxu1 }
 0x100   : > { %v411_v11 = vpop.f32.mrf.mxu0 }
 0x101   : > { %v519_v10 = vpop.f32.mrf.mxu1 }
 0x102   : > { %v1286_v13 = vpop.f32.mrf.mxu0 }
 0x103   : > { %v1314_v12 = vpop.f32.mrf.mxu1 }
 0x104   : > { %v678_v16 = vpop.f32.mrf.mxu0  ;;  %v509_v12 = vadd.f32 %v1682_v61, %v1684_v62 }
 0x105   : > { %v821_v15 = vpop.f32.mrf.mxu1  ;;  %v716_v17 = vadd.f32 %v678_v16, %v485_v14  ;;  %v947_v14 = vpop.permute.xlu0 %946 }
 0x106   : > { %v1325_v19 = vpop.f32.mrf.mxu0 }
 0x107   : > { %v1353_v18 = vpop.f32.mrf.mxu1  ;;  %v859_v21 = vadd.f32 %v821_v15, %v716_v17 }
 0x108   : > { %v681_v23 = vpop.f32.mrf.mxu0 }
 0x109   : > { %v824_v22 = vpop.f32.mrf.mxu1  ;;  %v1214_v24 = vpack.c.bf16 %v859_v21, %v859_v21  ;;  %v717_v25 = vadd.f32 %v681_v23, %v488_v20  ;;  %v969_v56 = vmul.f32 %v927_v32, %v859_v21  ;;  %v952_v23 = vpop.permute.xlu1 %951 }
 0x10a   : > { %v1326_v27 = vpop.f32.mrf.mxu0 }
 0x10b   : > { %v1354_v26 = vpop.f32.mrf.mxu1  ;;  %906 = vst.msk [vmem:[%s1698_s26] sm:$0xf] %vm905_vm4, %v1214_v24  ;;  %v860_v29 = vadd.f32 %v824_v22, %v717_v25  ;;  %v1004_v13 = vmul.f32 %v969_v56, %v859_v21  ;;  %v979_v19 = vsel %vm978_vm5, %v969_v56, 0.0  ;;  %v512_v27 = vadd.f32 %v1686_v2, %v1688_v3 }
 0x10c   : > { %v686_v31 = vpop.f32.mrf.mxu0 }
 0x10d   : > { %v829_v30 = vpop.f32.mrf.mxu1  ;;  %v1215_v33 = vpack.c.bf16 %v860_v29, %v860_v29  ;;  %v718_v34 = vadd.f32 %v686_v31, %v493_v28  ;;  %v970_v51 = vmul.f32 %v932_v48, %v860_v29  ;;  %v1013_v28 = vsel %vm978_vm5, %v1004_v13, 0.0 }
 0x10e   : > { %v1329_v36 = vpop.f32.mrf.mxu0 }
 0x10f   : > { %v1357_v35 = vpop.f32.mrf.mxu1  ;;  %907 = vst.msk [vmem:[%s1698_s26 + $0x4] sm:$0xf] %vm905_vm4, %v1215_v33  ;;  %v861_v38 = vadd.f32 %v829_v30, %v718_v34  ;;  %v1005_v4 = vmul.f32 %v970_v51, %v860_v29  ;;  %v980_v57 = vsel %vm978_vm5, %v970_v51, 0.0 }
 0x110   : > { %v689_v41 = vpop.f32.mrf.mxu0  ;;  %v981_v29 = vadd.f32 %v980_v57, %v979_v19 }
 0x111   : > { %v832_v39 = vpop.f32.mrf.mxu1  ;;  %v1216_v42 = vpack.c.bf16 %v861_v38, %v861_v38  ;;  %v719_v43 = vadd.f32 %v689_v41, %v496_v37  ;;  %v971_v0 = vmul.f32 %v937_v40, %v861_v38  ;;  %v1014_v20 = vsel %vm978_vm5, %v1005_v4, 0.0 }
 0x112   : > { %v1330_v46 = vpop.f32.mrf.mxu0  ;;  %v1015_v36 = vadd.f32 %v1014_v20, %v1013_v28 }
 0x113   : > { %v1358_v45 = vpop.f32.mrf.mxu1  ;;  %908 = vst.msk [vmem:[%s1698_s26 + $0x8] sm:$0xf] %vm905_vm4, %v1216_v42  ;;  %v862_v44 = vadd.f32 %v832_v39, %v719_v43  ;;  %v1006_v58 = vmul.f32 %v971_v0, %v861_v38  ;;  %v982_v61 = vsel %vm978_vm5, %v971_v0, 0.0  ;;  %v957_v39 = vpop.permute.xlu0 %956  ;;  %v517_v46 = vadd.f32 %v1690_v6, %v1692_v7 }
 0x114   : > { %v694_v52 = vpop.f32.mrf.mxu0  ;;  %v983_v37 = vadd.f32 %v982_v61, %v981_v29 }
 0x115   : > { %v837_v49 = vpop.f32.mrf.mxu1  ;;  %v1217_v50 = vpack.c.bf16 %v862_v44, %v862_v44  ;;  %v720_v1 = vadd.f32 %v694_v52, %v501_v47  ;;  %v972_v5 = vmul.f32 %v942_v59, %v862_v44  ;;  %v1016_v31 = vsel %vm978_vm5, %v1006_v58, 0.0 }
 0x116   : > { %v1333_v60 = vpop.f32.mrf.mxu0  ;;  %v1017_v47 = vadd.f32 %v1016_v31, %v1015_v36 }
 0x117   : > { %v1361_v55 = vpop.f32.mrf.mxu1  ;;  %909 = vst.msk [vmem:[%s1698_s26 + $0xc] sm:$0xf] %vm905_vm4, %v1217_v50  ;;  %v863_v53 = vadd.f32 %v837_v49, %v720_v1  ;;  %v1007_v22 = vmul.f32 %v972_v5, %v862_v44  ;;  %v984_v32 = vsel %vm978_vm5, %v972_v5, 0.0  ;;  %v962_v60 = vpop.permute.xlu1 %961 }
 0x118   : > { %v697_v8 = vpop.f32.mrf.mxu0  ;;  %v985_v48 = vadd.f32 %v984_v32, %v983_v37 }
 0x119   : > { %v840_v54 = vpop.f32.mrf.mxu1  ;;  %v1218_v9 = vpack.c.bf16 %v863_v53, %v863_v53  ;;  %v721_v10 = vadd.f32 %v697_v8, %v504_v63  ;;  %v973_v16 = vmul.f32 %v947_v14, %v863_v53  ;;  %v1018_v38 = vsel %vm978_vm5, %v1007_v22, 0.0  ;;  %v967_v14 = vpop.permute.xlu0 %966 }
 0x11a   : > { %v1334_v15 = vpop.f32.mrf.mxu0  ;;  %v1019_v55 = vadd.f32 %v1018_v38, %v1017_v47 }
 0x11b   : > { %v1362_v11 = vpop.f32.mrf.mxu1  ;;  %910 = vst.msk [vmem:[%s1698_s26 + $0x10] sm:$0xf] %vm905_vm4, %v1218_v9  ;;  %v864_v17 = vadd.f32 %v840_v54, %v721_v10  ;;  %v1008_v33 = vmul.f32 %v973_v16, %v863_v53  ;;  %v986_v40 = vsel %vm978_vm5, %v973_v16, 0.0 }
 0x11c   : > { %v702_v24 = vpop.f32.mrf.mxu0  ;;  %v987_v56 = vadd.f32 %v986_v40, %v985_v48 }
 0x11d   : > { %v845_v18 = vpop.f32.mrf.mxu1  ;;  %v1219_v62 = vpack.c.bf16 %v864_v17, %v864_v17  ;;  %v974_v21 = vmul.f32 %v952_v23, %v864_v17  ;;  %v722_v25 = vadd.f32 %v702_v24, %v509_v12  ;;  %v1020_v49 = vsel %vm978_vm5, %v1008_v33, 0.0 }
 0x11e   : > { %v1337_v30 = vpop.f32.mrf.mxu0  ;;  %v1021_v4 = vadd.f32 %v1020_v49, %v1019_v55 }
 0x11f   : > { %v1365_v26 = vpop.f32.mrf.mxu1  ;;  %911 = vst.msk [vmem:[%s1698_s26 + $0x14] sm:$0xf] %vm905_vm4, %v1219_v62  ;;  %v865_v34 = vadd.f32 %v845_v18, %v722_v25  ;;  %v1009_v2 = vmul.f32 %v974_v21, %v864_v17  ;;  %v988_v51 = vsel %vm978_vm5, %v974_v21, 0.0 }
 0x120   : > { %v705_v3 = vpop.f32.mrf.mxu0  ;;  %v989_v5 = vadd.f32 %v988_v51, %v987_v56 }
 0x121   : > { %v848_v35 = vpop.f32.mrf.mxu1  ;;  %v1220_v41 = vpack.c.bf16 %v865_v34, %v865_v34  ;;  %v975_v42 = vmul.f32 %v957_v39, %v865_v34  ;;  %v723_v43 = vadd.f32 %v705_v3, %v512_v27  ;;  %v1022_v59 = vsel %vm978_vm5, %v1009_v2, 0.0 }
 0x122   : > { %v1338_v44 = vpop.f32.mrf.mxu0  ;;  %v1023_v15 = vadd.f32 %v1022_v59, %v1021_v4 }
 0x123   : > { %v1366_v45 = vpop.f32.mrf.mxu1  ;;  %912 = vst.msk [vmem:[%s1698_s26 + $0x18] sm:$0xf] %vm905_vm4, %v1220_v41  ;;  %v1010_v52 = vmul.f32 %v975_v42, %v865_v34  ;;  %v866_v50 = vadd.f32 %v848_v35, %v723_v43  ;;  %v990_v6 = vsel %vm978_vm5, %v975_v42, 0.0 }
 0x124   : > { %v710_v63 = vpop.f32.mrf.mxu0  ;;  %v991_v57 = vadd.f32 %v990_v6, %v989_v5 }
 0x125   : > { %v853_v1 = vpop.f32.mrf.mxu1  ;;  %v1221_v7 = vpack.c.bf16 %v866_v50, %v866_v50  ;;  %v976_v0 = vmul.f32 %v962_v60, %v866_v50  ;;  %v724_v53 = vadd.f32 %v710_v63, %v517_v46  ;;  %v1024_v9 = vsel %vm978_vm5, %v1010_v52, 0.0 }
 0x126   : > { %v1341_v8 = vpop.f32.mrf.mxu0  ;;  %v1025_v20 = vadd.f32 %v1024_v9, %v1023_v15 }
 0x127   : > { %v1369_v54 = vpop.f32.mrf.mxu1  ;;  %913 = vst.msk [vmem:[%s1698_s26 + $0x1c] sm:$0xf] %vm905_vm4, %v1221_v7  ;;  %v992_v10 = vsel %vm978_vm5, %v976_v0, 0.0  ;;  %v1011_v11 = vmul.f32 %v976_v0, %v866_v50  ;;  %v867_v12 = vadd.f32 %v853_v1, %v724_v53 }
 0x128   : > { %v713_v58 = vpop.f32.mrf.mxu0  ;;  %v993_v22 = vadd.f32 %v992_v10, %v991_v57 }
 0x129   : > { %v856_v13 = vpop.f32.mrf.mxu1  ;;  %v1026_v16 = vsel %vm978_vm5, %v1011_v11, 0.0  ;;  %v1222_v17 = vpack.c.bf16 %v867_v12, %v867_v12  ;;  %v977_v18 = vmul.f32 %v967_v14, %v867_v12 }
 0x12a   : > { %v1342_v23 = vpop.f32.mrf.mxu0  ;;  %v1027_v62 = vadd.f32 %v1026_v16, %v1025_v20 }
 0x12b   : > { %v1370_v19 = vpop.f32.mrf.mxu1  ;;  %914 = vst.msk [vmem:[%s1698_s26 + $0x20] sm:$0xf] %vm905_vm4, %v1222_v17  ;;  %v994_v24 = vsel %vm978_vm5, %v977_v18, 0.0  ;;  %v1012_v61 = vmul.f32 %v977_v18, %v867_v12 }
 0x12c   : > { %v995_v21 = vadd.f32 %v994_v24, %v993_v22 }
 0x12d   : > { %v1028_v25 = vsel %vm978_vm5, %v1012_v61, 0.0 }
 0x12e   : > { %v996_v26 = vrot.slane %v995_v21, 4  ;;  %v1029_v27 = vadd.f32 %v1028_v25, %v1027_v62 }
 0x130   : > { %v997_v28 = vadd.f32 %v996_v26, %v995_v21  ;;  %v1030_v29 = vrot.slane %v1029_v27, 4 }
 0x132   : > { %v998_v30 = vrot.slane %v997_v28, 2  ;;  %v1031_v31 = vadd.f32 %v1030_v29, %v1029_v27 }
 0x134   : > { %v999_v32 = vadd.f32 %v998_v30, %v997_v28  ;;  %v1032_v33 = vrot.slane %v1031_v31, 2 }
 0x136   : > { %v1000_v34 = vrot.slane %v999_v32, 1  ;;  %v1033_v35 = vadd.f32 %v1032_v33, %v1031_v31 }
 0x138   : > { %v1001_v36 = vadd.f32 %v1000_v34, %v999_v32  ;;  %v1034_v37 = vrot.slane %v1033_v35, 1 }
 0x13a   : > { %1003 = vst.msk [vmem:[%s208_s30] sm:$0x1] %vm1002_vm6, %v1001_v36  ;;  %v1035_v38 = vadd.f32 %v1034_v37, %v1033_v35 }
 0x13c   : > { %1036 = vst.msk [vmem:[%s208_s30 + $0x1] sm:$0x1] %vm1002_vm6, %v1035_v38 }
 0x13d PF: > { %s15_s15 = sadd.s32 1, %s1420_s15  }
 0x13e   : > { %p12_p4 = scmp.ge.s32.totalorder %s15_s15, 4  }
 0x140   :  { %14 = sbr.rel (!%p12_p4) target bundleno = 1 (0x1), region = 77 }

// kernel: cnn_forward.8
= control target key start
LH: loop header
LB: loop body
LE: loop exit
PB: predicated region body
PF: predicated region fallthrough
CT: control target
= control target key end

     0   :  { %s1208_s15 = smov 0   ;;  %s1357_s0 = inlined_call_operand.vmem [shape: bf16[2,26,128], index: 0, kind: input, shape index: {}]   ;;  %s1358_s1 = inlined_call_operand.vmem [shape: bf16[4,128,64], index: 1, kind: input, shape index: {}]   ;;  %s1359_s2 = inlined_call_operand.vmem [shape: f32[20,1], index: 2, kind: input, shape index: {}]   ;;  %s1360_s3 = inlined_call_operand.vmem [shape: bf16[2,20,64], index: 3, kind: output, shape index: {0}]   ;;  %s1361_s4 = inlined_call_operand.vmem [shape: f32[2,2,64], index: 4, kind: output, shape index: {1}]  }
   0x1 LB: > { %s900_s16 = sadd.s32 4294967295, %s1180_s15   ;;  %p904_p0 = scmp.ge.s32.totalorder %s1180_s15, 1  ;;  %s1180_s15 = sphi %s1208_s15, %s15_s15  }
   0x2   : > { %p165_p1 = scmp.lt.s32.totalorder %s1180_s15, 3 }
   0x4   : > { %p166_p2 = pnand %p904_p0, %p165_p1 }
   0x5   : > { %p195_p3 = scmp.lt.s32.totalorder (!%p166_p2), %s900_s16, 1 }
   0x6   : > { %169 = sbr.rel (%p166_p2) target bundleno = 301 (0x12d), region = 32 }
   0xb   : > { %v1136_v0 = vld [vmem:[%s1358_s1 + $0x78] sm:$0xff]   ;;  %v1138_v2 = vld [vmem:[%s1358_s1 + $0x70] sm:$0xff]   ;;  %v1140_v4 = vld [vmem:[%s1358_s1 + $0x68] sm:$0xff]   ;;  %v1182_v6 = vmov 0   ;;  %s1363_s16 = smov (!%p195_p3, %s900_s16), 1  ;;  %vm641_vm1 = vcmask 1044480  }
   0xc   : > { %v1137_v1 = vld [vmem:[%s1358_s1 + $0x38] sm:$0xff]   ;;  %1044 = vmatprep.subr.bf16.mxu0 %v1136_v0  ;;  %v1139_v3 = vld [vmem:[%s1358_s1 + $0x30] sm:$0xff]   ;;  %v1141_v5 = vld [vmem:[%s1358_s1 + $0x28] sm:$0xff]   ;;  %1134 = vset.pattern.permute.xlu0 %v1182_v6  ;;  %s1000_s7 = sshll.u32 %s1363_s16, 4  ;;  %vm255_vm0 = vsmask.f32 7424 }
   0xd   : > { %1064 = vmatprep.subr.bf16.mxu1 %v1137_v1  ;;  %1045 = vmatpush3.bf16.msra.mxu0 %v1136_v0  ;;  %v1142_v7 = vld [vmem:[%s1358_s1 + $0x60] sm:$0xff]   ;;  %v1144_v9 = vld [vmem:[%s1358_s1 + $0x58] sm:$0xff]   ;;  %s1252_s14 = scalar_lea.vmem %s1357_s0, %s1000_s7  ;;  %v1146_v11 = vld [vmem:[%s1358_s1 + $0x50] sm:$0xff]   ;;  %vm501_vm2 = vsmask.f32 5376  ;;  %s1124_s20 = smul.u32 12, %s1363_s16 }
   0xe   : > { %1065 = vmatpush3.bf16.msra.mxu1 %v1137_v1  ;;  %1046 = vmatprep.subr.bf16.mxu0 %v1138_v2  ;;  %v1143_v8 = vld [vmem:[%s1358_s1 + $0x20] sm:$0xff]   ;;  %v1145_v10 = vld [vmem:[%s1358_s1 + $0x18] sm:$0xff]   ;;  %v1147_v12 = vld [vmem:[%s1358_s1 + $0x10] sm:$0xff]   ;;  %vm762_vm3 = vcmask 517120   ;;  %vm759_vm4 = vcmask 519168   ;;  %vm785_vm5 = vcmask 523264  }
   0xf   : > { %1066 = vmatprep.subr.bf16.mxu1 %v1139_v3  ;;  %1135 = vset.pattern.permute.xlu1 %v1182_v6  ;;  %v1152_v13 = vld [vmem:[%s1252_s14] sm:$0xff]   ;;  %v1153_v14 = vld [vmem:[%s1252_s14 + $0x8] ss:$0 sps:$4 sm:$0x77]   ;;  %v1155_v27 = vld [vmem:[%s1358_s1 + $0xb8] sm:$0xff]   ;;  %s204_s22 = scalar_lea.vmem %s1360_s3, %s1124_s20  ;;  %s908_s23 = sshll.u32 %s1363_s16, 1 }
  0x10   : > { %v1148_v15 = vld [vmem:[%s1358_s1 + $0x48] sm:$0xff]   ;;  %v257_v17 = vshrl.u32 %v1152_v13, 16  ;;  %v259_v18 = vshll.u32 %v1152_v13, 16  ;;  %v264_v19 = vshll.u32 %v1153_v14, 16  ;;  %1080 = vmatprep.mubr.bf16.mxu1 %v1152_v13  ;;  %v1150_v23 = vld [vmem:[%s1358_s1 + $0x40] sm:$0xff]   ;;  %v268_v26 = vshrl.u32 %v1153_v14, 16  ;;  %s208_s26 = scalar_lea.vmem %s1361_s4, %s908_s23 }
  0x11   : > { %1047 = vmatpush3.bf16.msra.mxu0 %v1138_v2  ;;  %v1149_v16 = vld [vmem:[%s1358_s1 + $0x8] sm:$0xff]   ;;  %v1151_v24 = vld [vmem:[%s1358_s1] sm:$0xff]   ;;  %v1156_v29 = vld [vmem:[%s1358_s1 + $0xf8] sm:$0xff]   ;;  %vm797_vm6 = vcmask 516096  }
  0x12   : > { %1067 = vmatpush3.bf16.msra.mxu1 %v1139_v3  ;;  %1048 = vmatprep.subr.bf16.mxu0 %v1140_v4  ;;  %v261_v20 = vrot.slane %v259_v18, 1  ;;  %v266_v21 = vrot.slane %v264_v19, 1  ;;  %v1154_v28 = vld [vmem:[%s1252_s14 + $0x8] ss:$0 sps:$4 sm:$0x33]   ;;  %v1157_v31 = vld [vmem:[%s1358_s1 + $0xb0] sm:$0xff]  }
  0x13   : > { %1068 = vmatprep.subr.bf16.mxu1 %v1141_v5  ;;  %v1158_v32 = vld [vmem:[%s1358_s1 + $0xf0] sm:$0xff]   ;;  %v1159_v33 = vld [vmem:[%s1358_s1 + $0xa8] sm:$0xff]   ;;  %v470_v34 = vld [vmem:[%s1252_s14] sm:$0xc] }
  0x14   : > { %v262_v22 = vor.u32 %v261_v20, %v257_v17  ;;  %v270_v30 = vor.u32 %v268_v26, %v266_v21  ;;  %v471_v35 = vld [vmem:[%s1252_s14 + $0x4] sm:$0xf]  ;;  %v1293_v37 = vld [vmem:[%s1252_s14 + $0x8] sm:$0x1f]   ;;  %v620_v39 = vld [vmem:[%s1252_s14] sm:$0x8] }
  0x15   : > { %1049 = vmatpush3.bf16.msra.mxu0 %v1140_v4  ;;  %v960_v36 = vcombine.low %v470_v34, %v471_v35  ;;  %v1160_v38 = vld [vmem:[%s1358_s1 + $0xe8] sm:$0xff]   ;;  %v764_v40 = vld [vmem:[%s1359_s2] sm:$0xff]  ;;  %v511_v43 = vshrl.u32 %v1293_v37, 16  ;;  %v514_v44 = vshll.u32 %v1293_v37, 16  ;;  %v766_v45 = vld [vmem:[%s1359_s2 + $0x10] sm:$0xf]  ;;  %v986_v46 = vcombine.low %v620_v39, %v471_v35 }
  0x16   : > { %1069 = vmatpush3.bf16.msra.mxu1 %v1141_v5  ;;  %1050 = vmatprep.subr.bf16.mxu0 %v1142_v7  ;;  %v267_v25 = vsel %vm255_vm0, %v262_v22, %v266_v21  ;;  %v643_v47 = vrot.slane %v1293_v37, 3  ;;  %v765_v48 = vld [vmem:[%s1359_s2 + $0x8] sm:$0xff]  ;;  %v1161_v49 = vld [vmem:[%s1358_s1 + $0xa0] sm:$0xff]   ;;  %v1163_v59 = vld [vmem:[%s1358_s1 + $0x98] sm:$0xff]  }
  0x17   : > { %1070 = vmatprep.subr.bf16.mxu1 %v1143_v8  ;;  %1060 = vmatprep.mubr.bf16.mxu0 %v267_v25  ;;  %v503_v41 = vshrl.u32 %v960_v36, 16  ;;  %v506_v42 = vshll.u32 %v960_v36, 16  ;;  %v513_v52 = vrot.slane %v511_v43, 2  ;;  %v516_v53 = vrot.slane %v514_v44, 3  ;;  %v1162_v54 = vld [vmem:[%s1358_s1 + $0xe0] sm:$0xff]   ;;  %v1164_v61 = vld [vmem:[%s1358_s1 + $0xd8] sm:$0xff]  }
  0x18   : > { %769 = vperm.xlu0 %1134, %v764_v40   ;;  %779 = vperm.xlu1 %1135, %v766_v45   ;;  %v642_v55 = vrot.slane %v986_v46, 3  ;;  %v1165_v62 = vld [vmem:[%s1358_s1 + $0x90] sm:$0xff]   ;;  %v1167_v0 = vld [vmem:[%s1358_s1 + $0x88] sm:$0xff]   ;;  %v1169_v2 = vld [vmem:[%s1358_s1 + $0x80] sm:$0xff]  }
  0x19   : > { %1051 = vmatpush3.bf16.msra.mxu0 %v1142_v7  ;;  %v505_v50 = vrot.slane %v503_v41, 2  ;;  %v508_v51 = vrot.slane %v506_v42, 3  ;;  %v517_v57 = vor.u32 %v516_v53, %v513_v52  ;;  %v1166_v63 = vld [vmem:[%s1358_s1 + $0xd0] sm:$0xff]   ;;  %v1168_v1 = vld [vmem:[%s1358_s1 + $0xc8] sm:$0xff]   ;;  %v1170_v3 = vld [vmem:[%s1358_s1 + $0xc0] sm:$0xff]  }
  0x1a   : > { %1071 = vmatpush3.bf16.msra.mxu1 %v1143_v8  ;;  %1052 = vmatprep.subr.bf16.mxu0 %v1144_v9  ;;  %v644_v58 = vsel %vm641_vm1, %v642_v55, %v643_v47 }
  0x1b   : > { %1072 = vmatprep.subr.bf16.mxu1 %v1145_v10  ;;  %v509_v56 = vor.u32 %v508_v51, %v505_v50 }
  0x1c   : > { %774 = vperm.xlu0 %1134, %v765_v48  }
  0x1d   : > { %1053 = vmatpush3.bf16.msra.mxu0 %v1144_v9  ;;  %v518_v60 = vsel %vm501_vm2, %v509_v56, %v517_v57 }
  0x1e   : > { %1073 = vmatpush3.bf16.msra.mxu1 %v1145_v10  ;;  %1054 = vmatprep.subr.bf16.mxu0 %v1146_v11 }
  0x1f   : > { %1074 = vmatprep.subr.bf16.mxu1 %v1147_v12 }
  0x21   : > { %1055 = vmatpush3.bf16.msra.mxu0 %v1146_v11 }
  0x22   : > { %1075 = vmatpush3.bf16.msra.mxu1 %v1147_v12  ;;  %1056 = vmatprep.subr.bf16.mxu0 %v1148_v15 }
  0x23   : > { %1076 = vmatprep.subr.bf16.mxu1 %v1149_v16 }
  0x25   : > { %1057 = vmatpush3.bf16.msra.mxu0 %v1148_v15 }
  0x26   : > { %1077 = vmatpush3.bf16.msra.mxu1 %v1149_v16  ;;  %1058 = vmatprep.subr.bf16.mxu0 %v1150_v23 }
  0x27   : > { %1078 = vmatprep.subr.bf16.mxu1 %v1151_v24 }
  0x29   : > { %1059 = vmatpush3.bf16.msra.mxu0 %v1150_v23 }
  0x2a   : > { %1079 = vmatpush3.bf16.msra.mxu1 %v1151_v24  ;;  %1084 = vmatprep.subr.bf16.mxu0 %v1155_v27 }
  0x2b   : > { %1104 = vmatprep.subr.bf16.mxu1 %v1156_v29 }
  0x2c   : > { %1061 = vmatmul.mubr.bf16.vlgmr.msra.gmra.mxu0 %v270_v30 }
  0x2d   : > { %1081 = vmatmul.mubr.bf16.vlgmr.msra.gmra.mxu1 %v1154_v28  ;;  %1085 = vmatpush3.bf16.msra.mxu0 %v1155_v27 }
  0x2e   : > { %1105 = vmatpush3.bf16.msra.mxu1 %v1156_v29  ;;  %1086 = vmatprep.subr.bf16.mxu0 %v1157_v31 }
  0x2f   : > { %1106 = vmatprep.subr.bf16.mxu1 %v1158_v32  ;;  %1100 = vmatprep.mubr.bf16.mxu0 %v518_v60 }
  0x30   : > { %1120 = vmatprep.mubr.bf16.mxu1 %v644_v58 }
  0x31   : > { %1087 = vmatpush3.bf16.msra.mxu0 %v1157_v31 }
  0x32   : > { %1107 = vmatpush3.bf16.msra.mxu1 %v1158_v32  ;;  %1088 = vmatprep.subr.bf16.mxu0 %v1159_v33 }
  0x33   : > { %1108 = vmatprep.subr.bf16.mxu1 %v1160_v38 }
  0x35   : > { %1089 = vmatpush3.bf16.msra.mxu0 %v1159_v33 }
  0x36   : > { %1109 = vmatpush3.bf16.msra.mxu1 %v1160_v38  ;;  %1090 = vmatprep.subr.bf16.mxu0 %v1161_v49 }
  0x37   : > { %1110 = vmatprep.subr.bf16.mxu1 %v1162_v54 }
  0x39   : > { %1091 = vmatpush3.bf16.msra.mxu0 %v1161_v49 }
  0x3a   : > { %1111 = vmatpush3.bf16.msra.mxu1 %v1162_v54  ;;  %1092 = vmatprep.subr.bf16.mxu0 %v1163_v59 }
  0x3b   : > { %1112 = vmatprep.subr.bf16.mxu1 %v1164_v61 }
  0x3d   : > { %1093 = vmatpush3.bf16.msra.mxu0 %v1163_v59 }
  0x3e   : > { %1113 = vmatpush3.bf16.msra.mxu1 %v1164_v61  ;;  %1094 = vmatprep.subr.bf16.mxu0 %v1165_v62 }
  0x3f   : > { %1114 = vmatprep.subr.bf16.mxu1 %v1166_v63 }
  0x41   : > { %1095 = vmatpush3.bf16.msra.mxu0 %v1165_v62 }
  0x42   : > { %1115 = vmatpush3.bf16.msra.mxu1 %v1166_v63  ;;  %1096 = vmatprep.subr.bf16.mxu0 %v1167_v0 }
  0x43   : > { %1116 = vmatprep.subr.bf16.mxu1 %v1168_v1 }
  0x45   : > { %1097 = vmatpush3.bf16.msra.mxu0 %v1167_v0 }
  0x46   : > { %1117 = vmatpush3.bf16.msra.mxu1 %v1168_v1  ;;  %1098 = vmatprep.subr.bf16.mxu0 %v1169_v2 }
  0x47   : > { %1118 = vmatprep.subr.bf16.mxu1 %v1170_v3 }
  0x49   : > { %1099 = vmatpush3.bf16.msra.mxu0 %v1169_v2 }
  0x4a   : > { %1119 = vmatpush3.bf16.msra.mxu1 %v1170_v3 }
  0x4c   : > { %1101 = vmatmul.mubr.bf16.vlgmr.msra.gmra.mxu0 %v517_v57 }
  0x4d   : > { %1121 = vmatmul.mubr.bf16.vlgmr.msra.gmra.mxu1 %v643_v47 }
  0x93   : > { %v770_v23 = vpop.permute.xlu0 %769  ;;  %v780_v29 = vpop.permute.xlu1 %779 }
  0x97   : > { %v775_v35 = vpop.permute.xlu0 %774 }
  0xec   : > { %v1062_v4 = vpop.f32.mrf.mxu0 }
  0xed   : > { %v1082_v5 = vpop.f32.mrf.mxu1 }
  0xee   : > { %v355_v6 = vpop.f32.mrf.mxu0  ;;  %v465_v11 = vadd.f32 %v1082_v5, %v1062_v4 }
  0xef   : > { %v456_v7 = vpop.f32.mrf.mxu1 }
  0xf0   : > { %v1063_v8 = vpop.f32.mrf.mxu0  ;;  %v457_v14 = vadd.f32 %v456_v7, %v355_v6 }
  0xf1   : > { %v1083_v9 = vpop.f32.mrf.mxu1 }
  0xf2   : > { %v358_v10 = vpop.f32.mrf.mxu0 }
  0xf3   : > { %v459_v12 = vpop.f32.mrf.mxu1 }
  0xf4   : > { %v460_v26 = vadd.f32 %v459_v12, %v358_v10 }
 0x10c   : > { %v1102_v13 = vpop.f32.mrf.mxu0 }
 0x10d   : > { %v619_v15 = vadd.f32 %v1102_v13, %v465_v11  ;;  %v1122_v16 = vpop.f32.mrf.mxu1 }
 0x10e   : > { %v603_v17 = vpop.f32.mrf.mxu0 }
 0x10f   : > { %v745_v18 = vadd.f32 %v1122_v16, %v619_v15  ;;  %v617_v19 = vadd.f32 %v603_v17, %v457_v14  ;;  %v729_v20 = vpop.f32.mrf.mxu1 }
 0x110   : > { %v1103_v21 = vpop.f32.mrf.mxu0 }
 0x111   : > { %v1003_v22 = vpack.c.bf16 %v745_v18, %v745_v18  ;;  %v743_v24 = vadd.f32 %v729_v20, %v617_v19  ;;  %v1123_v25 = vpop.f32.mrf.mxu1  ;;  %v784_v33 = vmul.f32 %v780_v29, %v745_v18 }
 0x112   : > { %v606_v27 = vpop.f32.mrf.mxu0 }
 0x113   : > { %763 = vst.msk [vmem:[%s204_s22 + $0x8] sm:$0x3] %vm762_vm3, %v1003_v22  ;;  %v1001_v28 = vpack.c.bf16 %v743_v24, %v743_v24  ;;  %v782_v30 = vmul.f32 %v770_v23, %v743_v24  ;;  %v618_v31 = vadd.f32 %v606_v27, %v460_v26  ;;  %v732_v32 = vpop.f32.mrf.mxu1  ;;  %v801_v40 = vmul.f32 %v784_v33, %v745_v18 }
 0x114   : > { %v789_v45 = vsel %vm759_vm4, %v784_v33, 0.0 }
 0x115   : > { %760 = vst.msk [vmem:[%s204_s22] sm:$0xf] %vm759_vm4, %v1001_v28  ;;  %v744_v34 = vadd.f32 %v732_v32, %v618_v31  ;;  %v799_v36 = vmul.f32 %v782_v30, %v743_v24  ;;  %v786_v39 = vsel %vm785_vm5, %v782_v30, 0.0  ;;  %v805_v49 = vsel %vm759_vm4, %v801_v40, 0.0 }
 0x117   : > { %v1002_v37 = vpack.c.bf16 %v744_v34, %v744_v34  ;;  %v783_v38 = vmul.f32 %v775_v35, %v744_v34  ;;  %v802_v44 = vsel %vm785_vm5, %v799_v36, 0.0 }
 0x119   : > { %761 = vst.msk [vmem:[%s204_s22 + $0x4] sm:$0xf] %vm759_vm4, %v1002_v37  ;;  %v787_v41 = vsel %vm785_vm5, %v783_v38, 0.0  ;;  %v800_v42 = vmul.f32 %v783_v38, %v744_v34 }
 0x11a   : > { %v788_v43 = vadd.f32 %v787_v41, %v786_v39 }
 0x11b   : > { %v803_v46 = vsel %vm785_vm5, %v800_v42, 0.0 }
 0x11c   : > { %v790_v47 = vadd.f32 %v789_v45, %v788_v43  ;;  %v804_v48 = vadd.f32 %v803_v46, %v802_v44 }
 0x11e   : > { %v791_v50 = vrot.slane %v790_v47, 4  ;;  %v806_v51 = vadd.f32 %v805_v49, %v804_v48 }
 0x120   : > { %v792_v52 = vadd.f32 %v791_v50, %v790_v47  ;;  %v807_v53 = vrot.slane %v806_v51, 4 }
 0x122   : > { %v793_v54 = vrot.slane %v792_v52, 2  ;;  %v808_v55 = vadd.f32 %v807_v53, %v806_v51 }
 0x124   : > { %v794_v56 = vadd.f32 %v793_v54, %v792_v52  ;;  %v809_v57 = vrot.slane %v808_v55, 2 }
 0x126   : > { %v795_v58 = vrot.slane %v794_v56, 1  ;;  %v810_v59 = vadd.f32 %v809_v57, %v808_v55 }
 0x128   : > { %v796_v60 = vadd.f32 %v795_v58, %v794_v56  ;;  %v811_v61 = vrot.slane %v810_v59, 1 }
 0x12a   : > { %798 = vst.msk [vmem:[%s208_s26] sm:$0x1] %vm797_vm6, %v796_v60  ;;  %v812_v62 = vadd.f32 %v811_v61, %v810_v59 }
 0x12c   : > { %813 = vst.msk [vmem:[%s208_s26 + $0x1] sm:$0x1] %vm797_vm6, %v812_v62 }
 0x12d PF: > { %s15_s15 = sadd.s32 1, %s1180_s15  }
 0x12e   : > { %p12_p4 = scmp.ge.s32.totalorder %s15_s15, 4  }
 0x130   :  { %14 = sbr.rel (!%p12_p4) target bundleno = 1 (0x1), region = 77 }

// kernel: cnn_forward.9
= control target key start
LH: loop header
LB: loop body
LE: loop exit
PB: predicated region body
PF: predicated region fallthrough
CT: control target
= control target key end

     0   :  { %v19_v0 = vlaneseq  ;;  %v220_v2 = vmov 1983009808   ;;  %vm181_vm0 = vcmask 1041408   ;;  %vm209_vm1 = vcmask 1024   ;;  %s253_s1 = inlined_call_operand.vmem [shape: bf16[1,1024], index: 1, kind: input, shape index: {}]   ;;  %s254_s0 = inlined_call_operand.vmem [shape: bf16[2,1024], index: 0, kind: input, shape index: {}]   ;;  %s255_s2 = inlined_call_operand.vmem [shape: f32[2,1], index: 2, kind: output, shape index: {}]  }
   0x1   :  { %v14_v1 = vld [vmem:[%s253_s1] sm:$0xff]  ;;  %v102_v3 = vunpack.c.l.s4 %v220_v2 }
   0x2   :  { %v15_v4 = vunpack.c.l.bf16 %v14_v1  ;;  %v20_v5 = vshrl.u32 %v19_v0, 7  ;;  %v16_v7 = vunpack.c.h.bf16 %v14_v1  ;;  %v11_v25 = vld [vmem:[%s254_s0] sm:$0xff] }
   0x3   :  { %v103_v6 = vunpack.c.0.s8 %v102_v3  ;;  %v12_v34 = vunpack.c.l.bf16 %v11_v25  ;;  %v13_v37 = vunpack.c.h.bf16 %v11_v25 }
   0x4   :  { %v21_v8 = vsub.s32 0, %v20_v5  ;;  %v25_v9 = vsub.s32 2, %v20_v5  ;;  %v29_v10 = vsub.s32 4, %v20_v5  ;;  %v33_v11 = vsub.s32 6, %v20_v5 }
   0x5   :  { %v106_v12 = vsub.s32 %v103_v6, %v20_v5 }
   0x6   :  { %v22_v13 = vrot.slane %v15_v4, %v21_v8  ;;  %v26_v14 = vrot.slane %v15_v4, %v25_v9  ;;  %v30_v15 = vrot.slane %v15_v4, %v29_v10  ;;  %v34_v16 = vrot.slane %v15_v4, %v33_v11 }
   0x7   :  { %v38_v17 = vrot.slane %v16_v7, %v21_v8  ;;  %v42_v18 = vrot.slane %v16_v7, %v25_v9  ;;  %v46_v19 = vrot.slane %v16_v7, %v29_v10  ;;  %v50_v20 = vrot.slane %v16_v7, %v33_v11 }
   0x8   :  { %v62_v21 = vrot.slane %v22_v13, %v21_v8  ;;  %v66_v22 = vrot.slane %v26_v14, %v21_v8  ;;  %v70_v23 = vrot.slane %v30_v15, %v21_v8  ;;  %v74_v24 = vrot.slane %v34_v16, %v21_v8 }
   0x9   :  { %v78_v26 = vrot.slane %v38_v17, %v21_v8  ;;  %v82_v27 = vrot.slane %v42_v18, %v21_v8  ;;  %v86_v28 = vrot.slane %v46_v19, %v21_v8  ;;  %v90_v29 = vrot.slane %v50_v20, %v21_v8 }
   0xa   :  { %v99_v30 = vcombine.low %v62_v21, %v66_v22  ;;  %v100_v31 = vcombine.low %v70_v23, %v74_v24 }
   0xb   :  { %v116_v32 = vcombine.low %v78_v26, %v82_v27  ;;  %v117_v33 = vcombine.low %v86_v28, %v90_v29 }
   0xc   :  { %v107_v35 = vrot.slane %v99_v30, %v106_v12  ;;  %v114_v36 = vrot.slane %v100_v31, %v106_v12 }
   0xd   :  { %v124_v38 = vrot.slane %v116_v32, %v106_v12  ;;  %v131_v39 = vrot.slane %v117_v33, %v106_v12 }
   0xe   :  { %v115_v40 = vcombine.low %v107_v35, %v114_v36 }
   0xf   :  { %v132_v41 = vcombine.low %v124_v38, %v131_v39 }
  0x10   :  { %v135_v42 = vmul.f32 %v115_v40, %v12_v34 }
  0x11   :  { %v136_v43 = vmul.f32 %v132_v41, %v13_v37 }
  0x12   :  { %v139_v44 = vcombine.high %v135_v42, %v135_v42  ;;  %v146_v45 = vrot.slane %v135_v42, %v106_v12 }
  0x13   :  { %v156_v46 = vcombine.high %v136_v43, %v136_v43  ;;  %v163_v49 = vrot.slane %v136_v43, %v106_v12 }
  0x14   :  { %v153_v47 = vrot.slane %v139_v44, %v106_v12  ;;  %v154_v48 = vcombine.high %v146_v45, %v146_v45  ;;  %v182_v50 = vsel %vm181_vm0, %v146_v45, 0.0 }
  0x15   :  { %v170_v55 = vrot.slane %v156_v46, %v106_v12  ;;  %v171_v56 = vcombine.high %v163_v49, %v163_v49  ;;  %v189_v59 = vsel %vm181_vm0, %v163_v49, 0.0 }
  0x16   :  { %v155_v51 = vcombine.high %v153_v47, %v153_v47  ;;  %v183_v52 = vsel %vm181_vm0, %v154_v48, 0.0  ;;  %v185_v53 = vsel %vm181_vm0, %v153_v47, 0.0 }
  0x17   :  { %v184_v54 = vadd.f32 %v183_v52, %v182_v50  ;;  %v172_v61 = vcombine.high %v170_v55, %v170_v55  ;;  %v191_v62 = vsel %vm181_vm0, %v171_v56, 0.0  ;;  %v193_v0 = vsel %vm181_vm0, %v170_v55, 0.0 }
  0x18   :  { %v187_v57 = vsel %vm181_vm0, %v155_v51, 0.0 }
  0x19   :  { %v186_v58 = vadd.f32 %v185_v53, %v184_v54  ;;  %v195_v2 = vsel %vm181_vm0, %v172_v61, 0.0 }
  0x1b   :  { %v188_v60 = vadd.f32 %v187_v57, %v186_v58 }
  0x1d   :  { %v190_v63 = vadd.f32 %v189_v59, %v188_v60 }
  0x1f   :  { %v192_v1 = vadd.f32 %v191_v62, %v190_v63 }
  0x21   :  { %v194_v3 = vadd.f32 %v193_v0, %v192_v1 }
  0x23   :  { %v196_v4 = vadd.f32 %v195_v2, %v194_v3 }
  0x25   :  { %197 = vadd.xlane.f32.xlu0 %v196_v4 }
  0xae   :  { %v198_v5 = vpop.xlane.xlu0 %197 }
  0xaf   :  { %v199_v6 = vand.u32 2147483647, %v198_v5  ;;  %vm206_vm2 = vcmp.ge.f32.partialorder %v198_v5, 0.0 }
  0xb1   :  { %v200_v7 = vsub.f32 0.0, %v199_v6 }
  0xb3   :  { %v201_v8 = vmul.f32 1.442695, %v200_v7 }
  0xb5   :  { %216 = vpow2.f32 %v201_v8 }
  0xc2   :  { %v217_v9 = vpop.eup %216 }
  0xc3   :  { %v203_v10 = vadd.f32 1.0, %v217_v9 }
  0xc5   :  { %218 = vrcp.f32 %v203_v10 }
  0xd2   :  { %v219_v11 = vpop.eup %218 }
  0xd3   :  { %v207_v12 = vsub.f32 1.0, %v219_v11 }
  0xd5   :  { %v208_v13 = vsel %vm206_vm2, %v219_v11, %v207_v12 }
  0xd6   :  { %210 = vst.msk [vmem:[%s255_s2] sm:$0x3] %vm209_vm1, %v208_v13 }

</bundles_post_ra>
